<compile_context>
chip_gen: v6e
topology: v6e:2x2x1
jax: 0.10.0
libtpu: 0.0.40
codegen_flags: <defaults>
</compile_context>

<pallas_src>
import functools

import jax
import jax.numpy as jnp
from jax import lax
from jax.experimental import pallas as pl
from jax.experimental.pallas import tpu as pltpu

_SUBLANE = 8
_LANE = 128


def _round_up(v, m):
    return (v + m - 1) // m * m


def _pick_channel_chunk(n_channels, hw, itemsize, budget_bytes=4 << 20):
    """Largest channel chunk (multiple of 8 dividing C) whose block fits the budget."""
    if n_channels * hw * itemsize <= budget_bytes or n_channels % _SUBLANE != 0:
        return n_channels
    chunk = (budget_bytes // (hw * itemsize)) // _SUBLANE * _SUBLANE
    chunk = max(_SUBLANE, min(chunk, n_channels))
    while chunk > _SUBLANE and n_channels % chunk != 0:
        chunk -= _SUBLANE
    return chunk if n_channels % chunk == 0 else n_channels


def _pick_batch_tile(batch, n_channels, hw, itemsize, chunk, budget_bytes=1 << 20):
    """Pack several small batch elements per grid step to amortize per-step cost."""
    if chunk != n_channels:          # channels already chunked -> one batch / step
        return 1
    per_batch = n_channels * hw * itemsize
    tile = 1
    for cand in range(1, min(batch, 8) + 1):
        if batch % cand == 0 and cand * per_batch <= budget_bytes:
            tile = cand
    return tile


def _cbam_spatial_kernel(x_ref, w_ref, out_ref, sum_ref, max_ref, pbuf_ref, *,
                         height, width, ksize, pad, n_channels, chunk,
                         batch_tile, row_off, col_off):
    cc = pl.program_id(1)            # channel-chunk index ("arbitrary" axis)

    # ---- channel pooling: one fused pass with running f32 sum and max ------
    @pl.when(cc == 0)
    def _init():
        sum_ref[...] = jnp.zeros_like(sum_ref)
        max_ref[...] = jnp.full(max_ref.shape, -jnp.inf, max_ref.dtype)

    def _accumulate(cstart, csize):
        # One read of each channel plane; both reductions share it.
        for b in range(batch_tile):
            blk = x_ref[b, pl.ds(cstart, csize), :].astype(jnp.float32)
            sum_ref[b, :] = sum_ref[b, :] + jnp.sum(blk, axis=0)
            max_ref[b, :] = jnp.maximum(max_ref[b, :], jnp.max(blk, axis=0))

    n_groups = chunk // _SUBLANE
    rem = chunk - n_groups * _SUBLANE
    if n_groups > 0:
        if n_groups <= 8:            # short, fixed trip count: unroll
            for g in range(n_groups):
                _accumulate(g * _SUBLANE, _SUBLANE)
        else:
            def _body(g, carry):
                _accumulate(pl.multiple_of(g * _SUBLANE, _SUBLANE), _SUBLANE)
                return carry
            lax.fori_loop(0, n_groups, _body, 0)
    if rem:
        _accumulate(n_groups * _SUBLANE, rem)

    # ---- last chunk: pad, k x k conv on the VPU, sigmoid, store ------------
    @pl.when(cc == pl.num_programs(1) - 1)
    def _epilogue():
        inv_c = jnp.float32(1.0 / n_channels)
        n_cols = pbuf_ref.shape[-1]
        # Small scratch (no 128-lane left pad): zeroing it is a few vreg
        # stores.  Borders stay zero across batch elements since only the
        # interior is rewritten below.
        pbuf_ref[...] = jnp.zeros_like(pbuf_ref)
        for b in range(batch_tile):
            # Relayout the flat pooled rows into the 2-D padded scratch
            # (H small row stores per plane; done once per output map).
            for i in range(height):
                src = pl.ds(i * width, width)
                dst = slice(col_off, col_off + width)
                pbuf_ref[0, row_off + i, dst] = sum_ref[b, src] * inv_c
                pbuf_ref[1, row_off + i, dst] = max_ref[b, src]

            # Cross-correlation (matches nn.Conv2d), no bias:
            #   y[i,j] = sum_{c,di,dj} w[c,di,dj] * pbuf[c, i+di, j+dj]
            # Inner loops use only sublane-offset row slabs read from the
            # scratch ref; the lane shift is hoisted to once per dj.
            acc = jnp.zeros((height, width), jnp.float32)
            for dj in range(ksize):
                part = jnp.zeros((height, n_cols), jnp.float32)
                for c in range(2):
                    for di in range(ksize):
                        wv = w_ref[(c * ksize + di) * ksize + dj]  # SMEM scalar
                        rows = pbuf_ref[c, row_off - pad + di:
                                        row_off - pad + di + height, :]
                        part = part + wv * rows
                off = col_off - pad + dj
                acc = acc + part[:, off:off + width]

            # Sigmoid.  (pl.reciprocal(..., approx=True) would push the divide
            # onto the otherwise-idle EUP slot at slightly lower precision.)
            y = 1.0 / (1.0 + jnp.exp(-acc))
            out_ref[b, 0] = y.astype(out_ref.dtype)


def cbam_spatial(x, weight, *, kernel_size=7, channel_chunk=None,
                 batch_tile=None):
    """Pallas implementation of CBAMSpatial.forward.

    Args:
      x:             [B, C, H, W] array.
      weight:        conv weight of shape [1, 2, k, k] (or [2, k, k]), no bias.
      kernel_size:   3 or 7 (padding = k // 2, as in the module).
      channel_chunk: optional chunk size along C (must divide C and be a
                     multiple of 8, or equal C).  Default: auto.
      batch_tile:    optional batch elements per grid step.  Default: auto.

    Returns:
      [B, 1, H, W] spatial attention map with the dtype of x.
    """
    assert kernel_size in (3, 7), "kernel size must be 3 or 7"
    B, C, H, W = x.shape
    pad = kernel_size // 2
    HW = H * W
    itemsize = x.dtype.itemsize

    w_flat = jnp.asarray(weight, jnp.float32).reshape(-1)
    assert w_flat.shape[0] == 2 * kernel_size * kernel_size

    # Channel chunking bounds the per-step (double-buffered) input block.
    chunk = channel_chunk if channel_chunk is not None else _pick_channel_chunk(
        C, HW, itemsize)
    assert chunk == C or (C % chunk == 0 and chunk % _SUBLANE == 0), (
        "channel_chunk must equal C or be a multiple of 8 dividing C")
    n_chunks = C // chunk

    tb = batch_tile if batch_tile is not None else _pick_batch_tile(
        B, C, HW, itemsize, chunk)
    assert B % tb == 0, "batch_tile must divide B"
    # TODO(synk): for B == 1 on v7x (2 TensorCores) a second "parallel" axis
    # over H row-tiles (with a (k-1)-row halo) would keep both cores busy.

    # Padded conv scratch: interior at (pad, pad), minor dims rounded to the
    # (8, 128) tile; no 128-lane left pad.
    rows_pad = _round_up(H + 2 * pad, _SUBLANE)
    cols_pad = _round_up(W + 2 * pad, _LANE)

    # Lane-dense flattening of the spatial dims (free: H, W trailing-contiguous).
    x_flat = x.reshape(B, C, HW)

    kernel = functools.partial(
        _cbam_spatial_kernel, height=H, width=W, ksize=kernel_size, pad=pad,
        n_channels=C, chunk=chunk, batch_tile=tb, row_off=pad, col_off=pad)

    # Explicit VMEM budget: double-buffered in/out blocks + scratch, with
    # headroom, clamped to [32 MiB, 64 MiB] (<= physical on v5e/v6e/v7x).
    in_block = tb * _round_up(chunk, _SUBLANE) * _round_up(HW, _LANE) * itemsize
    out_block = tb * _round_up(H, _SUBLANE) * _round_up(W, _LANE) * itemsize
    acc_bytes = 2 * _round_up(tb, _SUBLANE) * _round_up(HW, _LANE) * 4
    pbuf_bytes = 2 * rows_pad * cols_pad * 4
    need = 2 * (in_block + out_block) + acc_bytes + pbuf_bytes
    vmem_limit = int(min(max(2 * need, 32 << 20), 64 << 20))

    return pl.pallas_call(
        kernel,
        out_shape=jax.ShapeDtypeStruct((B, 1, H, W), x.dtype),
        grid=(B // tb, n_chunks),
        in_specs=[
            pl.BlockSpec((tb, chunk, HW), lambda b, c: (b, c, 0)),
            pl.BlockSpec(memory_space=pltpu.MemorySpace.SMEM),
        ],
        out_specs=pl.BlockSpec((tb, 1, H, W), lambda b, c: (b, 0, 0, 0)),
        scratch_shapes=[
            pltpu.VMEM((tb, HW), jnp.float32),                   # running sum
            pltpu.VMEM((tb, HW), jnp.float32),                   # running max
            pltpu.VMEM((2, rows_pad, cols_pad), jnp.float32),    # padded maps
        ],
        compiler_params=pltpu.CompilerParams(
            dimension_semantics=("parallel", "arbitrary"),
            vmem_limit_bytes=vmem_limit),
    )(x_flat, w_flat)


def _reference(x, weight, *, kernel_size=7):
    pad = kernel_size // 2
    avg = jnp.mean(x, axis=1, keepdims=True)
    mx = jnp.max(x, axis=1, keepdims=True)
    s = jnp.concatenate([avg, mx], axis=1).astype(jnp.float32)
    w = jnp.asarray(weight, jnp.float32).reshape(1, 2, kernel_size, kernel_size)
    y = jax.lax.conv_general_dilated(
        s, w, window_strides=(1, 1), padding=((pad, pad), (pad, pad)),
        dimension_numbers=("NCHW", "OIHW", "NCHW"),
        precision=jax.lax.Precision.HIGHEST)
    return jax.nn.sigmoid(y).astype(x.dtype)


if __name__ == "__main__":
    key = jax.random.PRNGKey(0)
    kx, kw7, kw3, kx2, kw2 = jax.random.split(key, 5)

    # Small CBAM-like shapes: batch=2, channels=4, spatial 16x16.
    B, C, H, W = 2, 4, 16, 16
    x = jax.random.normal(kx, (B, C, H, W), dtype=jnp.float32)

    # kernel_size = 7 (default CBAM configuration)
    w7 = 0.1 * jax.random.normal(kw7, (1, 2, 7, 7), dtype=jnp.float32)
    out7 = jax.block_until_ready(cbam_spatial(x, w7, kernel_size=7))
    ref7 = _reference(x, w7, kernel_size=7)
    assert out7.shape == (B, 1, H, W)
    assert jnp.allclose(out7, ref7, atol=1e-4, rtol=1e-4), \
        float(jnp.max(jnp.abs(out7 - ref7)))

    # kernel_size = 3 path.
    w3 = 0.1 * jax.random.normal(kw3, (1, 2, 3, 3), dtype=jnp.float32)
    out3 = jax.block_until_ready(cbam_spatial(x, w3, kernel_size=3))
    ref3 = _reference(x, w3, kernel_size=3)
    assert jnp.allclose(out3, ref3, atol=1e-4, rtol=1e-4), \
        float(jnp.max(jnp.abs(out3 - ref3)))

    # Multi channel-chunk path (running accumulators across "arbitrary" steps).
    x2 = jax.random.normal(kx2, (2, 32, 16, 16), dtype=jnp.float32)
    wc = 0.1 * jax.random.normal(kw2, (1, 2, 7, 7), dtype=jnp.float32)
    outc = jax.block_until_ready(
        cbam_spatial(x2, wc, kernel_size=7, channel_chunk=8))
    refc = _reference(x2, wc, kernel_size=7)
    assert jnp.allclose(outc, refc, atol=1e-4, rtol=1e-4), \
        float(jnp.max(jnp.abs(outc - refc)))

    print("KERNEL_OK")
</pallas_src>

<mosaic_0001>
module attributes {stable_mosaic.version = 11 : i64} {
  func.func @_cbam_spatial_kernel(%arg0: i32, %arg1: i32, %arg2: memref<2x4x256xf32, #tpu.memory_space<vmem>>, %arg3: memref<98xf32, #tpu.memory_space<smem>>, %arg4: memref<2x1x16x16xf32, #tpu.memory_space<vmem>>, %arg5: memref<2x256xf32, #tpu.memory_space<vmem>>, %arg6: memref<2x256xf32, #tpu.memory_space<vmem>>, %arg7: memref<2x24x128xf32, #tpu.memory_space<vmem>>) attributes {dimension_semantics = [#tpu.dimension_semantics<parallel>, #tpu.dimension_semantics<arbitrary>], iteration_bounds = array<i64: 1, 1>, scalar_prefetch = 0 : i64, scratch_operands = 3 : i64, tpu.core_type = #tpu.core_type<tc>, window_params = [{transform_indices = @transform_0, window_bounds = array<i64: 2, 4, 256>}, {transform_indices = @transform_1, window_bounds = array<i64: 98>}, {transform_indices = @transform_2, window_bounds = array<i64: 2, 1, 16, 16>}]} {
    %c0_i32 = arith.constant 0 : i32
    %0 = arith.cmpi eq, %arg1, %c0_i32 : i32
    %1 = arith.extui %0 : i1 to i32
    %c0_i32_0 = arith.constant 0 : i32
    %2 = arith.cmpi ne, %1, %c0_i32_0 : i32
    scf.if %2 {
      %cst_26 = arith.constant 0.000000e+00 : f32
      %38 = vector.broadcast %cst_26 : f32 to vector<2x256xf32>
      %c0_27 = arith.constant 0 : index
      %c0_28 = arith.constant 0 : index
      %39 = vector.load %arg5[%c0_27, %c0_28] : memref<2x256xf32, #tpu.memory_space<vmem>>, vector<2x256xf32>
      tpu.vector_store %arg5[%c0_27, %c0_28], %38 {strides = array<i32>} : memref<2x256xf32, #tpu.memory_space<vmem>>, vector<2x256xf32>,
      %cst_29 = arith.constant 0xFF800000 : f32
      %40 = vector.broadcast %cst_29 : f32 to vector<2x256xf32>
      %c0_30 = arith.constant 0 : index
      %c0_31 = arith.constant 0 : index
      %41 = vector.load %arg6[%c0_30, %c0_31] : memref<2x256xf32, #tpu.memory_space<vmem>>, vector<2x256xf32>
      tpu.vector_store %arg6[%c0_30, %c0_31], %40 {strides = array<i32>} : memref<2x256xf32, #tpu.memory_space<vmem>>, vector<2x256xf32>,
    } else {
    }
    %c0 = arith.constant 0 : index
    %c0_1 = arith.constant 0 : index
    %c0_2 = arith.constant 0 : index
    %3 = vector.load %arg2[%c0, %c0_1, %c0_2] : memref<2x4x256xf32, #tpu.memory_space<vmem>>, vector<1x4x256xf32>
    %4 = vector.shape_cast %3 : vector<1x4x256xf32> to vector<4x256xf32>
    %c0_3 = arith.constant 0 : index
    %c0_4 = arith.constant 0 : index
    %5 = vector.load %arg5[%c0_3, %c0_4] : memref<2x256xf32, #tpu.memory_space<vmem>>, vector<1x256xf32>
    %6 = vector.shape_cast %5 : vector<1x256xf32> to vector<256xf32>
    %cst = arith.constant dense<0.000000e+00> : vector<256xf32>
    %7 = vector.multi_reduction <add>, %4, %cst [0] : vector<4x256xf32> to vector<256xf32>
    %8 = arith.addf %6, %7 : vector<256xf32>
    %c0_5 = arith.constant 0 : index
    %c0_6 = arith.constant 0 : index
    %9 = vector.load %arg5[%c0_5, %c0_6] : memref<2x256xf32, #tpu.memory_space<vmem>>, vector<1x256xf32>
    %10 = vector.shape_cast %9 : vector<1x256xf32> to vector<256xf32>
    %11 = vector.shape_cast %8 : vector<256xf32> to vector<1x256xf32>
    tpu.vector_store %arg5[%c0_5, %c0_6], %11 {strides = array<i32>} : memref<2x256xf32, #tpu.memory_space<vmem>>, vector<1x256xf32>,
    %c0_7 = arith.constant 0 : index
    %c0_8 = arith.constant 0 : index
    %12 = vector.load %arg6[%c0_7, %c0_8] : memref<2x256xf32, #tpu.memory_space<vmem>>, vector<1x256xf32>
    %13 = vector.shape_cast %12 : vector<1x256xf32> to vector<256xf32>
    %cst_9 = arith.constant dense<0xFF800000> : vector<256xf32>
    %14 = vector.multi_reduction <maximumf>, %4, %cst_9 [0] : vector<4x256xf32> to vector<256xf32>
    %15 = arith.maximumf %13, %14 : vector<256xf32>
    %c0_10 = arith.constant 0 : index
    %c0_11 = arith.constant 0 : index
    %16 = vector.load %arg6[%c0_10, %c0_11] : memref<2x256xf32, #tpu.memory_space<vmem>>, vector<1x256xf32>
    %17 = vector.shape_cast %16 : vector<1x256xf32> to vector<256xf32>
    %18 = vector.shape_cast %15 : vector<256xf32> to vector<1x256xf32>
    tpu.vector_store %arg6[%c0_10, %c0_11], %18 {strides = array<i32>} : memref<2x256xf32, #tpu.memory_space<vmem>>, vector<1x256xf32>,
    %c1 = arith.constant 1 : index
    %c0_12 = arith.constant 0 : index
    %c0_13 = arith.constant 0 : index
    %19 = vector.load %arg2[%c1, %c0_12, %c0_13] : memref<2x4x256xf32, #tpu.memory_space<vmem>>, vector<1x4x256xf32>
    %20 = vector.shape_cast %19 : vector<1x4x256xf32> to vector<4x256xf32>
    %c1_14 = arith.constant 1 : index
    %c0_15 = arith.constant 0 : index
    %21 = vector.load %arg5[%c1_14, %c0_15] : memref<2x256xf32, #tpu.memory_space<vmem>>, vector<1x256xf32>
    %22 = vector.shape_cast %21 : vector<1x256xf32> to vector<256xf32>
    %cst_16 = arith.constant dense<0.000000e+00> : vector<256xf32>
    %23 = vector.multi_reduction <add>, %20, %cst_16 [0] : vector<4x256xf32> to vector<256xf32>
    %24 = arith.addf %22, %23 : vector<256xf32>
    %c1_17 = arith.constant 1 : index
    %c0_18 = arith.constant 0 : index
    %25 = vector.load %arg5[%c1_17, %c0_18] : memref<2x256xf32, #tpu.memory_space<vmem>>, vector<1x256xf32>
    %26 = vector.shape_cast %25 : vector<1x256xf32> to vector<256xf32>
    %27 = vector.shape_cast %24 : vector<256xf32> to vector<1x256xf32>
    tpu.vector_store %arg5[%c1_17, %c0_18], %27 {strides = array<i32>} : memref<2x256xf32, #tpu.memory_space<vmem>>, vector<1x256xf32>,
    %c1_19 = arith.constant 1 : index
    %c0_20 = arith.constant 0 : index
    %28 = vector.load %arg6[%c1_19, %c0_20] : memref<2x256xf32, #tpu.memory_space<vmem>>, vector<1x256xf32>
    %29 = vector.shape_cast %28 : vector<1x256xf32> to vector<256xf32>
    %cst_21 = arith.constant dense<0xFF800000> : vector<256xf32>
    %30 = vector.multi_reduction <maximumf>, %20, %cst_21 [0] : vector<4x256xf32> to vector<256xf32>
    %31 = arith.maximumf %29, %30 : vector<256xf32>
    %c1_22 = arith.constant 1 : index
    %c0_23 = arith.constant 0 : index
    %32 = vector.load %arg6[%c1_22, %c0_23] : memref<2x256xf32, #tpu.memory_space<vmem>>, vector<1x256xf32>
    %33 = vector.shape_cast %32 : vector<1x256xf32> to vector<256xf32>
    %34 = vector.shape_cast %31 : vector<256xf32> to vector<1x256xf32>
    tpu.vector_store %arg6[%c1_22, %c0_23], %34 {strides = array<i32>} : memref<2x256xf32, #tpu.memory_space<vmem>>, vector<1x256xf32>,
    %c0_i32_24 = arith.constant 0 : i32
    %35 = arith.cmpi eq, %arg1, %c0_i32_24 : i32
    %36 = arith.extui %35 : i1 to i32
    %c0_i32_25 = arith.constant 0 : i32
    %37 = arith.cmpi ne, %36, %c0_i32_25 : i32
    scf.if %37 {
      %cst_26 = arith.constant 0.000000e+00 : f32
      %38 = vector.broadcast %cst_26 : f32 to vector<2x24x128xf32>
      %c0_27 = arith.constant 0 : index
      %c0_28 = arith.constant 0 : index
      %c0_29 = arith.constant 0 : index
      %39 = vector.load %arg7[%c0_27, %c0_28, %c0_29] : memref<2x24x128xf32, #tpu.memory_space<vmem>>, vector<2x24x128xf32>
      tpu.vector_store %arg7[%c0_27, %c0_28, %c0_29], %38 {strides = array<i32>} : memref<2x24x128xf32, #tpu.memory_space<vmem>>, vector<2x24x128xf32>,
      %c0_30 = arith.constant 0 : index
      %c0_31 = arith.constant 0 : index
      %40 = vector.load %arg5[%c0_30, %c0_31] : memref<2x256xf32, #tpu.memory_space<vmem>>, vector<1x16xf32>
      %41 = vector.shape_cast %40 : vector<1x16xf32> to vector<16xf32>
      %cst_32 = arith.constant 2.500000e-01 : f32
      %42 = vector.broadcast %cst_32 : f32 to vector<16xf32>
      %43 = arith.mulf %41, %42 : vector<16xf32>
      %c0_33 = arith.constant 0 : index
      %c3 = arith.constant 3 : index
      %c3_34 = arith.constant 3 : index
      %44 = vector.load %arg7[%c0_33, %c3, %c3_34] : memref<2x24x128xf32, #tpu.memory_space<vmem>>, vector<1x1x16xf32>
      %45 = vector.shape_cast %44 : vector<1x1x16xf32> to vector<16xf32>
      %46 = vector.shape_cast %43 : vector<16xf32> to vector<1x1x16xf32>
      tpu.vector_store %arg7[%c0_33, %c3, %c3_34], %46 {strides = array<i32>} : memref<2x24x128xf32, #tpu.memory_space<vmem>>, vector<1x1x16xf32>,
      %c0_35 = arith.constant 0 : index
      %c0_36 = arith.constant 0 : index
      %47 = vector.load %arg6[%c0_35, %c0_36] : memref<2x256xf32, #tpu.memory_space<vmem>>, vector<1x16xf32>
      %48 = vector.shape_cast %47 : vector<1x16xf32> to vector<16xf32>
      %c1_37 = arith.constant 1 : index
      %c3_38 = arith.constant 3 : index
      %c3_39 = arith.constant 3 : index
      %49 = vector.load %arg7[%c1_37, %c3_38, %c3_39] : memref<2x24x128xf32, #tpu.memory_space<vmem>>, vector<1x1x16xf32>
      %50 = vector.shape_cast %49 : vector<1x1x16xf32> to vector<16xf32>
      %51 = vector.shape_cast %48 : vector<16xf32> to vector<1x1x16xf32>
      tpu.vector_store %arg7[%c1_37, %c3_38, %c3_39], %51 {strides = array<i32>} : memref<2x24x128xf32, #tpu.memory_space<vmem>>, vector<1x1x16xf32>,
      %c0_40 = arith.constant 0 : index
      %c16 = arith.constant 16 : index
      %52 = vector.load %arg5[%c0_40, %c16] : memref<2x256xf32, #tpu.memory_space<vmem>>, vector<1x16xf32>
      %53 = vector.shape_cast %52 : vector<1x16xf32> to vector<16xf32>
      %cst_41 = arith.constant 2.500000e-01 : f32
      %54 = vector.broadcast %cst_41 : f32 to vector<16xf32>
      %55 = arith.mulf %53, %54 : vector<16xf32>
      %c0_42 = arith.constant 0 : index
      %c4 = arith.constant 4 : index
      %c3_43 = arith.constant 3 : index
      %56 = vector.load %arg7[%c0_42, %c4, %c3_43] : memref<2x24x128xf32, #tpu.memory_space<vmem>>, vector<1x1x16xf32>
      %57 = vector.shape_cast %56 : vector<1x1x16xf32> to vector<16xf32>
      %58 = vector.shape_cast %55 : vector<16xf32> to vector<1x1x16xf32>
      tpu.vector_store %arg7[%c0_42, %c4, %c3_43], %58 {strides = array<i32>} : memref<2x24x128xf32, #tpu.memory_space<vmem>>, vector<1x1x16xf32>,
      %c0_44 = arith.constant 0 : index
      %c16_45 = arith.constant 16 : index
      %59 = vector.load %arg6[%c0_44, %c16_45] : memref<2x256xf32, #tpu.memory_space<vmem>>, vector<1x16xf32>
      %60 = vector.shape_cast %59 : vector<1x16xf32> to vector<16xf32>
      %c1_46 = arith.constant 1 : index
      %c4_47 = arith.constant 4 : index
      %c3_48 = arith.constant 3 : index
      %61 = vector.load %arg7[%c1_46, %c4_47, %c3_48] : memref<2x24x128xf32, #tpu.memory_space<vmem>>, vector<1x1x16xf32>
      %62 = vector.shape_cast %61 : vector<1x1x16xf32> to vector<16xf32>
      %63 = vector.shape_cast %60 : vector<16xf32> to vector<1x1x16xf32>
      tpu.vector_store %arg7[%c1_46, %c4_47, %c3_48], %63 {strides = array<i32>} : memref<2x24x128xf32, #tpu.memory_space<vmem>>, vector<1x1x16xf32>,
      %c0_49 = arith.constant 0 : index
      %c32 = arith.constant 32 : index
      %64 = vector.load %arg5[%c0_49, %c32] : memref<2x256xf32, #tpu.memory_space<vmem>>, vector<1x16xf32>
      %65 = vector.shape_cast %64 : vector<1x16xf32> to vector<16xf32>
      %cst_50 = arith.constant 2.500000e-01 : f32
      %66 = vector.broadcast %cst_50 : f32 to vector<16xf32>
      %67 = arith.mulf %65, %66 : vector<16xf32>
      %c0_51 = arith.constant 0 : index
      %c5 = arith.constant 5 : index
      %c3_52 = arith.constant 3 : index
      %68 = vector.load %arg7[%c0_51, %c5, %c3_52] : memref<2x24x128xf32, #tpu.memory_space<vmem>>, vector<1x1x16xf32>
      %69 = vector.shape_cast %68 : vector<1x1x16xf32> to vector<16xf32>
      %70 = vector.shape_cast %67 : vector<16xf32> to vector<1x1x16xf32>
      tpu.vector_store %arg7[%c0_51, %c5, %c3_52], %70 {strides = array<i32>} : memref<2x24x128xf32, #tpu.memory_space<vmem>>, vector<1x1x16xf32>,
      %c0_53 = arith.constant 0 : index
      %c32_54 = arith.constant 32 : index
      %71 = vector.load %arg6[%c0_53, %c32_54] : memref<2x256xf32, #tpu.memory_space<vmem>>, vector<1x16xf32>
      %72 = vector.shape_cast %71 : vector<1x16xf32> to vector<16xf32>
      %c1_55 = arith.constant 1 : index
      %c5_56 = arith.constant 5 : index
      %c3_57 = arith.constant 3 : index
      %73 = vector.load %arg7[%c1_55, %c5_56, %c3_57] : memref<2x24x128xf32, #tpu.memory_space<vmem>>, vector<1x1x16xf32>
      %74 = vector.shape_cast %73 : vector<1x1x16xf32> to vector<16xf32>
      %75 = vector.shape_cast %72 : vector<16xf32> to vector<1x1x16xf32>
      tpu.vector_store %arg7[%c1_55, %c5_56, %c3_57], %75 {strides = array<i32>} : memref<2x24x128xf32, #tpu.memory_space<vmem>>, vector<1x1x16xf32>,
      %c0_58 = arith.constant 0 : index
      %c48 = arith.constant 48 : index
      %76 = vector.load %arg5[%c0_58, %c48] : memref<2x256xf32, #tpu.memory_space<vmem>>, vector<1x16xf32>
      %77 = vector.shape_cast %76 : vector<1x16xf32> to vector<16xf32>
      %cst_59 = arith.constant 2.500000e-01 : f32
      %78 = vector.broadcast %cst_59 : f32 to vector<16xf32>
      %79 = arith.mulf %77, %78 : vector<16xf32>
      %c0_60 = arith.constant 0 : index
      %c6 = arith.constant 6 : index
      %c3_61 = arith.constant 3 : index
      %80 = vector.load %arg7[%c0_60, %c6, %c3_61] : memref<2x24x128xf32, #tpu.memory_space<vmem>>, vector<1x1x16xf32>
      %81 = vector.shape_cast %80 : vector<1x1x16xf32> to vector<16xf32>
      %82 = vector.shape_cast %79 : vector<16xf32> to vector<1x1x16xf32>
      tpu.vector_store %arg7[%c0_60, %c6, %c3_61], %82 {strides = array<i32>} : memref<2x24x128xf32, #tpu.memory_space<vmem>>, vector<1x1x16xf32>,
      %c0_62 = arith.constant 0 : index
      %c48_63 = arith.constant 48 : index
      %83 = vector.load %arg6[%c0_62, %c48_63] : memref<2x256xf32, #tpu.memory_space<vmem>>, vector<1x16xf32>
      %84 = vector.shape_cast %83 : vector<1x16xf32> to vector<16xf32>
      %c1_64 = arith.constant 1 : index
      %c6_65 = arith.constant 6 : index
      %c3_66 = arith.constant 3 : index
      %85 = vector.load %arg7[%c1_64, %c6_65, %c3_66] : memref<2x24x128xf32, #tpu.memory_space<vmem>>, vector<1x1x16xf32>
      %86 = vector.shape_cast %85 : vector<1x1x16xf32> to vector<16xf32>
      %87 = vector.shape_cast %84 : vector<16xf32> to vector<1x1x16xf32>
      tpu.vector_store %arg7[%c1_64, %c6_65, %c3_66], %87 {strides = array<i32>} : memref<2x24x128xf32, #tpu.memory_space<vmem>>, vector<1x1x16xf32>,
      %c0_67 = arith.constant 0 : index
      %c64 = arith.constant 64 : index
      %88 = vector.load %arg5[%c0_67, %c64] : memref<2x256xf32, #tpu.memory_space<vmem>>, vector<1x16xf32>
      %89 = vector.shape_cast %88 : vector<1x16xf32> to vector<16xf32>
      %cst_68 = arith.constant 2.500000e-01 : f32
      %90 = vector.broadcast %cst_68 : f32 to vector<16xf32>
      %91 = arith.mulf %89, %90 : vector<16xf32>
      %c0_69 = arith.constant 0 : index
      %c7 = arith.constant 7 : index
      %c3_70 = arith.constant 3 : index
      %92 = vector.load %arg7[%c0_69, %c7, %c3_70] : memref<2x24x128xf32, #tpu.memory_space<vmem>>, vector<1x1x16xf32>
      %93 = vector.shape_cast %92 : vector<1x1x16xf32> to vector<16xf32>
      %94 = vector.shape_cast %91 : vector<16xf32> to vector<1x1x16xf32>
      tpu.vector_store %arg7[%c0_69, %c7, %c3_70], %94 {strides = array<i32>} : memref<2x24x128xf32, #tpu.memory_space<vmem>>, vector<1x1x16xf32>,
      %c0_71 = arith.constant 0 : index
      %c64_72 = arith.constant 64 : index
      %95 = vector.load %arg6[%c0_71, %c64_72] : memref<2x256xf32, #tpu.memory_space<vmem>>, vector<1x16xf32>
      %96 = vector.shape_cast %95 : vector<1x16xf32> to vector<16xf32>
      %c1_73 = arith.constant 1 : index
      %c7_74 = arith.constant 7 : index
      %c3_75 = arith.constant 3 : index
      %97 = vector.load %arg7[%c1_73, %c7_74, %c3_75] : memref<2x24x128xf32, #tpu.memory_space<vmem>>, vector<1x1x16xf32>
      %98 = vector.shape_cast %97 : vector<1x1x16xf32> to vector<16xf32>
      %99 = vector.shape_cast %96 : vector<16xf32> to vector<1x1x16xf32>
      tpu.vector_store %arg7[%c1_73, %c7_74, %c3_75], %99 {strides = array<i32>} : memref<2x24x128xf32, #tpu.memory_space<vmem>>, vector<1x1x16xf32>,
      %c0_76 = arith.constant 0 : index
      %c80 = arith.constant 80 : index
      %100 = vector.load %arg5[%c0_76, %c80] : memref<2x256xf32, #tpu.memory_space<vmem>>, vector<1x16xf32>
      %101 = vector.shape_cast %100 : vector<1x16xf32> to vector<16xf32>
      %cst_77 = arith.constant 2.500000e-01 : f32
      %102 = vector.broadcast %cst_77 : f32 to vector<16xf32>
      %103 = arith.mulf %101, %102 : vector<16xf32>
      %c0_78 = arith.constant 0 : index
      %c8 = arith.constant 8 : index
      %c3_79 = arith.constant 3 : index
      %104 = vector.load %arg7[%c0_78, %c8, %c3_79] : memref<2x24x128xf32, #tpu.memory_space<vmem>>, vector<1x1x16xf32>
      %105 = vector.shape_cast %104 : vector<1x1x16xf32> to vector<16xf32>
      %106 = vector.shape_cast %103 : vector<16xf32> to vector<1x1x16xf32>
      tpu.vector_store %arg7[%c0_78, %c8, %c3_79], %106 {strides = array<i32>} : memref<2x24x128xf32, #tpu.memory_space<vmem>>, vector<1x1x16xf32>,
      %c0_80 = arith.constant 0 : index
      %c80_81 = arith.constant 80 : index
      %107 = vector.load %arg6[%c0_80, %c80_81] : memref<2x256xf32, #tpu.memory_space<vmem>>, vector<1x16xf32>
      %108 = vector.shape_cast %107 : vector<1x16xf32> to vector<16xf32>
      %c1_82 = arith.constant 1 : index
      %c8_83 = arith.constant 8 : index
      %c3_84 = arith.constant 3 : index
      %109 = vector.load %arg7[%c1_82, %c8_83, %c3_84] : memref<2x24x128xf32, #tpu.memory_space<vmem>>, vector<1x1x16xf32>
      %110 = vector.shape_cast %109 : vector<1x1x16xf32> to vector<16xf32>
      %111 = vector.shape_cast %108 : vector<16xf32> to vector<1x1x16xf32>
      tpu.vector_store %arg7[%c1_82, %c8_83, %c3_84], %111 {strides = array<i32>} : memref<2x24x128xf32, #tpu.memory_space<vmem>>, vector<1x1x16xf32>,
      %c0_85 = arith.constant 0 : index
      %c96 = arith.constant 96 : index
      %112 = vector.load %arg5[%c0_85, %c96] : memref<2x256xf32, #tpu.memory_space<vmem>>, vector<1x16xf32>
      %113 = vector.shape_cast %112 : vector<1x16xf32> to vector<16xf32>
      %cst_86 = arith.constant 2.500000e-01 : f32
      %114 = vector.broadcast %cst_86 : f32 to vector<16xf32>
      %115 = arith.mulf %113, %114 : vector<16xf32>
      %c0_87 = arith.constant 0 : index
      %c9 = arith.constant 9 : index
      %c3_88 = arith.constant 3 : index
      %116 = vector.load %arg7[%c0_87, %c9, %c3_88] : memref<2x24x128xf32, #tpu.memory_space<vmem>>, vector<1x1x16xf32>
      %117 = vector.shape_cast %116 : vector<1x1x16xf32> to vector<16xf32>
      %118 = vector.shape_cast %115 : vector<16xf32> to vector<1x1x16xf32>
      tpu.vector_store %arg7[%c0_87, %c9, %c3_88], %118 {strides = array<i32>} : memref<2x24x128xf32, #tpu.memory_space<vmem>>, vector<1x1x16xf32>,
      %c0_89 = arith.constant 0 : index
      %c96_90 = arith.constant 96 : index
      %119 = vector.load %arg6[%c0_89, %c96_90] : memref<2x256xf32, #tpu.memory_space<vmem>>, vector<1x16xf32>
      %120 = vector.shape_cast %119 : vector<1x16xf32> to vector<16xf32>
      %c1_91 = arith.constant 1 : index
      %c9_92 = arith.constant 9 : index
      %c3_93 = arith.constant 3 : index
      %121 = vector.load %arg7[%c1_91, %c9_92, %c3_93] : memref<2x24x128xf32, #tpu.memory_space<vmem>>, vector<1x1x16xf32>
      %122 = vector.shape_cast %121 : vector<1x1x16xf32> to vector<16xf32>
      %123 = vector.shape_cast %120 : vector<16xf32> to vector<1x1x16xf32>
      tpu.vector_store %arg7[%c1_91, %c9_92, %c3_93], %123 {strides = array<i32>} : memref<2x24x128xf32, #tpu.memory_space<vmem>>, vector<1x1x16xf32>,
      %c0_94 = arith.constant 0 : index
      %c112 = arith.constant 112 : index
      %124 = vector.load %arg5[%c0_94, %c112] : memref<2x256xf32, #tpu.memory_space<vmem>>, vector<1x16xf32>
      %125 = vector.shape_cast %124 : vector<1x16xf32> to vector<16xf32>
      %cst_95 = arith.constant 2.500000e-01 : f32
      %126 = vector.broadcast %cst_95 : f32 to vector<16xf32>
      %127 = arith.mulf %125, %126 : vector<16xf32>
      %c0_96 = arith.constant 0 : index
      %c10 = arith.constant 10 : index
      %c3_97 = arith.constant 3 : index
      %128 = vector.load %arg7[%c0_96, %c10, %c3_97] : memref<2x24x128xf32, #tpu.memory_space<vmem>>, vector<1x1x16xf32>
      %129 = vector.shape_cast %128 : vector<1x1x16xf32> to vector<16xf32>
      %130 = vector.shape_cast %127 : vector<16xf32> to vector<1x1x16xf32>
      tpu.vector_store %arg7[%c0_96, %c10, %c3_97], %130 {strides = array<i32>} : memref<2x24x128xf32, #tpu.memory_space<vmem>>, vector<1x1x16xf32>,
      %c0_98 = arith.constant 0 : index
      %c112_99 = arith.constant 112 : index
      %131 = vector.load %arg6[%c0_98, %c112_99] : memref<2x256xf32, #tpu.memory_space<vmem>>, vector<1x16xf32>
      %132 = vector.shape_cast %131 : vector<1x16xf32> to vector<16xf32>
      %c1_100 = arith.constant 1 : index
      %c10_101 = arith.constant 10 : index
      %c3_102 = arith.constant 3 : index
      %133 = vector.load %arg7[%c1_100, %c10_101, %c3_102] : memref<2x24x128xf32, #tpu.memory_space<vmem>>, vector<1x1x16xf32>
      %134 = vector.shape_cast %133 : vector<1x1x16xf32> to vector<16xf32>
      %135 = vector.shape_cast %132 : vector<16xf32> to vector<1x1x16xf32>
      tpu.vector_store %arg7[%c1_100, %c10_101, %c3_102], %135 {strides = array<i32>} : memref<2x24x128xf32, #tpu.memory_space<vmem>>, vector<1x1x16xf32>,
      %c0_103 = arith.constant 0 : index
      %c128 = arith.constant 128 : index
      %136 = vector.load %arg5[%c0_103, %c128] : memref<2x256xf32, #tpu.memory_space<vmem>>, vector<1x16xf32>
      %137 = vector.shape_cast %136 : vector<1x16xf32> to vector<16xf32>
      %cst_104 = arith.constant 2.500000e-01 : f32
      %138 = vector.broadcast %cst_104 : f32 to vector<16xf32>
      %139 = arith.mulf %137, %138 : vector<16xf32>
      %c0_105 = arith.constant 0 : index
      %c11 = arith.constant 11 : index
      %c3_106 = arith.constant 3 : index
      %140 = vector.load %arg7[%c0_105, %c11, %c3_106] : memref<2x24x128xf32, #tpu.memory_space<vmem>>, vector<1x1x16xf32>
      %141 = vector.shape_cast %140 : vector<1x1x16xf32> to vector<16xf32>
      %142 = vector.shape_cast %139 : vector<16xf32> to vector<1x1x16xf32>
      tpu.vector_store %arg7[%c0_105, %c11, %c3_106], %142 {strides = array<i32>} : memref<2x24x128xf32, #tpu.memory_space<vmem>>, vector<1x1x16xf32>,
      %c0_107 = arith.constant 0 : index
      %c128_108 = arith.constant 128 : index
      %143 = vector.load %arg6[%c0_107, %c128_108] : memref<2x256xf32, #tpu.memory_space<vmem>>, vector<1x16xf32>
      %144 = vector.shape_cast %143 : vector<1x16xf32> to vector<16xf32>
      %c1_109 = arith.constant 1 : index
      %c11_110 = arith.constant 11 : index
      %c3_111 = arith.constant 3 : index
      %145 = vector.load %arg7[%c1_109, %c11_110, %c3_111] : memref<2x24x128xf32, #tpu.memory_space<vmem>>, vector<1x1x16xf32>
      %146 = vector.shape_cast %145 : vector<1x1x16xf32> to vector<16xf32>
      %147 = vector.shape_cast %144 : vector<16xf32> to vector<1x1x16xf32>
      tpu.vector_store %arg7[%c1_109, %c11_110, %c3_111], %147 {strides = array<i32>} : memref<2x24x128xf32, #tpu.memory_space<vmem>>, vector<1x1x16xf32>,
      %c0_112 = arith.constant 0 : index
      %c144 = arith.constant 144 : index
      %148 = vector.load %arg5[%c0_112, %c144] : memref<2x256xf32, #tpu.memory_space<vmem>>, vector<1x16xf32>
      %149 = vector.shape_cast %148 : vector<1x16xf32> to vector<16xf32>
      %cst_113 = arith.constant 2.500000e-01 : f32
      %150 = vector.broadcast %cst_113 : f32 to vector<16xf32>
      %151 = arith.mulf %149, %150 : vector<16xf32>
      %c0_114 = arith.constant 0 : index
      %c12 = arith.constant 12 : index
      %c3_115 = arith.constant 3 : index
      %152 = vector.load %arg7[%c0_114, %c12, %c3_115] : memref<2x24x128xf32, #tpu.memory_space<vmem>>, vector<1x1x16xf32>
      %153 = vector.shape_cast %152 : vector<1x1x16xf32> to vector<16xf32>
      %154 = vector.shape_cast %151 : vector<16xf32> to vector<1x1x16xf32>
      tpu.vector_store %arg7[%c0_114, %c12, %c3_115], %154 {strides = array<i32>} : memref<2x24x128xf32, #tpu.memory_space<vmem>>, vector<1x1x16xf32>,
      %c0_116 = arith.constant 0 : index
      %c144_117 = arith.constant 144 : index
      %155 = vector.load %arg6[%c0_116, %c144_117] : memref<2x256xf32, #tpu.memory_space<vmem>>, vector<1x16xf32>
      %156 = vector.shape_cast %155 : vector<1x16xf32> to vector<16xf32>
      %c1_118 = arith.constant 1 : index
      %c12_119 = arith.constant 12 : index
      %c3_120 = arith.constant 3 : index
      %157 = vector.load %arg7[%c1_118, %c12_119, %c3_120] : memref<2x24x128xf32, #tpu.memory_space<vmem>>, vector<1x1x16xf32>
      %158 = vector.shape_cast %157 : vector<1x1x16xf32> to vector<16xf32>
      %159 = vector.shape_cast %156 : vector<16xf32> to vector<1x1x16xf32>
      tpu.vector_store %arg7[%c1_118, %c12_119, %c3_120], %159 {strides = array<i32>} : memref<2x24x128xf32, #tpu.memory_space<vmem>>, vector<1x1x16xf32>,
      %c0_121 = arith.constant 0 : index
      %c160 = arith.constant 160 : index
      %160 = vector.load %arg5[%c0_121, %c160] : memref<2x256xf32, #tpu.memory_space<vmem>>, vector<1x16xf32>
      %161 = vector.shape_cast %160 : vector<1x16xf32> to vector<16xf32>
      %cst_122 = arith.constant 2.500000e-01 : f32
      %162 = vector.broadcast %cst_122 : f32 to vector<16xf32>
      %163 = arith.mulf %161, %162 : vector<16xf32>
      %c0_123 = arith.constant 0 : index
      %c13 = arith.constant 13 : index
      %c3_124 = arith.constant 3 : index
      %164 = vector.load %arg7[%c0_123, %c13, %c3_124] : memref<2x24x128xf32, #tpu.memory_space<vmem>>, vector<1x1x16xf32>
      %165 = vector.shape_cast %164 : vector<1x1x16xf32> to vector<16xf32>
      %166 = vector.shape_cast %163 : vector<16xf32> to vector<1x1x16xf32>
      tpu.vector_store %arg7[%c0_123, %c13, %c3_124], %166 {strides = array<i32>} : memref<2x24x128xf32, #tpu.memory_space<vmem>>, vector<1x1x16xf32>,
      %c0_125 = arith.constant 0 : index
      %c160_126 = arith.constant 160 : index
      %167 = vector.load %arg6[%c0_125, %c160_126] : memref<2x256xf32, #tpu.memory_space<vmem>>, vector<1x16xf32>
      %168 = vector.shape_cast %167 : vector<1x16xf32> to vector<16xf32>
      %c1_127 = arith.constant 1 : index
      %c13_128 = arith.constant 13 : index
      %c3_129 = arith.constant 3 : index
      %169 = vector.load %arg7[%c1_127, %c13_128, %c3_129] : memref<2x24x128xf32, #tpu.memory_space<vmem>>, vector<1x1x16xf32>
      %170 = vector.shape_cast %169 : vector<1x1x16xf32> to vector<16xf32>
      %171 = vector.shape_cast %168 : vector<16xf32> to vector<1x1x16xf32>
      tpu.vector_store %arg7[%c1_127, %c13_128, %c3_129], %171 {strides = array<i32>} : memref<2x24x128xf32, #tpu.memory_space<vmem>>, vector<1x1x16xf32>,
      %c0_130 = arith.constant 0 : index
      %c176 = arith.constant 176 : index
      %172 = vector.load %arg5[%c0_130, %c176] : memref<2x256xf32, #tpu.memory_space<vmem>>, vector<1x16xf32>
      %173 = vector.shape_cast %172 : vector<1x16xf32> to vector<16xf32>
      %cst_131 = arith.constant 2.500000e-01 : f32
      %174 = vector.broadcast %cst_131 : f32 to vector<16xf32>
      %175 = arith.mulf %173, %174 : vector<16xf32>
      %c0_132 = arith.constant 0 : index
      %c14 = arith.constant 14 : index
      %c3_133 = arith.constant 3 : index
      %176 = vector.load %arg7[%c0_132, %c14, %c3_133] : memref<2x24x128xf32, #tpu.memory_space<vmem>>, vector<1x1x16xf32>
      %177 = vector.shape_cast %176 : vector<1x1x16xf32> to vector<16xf32>
      %178 = vector.shape_cast %175 : vector<16xf32> to vector<1x1x16xf32>
      tpu.vector_store %arg7[%c0_132, %c14, %c3_133], %178 {strides = array<i32>} : memref<2x24x128xf32, #tpu.memory_space<vmem>>, vector<1x1x16xf32>,
      %c0_134 = arith.constant 0 : index
      %c176_135 = arith.constant 176 : index
      %179 = vector.load %arg6[%c0_134, %c176_135] : memref<2x256xf32, #tpu.memory_space<vmem>>, vector<1x16xf32>
      %180 = vector.shape_cast %179 : vector<1x16xf32> to vector<16xf32>
      %c1_136 = arith.constant 1 : index
      %c14_137 = arith.constant 14 : index
      %c3_138 = arith.constant 3 : index
      %181 = vector.load %arg7[%c1_136, %c14_137, %c3_138] : memref<2x24x128xf32, #tpu.memory_space<vmem>>, vector<1x1x16xf32>
      %182 = vector.shape_cast %181 : vector<1x1x16xf32> to vector<16xf32>
      %183 = vector.shape_cast %180 : vector<16xf32> to vector<1x1x16xf32>
      tpu.vector_store %arg7[%c1_136, %c14_137, %c3_138], %183 {strides = array<i32>} : memref<2x24x128xf32, #tpu.memory_space<vmem>>, vector<1x1x16xf32>,
      %c0_139 = arith.constant 0 : index
      %c192 = arith.constant 192 : index
      %184 = vector.load %arg5[%c0_139, %c192] : memref<2x256xf32, #tpu.memory_space<vmem>>, vector<1x16xf32>
      %185 = vector.shape_cast %184 : vector<1x16xf32> to vector<16xf32>
      %cst_140 = arith.constant 2.500000e-01 : f32
      %186 = vector.broadcast %cst_140 : f32 to vector<16xf32>
      %187 = arith.mulf %185, %186 : vector<16xf32>
      %c0_141 = arith.constant 0 : index
      %c15 = arith.constant 15 : index
      %c3_142 = arith.constant 3 : index
      %188 = vector.load %arg7[%c0_141, %c15, %c3_142] : memref<2x24x128xf32, #tpu.memory_space<vmem>>, vector<1x1x16xf32>
      %189 = vector.shape_cast %188 : vector<1x1x16xf32> to vector<16xf32>
      %190 = vector.shape_cast %187 : vector<16xf32> to vector<1x1x16xf32>
      tpu.vector_store %arg7[%c0_141, %c15, %c3_142], %190 {strides = array<i32>} : memref<2x24x128xf32, #tpu.memory_space<vmem>>, vector<1x1x16xf32>,
      %c0_143 = arith.constant 0 : index
      %c192_144 = arith.constant 192 : index
      %191 = vector.load %arg6[%c0_143, %c192_144] : memref<2x256xf32, #tpu.memory_space<vmem>>, vector<1x16xf32>
      %192 = vector.shape_cast %191 : vector<1x16xf32> to vector<16xf32>
      %c1_145 = arith.constant 1 : index
      %c15_146 = arith.constant 15 : index
      %c3_147 = arith.constant 3 : index
      %193 = vector.load %arg7[%c1_145, %c15_146, %c3_147] : memref<2x24x128xf32, #tpu.memory_space<vmem>>, vector<1x1x16xf32>
      %194 = vector.shape_cast %193 : vector<1x1x16xf32> to vector<16xf32>
      %195 = vector.shape_cast %192 : vector<16xf32> to vector<1x1x16xf32>
      tpu.vector_store %arg7[%c1_145, %c15_146, %c3_147], %195 {strides = array<i32>} : memref<2x24x128xf32, #tpu.memory_space<vmem>>, vector<1x1x16xf32>,
      %c0_148 = arith.constant 0 : index
      %c208 = arith.constant 208 : index
      %196 = vector.load %arg5[%c0_148, %c208] : memref<2x256xf32, #tpu.memory_space<vmem>>, vector<1x16xf32>
      %197 = vector.shape_cast %196 : vector<1x16xf32> to vector<16xf32>
      %cst_149 = arith.constant 2.500000e-01 : f32
      %198 = vector.broadcast %cst_149 : f32 to vector<16xf32>
      %199 = arith.mulf %197, %198 : vector<16xf32>
      %c0_150 = arith.constant 0 : index
      %c16_151 = arith.constant 16 : index
      %c3_152 = arith.constant 3 : index
      %200 = vector.load %arg7[%c0_150, %c16_151, %c3_152] : memref<2x24x128xf32, #tpu.memory_space<vmem>>, vector<1x1x16xf32>
      %201 = vector.shape_cast %200 : vector<1x1x16xf32> to vector<16xf32>
      %202 = vector.shape_cast %199 : vector<16xf32> to vector<1x1x16xf32>
      tpu.vector_store %arg7[%c0_150, %c16_151, %c3_152], %202 {strides = array<i32>} : memref<2x24x128xf32, #tpu.memory_space<vmem>>, vector<1x1x16xf32>,
      %c0_153 = arith.constant 0 : index
      %c208_154 = arith.constant 208 : index
      %203 = vector.load %arg6[%c0_153, %c208_154] : memref<2x256xf32, #tpu.memory_space<vmem>>, vector<1x16xf32>
      %204 = vector.shape_cast %203 : vector<1x16xf32> to vector<16xf32>
      %c1_155 = arith.constant 1 : index
      %c16_156 = arith.constant 16 : index
      %c3_157 = arith.constant 3 : index
      %205 = vector.load %arg7[%c1_155, %c16_156, %c3_157] : memref<2x24x128xf32, #tpu.memory_space<vmem>>, vector<1x1x16xf32>
      %206 = vector.shape_cast %205 : vector<1x1x16xf32> to vector<16xf32>
      %207 = vector.shape_cast %204 : vector<16xf32> to vector<1x1x16xf32>
      tpu.vector_store %arg7[%c1_155, %c16_156, %c3_157], %207 {strides = array<i32>} : memref<2x24x128xf32, #tpu.memory_space<vmem>>, vector<1x1x16xf32>,
      %c0_158 = arith.constant 0 : index
      %c224 = arith.constant 224 : index
      %208 = vector.load %arg5[%c0_158, %c224] : memref<2x256xf32, #tpu.memory_space<vmem>>, vector<1x16xf32>
      %209 = vector.shape_cast %208 : vector<1x16xf32> to vector<16xf32>
      %cst_159 = arith.constant 2.500000e-01 : f32
      %210 = vector.broadcast %cst_159 : f32 to vector<16xf32>
      %211 = arith.mulf %209, %210 : vector<16xf32>
      %c0_160 = arith.constant 0 : index
      %c17 = arith.constant 17 : index
      %c3_161 = arith.constant 3 : index
      %212 = vector.load %arg7[%c0_160, %c17, %c3_161] : memref<2x24x128xf32, #tpu.memory_space<vmem>>, vector<1x1x16xf32>
      %213 = vector.shape_cast %212 : vector<1x1x16xf32> to vector<16xf32>
      %214 = vector.shape_cast %211 : vector<16xf32> to vector<1x1x16xf32>
      tpu.vector_store %arg7[%c0_160, %c17, %c3_161], %214 {strides = array<i32>} : memref<2x24x128xf32, #tpu.memory_space<vmem>>, vector<1x1x16xf32>,
      %c0_162 = arith.constant 0 : index
      %c224_163 = arith.constant 224 : index
      %215 = vector.load %arg6[%c0_162, %c224_163] : memref<2x256xf32, #tpu.memory_space<vmem>>, vector<1x16xf32>
      %216 = vector.shape_cast %215 : vector<1x16xf32> to vector<16xf32>
      %c1_164 = arith.constant 1 : index
      %c17_165 = arith.constant 17 : index
      %c3_166 = arith.constant 3 : index
      %217 = vector.load %arg7[%c1_164, %c17_165, %c3_166] : memref<2x24x128xf32, #tpu.memory_space<vmem>>, vector<1x1x16xf32>
      %218 = vector.shape_cast %217 : vector<1x1x16xf32> to vector<16xf32>
      %219 = vector.shape_cast %216 : vector<16xf32> to vector<1x1x16xf32>
      tpu.vector_store %arg7[%c1_164, %c17_165, %c3_166], %219 {strides = array<i32>} : memref<2x24x128xf32, #tpu.memory_space<vmem>>, vector<1x1x16xf32>,
      %c0_167 = arith.constant 0 : index
      %c240 = arith.constant 240 : index
      %220 = vector.load %arg5[%c0_167, %c240] : memref<2x256xf32, #tpu.memory_space<vmem>>, vector<1x16xf32>
      %221 = vector.shape_cast %220 : vector<1x16xf32> to vector<16xf32>
      %cst_168 = arith.constant 2.500000e-01 : f32
      %222 = vector.broadcast %cst_168 : f32 to vector<16xf32>
      %223 = arith.mulf %221, %222 : vector<16xf32>
      %c0_169 = arith.constant 0 : index
      %c18 = arith.constant 18 : index
      %c3_170 = arith.constant 3 : index
      %224 = vector.load %arg7[%c0_169, %c18, %c3_170] : memref<2x24x128xf32, #tpu.memory_space<vmem>>, vector<1x1x16xf32>
      %225 = vector.shape_cast %224 : vector<1x1x16xf32> to vector<16xf32>
      %226 = vector.shape_cast %223 : vector<16xf32> to vector<1x1x16xf32>
      tpu.vector_store %arg7[%c0_169, %c18, %c3_170], %226 {strides = array<i32>} : memref<2x24x128xf32, #tpu.memory_space<vmem>>, vector<1x1x16xf32>,
      %c0_171 = arith.constant 0 : index
      %c240_172 = arith.constant 240 : index
      %227 = vector.load %arg6[%c0_171, %c240_172] : memref<2x256xf32, #tpu.memory_space<vmem>>, vector<1x16xf32>
      %228 = vector.shape_cast %227 : vector<1x16xf32> to vector<16xf32>
      %c1_173 = arith.constant 1 : index
      %c18_174 = arith.constant 18 : index
      %c3_175 = arith.constant 3 : index
      %229 = vector.load %arg7[%c1_173, %c18_174, %c3_175] : memref<2x24x128xf32, #tpu.memory_space<vmem>>, vector<1x1x16xf32>
      %230 = vector.shape_cast %229 : vector<1x1x16xf32> to vector<16xf32>
      %231 = vector.shape_cast %228 : vector<16xf32> to vector<1x1x16xf32>
      tpu.vector_store %arg7[%c1_173, %c18_174, %c3_175], %231 {strides = array<i32>} : memref<2x24x128xf32, #tpu.memory_space<vmem>>, vector<1x1x16xf32>,
      %cst_176 = arith.constant 0.000000e+00 : f32
      %232 = vector.broadcast %cst_176 : f32 to vector<16x16xf32>
      %cst_177 = arith.constant 0.000000e+00 : f32
      %233 = vector.broadcast %cst_177 : f32 to vector<16x128xf32>
      %c0_178 = arith.constant 0 : index
      %234 = memref.load %arg3[%c0_178] : memref<98xf32, #tpu.memory_space<smem>>
      %c0_179 = arith.constant 0 : index
      %c0_180 = arith.constant 0 : index
      %c0_181 = arith.constant 0 : index
      %235 = vector.load %arg7[%c0_179, %c0_180, %c0_181] : memref<2x24x128xf32, #tpu.memory_space<vmem>>, vector<1x16x128xf32>
      %236 = vector.shape_cast %235 : vector<1x16x128xf32> to vector<16x128xf32>
      %237 = vector.broadcast %234 : f32 to vector<16x128xf32>
      %238 = arith.mulf %237, %236 : vector<16x128xf32>
      %239 = arith.addf %233, %238 : vector<16x128xf32>
      %c7_182 = arith.constant 7 : index
      %240 = memref.load %arg3[%c7_182] : memref<98xf32, #tpu.memory_space<smem>>
      %c0_183 = arith.constant 0 : index
      %c1_184 = arith.constant 1 : index
      %c0_185 = arith.constant 0 : index
      %241 = vector.load %arg7[%c0_183, %c1_184, %c0_185] : memref<2x24x128xf32, #tpu.memory_space<vmem>>, vector<1x16x128xf32>
      %242 = vector.shape_cast %241 : vector<1x16x128xf32> to vector<16x128xf32>
      %243 = vector.broadcast %240 : f32 to vector<16x128xf32>
      %244 = arith.mulf %243, %242 : vector<16x128xf32>
      %245 = arith.addf %239, %244 : vector<16x128xf32>
      %c14_186 = arith.constant 14 : index
      %246 = memref.load %arg3[%c14_186] : memref<98xf32, #tpu.memory_space<smem>>
      %c0_187 = arith.constant 0 : index
      %c2 = arith.constant 2 : index
      %c0_188 = arith.constant 0 : index
      %247 = vector.load %arg7[%c0_187, %c2, %c0_188] : memref<2x24x128xf32, #tpu.memory_space<vmem>>, vector<1x16x128xf32>
      %248 = vector.shape_cast %247 : vector<1x16x128xf32> to vector<16x128xf32>
      %249 = vector.broadcast %246 : f32 to vector<16x128xf32>
      %250 = arith.mulf %249, %248 : vector<16x128xf32>
      %251 = arith.addf %245, %250 : vector<16x128xf32>
      %c21 = arith.constant 21 : index
      %252 = memref.load %arg3[%c21] : memref<98xf32, #tpu.memory_space<smem>>
      %c0_189 = arith.constant 0 : index
      %c3_190 = arith.constant 3 : index
      %c0_191 = arith.constant 0 : index
      %253 = vector.load %arg7[%c0_189, %c3_190, %c0_191] : memref<2x24x128xf32, #tpu.memory_space<vmem>>, vector<1x16x128xf32>
      %254 = vector.shape_cast %253 : vector<1x16x128xf32> to vector<16x128xf32>
      %255 = vector.broadcast %252 : f32 to vector<16x128xf32>
      %256 = arith.mulf %255, %254 : vector<16x128xf32>
      %257 = arith.addf %251, %256 : vector<16x128xf32>
      %c28 = arith.constant 28 : index
      %258 = memref.load %arg3[%c28] : memref<98xf32, #tpu.memory_space<smem>>
      %c0_192 = arith.constant 0 : index
      %c4_193 = arith.constant 4 : index
      %c0_194 = arith.constant 0 : index
      %259 = vector.load %arg7[%c0_192, %c4_193, %c0_194] : memref<2x24x128xf32, #tpu.memory_space<vmem>>, vector<1x16x128xf32>
      %260 = vector.shape_cast %259 : vector<1x16x128xf32> to vector<16x128xf32>
      %261 = vector.broadcast %258 : f32 to vector<16x128xf32>
      %262 = arith.mulf %261, %260 : vector<16x128xf32>
      %263 = arith.addf %257, %262 : vector<16x128xf32>
      %c35 = arith.constant 35 : index
      %264 = memref.load %arg3[%c35] : memref<98xf32, #tpu.memory_space<smem>>
      %c0_195 = arith.constant 0 : index
      %c5_196 = arith.constant 5 : index
      %c0_197 = arith.constant 0 : index
      %265 = vector.load %arg7[%c0_195, %c5_196, %c0_197] : memref<2x24x128xf32, #tpu.memory_space<vmem>>, vector<1x16x128xf32>
      %266 = vector.shape_cast %265 : vector<1x16x128xf32> to vector<16x128xf32>
      %267 = vector.broadcast %264 : f32 to vector<16x128xf32>
      %268 = arith.mulf %267, %266 : vector<16x128xf32>
      %269 = arith.addf %263, %268 : vector<16x128xf32>
      %c42 = arith.constant 42 : index
      %270 = memref.load %arg3[%c42] : memref<98xf32, #tpu.memory_space<smem>>
      %c0_198 = arith.constant 0 : index
      %c6_199 = arith.constant 6 : index
      %c0_200 = arith.constant 0 : index
      %271 = vector.load %arg7[%c0_198, %c6_199, %c0_200] : memref<2x24x128xf32, #tpu.memory_space<vmem>>, vector<1x16x128xf32>
      %272 = vector.shape_cast %271 : vector<1x16x128xf32> to vector<16x128xf32>
      %273 = vector.broadcast %270 : f32 to vector<16x128xf32>
      %274 = arith.mulf %273, %272 : vector<16x128xf32>
      %275 = arith.addf %269, %274 : vector<16x128xf32>
      %c49 = arith.constant 49 : index
      %276 = memref.load %arg3[%c49] : memref<98xf32, #tpu.memory_space<smem>>
      %c1_201 = arith.constant 1 : index
      %c0_202 = arith.constant 0 : index
      %c0_203 = arith.constant 0 : index
      %277 = vector.load %arg7[%c1_201, %c0_202, %c0_203] : memref<2x24x128xf32, #tpu.memory_space<vmem>>, vector<1x16x128xf32>
      %278 = vector.shape_cast %277 : vector<1x16x128xf32> to vector<16x128xf32>
      %279 = vector.broadcast %276 : f32 to vector<16x128xf32>
      %280 = arith.mulf %279, %278 : vector<16x128xf32>
      %281 = arith.addf %275, %280 : vector<16x128xf32>
      %c56 = arith.constant 56 : index
      %282 = memref.load %arg3[%c56] : memref<98xf32, #tpu.memory_space<smem>>
      %c1_204 = arith.constant 1 : index
      %c1_205 = arith.constant 1 : index
      %c0_206 = arith.constant 0 : index
      %283 = vector.load %arg7[%c1_204, %c1_205, %c0_206] : memref<2x24x128xf32, #tpu.memory_space<vmem>>, vector<1x16x128xf32>
      %284 = vector.shape_cast %283 : vector<1x16x128xf32> to vector<16x128xf32>
      %285 = vector.broadcast %282 : f32 to vector<16x128xf32>
      %286 = arith.mulf %285, %284 : vector<16x128xf32>
      %287 = arith.addf %281, %286 : vector<16x128xf32>
      %c63 = arith.constant 63 : index
      %288 = memref.load %arg3[%c63] : memref<98xf32, #tpu.memory_space<smem>>
      %c1_207 = arith.constant 1 : index
      %c2_208 = arith.constant 2 : index
      %c0_209 = arith.constant 0 : index
      %289 = vector.load %arg7[%c1_207, %c2_208, %c0_209] : memref<2x24x128xf32, #tpu.memory_space<vmem>>, vector<1x16x128xf32>
      %290 = vector.shape_cast %289 : vector<1x16x128xf32> to vector<16x128xf32>
      %291 = vector.broadcast %288 : f32 to vector<16x128xf32>
      %292 = arith.mulf %291, %290 : vector<16x128xf32>
      %293 = arith.addf %287, %292 : vector<16x128xf32>
      %c70 = arith.constant 70 : index
      %294 = memref.load %arg3[%c70] : memref<98xf32, #tpu.memory_space<smem>>
      %c1_210 = arith.constant 1 : index
      %c3_211 = arith.constant 3 : index
      %c0_212 = arith.constant 0 : index
      %295 = vector.load %arg7[%c1_210, %c3_211, %c0_212] : memref<2x24x128xf32, #tpu.memory_space<vmem>>, vector<1x16x128xf32>
      %296 = vector.shape_cast %295 : vector<1x16x128xf32> to vector<16x128xf32>
      %297 = vector.broadcast %294 : f32 to vector<16x128xf32>
      %298 = arith.mulf %297, %296 : vector<16x128xf32>
      %299 = arith.addf %293, %298 : vector<16x128xf32>
      %c77 = arith.constant 77 : index
      %300 = memref.load %arg3[%c77] : memref<98xf32, #tpu.memory_space<smem>>
      %c1_213 = arith.constant 1 : index
      %c4_214 = arith.constant 4 : index
      %c0_215 = arith.constant 0 : index
      %301 = vector.load %arg7[%c1_213, %c4_214, %c0_215] : memref<2x24x128xf32, #tpu.memory_space<vmem>>, vector<1x16x128xf32>
      %302 = vector.shape_cast %301 : vector<1x16x128xf32> to vector<16x128xf32>
      %303 = vector.broadcast %300 : f32 to vector<16x128xf32>
      %304 = arith.mulf %303, %302 : vector<16x128xf32>
      %305 = arith.addf %299, %304 : vector<16x128xf32>
      %c84 = arith.constant 84 : index
      %306 = memref.load %arg3[%c84] : memref<98xf32, #tpu.memory_space<smem>>
      %c1_216 = arith.constant 1 : index
      %c5_217 = arith.constant 5 : index
      %c0_218 = arith.constant 0 : index
      %307 = vector.load %arg7[%c1_216, %c5_217, %c0_218] : memref<2x24x128xf32, #tpu.memory_space<vmem>>, vector<1x16x128xf32>
      %308 = vector.shape_cast %307 : vector<1x16x128xf32> to vector<16x128xf32>
      %309 = vector.broadcast %306 : f32 to vector<16x128xf32>
      %310 = arith.mulf %309, %308 : vector<16x128xf32>
      %311 = arith.addf %305, %310 : vector<16x128xf32>
      %c91 = arith.constant 91 : index
      %312 = memref.load %arg3[%c91] : memref<98xf32, #tpu.memory_space<smem>>
      %c1_219 = arith.constant 1 : index
      %c6_220 = arith.constant 6 : index
      %c0_221 = arith.constant 0 : index
      %313 = vector.load %arg7[%c1_219, %c6_220, %c0_221] : memref<2x24x128xf32, #tpu.memory_space<vmem>>, vector<1x16x128xf32>
      %314 = vector.shape_cast %313 : vector<1x16x128xf32> to vector<16x128xf32>
      %315 = vector.broadcast %312 : f32 to vector<16x128xf32>
      %316 = arith.mulf %315, %314 : vector<16x128xf32>
      %317 = arith.addf %311, %316 : vector<16x128xf32>
      %318 = vector.extract_strided_slice %317 {offsets = [0, 0], sizes = [16, 16], strides = [1, 1]} : vector<16x128xf32> to vector<16x16xf32>
      %319 = arith.addf %232, %318 : vector<16x16xf32>
      %cst_222 = arith.constant 0.000000e+00 : f32
      %320 = vector.broadcast %cst_222 : f32 to vector<16x128xf32>
      %c1_223 = arith.constant 1 : index
      %321 = memref.load %arg3[%c1_223] : memref<98xf32, #tpu.memory_space<smem>>
      %c0_224 = arith.constant 0 : index
      %c0_225 = arith.constant 0 : index
      %c0_226 = arith.constant 0 : index
      %322 = vector.load %arg7[%c0_224, %c0_225, %c0_226] : memref<2x24x128xf32, #tpu.memory_space<vmem>>, vector<1x16x128xf32>
      %323 = vector.shape_cast %322 : vector<1x16x128xf32> to vector<16x128xf32>
      %324 = vector.broadcast %321 : f32 to vector<16x128xf32>
      %325 = arith.mulf %324, %323 : vector<16x128xf32>
      %326 = arith.addf %320, %325 : vector<16x128xf32>
      %c8_227 = arith.constant 8 : index
      %327 = memref.load %arg3[%c8_227] : memref<98xf32, #tpu.memory_space<smem>>
      %c0_228 = arith.constant 0 : index
      %c1_229 = arith.constant 1 : index
      %c0_230 = arith.constant 0 : index
      %328 = vector.load %arg7[%c0_228, %c1_229, %c0_230] : memref<2x24x128xf32, #tpu.memory_space<vmem>>, vector<1x16x128xf32>
      %329 = vector.shape_cast %328 : vector<1x16x128xf32> to vector<16x128xf32>
      %330 = vector.broadcast %327 : f32 to vector<16x128xf32>
      %331 = arith.mulf %330, %329 : vector<16x128xf32>
      %332 = arith.addf %326, %331 : vector<16x128xf32>
      %c15_231 = arith.constant 15 : index
      %333 = memref.load %arg3[%c15_231] : memref<98xf32, #tpu.memory_space<smem>>
      %c0_232 = arith.constant 0 : index
      %c2_233 = arith.constant 2 : index
      %c0_234 = arith.constant 0 : index
      %334 = vector.load %arg7[%c0_232, %c2_233, %c0_234] : memref<2x24x128xf32, #tpu.memory_space<vmem>>, vector<1x16x128xf32>
      %335 = vector.shape_cast %334 : vector<1x16x128xf32> to vector<16x128xf32>
      %336 = vector.broadcast %333 : f32 to vector<16x128xf32>
      %337 = arith.mulf %336, %335 : vector<16x128xf32>
      %338 = arith.addf %332, %337 : vector<16x128xf32>
      %c22 = arith.constant 22 : index
      %339 = memref.load %arg3[%c22] : memref<98xf32, #tpu.memory_space<smem>>
      %c0_235 = arith.constant 0 : index
      %c3_236 = arith.constant 3 : index
      %c0_237 = arith.constant 0 : index
      %340 = vector.load %arg7[%c0_235, %c3_236, %c0_237] : memref<2x24x128xf32, #tpu.memory_space<vmem>>, vector<1x16x128xf32>
      %341 = vector.shape_cast %340 : vector<1x16x128xf32> to vector<16x128xf32>
      %342 = vector.broadcast %339 : f32 to vector<16x128xf32>
      %343 = arith.mulf %342, %341 : vector<16x128xf32>
      %344 = arith.addf %338, %343 : vector<16x128xf32>
      %c29 = arith.constant 29 : index
      %345 = memref.load %arg3[%c29] : memref<98xf32, #tpu.memory_space<smem>>
      %c0_238 = arith.constant 0 : index
      %c4_239 = arith.constant 4 : index
      %c0_240 = arith.constant 0 : index
      %346 = vector.load %arg7[%c0_238, %c4_239, %c0_240] : memref<2x24x128xf32, #tpu.memory_space<vmem>>, vector<1x16x128xf32>
      %347 = vector.shape_cast %346 : vector<1x16x128xf32> to vector<16x128xf32>
      %348 = vector.broadcast %345 : f32 to vector<16x128xf32>
      %349 = arith.mulf %348, %347 : vector<16x128xf32>
      %350 = arith.addf %344, %349 : vector<16x128xf32>
      %c36 = arith.constant 36 : index
      %351 = memref.load %arg3[%c36] : memref<98xf32, #tpu.memory_space<smem>>
      %c0_241 = arith.constant 0 : index
      %c5_242 = arith.constant 5 : index
      %c0_243 = arith.constant 0 : index
      %352 = vector.load %arg7[%c0_241, %c5_242, %c0_243] : memref<2x24x128xf32, #tpu.memory_space<vmem>>, vector<1x16x128xf32>
      %353 = vector.shape_cast %352 : vector<1x16x128xf32> to vector<16x128xf32>
      %354 = vector.broadcast %351 : f32 to vector<16x128xf32>
      %355 = arith.mulf %354, %353 : vector<16x128xf32>
      %356 = arith.addf %350, %355 : vector<16x128xf32>
      %c43 = arith.constant 43 : index
      %357 = memref.load %arg3[%c43] : memref<98xf32, #tpu.memory_space<smem>>
      %c0_244 = arith.constant 0 : index
      %c6_245 = arith.constant 6 : index
      %c0_246 = arith.constant 0 : index
      %358 = vector.load %arg7[%c0_244, %c6_245, %c0_246] : memref<2x24x128xf32, #tpu.memory_space<vmem>>, vector<1x16x128xf32>
      %359 = vector.shape_cast %358 : vector<1x16x128xf32> to vector<16x128xf32>
      %360 = vector.broadcast %357 : f32 to vector<16x128xf32>
      %361 = arith.mulf %360, %359 : vector<16x128xf32>
      %362 = arith.addf %356, %361 : vector<16x128xf32>
      %c50 = arith.constant 50 : index
      %363 = memref.load %arg3[%c50] : memref<98xf32, #tpu.memory_space<smem>>
      %c1_247 = arith.constant 1 : index
      %c0_248 = arith.constant 0 : index
      %c0_249 = arith.constant 0 : index
      %364 = vector.load %arg7[%c1_247, %c0_248, %c0_249] : memref<2x24x128xf32, #tpu.memory_space<vmem>>, vector<1x16x128xf32>
      %365 = vector.shape_cast %364 : vector<1x16x128xf32> to vector<16x128xf32>
      %366 = vector.broadcast %363 : f32 to vector<16x128xf32>
      %367 = arith.mulf %366, %365 : vector<16x128xf32>
      %368 = arith.addf %362, %367 : vector<16x128xf32>
      %c57 = arith.constant 57 : index
      %369 = memref.load %arg3[%c57] : memref<98xf32, #tpu.memory_space<smem>>
      %c1_250 = arith.constant 1 : index
      %c1_251 = arith.constant 1 : index
      %c0_252 = arith.constant 0 : index
      %370 = vector.load %arg7[%c1_250, %c1_251, %c0_252] : memref<2x24x128xf32, #tpu.memory_space<vmem>>, vector<1x16x128xf32>
      %371 = vector.shape_cast %370 : vector<1x16x128xf32> to vector<16x128xf32>
      %372 = vector.broadcast %369 : f32 to vector<16x128xf32>
      %373 = arith.mulf %372, %371 : vector<16x128xf32>
      %374 = arith.addf %368, %373 : vector<16x128xf32>
      %c64_253 = arith.constant 64 : index
      %375 = memref.load %arg3[%c64_253] : memref<98xf32, #tpu.memory_space<smem>>
      %c1_254 = arith.constant 1 : index
      %c2_255 = arith.constant 2 : index
      %c0_256 = arith.constant 0 : index
      %376 = vector.load %arg7[%c1_254, %c2_255, %c0_256] : memref<2x24x128xf32, #tpu.memory_space<vmem>>, vector<1x16x128xf32>
      %377 = vector.shape_cast %376 : vector<1x16x128xf32> to vector<16x128xf32>
      %378 = vector.broadcast %375 : f32 to vector<16x128xf32>
      %379 = arith.mulf %378, %377 : vector<16x128xf32>
      %380 = arith.addf %374, %379 : vector<16x128xf32>
      %c71 = arith.constant 71 : index
      %381 = memref.load %arg3[%c71] : memref<98xf32, #tpu.memory_space<smem>>
      %c1_257 = arith.constant 1 : index
      %c3_258 = arith.constant 3 : index
      %c0_259 = arith.constant 0 : index
      %382 = vector.load %arg7[%c1_257, %c3_258, %c0_259] : memref<2x24x128xf32, #tpu.memory_space<vmem>>, vector<1x16x128xf32>
      %383 = vector.shape_cast %382 : vector<1x16x128xf32> to vector<16x128xf32>
      %384 = vector.broadcast %381 : f32 to vector<16x128xf32>
      %385 = arith.mulf %384, %383 : vector<16x128xf32>
      %386 = arith.addf %380, %385 : vector<16x128xf32>
      %c78 = arith.constant 78 : index
      %387 = memref.load %arg3[%c78] : memref<98xf32, #tpu.memory_space<smem>>
      %c1_260 = arith.constant 1 : index
      %c4_261 = arith.constant 4 : index
      %c0_262 = arith.constant 0 : index
      %388 = vector.load %arg7[%c1_260, %c4_261, %c0_262] : memref<2x24x128xf32, #tpu.memory_space<vmem>>, vector<1x16x128xf32>
      %389 = vector.shape_cast %388 : vector<1x16x128xf32> to vector<16x128xf32>
      %390 = vector.broadcast %387 : f32 to vector<16x128xf32>
      %391 = arith.mulf %390, %389 : vector<16x128xf32>
      %392 = arith.addf %386, %391 : vector<16x128xf32>
      %c85 = arith.constant 85 : index
      %393 = memref.load %arg3[%c85] : memref<98xf32, #tpu.memory_space<smem>>
      %c1_263 = arith.constant 1 : index
      %c5_264 = arith.constant 5 : index
      %c0_265 = arith.constant 0 : index
      %394 = vector.load %arg7[%c1_263, %c5_264, %c0_265] : memref<2x24x128xf32, #tpu.memory_space<vmem>>, vector<1x16x128xf32>
      %395 = vector.shape_cast %394 : vector<1x16x128xf32> to vector<16x128xf32>
      %396 = vector.broadcast %393 : f32 to vector<16x128xf32>
      %397 = arith.mulf %396, %395 : vector<16x128xf32>
      %398 = arith.addf %392, %397 : vector<16x128xf32>
      %c92 = arith.constant 92 : index
      %399 = memref.load %arg3[%c92] : memref<98xf32, #tpu.memory_space<smem>>
      %c1_266 = arith.constant 1 : index
      %c6_267 = arith.constant 6 : index
      %c0_268 = arith.constant 0 : index
      %400 = vector.load %arg7[%c1_266, %c6_267, %c0_268] : memref<2x24x128xf32, #tpu.memory_space<vmem>>, vector<1x16x128xf32>
      %401 = vector.shape_cast %400 : vector<1x16x128xf32> to vector<16x128xf32>
      %402 = vector.broadcast %399 : f32 to vector<16x128xf32>
      %403 = arith.mulf %402, %401 : vector<16x128xf32>
      %404 = arith.addf %398, %403 : vector<16x128xf32>
      %405 = vector.extract_strided_slice %404 {offsets = [0, 1], sizes = [16, 16], strides = [1, 1]} : vector<16x128xf32> to vector<16x16xf32>
      %406 = arith.addf %319, %405 : vector<16x16xf32>
      %cst_269 = arith.constant 0.000000e+00 : f32
      %407 = vector.broadcast %cst_269 : f32 to vector<16x128xf32>
      %c2_270 = arith.constant 2 : index
      %408 = memref.load %arg3[%c2_270] : memref<98xf32, #tpu.memory_space<smem>>
      %c0_271 = arith.constant 0 : index
      %c0_272 = arith.constant 0 : index
      %c0_273 = arith.constant 0 : index
      %409 = vector.load %arg7[%c0_271, %c0_272, %c0_273] : memref<2x24x128xf32, #tpu.memory_space<vmem>>, vector<1x16x128xf32>
      %410 = vector.shape_cast %409 : vector<1x16x128xf32> to vector<16x128xf32>
      %411 = vector.broadcast %408 : f32 to vector<16x128xf32>
      %412 = arith.mulf %411, %410 : vector<16x128xf32>
      %413 = arith.addf %407, %412 : vector<16x128xf32>
      %c9_274 = arith.constant 9 : index
      %414 = memref.load %arg3[%c9_274] : memref<98xf32, #tpu.memory_space<smem>>
      %c0_275 = arith.constant 0 : index
      %c1_276 = arith.constant 1 : index
      %c0_277 = arith.constant 0 : index
      %415 = vector.load %arg7[%c0_275, %c1_276, %c0_277] : memref<2x24x128xf32, #tpu.memory_space<vmem>>, vector<1x16x128xf32>
      %416 = vector.shape_cast %415 : vector<1x16x128xf32> to vector<16x128xf32>
      %417 = vector.broadcast %414 : f32 to vector<16x128xf32>
      %418 = arith.mulf %417, %416 : vector<16x128xf32>
      %419 = arith.addf %413, %418 : vector<16x128xf32>
      %c16_278 = arith.constant 16 : index
      %420 = memref.load %arg3[%c16_278] : memref<98xf32, #tpu.memory_space<smem>>
      %c0_279 = arith.constant 0 : index
      %c2_280 = arith.constant 2 : index
      %c0_281 = arith.constant 0 : index
      %421 = vector.load %arg7[%c0_279, %c2_280, %c0_281] : memref<2x24x128xf32, #tpu.memory_space<vmem>>, vector<1x16x128xf32>
      %422 = vector.shape_cast %421 : vector<1x16x128xf32> to vector<16x128xf32>
      %423 = vector.broadcast %420 : f32 to vector<16x128xf32>
      %424 = arith.mulf %423, %422 : vector<16x128xf32>
      %425 = arith.addf %419, %424 : vector<16x128xf32>
      %c23 = arith.constant 23 : index
      %426 = memref.load %arg3[%c23] : memref<98xf32, #tpu.memory_space<smem>>
      %c0_282 = arith.constant 0 : index
      %c3_283 = arith.constant 3 : index
      %c0_284 = arith.constant 0 : index
      %427 = vector.load %arg7[%c0_282, %c3_283, %c0_284] : memref<2x24x128xf32, #tpu.memory_space<vmem>>, vector<1x16x128xf32>
      %428 = vector.shape_cast %427 : vector<1x16x128xf32> to vector<16x128xf32>
      %429 = vector.broadcast %426 : f32 to vector<16x128xf32>
      %430 = arith.mulf %429, %428 : vector<16x128xf32>
      %431 = arith.addf %425, %430 : vector<16x128xf32>
      %c30 = arith.constant 30 : index
      %432 = memref.load %arg3[%c30] : memref<98xf32, #tpu.memory_space<smem>>
      %c0_285 = arith.constant 0 : index
      %c4_286 = arith.constant 4 : index
      %c0_287 = arith.constant 0 : index
      %433 = vector.load %arg7[%c0_285, %c4_286, %c0_287] : memref<2x24x128xf32, #tpu.memory_space<vmem>>, vector<1x16x128xf32>
      %434 = vector.shape_cast %433 : vector<1x16x128xf32> to vector<16x128xf32>
      %435 = vector.broadcast %432 : f32 to vector<16x128xf32>
      %436 = arith.mulf %435, %434 : vector<16x128xf32>
      %437 = arith.addf %431, %436 : vector<16x128xf32>
      %c37 = arith.constant 37 : index
      %438 = memref.load %arg3[%c37] : memref<98xf32, #tpu.memory_space<smem>>
      %c0_288 = arith.constant 0 : index
      %c5_289 = arith.constant 5 : index
      %c0_290 = arith.constant 0 : index
      %439 = vector.load %arg7[%c0_288, %c5_289, %c0_290] : memref<2x24x128xf32, #tpu.memory_space<vmem>>, vector<1x16x128xf32>
      %440 = vector.shape_cast %439 : vector<1x16x128xf32> to vector<16x128xf32>
      %441 = vector.broadcast %438 : f32 to vector<16x128xf32>
      %442 = arith.mulf %441, %440 : vector<16x128xf32>
      %443 = arith.addf %437, %442 : vector<16x128xf32>
      %c44 = arith.constant 44 : index
      %444 = memref.load %arg3[%c44] : memref<98xf32, #tpu.memory_space<smem>>
      %c0_291 = arith.constant 0 : index
      %c6_292 = arith.constant 6 : index
      %c0_293 = arith.constant 0 : index
      %445 = vector.load %arg7[%c0_291, %c6_292, %c0_293] : memref<2x24x128xf32, #tpu.memory_space<vmem>>, vector<1x16x128xf32>
      %446 = vector.shape_cast %445 : vector<1x16x128xf32> to vector<16x128xf32>
      %447 = vector.broadcast %444 : f32 to vector<16x128xf32>
      %448 = arith.mulf %447, %446 : vector<16x128xf32>
      %449 = arith.addf %443, %448 : vector<16x128xf32>
      %c51 = arith.constant 51 : index
      %450 = memref.load %arg3[%c51] : memref<98xf32, #tpu.memory_space<smem>>
      %c1_294 = arith.constant 1 : index
      %c0_295 = arith.constant 0 : index
      %c0_296 = arith.constant 0 : index
      %451 = vector.load %arg7[%c1_294, %c0_295, %c0_296] : memref<2x24x128xf32, #tpu.memory_space<vmem>>, vector<1x16x128xf32>
      %452 = vector.shape_cast %451 : vector<1x16x128xf32> to vector<16x128xf32>
      %453 = vector.broadcast %450 : f32 to vector<16x128xf32>
      %454 = arith.mulf %453, %452 : vector<16x128xf32>
      %455 = arith.addf %449, %454 : vector<16x128xf32>
      %c58 = arith.constant 58 : index
      %456 = memref.load %arg3[%c58] : memref<98xf32, #tpu.memory_space<smem>>
      %c1_297 = arith.constant 1 : index
      %c1_298 = arith.constant 1 : index
      %c0_299 = arith.constant 0 : index
      %457 = vector.load %arg7[%c1_297, %c1_298, %c0_299] : memref<2x24x128xf32, #tpu.memory_space<vmem>>, vector<1x16x128xf32>
      %458 = vector.shape_cast %457 : vector<1x16x128xf32> to vector<16x128xf32>
      %459 = vector.broadcast %456 : f32 to vector<16x128xf32>
      %460 = arith.mulf %459, %458 : vector<16x128xf32>
      %461 = arith.addf %455, %460 : vector<16x128xf32>
      %c65 = arith.constant 65 : index
      %462 = memref.load %arg3[%c65] : memref<98xf32, #tpu.memory_space<smem>>
      %c1_300 = arith.constant 1 : index
      %c2_301 = arith.constant 2 : index
      %c0_302 = arith.constant 0 : index
      %463 = vector.load %arg7[%c1_300, %c2_301, %c0_302] : memref<2x24x128xf32, #tpu.memory_space<vmem>>, vector<1x16x128xf32>
      %464 = vector.shape_cast %463 : vector<1x16x128xf32> to vector<16x128xf32>
      %465 = vector.broadcast %462 : f32 to vector<16x128xf32>
      %466 = arith.mulf %465, %464 : vector<16x128xf32>
      %467 = arith.addf %461, %466 : vector<16x128xf32>
      %c72 = arith.constant 72 : index
      %468 = memref.load %arg3[%c72] : memref<98xf32, #tpu.memory_space<smem>>
      %c1_303 = arith.constant 1 : index
      %c3_304 = arith.constant 3 : index
      %c0_305 = arith.constant 0 : index
      %469 = vector.load %arg7[%c1_303, %c3_304, %c0_305] : memref<2x24x128xf32, #tpu.memory_space<vmem>>, vector<1x16x128xf32>
      %470 = vector.shape_cast %469 : vector<1x16x128xf32> to vector<16x128xf32>
      %471 = vector.broadcast %468 : f32 to vector<16x128xf32>
      %472 = arith.mulf %471, %470 : vector<16x128xf32>
      %473 = arith.addf %467, %472 : vector<16x128xf32>
      %c79 = arith.constant 79 : index
      %474 = memref.load %arg3[%c79] : memref<98xf32, #tpu.memory_space<smem>>
      %c1_306 = arith.constant 1 : index
      %c4_307 = arith.constant 4 : index
      %c0_308 = arith.constant 0 : index
      %475 = vector.load %arg7[%c1_306, %c4_307, %c0_308] : memref<2x24x128xf32, #tpu.memory_space<vmem>>, vector<1x16x128xf32>
      %476 = vector.shape_cast %475 : vector<1x16x128xf32> to vector<16x128xf32>
      %477 = vector.broadcast %474 : f32 to vector<16x128xf32>
      %478 = arith.mulf %477, %476 : vector<16x128xf32>
      %479 = arith.addf %473, %478 : vector<16x128xf32>
      %c86 = arith.constant 86 : index
      %480 = memref.load %arg3[%c86] : memref<98xf32, #tpu.memory_space<smem>>
      %c1_309 = arith.constant 1 : index
      %c5_310 = arith.constant 5 : index
      %c0_311 = arith.constant 0 : index
      %481 = vector.load %arg7[%c1_309, %c5_310, %c0_311] : memref<2x24x128xf32, #tpu.memory_space<vmem>>, vector<1x16x128xf32>
      %482 = vector.shape_cast %481 : vector<1x16x128xf32> to vector<16x128xf32>
      %483 = vector.broadcast %480 : f32 to vector<16x128xf32>
      %484 = arith.mulf %483, %482 : vector<16x128xf32>
      %485 = arith.addf %479, %484 : vector<16x128xf32>
      %c93 = arith.constant 93 : index
      %486 = memref.load %arg3[%c93] : memref<98xf32, #tpu.memory_space<smem>>
      %c1_312 = arith.constant 1 : index
      %c6_313 = arith.constant 6 : index
      %c0_314 = arith.constant 0 : index
      %487 = vector.load %arg7[%c1_312, %c6_313, %c0_314] : memref<2x24x128xf32, #tpu.memory_space<vmem>>, vector<1x16x128xf32>
      %488 = vector.shape_cast %487 : vector<1x16x128xf32> to vector<16x128xf32>
      %489 = vector.broadcast %486 : f32 to vector<16x128xf32>
      %490 = arith.mulf %489, %488 : vector<16x128xf32>
      %491 = arith.addf %485, %490 : vector<16x128xf32>
      %492 = vector.extract_strided_slice %491 {offsets = [0, 2], sizes = [16, 16], strides = [1, 1]} : vector<16x128xf32> to vector<16x16xf32>
      %493 = arith.addf %406, %492 : vector<16x16xf32>
      %cst_315 = arith.constant 0.000000e+00 : f32
      %494 = vector.broadcast %cst_315 : f32 to vector<16x128xf32>
      %c3_316 = arith.constant 3 : index
      %495 = memref.load %arg3[%c3_316] : memref<98xf32, #tpu.memory_space<smem>>
      %c0_317 = arith.constant 0 : index
      %c0_318 = arith.constant 0 : index
      %c0_319 = arith.constant 0 : index
      %496 = vector.load %arg7[%c0_317, %c0_318, %c0_319] : memref<2x24x128xf32, #tpu.memory_space<vmem>>, vector<1x16x128xf32>
      %497 = vector.shape_cast %496 : vector<1x16x128xf32> to vector<16x128xf32>
      %498 = vector.broadcast %495 : f32 to vector<16x128xf32>
      %499 = arith.mulf %498, %497 : vector<16x128xf32>
      %500 = arith.addf %494, %499 : vector<16x128xf32>
      %c10_320 = arith.constant 10 : index
      %501 = memref.load %arg3[%c10_320] : memref<98xf32, #tpu.memory_space<smem>>
      %c0_321 = arith.constant 0 : index
      %c1_322 = arith.constant 1 : index
      %c0_323 = arith.constant 0 : index
      %502 = vector.load %arg7[%c0_321, %c1_322, %c0_323] : memref<2x24x128xf32, #tpu.memory_space<vmem>>, vector<1x16x128xf32>
      %503 = vector.shape_cast %502 : vector<1x16x128xf32> to vector<16x128xf32>
      %504 = vector.broadcast %501 : f32 to vector<16x128xf32>
      %505 = arith.mulf %504, %503 : vector<16x128xf32>
      %506 = arith.addf %500, %505 : vector<16x128xf32>
      %c17_324 = arith.constant 17 : index
      %507 = memref.load %arg3[%c17_324] : memref<98xf32, #tpu.memory_space<smem>>
      %c0_325 = arith.constant 0 : index
      %c2_326 = arith.constant 2 : index
      %c0_327 = arith.constant 0 : index
      %508 = vector.load %arg7[%c0_325, %c2_326, %c0_327] : memref<2x24x128xf32, #tpu.memory_space<vmem>>, vector<1x16x128xf32>
      %509 = vector.shape_cast %508 : vector<1x16x128xf32> to vector<16x128xf32>
      %510 = vector.broadcast %507 : f32 to vector<16x128xf32>
      %511 = arith.mulf %510, %509 : vector<16x128xf32>
      %512 = arith.addf %506, %511 : vector<16x128xf32>
      %c24 = arith.constant 24 : index
      %513 = memref.load %arg3[%c24] : memref<98xf32, #tpu.memory_space<smem>>
      %c0_328 = arith.constant 0 : index
      %c3_329 = arith.constant 3 : index
      %c0_330 = arith.constant 0 : index
      %514 = vector.load %arg7[%c0_328, %c3_329, %c0_330] : memref<2x24x128xf32, #tpu.memory_space<vmem>>, vector<1x16x128xf32>
      %515 = vector.shape_cast %514 : vector<1x16x128xf32> to vector<16x128xf32>
      %516 = vector.broadcast %513 : f32 to vector<16x128xf32>
      %517 = arith.mulf %516, %515 : vector<16x128xf32>
      %518 = arith.addf %512, %517 : vector<16x128xf32>
      %c31 = arith.constant 31 : index
      %519 = memref.load %arg3[%c31] : memref<98xf32, #tpu.memory_space<smem>>
      %c0_331 = arith.constant 0 : index
      %c4_332 = arith.constant 4 : index
      %c0_333 = arith.constant 0 : index
      %520 = vector.load %arg7[%c0_331, %c4_332, %c0_333] : memref<2x24x128xf32, #tpu.memory_space<vmem>>, vector<1x16x128xf32>
      %521 = vector.shape_cast %520 : vector<1x16x128xf32> to vector<16x128xf32>
      %522 = vector.broadcast %519 : f32 to vector<16x128xf32>
      %523 = arith.mulf %522, %521 : vector<16x128xf32>
      %524 = arith.addf %518, %523 : vector<16x128xf32>
      %c38 = arith.constant 38 : index
      %525 = memref.load %arg3[%c38] : memref<98xf32, #tpu.memory_space<smem>>
      %c0_334 = arith.constant 0 : index
      %c5_335 = arith.constant 5 : index
      %c0_336 = arith.constant 0 : index
      %526 = vector.load %arg7[%c0_334, %c5_335, %c0_336] : memref<2x24x128xf32, #tpu.memory_space<vmem>>, vector<1x16x128xf32>
      %527 = vector.shape_cast %526 : vector<1x16x128xf32> to vector<16x128xf32>
      %528 = vector.broadcast %525 : f32 to vector<16x128xf32>
      %529 = arith.mulf %528, %527 : vector<16x128xf32>
      %530 = arith.addf %524, %529 : vector<16x128xf32>
      %c45 = arith.constant 45 : index
      %531 = memref.load %arg3[%c45] : memref<98xf32, #tpu.memory_space<smem>>
      %c0_337 = arith.constant 0 : index
      %c6_338 = arith.constant 6 : index
      %c0_339 = arith.constant 0 : index
      %532 = vector.load %arg7[%c0_337, %c6_338, %c0_339] : memref<2x24x128xf32, #tpu.memory_space<vmem>>, vector<1x16x128xf32>
      %533 = vector.shape_cast %532 : vector<1x16x128xf32> to vector<16x128xf32>
      %534 = vector.broadcast %531 : f32 to vector<16x128xf32>
      %535 = arith.mulf %534, %533 : vector<16x128xf32>
      %536 = arith.addf %530, %535 : vector<16x128xf32>
      %c52 = arith.constant 52 : index
      %537 = memref.load %arg3[%c52] : memref<98xf32, #tpu.memory_space<smem>>
      %c1_340 = arith.constant 1 : index
      %c0_341 = arith.constant 0 : index
      %c0_342 = arith.constant 0 : index
      %538 = vector.load %arg7[%c1_340, %c0_341, %c0_342] : memref<2x24x128xf32, #tpu.memory_space<vmem>>, vector<1x16x128xf32>
      %539 = vector.shape_cast %538 : vector<1x16x128xf32> to vector<16x128xf32>
      %540 = vector.broadcast %537 : f32 to vector<16x128xf32>
      %541 = arith.mulf %540, %539 : vector<16x128xf32>
      %542 = arith.addf %536, %541 : vector<16x128xf32>
      %c59 = arith.constant 59 : index
      %543 = memref.load %arg3[%c59] : memref<98xf32, #tpu.memory_space<smem>>
      %c1_343 = arith.constant 1 : index
      %c1_344 = arith.constant 1 : index
      %c0_345 = arith.constant 0 : index
      %544 = vector.load %arg7[%c1_343, %c1_344, %c0_345] : memref<2x24x128xf32, #tpu.memory_space<vmem>>, vector<1x16x128xf32>
      %545 = vector.shape_cast %544 : vector<1x16x128xf32> to vector<16x128xf32>
      %546 = vector.broadcast %543 : f32 to vector<16x128xf32>
      %547 = arith.mulf %546, %545 : vector<16x128xf32>
      %548 = arith.addf %542, %547 : vector<16x128xf32>
      %c66 = arith.constant 66 : index
      %549 = memref.load %arg3[%c66] : memref<98xf32, #tpu.memory_space<smem>>
      %c1_346 = arith.constant 1 : index
      %c2_347 = arith.constant 2 : index
      %c0_348 = arith.constant 0 : index
      %550 = vector.load %arg7[%c1_346, %c2_347, %c0_348] : memref<2x24x128xf32, #tpu.memory_space<vmem>>, vector<1x16x128xf32>
      %551 = vector.shape_cast %550 : vector<1x16x128xf32> to vector<16x128xf32>
      %552 = vector.broadcast %549 : f32 to vector<16x128xf32>
      %553 = arith.mulf %552, %551 : vector<16x128xf32>
      %554 = arith.addf %548, %553 : vector<16x128xf32>
      %c73 = arith.constant 73 : index
      %555 = memref.load %arg3[%c73] : memref<98xf32, #tpu.memory_space<smem>>
      %c1_349 = arith.constant 1 : index
      %c3_350 = arith.constant 3 : index
      %c0_351 = arith.constant 0 : index
      %556 = vector.load %arg7[%c1_349, %c3_350, %c0_351] : memref<2x24x128xf32, #tpu.memory_space<vmem>>, vector<1x16x128xf32>
      %557 = vector.shape_cast %556 : vector<1x16x128xf32> to vector<16x128xf32>
      %558 = vector.broadcast %555 : f32 to vector<16x128xf32>
      %559 = arith.mulf %558, %557 : vector<16x128xf32>
      %560 = arith.addf %554, %559 : vector<16x128xf32>
      %c80_352 = arith.constant 80 : index
      %561 = memref.load %arg3[%c80_352] : memref<98xf32, #tpu.memory_space<smem>>
      %c1_353 = arith.constant 1 : index
      %c4_354 = arith.constant 4 : index
      %c0_355 = arith.constant 0 : index
      %562 = vector.load %arg7[%c1_353, %c4_354, %c0_355] : memref<2x24x128xf32, #tpu.memory_space<vmem>>, vector<1x16x128xf32>
      %563 = vector.shape_cast %562 : vector<1x16x128xf32> to vector<16x128xf32>
      %564 = vector.broadcast %561 : f32 to vector<16x128xf32>
      %565 = arith.mulf %564, %563 : vector<16x128xf32>
      %566 = arith.addf %560, %565 : vector<16x128xf32>
      %c87 = arith.constant 87 : index
      %567 = memref.load %arg3[%c87] : memref<98xf32, #tpu.memory_space<smem>>
      %c1_356 = arith.constant 1 : index
      %c5_357 = arith.constant 5 : index
      %c0_358 = arith.constant 0 : index
      %568 = vector.load %arg7[%c1_356, %c5_357, %c0_358] : memref<2x24x128xf32, #tpu.memory_space<vmem>>, vector<1x16x128xf32>
      %569 = vector.shape_cast %568 : vector<1x16x128xf32> to vector<16x128xf32>
      %570 = vector.broadcast %567 : f32 to vector<16x128xf32>
      %571 = arith.mulf %570, %569 : vector<16x128xf32>
      %572 = arith.addf %566, %571 : vector<16x128xf32>
      %c94 = arith.constant 94 : index
      %573 = memref.load %arg3[%c94] : memref<98xf32, #tpu.memory_space<smem>>
      %c1_359 = arith.constant 1 : index
      %c6_360 = arith.constant 6 : index
      %c0_361 = arith.constant 0 : index
      %574 = vector.load %arg7[%c1_359, %c6_360, %c0_361] : memref<2x24x128xf32, #tpu.memory_space<vmem>>, vector<1x16x128xf32>
      %575 = vector.shape_cast %574 : vector<1x16x128xf32> to vector<16x128xf32>
      %576 = vector.broadcast %573 : f32 to vector<16x128xf32>
      %577 = arith.mulf %576, %575 : vector<16x128xf32>
      %578 = arith.addf %572, %577 : vector<16x128xf32>
      %579 = vector.extract_strided_slice %578 {offsets = [0, 3], sizes = [16, 16], strides = [1, 1]} : vector<16x128xf32> to vector<16x16xf32>
      %580 = arith.addf %493, %579 : vector<16x16xf32>
      %cst_362 = arith.constant 0.000000e+00 : f32
      %581 = vector.broadcast %cst_362 : f32 to vector<16x128xf32>
      %c4_363 = arith.constant 4 : index
      %582 = memref.load %arg3[%c4_363] : memref<98xf32, #tpu.memory_space<smem>>
      %c0_364 = arith.constant 0 : index
      %c0_365 = arith.constant 0 : index
      %c0_366 = arith.constant 0 : index
      %583 = vector.load %arg7[%c0_364, %c0_365, %c0_366] : memref<2x24x128xf32, #tpu.memory_space<vmem>>, vector<1x16x128xf32>
      %584 = vector.shape_cast %583 : vector<1x16x128xf32> to vector<16x128xf32>
      %585 = vector.broadcast %582 : f32 to vector<16x128xf32>
      %586 = arith.mulf %585, %584 : vector<16x128xf32>
      %587 = arith.addf %581, %586 : vector<16x128xf32>
      %c11_367 = arith.constant 11 : index
      %588 = memref.load %arg3[%c11_367] : memref<98xf32, #tpu.memory_space<smem>>
      %c0_368 = arith.constant 0 : index
      %c1_369 = arith.constant 1 : index
      %c0_370 = arith.constant 0 : index
      %589 = vector.load %arg7[%c0_368, %c1_369, %c0_370] : memref<2x24x128xf32, #tpu.memory_space<vmem>>, vector<1x16x128xf32>
      %590 = vector.shape_cast %589 : vector<1x16x128xf32> to vector<16x128xf32>
      %591 = vector.broadcast %588 : f32 to vector<16x128xf32>
      %592 = arith.mulf %591, %590 : vector<16x128xf32>
      %593 = arith.addf %587, %592 : vector<16x128xf32>
      %c18_371 = arith.constant 18 : index
      %594 = memref.load %arg3[%c18_371] : memref<98xf32, #tpu.memory_space<smem>>
      %c0_372 = arith.constant 0 : index
      %c2_373 = arith.constant 2 : index
      %c0_374 = arith.constant 0 : index
      %595 = vector.load %arg7[%c0_372, %c2_373, %c0_374] : memref<2x24x128xf32, #tpu.memory_space<vmem>>, vector<1x16x128xf32>
      %596 = vector.shape_cast %595 : vector<1x16x128xf32> to vector<16x128xf32>
      %597 = vector.broadcast %594 : f32 to vector<16x128xf32>
      %598 = arith.mulf %597, %596 : vector<16x128xf32>
      %599 = arith.addf %593, %598 : vector<16x128xf32>
      %c25 = arith.constant 25 : index
      %600 = memref.load %arg3[%c25] : memref<98xf32, #tpu.memory_space<smem>>
      %c0_375 = arith.constant 0 : index
      %c3_376 = arith.constant 3 : index
      %c0_377 = arith.constant 0 : index
      %601 = vector.load %arg7[%c0_375, %c3_376, %c0_377] : memref<2x24x128xf32, #tpu.memory_space<vmem>>, vector<1x16x128xf32>
      %602 = vector.shape_cast %601 : vector<1x16x128xf32> to vector<16x128xf32>
      %603 = vector.broadcast %600 : f32 to vector<16x128xf32>
      %604 = arith.mulf %603, %602 : vector<16x128xf32>
      %605 = arith.addf %599, %604 : vector<16x128xf32>
      %c32_378 = arith.constant 32 : index
      %606 = memref.load %arg3[%c32_378] : memref<98xf32, #tpu.memory_space<smem>>
      %c0_379 = arith.constant 0 : index
      %c4_380 = arith.constant 4 : index
      %c0_381 = arith.constant 0 : index
      %607 = vector.load %arg7[%c0_379, %c4_380, %c0_381] : memref<2x24x128xf32, #tpu.memory_space<vmem>>, vector<1x16x128xf32>
      %608 = vector.shape_cast %607 : vector<1x16x128xf32> to vector<16x128xf32>
      %609 = vector.broadcast %606 : f32 to vector<16x128xf32>
      %610 = arith.mulf %609, %608 : vector<16x128xf32>
      %611 = arith.addf %605, %610 : vector<16x128xf32>
      %c39 = arith.constant 39 : index
      %612 = memref.load %arg3[%c39] : memref<98xf32, #tpu.memory_space<smem>>
      %c0_382 = arith.constant 0 : index
      %c5_383 = arith.constant 5 : index
      %c0_384 = arith.constant 0 : index
      %613 = vector.load %arg7[%c0_382, %c5_383, %c0_384] : memref<2x24x128xf32, #tpu.memory_space<vmem>>, vector<1x16x128xf32>
      %614 = vector.shape_cast %613 : vector<1x16x128xf32> to vector<16x128xf32>
      %615 = vector.broadcast %612 : f32 to vector<16x128xf32>
      %616 = arith.mulf %615, %614 : vector<16x128xf32>
      %617 = arith.addf %611, %616 : vector<16x128xf32>
      %c46 = arith.constant 46 : index
      %618 = memref.load %arg3[%c46] : memref<98xf32, #tpu.memory_space<smem>>
      %c0_385 = arith.constant 0 : index
      %c6_386 = arith.constant 6 : index
      %c0_387 = arith.constant 0 : index
      %619 = vector.load %arg7[%c0_385, %c6_386, %c0_387] : memref<2x24x128xf32, #tpu.memory_space<vmem>>, vector<1x16x128xf32>
      %620 = vector.shape_cast %619 : vector<1x16x128xf32> to vector<16x128xf32>
      %621 = vector.broadcast %618 : f32 to vector<16x128xf32>
      %622 = arith.mulf %621, %620 : vector<16x128xf32>
      %623 = arith.addf %617, %622 : vector<16x128xf32>
      %c53 = arith.constant 53 : index
      %624 = memref.load %arg3[%c53] : memref<98xf32, #tpu.memory_space<smem>>
      %c1_388 = arith.constant 1 : index
      %c0_389 = arith.constant 0 : index
      %c0_390 = arith.constant 0 : index
      %625 = vector.load %arg7[%c1_388, %c0_389, %c0_390] : memref<2x24x128xf32, #tpu.memory_space<vmem>>, vector<1x16x128xf32>
      %626 = vector.shape_cast %625 : vector<1x16x128xf32> to vector<16x128xf32>
      %627 = vector.broadcast %624 : f32 to vector<16x128xf32>
      %628 = arith.mulf %627, %626 : vector<16x128xf32>
      %629 = arith.addf %623, %628 : vector<16x128xf32>
      %c60 = arith.constant 60 : index
      %630 = memref.load %arg3[%c60] : memref<98xf32, #tpu.memory_space<smem>>
      %c1_391 = arith.constant 1 : index
      %c1_392 = arith.constant 1 : index
      %c0_393 = arith.constant 0 : index
      %631 = vector.load %arg7[%c1_391, %c1_392, %c0_393] : memref<2x24x128xf32, #tpu.memory_space<vmem>>, vector<1x16x128xf32>
      %632 = vector.shape_cast %631 : vector<1x16x128xf32> to vector<16x128xf32>
      %633 = vector.broadcast %630 : f32 to vector<16x128xf32>
      %634 = arith.mulf %633, %632 : vector<16x128xf32>
      %635 = arith.addf %629, %634 : vector<16x128xf32>
      %c67 = arith.constant 67 : index
      %636 = memref.load %arg3[%c67] : memref<98xf32, #tpu.memory_space<smem>>
      %c1_394 = arith.constant 1 : index
      %c2_395 = arith.constant 2 : index
      %c0_396 = arith.constant 0 : index
      %637 = vector.load %arg7[%c1_394, %c2_395, %c0_396] : memref<2x24x128xf32, #tpu.memory_space<vmem>>, vector<1x16x128xf32>
      %638 = vector.shape_cast %637 : vector<1x16x128xf32> to vector<16x128xf32>
      %639 = vector.broadcast %636 : f32 to vector<16x128xf32>
      %640 = arith.mulf %639, %638 : vector<16x128xf32>
      %641 = arith.addf %635, %640 : vector<16x128xf32>
      %c74 = arith.constant 74 : index
      %642 = memref.load %arg3[%c74] : memref<98xf32, #tpu.memory_space<smem>>
      %c1_397 = arith.constant 1 : index
      %c3_398 = arith.constant 3 : index
      %c0_399 = arith.constant 0 : index
      %643 = vector.load %arg7[%c1_397, %c3_398, %c0_399] : memref<2x24x128xf32, #tpu.memory_space<vmem>>, vector<1x16x128xf32>
      %644 = vector.shape_cast %643 : vector<1x16x128xf32> to vector<16x128xf32>
      %645 = vector.broadcast %642 : f32 to vector<16x128xf32>
      %646 = arith.mulf %645, %644 : vector<16x128xf32>
      %647 = arith.addf %641, %646 : vector<16x128xf32>
      %c81 = arith.constant 81 : index
      %648 = memref.load %arg3[%c81] : memref<98xf32, #tpu.memory_space<smem>>
      %c1_400 = arith.constant 1 : index
      %c4_401 = arith.constant 4 : index
      %c0_402 = arith.constant 0 : index
      %649 = vector.load %arg7[%c1_400, %c4_401, %c0_402] : memref<2x24x128xf32, #tpu.memory_space<vmem>>, vector<1x16x128xf32>
      %650 = vector.shape_cast %649 : vector<1x16x128xf32> to vector<16x128xf32>
      %651 = vector.broadcast %648 : f32 to vector<16x128xf32>
      %652 = arith.mulf %651, %650 : vector<16x128xf32>
      %653 = arith.addf %647, %652 : vector<16x128xf32>
      %c88 = arith.constant 88 : index
      %654 = memref.load %arg3[%c88] : memref<98xf32, #tpu.memory_space<smem>>
      %c1_403 = arith.constant 1 : index
      %c5_404 = arith.constant 5 : index
      %c0_405 = arith.constant 0 : index
      %655 = vector.load %arg7[%c1_403, %c5_404, %c0_405] : memref<2x24x128xf32, #tpu.memory_space<vmem>>, vector<1x16x128xf32>
      %656 = vector.shape_cast %655 : vector<1x16x128xf32> to vector<16x128xf32>
      %657 = vector.broadcast %654 : f32 to vector<16x128xf32>
      %658 = arith.mulf %657, %656 : vector<16x128xf32>
      %659 = arith.addf %653, %658 : vector<16x128xf32>
      %c95 = arith.constant 95 : index
      %660 = memref.load %arg3[%c95] : memref<98xf32, #tpu.memory_space<smem>>
      %c1_406 = arith.constant 1 : index
      %c6_407 = arith.constant 6 : index
      %c0_408 = arith.constant 0 : index
      %661 = vector.load %arg7[%c1_406, %c6_407, %c0_408] : memref<2x24x128xf32, #tpu.memory_space<vmem>>, vector<1x16x128xf32>
      %662 = vector.shape_cast %661 : vector<1x16x128xf32> to vector<16x128xf32>
      %663 = vector.broadcast %660 : f32 to vector<16x128xf32>
      %664 = arith.mulf %663, %662 : vector<16x128xf32>
      %665 = arith.addf %659, %664 : vector<16x128xf32>
      %666 = vector.extract_strided_slice %665 {offsets = [0, 4], sizes = [16, 16], strides = [1, 1]} : vector<16x128xf32> to vector<16x16xf32>
      %667 = arith.addf %580, %666 : vector<16x16xf32>
      %cst_409 = arith.constant 0.000000e+00 : f32
      %668 = vector.broadcast %cst_409 : f32 to vector<16x128xf32>
      %c5_410 = arith.constant 5 : index
      %669 = memref.load %arg3[%c5_410] : memref<98xf32, #tpu.memory_space<smem>>
      %c0_411 = arith.constant 0 : index
      %c0_412 = arith.constant 0 : index
      %c0_413 = arith.constant 0 : index
      %670 = vector.load %arg7[%c0_411, %c0_412, %c0_413] : memref<2x24x128xf32, #tpu.memory_space<vmem>>, vector<1x16x128xf32>
      %671 = vector.shape_cast %670 : vector<1x16x128xf32> to vector<16x128xf32>
      %672 = vector.broadcast %669 : f32 to vector<16x128xf32>
      %673 = arith.mulf %672, %671 : vector<16x128xf32>
      %674 = arith.addf %668, %673 : vector<16x128xf32>
      %c12_414 = arith.constant 12 : index
      %675 = memref.load %arg3[%c12_414] : memref<98xf32, #tpu.memory_space<smem>>
      %c0_415 = arith.constant 0 : index
      %c1_416 = arith.constant 1 : index
      %c0_417 = arith.constant 0 : index
      %676 = vector.load %arg7[%c0_415, %c1_416, %c0_417] : memref<2x24x128xf32, #tpu.memory_space<vmem>>, vector<1x16x128xf32>
      %677 = vector.shape_cast %676 : vector<1x16x128xf32> to vector<16x128xf32>
      %678 = vector.broadcast %675 : f32 to vector<16x128xf32>
      %679 = arith.mulf %678, %677 : vector<16x128xf32>
      %680 = arith.addf %674, %679 : vector<16x128xf32>
      %c19 = arith.constant 19 : index
      %681 = memref.load %arg3[%c19] : memref<98xf32, #tpu.memory_space<smem>>
      %c0_418 = arith.constant 0 : index
      %c2_419 = arith.constant 2 : index
      %c0_420 = arith.constant 0 : index
      %682 = vector.load %arg7[%c0_418, %c2_419, %c0_420] : memref<2x24x128xf32, #tpu.memory_space<vmem>>, vector<1x16x128xf32>
      %683 = vector.shape_cast %682 : vector<1x16x128xf32> to vector<16x128xf32>
      %684 = vector.broadcast %681 : f32 to vector<16x128xf32>
      %685 = arith.mulf %684, %683 : vector<16x128xf32>
      %686 = arith.addf %680, %685 : vector<16x128xf32>
      %c26 = arith.constant 26 : index
      %687 = memref.load %arg3[%c26] : memref<98xf32, #tpu.memory_space<smem>>
      %c0_421 = arith.constant 0 : index
      %c3_422 = arith.constant 3 : index
      %c0_423 = arith.constant 0 : index
      %688 = vector.load %arg7[%c0_421, %c3_422, %c0_423] : memref<2x24x128xf32, #tpu.memory_space<vmem>>, vector<1x16x128xf32>
      %689 = vector.shape_cast %688 : vector<1x16x128xf32> to vector<16x128xf32>
      %690 = vector.broadcast %687 : f32 to vector<16x128xf32>
      %691 = arith.mulf %690, %689 : vector<16x128xf32>
      %692 = arith.addf %686, %691 : vector<16x128xf32>
      %c33 = arith.constant 33 : index
      %693 = memref.load %arg3[%c33] : memref<98xf32, #tpu.memory_space<smem>>
      %c0_424 = arith.constant 0 : index
      %c4_425 = arith.constant 4 : index
      %c0_426 = arith.constant 0 : index
      %694 = vector.load %arg7[%c0_424, %c4_425, %c0_426] : memref<2x24x128xf32, #tpu.memory_space<vmem>>, vector<1x16x128xf32>
      %695 = vector.shape_cast %694 : vector<1x16x128xf32> to vector<16x128xf32>
      %696 = vector.broadcast %693 : f32 to vector<16x128xf32>
      %697 = arith.mulf %696, %695 : vector<16x128xf32>
      %698 = arith.addf %692, %697 : vector<16x128xf32>
      %c40 = arith.constant 40 : index
      %699 = memref.load %arg3[%c40] : memref<98xf32, #tpu.memory_space<smem>>
      %c0_427 = arith.constant 0 : index
      %c5_428 = arith.constant 5 : index
      %c0_429 = arith.constant 0 : index
      %700 = vector.load %arg7[%c0_427, %c5_428, %c0_429] : memref<2x24x128xf32, #tpu.memory_space<vmem>>, vector<1x16x128xf32>
      %701 = vector.shape_cast %700 : vector<1x16x128xf32> to vector<16x128xf32>
      %702 = vector.broadcast %699 : f32 to vector<16x128xf32>
      %703 = arith.mulf %702, %701 : vector<16x128xf32>
      %704 = arith.addf %698, %703 : vector<16x128xf32>
      %c47 = arith.constant 47 : index
      %705 = memref.load %arg3[%c47] : memref<98xf32, #tpu.memory_space<smem>>
      %c0_430 = arith.constant 0 : index
      %c6_431 = arith.constant 6 : index
      %c0_432 = arith.constant 0 : index
      %706 = vector.load %arg7[%c0_430, %c6_431, %c0_432] : memref<2x24x128xf32, #tpu.memory_space<vmem>>, vector<1x16x128xf32>
      %707 = vector.shape_cast %706 : vector<1x16x128xf32> to vector<16x128xf32>
      %708 = vector.broadcast %705 : f32 to vector<16x128xf32>
      %709 = arith.mulf %708, %707 : vector<16x128xf32>
      %710 = arith.addf %704, %709 : vector<16x128xf32>
      %c54 = arith.constant 54 : index
      %711 = memref.load %arg3[%c54] : memref<98xf32, #tpu.memory_space<smem>>
      %c1_433 = arith.constant 1 : index
      %c0_434 = arith.constant 0 : index
      %c0_435 = arith.constant 0 : index
      %712 = vector.load %arg7[%c1_433, %c0_434, %c0_435] : memref<2x24x128xf32, #tpu.memory_space<vmem>>, vector<1x16x128xf32>
      %713 = vector.shape_cast %712 : vector<1x16x128xf32> to vector<16x128xf32>
      %714 = vector.broadcast %711 : f32 to vector<16x128xf32>
      %715 = arith.mulf %714, %713 : vector<16x128xf32>
      %716 = arith.addf %710, %715 : vector<16x128xf32>
      %c61 = arith.constant 61 : index
      %717 = memref.load %arg3[%c61] : memref<98xf32, #tpu.memory_space<smem>>
      %c1_436 = arith.constant 1 : index
      %c1_437 = arith.constant 1 : index
      %c0_438 = arith.constant 0 : index
      %718 = vector.load %arg7[%c1_436, %c1_437, %c0_438] : memref<2x24x128xf32, #tpu.memory_space<vmem>>, vector<1x16x128xf32>
      %719 = vector.shape_cast %718 : vector<1x16x128xf32> to vector<16x128xf32>
      %720 = vector.broadcast %717 : f32 to vector<16x128xf32>
      %721 = arith.mulf %720, %719 : vector<16x128xf32>
      %722 = arith.addf %716, %721 : vector<16x128xf32>
      %c68 = arith.constant 68 : index
      %723 = memref.load %arg3[%c68] : memref<98xf32, #tpu.memory_space<smem>>
      %c1_439 = arith.constant 1 : index
      %c2_440 = arith.constant 2 : index
      %c0_441 = arith.constant 0 : index
      %724 = vector.load %arg7[%c1_439, %c2_440, %c0_441] : memref<2x24x128xf32, #tpu.memory_space<vmem>>, vector<1x16x128xf32>
      %725 = vector.shape_cast %724 : vector<1x16x128xf32> to vector<16x128xf32>
      %726 = vector.broadcast %723 : f32 to vector<16x128xf32>
      %727 = arith.mulf %726, %725 : vector<16x128xf32>
      %728 = arith.addf %722, %727 : vector<16x128xf32>
      %c75 = arith.constant 75 : index
      %729 = memref.load %arg3[%c75] : memref<98xf32, #tpu.memory_space<smem>>
      %c1_442 = arith.constant 1 : index
      %c3_443 = arith.constant 3 : index
      %c0_444 = arith.constant 0 : index
      %730 = vector.load %arg7[%c1_442, %c3_443, %c0_444] : memref<2x24x128xf32, #tpu.memory_space<vmem>>, vector<1x16x128xf32>
      %731 = vector.shape_cast %730 : vector<1x16x128xf32> to vector<16x128xf32>
      %732 = vector.broadcast %729 : f32 to vector<16x128xf32>
      %733 = arith.mulf %732, %731 : vector<16x128xf32>
      %734 = arith.addf %728, %733 : vector<16x128xf32>
      %c82 = arith.constant 82 : index
      %735 = memref.load %arg3[%c82] : memref<98xf32, #tpu.memory_space<smem>>
      %c1_445 = arith.constant 1 : index
      %c4_446 = arith.constant 4 : index
      %c0_447 = arith.constant 0 : index
      %736 = vector.load %arg7[%c1_445, %c4_446, %c0_447] : memref<2x24x128xf32, #tpu.memory_space<vmem>>, vector<1x16x128xf32>
      %737 = vector.shape_cast %736 : vector<1x16x128xf32> to vector<16x128xf32>
      %738 = vector.broadcast %735 : f32 to vector<16x128xf32>
      %739 = arith.mulf %738, %737 : vector<16x128xf32>
      %740 = arith.addf %734, %739 : vector<16x128xf32>
      %c89 = arith.constant 89 : index
      %741 = memref.load %arg3[%c89] : memref<98xf32, #tpu.memory_space<smem>>
      %c1_448 = arith.constant 1 : index
      %c5_449 = arith.constant 5 : index
      %c0_450 = arith.constant 0 : index
      %742 = vector.load %arg7[%c1_448, %c5_449, %c0_450] : memref<2x24x128xf32, #tpu.memory_space<vmem>>, vector<1x16x128xf32>
      %743 = vector.shape_cast %742 : vector<1x16x128xf32> to vector<16x128xf32>
      %744 = vector.broadcast %741 : f32 to vector<16x128xf32>
      %745 = arith.mulf %744, %743 : vector<16x128xf32>
      %746 = arith.addf %740, %745 : vector<16x128xf32>
      %c96_451 = arith.constant 96 : index
      %747 = memref.load %arg3[%c96_451] : memref<98xf32, #tpu.memory_space<smem>>
      %c1_452 = arith.constant 1 : index
      %c6_453 = arith.constant 6 : index
      %c0_454 = arith.constant 0 : index
      %748 = vector.load %arg7[%c1_452, %c6_453, %c0_454] : memref<2x24x128xf32, #tpu.memory_space<vmem>>, vector<1x16x128xf32>
      %749 = vector.shape_cast %748 : vector<1x16x128xf32> to vector<16x128xf32>
      %750 = vector.broadcast %747 : f32 to vector<16x128xf32>
      %751 = arith.mulf %750, %749 : vector<16x128xf32>
      %752 = arith.addf %746, %751 : vector<16x128xf32>
      %753 = vector.extract_strided_slice %752 {offsets = [0, 5], sizes = [16, 16], strides = [1, 1]} : vector<16x128xf32> to vector<16x16xf32>
      %754 = arith.addf %667, %753 : vector<16x16xf32>
      %cst_455 = arith.constant 0.000000e+00 : f32
      %755 = vector.broadcast %cst_455 : f32 to vector<16x128xf32>
      %c6_456 = arith.constant 6 : index
      %756 = memref.load %arg3[%c6_456] : memref<98xf32, #tpu.memory_space<smem>>
      %c0_457 = arith.constant 0 : index
      %c0_458 = arith.constant 0 : index
      %c0_459 = arith.constant 0 : index
      %757 = vector.load %arg7[%c0_457, %c0_458, %c0_459] : memref<2x24x128xf32, #tpu.memory_space<vmem>>, vector<1x16x128xf32>
      %758 = vector.shape_cast %757 : vector<1x16x128xf32> to vector<16x128xf32>
      %759 = vector.broadcast %756 : f32 to vector<16x128xf32>
      %760 = arith.mulf %759, %758 : vector<16x128xf32>
      %761 = arith.addf %755, %760 : vector<16x128xf32>
      %c13_460 = arith.constant 13 : index
      %762 = memref.load %arg3[%c13_460] : memref<98xf32, #tpu.memory_space<smem>>
      %c0_461 = arith.constant 0 : index
      %c1_462 = arith.constant 1 : index
      %c0_463 = arith.constant 0 : index
      %763 = vector.load %arg7[%c0_461, %c1_462, %c0_463] : memref<2x24x128xf32, #tpu.memory_space<vmem>>, vector<1x16x128xf32>
      %764 = vector.shape_cast %763 : vector<1x16x128xf32> to vector<16x128xf32>
      %765 = vector.broadcast %762 : f32 to vector<16x128xf32>
      %766 = arith.mulf %765, %764 : vector<16x128xf32>
      %767 = arith.addf %761, %766 : vector<16x128xf32>
      %c20 = arith.constant 20 : index
      %768 = memref.load %arg3[%c20] : memref<98xf32, #tpu.memory_space<smem>>
      %c0_464 = arith.constant 0 : index
      %c2_465 = arith.constant 2 : index
      %c0_466 = arith.constant 0 : index
      %769 = vector.load %arg7[%c0_464, %c2_465, %c0_466] : memref<2x24x128xf32, #tpu.memory_space<vmem>>, vector<1x16x128xf32>
      %770 = vector.shape_cast %769 : vector<1x16x128xf32> to vector<16x128xf32>
      %771 = vector.broadcast %768 : f32 to vector<16x128xf32>
      %772 = arith.mulf %771, %770 : vector<16x128xf32>
      %773 = arith.addf %767, %772 : vector<16x128xf32>
      %c27 = arith.constant 27 : index
      %774 = memref.load %arg3[%c27] : memref<98xf32, #tpu.memory_space<smem>>
      %c0_467 = arith.constant 0 : index
      %c3_468 = arith.constant 3 : index
      %c0_469 = arith.constant 0 : index
      %775 = vector.load %arg7[%c0_467, %c3_468, %c0_469] : memref<2x24x128xf32, #tpu.memory_space<vmem>>, vector<1x16x128xf32>
      %776 = vector.shape_cast %775 : vector<1x16x128xf32> to vector<16x128xf32>
      %777 = vector.broadcast %774 : f32 to vector<16x128xf32>
      %778 = arith.mulf %777, %776 : vector<16x128xf32>
      %779 = arith.addf %773, %778 : vector<16x128xf32>
      %c34 = arith.constant 34 : index
      %780 = memref.load %arg3[%c34] : memref<98xf32, #tpu.memory_space<smem>>
      %c0_470 = arith.constant 0 : index
      %c4_471 = arith.constant 4 : index
      %c0_472 = arith.constant 0 : index
      %781 = vector.load %arg7[%c0_470, %c4_471, %c0_472] : memref<2x24x128xf32, #tpu.memory_space<vmem>>, vector<1x16x128xf32>
      %782 = vector.shape_cast %781 : vector<1x16x128xf32> to vector<16x128xf32>
      %783 = vector.broadcast %780 : f32 to vector<16x128xf32>
      %784 = arith.mulf %783, %782 : vector<16x128xf32>
      %785 = arith.addf %779, %784 : vector<16x128xf32>
      %c41 = arith.constant 41 : index
      %786 = memref.load %arg3[%c41] : memref<98xf32, #tpu.memory_space<smem>>
      %c0_473 = arith.constant 0 : index
      %c5_474 = arith.constant 5 : index
      %c0_475 = arith.constant 0 : index
      %787 = vector.load %arg7[%c0_473, %c5_474, %c0_475] : memref<2x24x128xf32, #tpu.memory_space<vmem>>, vector<1x16x128xf32>
      %788 = vector.shape_cast %787 : vector<1x16x128xf32> to vector<16x128xf32>
      %789 = vector.broadcast %786 : f32 to vector<16x128xf32>
      %790 = arith.mulf %789, %788 : vector<16x128xf32>
      %791 = arith.addf %785, %790 : vector<16x128xf32>
      %c48_476 = arith.constant 48 : index
      %792 = memref.load %arg3[%c48_476] : memref<98xf32, #tpu.memory_space<smem>>
      %c0_477 = arith.constant 0 : index
      %c6_478 = arith.constant 6 : index
      %c0_479 = arith.constant 0 : index
      %793 = vector.load %arg7[%c0_477, %c6_478, %c0_479] : memref<2x24x128xf32, #tpu.memory_space<vmem>>, vector<1x16x128xf32>
      %794 = vector.shape_cast %793 : vector<1x16x128xf32> to vector<16x128xf32>
      %795 = vector.broadcast %792 : f32 to vector<16x128xf32>
      %796 = arith.mulf %795, %794 : vector<16x128xf32>
      %797 = arith.addf %791, %796 : vector<16x128xf32>
      %c55 = arith.constant 55 : index
      %798 = memref.load %arg3[%c55] : memref<98xf32, #tpu.memory_space<smem>>
      %c1_480 = arith.constant 1 : index
      %c0_481 = arith.constant 0 : index
      %c0_482 = arith.constant 0 : index
      %799 = vector.load %arg7[%c1_480, %c0_481, %c0_482] : memref<2x24x128xf32, #tpu.memory_space<vmem>>, vector<1x16x128xf32>
      %800 = vector.shape_cast %799 : vector<1x16x128xf32> to vector<16x128xf32>
      %801 = vector.broadcast %798 : f32 to vector<16x128xf32>
      %802 = arith.mulf %801, %800 : vector<16x128xf32>
      %803 = arith.addf %797, %802 : vector<16x128xf32>
      %c62 = arith.constant 62 : index
      %804 = memref.load %arg3[%c62] : memref<98xf32, #tpu.memory_space<smem>>
      %c1_483 = arith.constant 1 : index
      %c1_484 = arith.constant 1 : index
      %c0_485 = arith.constant 0 : index
      %805 = vector.load %arg7[%c1_483, %c1_484, %c0_485] : memref<2x24x128xf32, #tpu.memory_space<vmem>>, vector<1x16x128xf32>
      %806 = vector.shape_cast %805 : vector<1x16x128xf32> to vector<16x128xf32>
      %807 = vector.broadcast %804 : f32 to vector<16x128xf32>
      %808 = arith.mulf %807, %806 : vector<16x128xf32>
      %809 = arith.addf %803, %808 : vector<16x128xf32>
      %c69 = arith.constant 69 : index
      %810 = memref.load %arg3[%c69] : memref<98xf32, #tpu.memory_space<smem>>
      %c1_486 = arith.constant 1 : index
      %c2_487 = arith.constant 2 : index
      %c0_488 = arith.constant 0 : index
      %811 = vector.load %arg7[%c1_486, %c2_487, %c0_488] : memref<2x24x128xf32, #tpu.memory_space<vmem>>, vector<1x16x128xf32>
      %812 = vector.shape_cast %811 : vector<1x16x128xf32> to vector<16x128xf32>
      %813 = vector.broadcast %810 : f32 to vector<16x128xf32>
      %814 = arith.mulf %813, %812 : vector<16x128xf32>
      %815 = arith.addf %809, %814 : vector<16x128xf32>
      %c76 = arith.constant 76 : index
      %816 = memref.load %arg3[%c76] : memref<98xf32, #tpu.memory_space<smem>>
      %c1_489 = arith.constant 1 : index
      %c3_490 = arith.constant 3 : index
      %c0_491 = arith.constant 0 : index
      %817 = vector.load %arg7[%c1_489, %c3_490, %c0_491] : memref<2x24x128xf32, #tpu.memory_space<vmem>>, vector<1x16x128xf32>
      %818 = vector.shape_cast %817 : vector<1x16x128xf32> to vector<16x128xf32>
      %819 = vector.broadcast %816 : f32 to vector<16x128xf32>
      %820 = arith.mulf %819, %818 : vector<16x128xf32>
      %821 = arith.addf %815, %820 : vector<16x128xf32>
      %c83 = arith.constant 83 : index
      %822 = memref.load %arg3[%c83] : memref<98xf32, #tpu.memory_space<smem>>
      %c1_492 = arith.constant 1 : index
      %c4_493 = arith.constant 4 : index
      %c0_494 = arith.constant 0 : index
      %823 = vector.load %arg7[%c1_492, %c4_493, %c0_494] : memref<2x24x128xf32, #tpu.memory_space<vmem>>, vector<1x16x128xf32>
      %824 = vector.shape_cast %823 : vector<1x16x128xf32> to vector<16x128xf32>
      %825 = vector.broadcast %822 : f32 to vector<16x128xf32>
      %826 = arith.mulf %825, %824 : vector<16x128xf32>
      %827 = arith.addf %821, %826 : vector<16x128xf32>
      %c90 = arith.constant 90 : index
      %828 = memref.load %arg3[%c90] : memref<98xf32, #tpu.memory_space<smem>>
      %c1_495 = arith.constant 1 : index
      %c5_496 = arith.constant 5 : index
      %c0_497 = arith.constant 0 : index
      %829 = vector.load %arg7[%c1_495, %c5_496, %c0_497] : memref<2x24x128xf32, #tpu.memory_space<vmem>>, vector<1x16x128xf32>
      %830 = vector.shape_cast %829 : vector<1x16x128xf32> to vector<16x128xf32>
      %831 = vector.broadcast %828 : f32 to vector<16x128xf32>
      %832 = arith.mulf %831, %830 : vector<16x128xf32>
      %833 = arith.addf %827, %832 : vector<16x128xf32>
      %c97 = arith.constant 97 : index
      %834 = memref.load %arg3[%c97] : memref<98xf32, #tpu.memory_space<smem>>
      %c1_498 = arith.constant 1 : index
      %c6_499 = arith.constant 6 : index
      %c0_500 = arith.constant 0 : index
      %835 = vector.load %arg7[%c1_498, %c6_499, %c0_500] : memref<2x24x128xf32, #tpu.memory_space<vmem>>, vector<1x16x128xf32>
      %836 = vector.shape_cast %835 : vector<1x16x128xf32> to vector<16x128xf32>
      %837 = vector.broadcast %834 : f32 to vector<16x128xf32>
      %838 = arith.mulf %837, %836 : vector<16x128xf32>
      %839 = arith.addf %833, %838 : vector<16x128xf32>
      %840 = vector.extract_strided_slice %839 {offsets = [0, 6], sizes = [16, 16], strides = [1, 1]} : vector<16x128xf32> to vector<16x16xf32>
      %841 = arith.addf %754, %840 : vector<16x16xf32>
      %cst_501 = arith.constant 0.000000e+00 : f32
      %842 = vector.broadcast %cst_501 : f32 to vector<16x16xf32>
      %843 = arith.subf %842, %841 : vector<16x16xf32>
      %844 = math.exp %843 : vector<16x16xf32>
      %cst_502 = arith.constant 1.000000e+00 : f32
      %845 = vector.broadcast %cst_502 : f32 to vector<16x16xf32>
      %846 = arith.addf %845, %844 : vector<16x16xf32>
      %cst_503 = arith.constant 1.000000e+00 : f32
      %847 = vector.broadcast %cst_503 : f32 to vector<16x16xf32>
      %848 = arith.divf %847, %846 : vector<16x16xf32>
      %c0_504 = arith.constant 0 : index
      %c0_505 = arith.constant 0 : index
      %c0_506 = arith.constant 0 : index
      %c0_507 = arith.constant 0 : index
      %849 = vector.load %arg4[%c0_504, %c0_505, %c0_506, %c0_507] : memref<2x1x16x16xf32, #tpu.memory_space<vmem>>, vector<1x1x16x16xf32>
      %850 = vector.shape_cast %849 : vector<1x1x16x16xf32> to vector<16x16xf32>
      %851 = vector.shape_cast %848 : vector<16x16xf32> to vector<1x1x16x16xf32>
      tpu.vector_store %arg4[%c0_504, %c0_505, %c0_506, %c0_507], %851 {strides = array<i32>} : memref<2x1x16x16xf32, #tpu.memory_space<vmem>>, vector<1x1x16x16xf32>,
      %c1_508 = arith.constant 1 : index
      %c0_509 = arith.constant 0 : index
      %852 = vector.load %arg5[%c1_508, %c0_509] : memref<2x256xf32, #tpu.memory_space<vmem>>, vector<1x16xf32>
      %853 = vector.shape_cast %852 : vector<1x16xf32> to vector<16xf32>
      %cst_510 = arith.constant 2.500000e-01 : f32
      %854 = vector.broadcast %cst_510 : f32 to vector<16xf32>
      %855 = arith.mulf %853, %854 : vector<16xf32>
      %c0_511 = arith.constant 0 : index
      %c3_512 = arith.constant 3 : index
      %c3_513 = arith.constant 3 : index
      %856 = vector.load %arg7[%c0_511, %c3_512, %c3_513] : memref<2x24x128xf32, #tpu.memory_space<vmem>>, vector<1x1x16xf32>
      %857 = vector.shape_cast %856 : vector<1x1x16xf32> to vector<16xf32>
      %858 = vector.shape_cast %855 : vector<16xf32> to vector<1x1x16xf32>
      tpu.vector_store %arg7[%c0_511, %c3_512, %c3_513], %858 {strides = array<i32>} : memref<2x24x128xf32, #tpu.memory_space<vmem>>, vector<1x1x16xf32>,
      %c1_514 = arith.constant 1 : index
      %c0_515 = arith.constant 0 : index
      %859 = vector.load %arg6[%c1_514, %c0_515] : memref<2x256xf32, #tpu.memory_space<vmem>>, vector<1x16xf32>
      %860 = vector.shape_cast %859 : vector<1x16xf32> to vector<16xf32>
      %c1_516 = arith.constant 1 : index
      %c3_517 = arith.constant 3 : index
      %c3_518 = arith.constant 3 : index
      %861 = vector.load %arg7[%c1_516, %c3_517, %c3_518] : memref<2x24x128xf32, #tpu.memory_space<vmem>>, vector<1x1x16xf32>
      %862 = vector.shape_cast %861 : vector<1x1x16xf32> to vector<16xf32>
      %863 = vector.shape_cast %860 : vector<16xf32> to vector<1x1x16xf32>
      tpu.vector_store %arg7[%c1_516, %c3_517, %c3_518], %863 {strides = array<i32>} : memref<2x24x128xf32, #tpu.memory_space<vmem>>, vector<1x1x16xf32>,
      %c1_519 = arith.constant 1 : index
      %c16_520 = arith.constant 16 : index
      %864 = vector.load %arg5[%c1_519, %c16_520] : memref<2x256xf32, #tpu.memory_space<vmem>>, vector<1x16xf32>
      %865 = vector.shape_cast %864 : vector<1x16xf32> to vector<16xf32>
      %cst_521 = arith.constant 2.500000e-01 : f32
      %866 = vector.broadcast %cst_521 : f32 to vector<16xf32>
      %867 = arith.mulf %865, %866 : vector<16xf32>
      %c0_522 = arith.constant 0 : index
      %c4_523 = arith.constant 4 : index
      %c3_524 = arith.constant 3 : index
      %868 = vector.load %arg7[%c0_522, %c4_523, %c3_524] : memref<2x24x128xf32, #tpu.memory_space<vmem>>, vector<1x1x16xf32>
      %869 = vector.shape_cast %868 : vector<1x1x16xf32> to vector<16xf32>
      %870 = vector.shape_cast %867 : vector<16xf32> to vector<1x1x16xf32>
      tpu.vector_store %arg7[%c0_522, %c4_523, %c3_524], %870 {strides = array<i32>} : memref<2x24x128xf32, #tpu.memory_space<vmem>>, vector<1x1x16xf32>,
      %c1_525 = arith.constant 1 : index
      %c16_526 = arith.constant 16 : index
      %871 = vector.load %arg6[%c1_525, %c16_526] : memref<2x256xf32, #tpu.memory_space<vmem>>, vector<1x16xf32>
      %872 = vector.shape_cast %871 : vector<1x16xf32> to vector<16xf32>
      %c1_527 = arith.constant 1 : index
      %c4_528 = arith.constant 4 : index
      %c3_529 = arith.constant 3 : index
      %873 = vector.load %arg7[%c1_527, %c4_528, %c3_529] : memref<2x24x128xf32, #tpu.memory_space<vmem>>, vector<1x1x16xf32>
      %874 = vector.shape_cast %873 : vector<1x1x16xf32> to vector<16xf32>
      %875 = vector.shape_cast %872 : vector<16xf32> to vector<1x1x16xf32>
      tpu.vector_store %arg7[%c1_527, %c4_528, %c3_529], %875 {strides = array<i32>} : memref<2x24x128xf32, #tpu.memory_space<vmem>>, vector<1x1x16xf32>,
      %c1_530 = arith.constant 1 : index
      %c32_531 = arith.constant 32 : index
      %876 = vector.load %arg5[%c1_530, %c32_531] : memref<2x256xf32, #tpu.memory_space<vmem>>, vector<1x16xf32>
      %877 = vector.shape_cast %876 : vector<1x16xf32> to vector<16xf32>
      %cst_532 = arith.constant 2.500000e-01 : f32
      %878 = vector.broadcast %cst_532 : f32 to vector<16xf32>
      %879 = arith.mulf %877, %878 : vector<16xf32>
      %c0_533 = arith.constant 0 : index
      %c5_534 = arith.constant 5 : index
      %c3_535 = arith.constant 3 : index
      %880 = vector.load %arg7[%c0_533, %c5_534, %c3_535] : memref<2x24x128xf32, #tpu.memory_space<vmem>>, vector<1x1x16xf32>
      %881 = vector.shape_cast %880 : vector<1x1x16xf32> to vector<16xf32>
      %882 = vector.shape_cast %879 : vector<16xf32> to vector<1x1x16xf32>
      tpu.vector_store %arg7[%c0_533, %c5_534, %c3_535], %882 {strides = array<i32>} : memref<2x24x128xf32, #tpu.memory_space<vmem>>, vector<1x1x16xf32>,
      %c1_536 = arith.constant 1 : index
      %c32_537 = arith.constant 32 : index
      %883 = vector.load %arg6[%c1_536, %c32_537] : memref<2x256xf32, #tpu.memory_space<vmem>>, vector<1x16xf32>
      %884 = vector.shape_cast %883 : vector<1x16xf32> to vector<16xf32>
      %c1_538 = arith.constant 1 : index
      %c5_539 = arith.constant 5 : index
      %c3_540 = arith.constant 3 : index
      %885 = vector.load %arg7[%c1_538, %c5_539, %c3_540] : memref<2x24x128xf32, #tpu.memory_space<vmem>>, vector<1x1x16xf32>
      %886 = vector.shape_cast %885 : vector<1x1x16xf32> to vector<16xf32>
      %887 = vector.shape_cast %884 : vector<16xf32> to vector<1x1x16xf32>
      tpu.vector_store %arg7[%c1_538, %c5_539, %c3_540], %887 {strides = array<i32>} : memref<2x24x128xf32, #tpu.memory_space<vmem>>, vector<1x1x16xf32>,
      %c1_541 = arith.constant 1 : index
      %c48_542 = arith.constant 48 : index
      %888 = vector.load %arg5[%c1_541, %c48_542] : memref<2x256xf32, #tpu.memory_space<vmem>>, vector<1x16xf32>
      %889 = vector.shape_cast %888 : vector<1x16xf32> to vector<16xf32>
      %cst_543 = arith.constant 2.500000e-01 : f32
      %890 = vector.broadcast %cst_543 : f32 to vector<16xf32>
      %891 = arith.mulf %889, %890 : vector<16xf32>
      %c0_544 = arith.constant 0 : index
      %c6_545 = arith.constant 6 : index
      %c3_546 = arith.constant 3 : index
      %892 = vector.load %arg7[%c0_544, %c6_545, %c3_546] : memref<2x24x128xf32, #tpu.memory_space<vmem>>, vector<1x1x16xf32>
      %893 = vector.shape_cast %892 : vector<1x1x16xf32> to vector<16xf32>
      %894 = vector.shape_cast %891 : vector<16xf32> to vector<1x1x16xf32>
      tpu.vector_store %arg7[%c0_544, %c6_545, %c3_546], %894 {strides = array<i32>} : memref<2x24x128xf32, #tpu.memory_space<vmem>>, vector<1x1x16xf32>,
      %c1_547 = arith.constant 1 : index
      %c48_548 = arith.constant 48 : index
      %895 = vector.load %arg6[%c1_547, %c48_548] : memref<2x256xf32, #tpu.memory_space<vmem>>, vector<1x16xf32>
      %896 = vector.shape_cast %895 : vector<1x16xf32> to vector<16xf32>
      %c1_549 = arith.constant 1 : index
      %c6_550 = arith.constant 6 : index
      %c3_551 = arith.constant 3 : index
      %897 = vector.load %arg7[%c1_549, %c6_550, %c3_551] : memref<2x24x128xf32, #tpu.memory_space<vmem>>, vector<1x1x16xf32>
      %898 = vector.shape_cast %897 : vector<1x1x16xf32> to vector<16xf32>
      %899 = vector.shape_cast %896 : vector<16xf32> to vector<1x1x16xf32>
      tpu.vector_store %arg7[%c1_549, %c6_550, %c3_551], %899 {strides = array<i32>} : memref<2x24x128xf32, #tpu.memory_space<vmem>>, vector<1x1x16xf32>,
      %c1_552 = arith.constant 1 : index
      %c64_553 = arith.constant 64 : index
      %900 = vector.load %arg5[%c1_552, %c64_553] : memref<2x256xf32, #tpu.memory_space<vmem>>, vector<1x16xf32>
      %901 = vector.shape_cast %900 : vector<1x16xf32> to vector<16xf32>
      %cst_554 = arith.constant 2.500000e-01 : f32
      %902 = vector.broadcast %cst_554 : f32 to vector<16xf32>
      %903 = arith.mulf %901, %902 : vector<16xf32>
      %c0_555 = arith.constant 0 : index
      %c7_556 = arith.constant 7 : index
      %c3_557 = arith.constant 3 : index
      %904 = vector.load %arg7[%c0_555, %c7_556, %c3_557] : memref<2x24x128xf32, #tpu.memory_space<vmem>>, vector<1x1x16xf32>
      %905 = vector.shape_cast %904 : vector<1x1x16xf32> to vector<16xf32>
      %906 = vector.shape_cast %903 : vector<16xf32> to vector<1x1x16xf32>
      tpu.vector_store %arg7[%c0_555, %c7_556, %c3_557], %906 {strides = array<i32>} : memref<2x24x128xf32, #tpu.memory_space<vmem>>, vector<1x1x16xf32>,
      %c1_558 = arith.constant 1 : index
      %c64_559 = arith.constant 64 : index
      %907 = vector.load %arg6[%c1_558, %c64_559] : memref<2x256xf32, #tpu.memory_space<vmem>>, vector<1x16xf32>
      %908 = vector.shape_cast %907 : vector<1x16xf32> to vector<16xf32>
      %c1_560 = arith.constant 1 : index
      %c7_561 = arith.constant 7 : index
      %c3_562 = arith.constant 3 : index
      %909 = vector.load %arg7[%c1_560, %c7_561, %c3_562] : memref<2x24x128xf32, #tpu.memory_space<vmem>>, vector<1x1x16xf32>
      %910 = vector.shape_cast %909 : vector<1x1x16xf32> to vector<16xf32>
      %911 = vector.shape_cast %908 : vector<16xf32> to vector<1x1x16xf32>
      tpu.vector_store %arg7[%c1_560, %c7_561, %c3_562], %911 {strides = array<i32>} : memref<2x24x128xf32, #tpu.memory_space<vmem>>, vector<1x1x16xf32>,
      %c1_563 = arith.constant 1 : index
      %c80_564 = arith.constant 80 : index
      %912 = vector.load %arg5[%c1_563, %c80_564] : memref<2x256xf32, #tpu.memory_space<vmem>>, vector<1x16xf32>
      %913 = vector.shape_cast %912 : vector<1x16xf32> to vector<16xf32>
      %cst_565 = arith.constant 2.500000e-01 : f32
      %914 = vector.broadcast %cst_565 : f32 to vector<16xf32>
      %915 = arith.mulf %913, %914 : vector<16xf32>
      %c0_566 = arith.constant 0 : index
      %c8_567 = arith.constant 8 : index
      %c3_568 = arith.constant 3 : index
      %916 = vector.load %arg7[%c0_566, %c8_567, %c3_568] : memref<2x24x128xf32, #tpu.memory_space<vmem>>, vector<1x1x16xf32>
      %917 = vector.shape_cast %916 : vector<1x1x16xf32> to vector<16xf32>
      %918 = vector.shape_cast %915 : vector<16xf32> to vector<1x1x16xf32>
      tpu.vector_store %arg7[%c0_566, %c8_567, %c3_568], %918 {strides = array<i32>} : memref<2x24x128xf32, #tpu.memory_space<vmem>>, vector<1x1x16xf32>,
      %c1_569 = arith.constant 1 : index
      %c80_570 = arith.constant 80 : index
      %919 = vector.load %arg6[%c1_569, %c80_570] : memref<2x256xf32, #tpu.memory_space<vmem>>, vector<1x16xf32>
      %920 = vector.shape_cast %919 : vector<1x16xf32> to vector<16xf32>
      %c1_571 = arith.constant 1 : index
      %c8_572 = arith.constant 8 : index
      %c3_573 = arith.constant 3 : index
      %921 = vector.load %arg7[%c1_571, %c8_572, %c3_573] : memref<2x24x128xf32, #tpu.memory_space<vmem>>, vector<1x1x16xf32>
      %922 = vector.shape_cast %921 : vector<1x1x16xf32> to vector<16xf32>
      %923 = vector.shape_cast %920 : vector<16xf32> to vector<1x1x16xf32>
      tpu.vector_store %arg7[%c1_571, %c8_572, %c3_573], %923 {strides = array<i32>} : memref<2x24x128xf32, #tpu.memory_space<vmem>>, vector<1x1x16xf32>,
      %c1_574 = arith.constant 1 : index
      %c96_575 = arith.constant 96 : index
      %924 = vector.load %arg5[%c1_574, %c96_575] : memref<2x256xf32, #tpu.memory_space<vmem>>, vector<1x16xf32>
      %925 = vector.shape_cast %924 : vector<1x16xf32> to vector<16xf32>
      %cst_576 = arith.constant 2.500000e-01 : f32
      %926 = vector.broadcast %cst_576 : f32 to vector<16xf32>
      %927 = arith.mulf %925, %926 : vector<16xf32>
      %c0_577 = arith.constant 0 : index
      %c9_578 = arith.constant 9 : index
      %c3_579 = arith.constant 3 : index
      %928 = vector.load %arg7[%c0_577, %c9_578, %c3_579] : memref<2x24x128xf32, #tpu.memory_space<vmem>>, vector<1x1x16xf32>
      %929 = vector.shape_cast %928 : vector<1x1x16xf32> to vector<16xf32>
      %930 = vector.shape_cast %927 : vector<16xf32> to vector<1x1x16xf32>
      tpu.vector_store %arg7[%c0_577, %c9_578, %c3_579], %930 {strides = array<i32>} : memref<2x24x128xf32, #tpu.memory_space<vmem>>, vector<1x1x16xf32>,
      %c1_580 = arith.constant 1 : index
      %c96_581 = arith.constant 96 : index
      %931 = vector.load %arg6[%c1_580, %c96_581] : memref<2x256xf32, #tpu.memory_space<vmem>>, vector<1x16xf32>
      %932 = vector.shape_cast %931 : vector<1x16xf32> to vector<16xf32>
      %c1_582 = arith.constant 1 : index
      %c9_583 = arith.constant 9 : index
      %c3_584 = arith.constant 3 : index
      %933 = vector.load %arg7[%c1_582, %c9_583, %c3_584] : memref<2x24x128xf32, #tpu.memory_space<vmem>>, vector<1x1x16xf32>
      %934 = vector.shape_cast %933 : vector<1x1x16xf32> to vector<16xf32>
      %935 = vector.shape_cast %932 : vector<16xf32> to vector<1x1x16xf32>
      tpu.vector_store %arg7[%c1_582, %c9_583, %c3_584], %935 {strides = array<i32>} : memref<2x24x128xf32, #tpu.memory_space<vmem>>, vector<1x1x16xf32>,
      %c1_585 = arith.constant 1 : index
      %c112_586 = arith.constant 112 : index
      %936 = vector.load %arg5[%c1_585, %c112_586] : memref<2x256xf32, #tpu.memory_space<vmem>>, vector<1x16xf32>
      %937 = vector.shape_cast %936 : vector<1x16xf32> to vector<16xf32>
      %cst_587 = arith.constant 2.500000e-01 : f32
      %938 = vector.broadcast %cst_587 : f32 to vector<16xf32>
      %939 = arith.mulf %937, %938 : vector<16xf32>
      %c0_588 = arith.constant 0 : index
      %c10_589 = arith.constant 10 : index
      %c3_590 = arith.constant 3 : index
      %940 = vector.load %arg7[%c0_588, %c10_589, %c3_590] : memref<2x24x128xf32, #tpu.memory_space<vmem>>, vector<1x1x16xf32>
      %941 = vector.shape_cast %940 : vector<1x1x16xf32> to vector<16xf32>
      %942 = vector.shape_cast %939 : vector<16xf32> to vector<1x1x16xf32>
      tpu.vector_store %arg7[%c0_588, %c10_589, %c3_590], %942 {strides = array<i32>} : memref<2x24x128xf32, #tpu.memory_space<vmem>>, vector<1x1x16xf32>,
      %c1_591 = arith.constant 1 : index
      %c112_592 = arith.constant 112 : index
      %943 = vector.load %arg6[%c1_591, %c112_592] : memref<2x256xf32, #tpu.memory_space<vmem>>, vector<1x16xf32>
      %944 = vector.shape_cast %943 : vector<1x16xf32> to vector<16xf32>
      %c1_593 = arith.constant 1 : index
      %c10_594 = arith.constant 10 : index
      %c3_595 = arith.constant 3 : index
      %945 = vector.load %arg7[%c1_593, %c10_594, %c3_595] : memref<2x24x128xf32, #tpu.memory_space<vmem>>, vector<1x1x16xf32>
      %946 = vector.shape_cast %945 : vector<1x1x16xf32> to vector<16xf32>
      %947 = vector.shape_cast %944 : vector<16xf32> to vector<1x1x16xf32>
      tpu.vector_store %arg7[%c1_593, %c10_594, %c3_595], %947 {strides = array<i32>} : memref<2x24x128xf32, #tpu.memory_space<vmem>>, vector<1x1x16xf32>,
      %c1_596 = arith.constant 1 : index
      %c128_597 = arith.constant 128 : index
      %948 = vector.load %arg5[%c1_596, %c128_597] : memref<2x256xf32, #tpu.memory_space<vmem>>, vector<1x16xf32>
      %949 = vector.shape_cast %948 : vector<1x16xf32> to vector<16xf32>
      %cst_598 = arith.constant 2.500000e-01 : f32
      %950 = vector.broadcast %cst_598 : f32 to vector<16xf32>
      %951 = arith.mulf %949, %950 : vector<16xf32>
      %c0_599 = arith.constant 0 : index
      %c11_600 = arith.constant 11 : index
      %c3_601 = arith.constant 3 : index
      %952 = vector.load %arg7[%c0_599, %c11_600, %c3_601] : memref<2x24x128xf32, #tpu.memory_space<vmem>>, vector<1x1x16xf32>
      %953 = vector.shape_cast %952 : vector<1x1x16xf32> to vector<16xf32>
      %954 = vector.shape_cast %951 : vector<16xf32> to vector<1x1x16xf32>
      tpu.vector_store %arg7[%c0_599, %c11_600, %c3_601], %954 {strides = array<i32>} : memref<2x24x128xf32, #tpu.memory_space<vmem>>, vector<1x1x16xf32>,
      %c1_602 = arith.constant 1 : index
      %c128_603 = arith.constant 128 : index
      %955 = vector.load %arg6[%c1_602, %c128_603] : memref<2x256xf32, #tpu.memory_space<vmem>>, vector<1x16xf32>
      %956 = vector.shape_cast %955 : vector<1x16xf32> to vector<16xf32>
      %c1_604 = arith.constant 1 : index
      %c11_605 = arith.constant 11 : index
      %c3_606 = arith.constant 3 : index
      %957 = vector.load %arg7[%c1_604, %c11_605, %c3_606] : memref<2x24x128xf32, #tpu.memory_space<vmem>>, vector<1x1x16xf32>
      %958 = vector.shape_cast %957 : vector<1x1x16xf32> to vector<16xf32>
      %959 = vector.shape_cast %956 : vector<16xf32> to vector<1x1x16xf32>
      tpu.vector_store %arg7[%c1_604, %c11_605, %c3_606], %959 {strides = array<i32>} : memref<2x24x128xf32, #tpu.memory_space<vmem>>, vector<1x1x16xf32>,
      %c1_607 = arith.constant 1 : index
      %c144_608 = arith.constant 144 : index
      %960 = vector.load %arg5[%c1_607, %c144_608] : memref<2x256xf32, #tpu.memory_space<vmem>>, vector<1x16xf32>
      %961 = vector.shape_cast %960 : vector<1x16xf32> to vector<16xf32>
      %cst_609 = arith.constant 2.500000e-01 : f32
      %962 = vector.broadcast %cst_609 : f32 to vector<16xf32>
      %963 = arith.mulf %961, %962 : vector<16xf32>
      %c0_610 = arith.constant 0 : index
      %c12_611 = arith.constant 12 : index
      %c3_612 = arith.constant 3 : index
      %964 = vector.load %arg7[%c0_610, %c12_611, %c3_612] : memref<2x24x128xf32, #tpu.memory_space<vmem>>, vector<1x1x16xf32>
      %965 = vector.shape_cast %964 : vector<1x1x16xf32> to vector<16xf32>
      %966 = vector.shape_cast %963 : vector<16xf32> to vector<1x1x16xf32>
      tpu.vector_store %arg7[%c0_610, %c12_611, %c3_612], %966 {strides = array<i32>} : memref<2x24x128xf32, #tpu.memory_space<vmem>>, vector<1x1x16xf32>,
      %c1_613 = arith.constant 1 : index
      %c144_614 = arith.constant 144 : index
      %967 = vector.load %arg6[%c1_613, %c144_614] : memref<2x256xf32, #tpu.memory_space<vmem>>, vector<1x16xf32>
      %968 = vector.shape_cast %967 : vector<1x16xf32> to vector<16xf32>
      %c1_615 = arith.constant 1 : index
      %c12_616 = arith.constant 12 : index
      %c3_617 = arith.constant 3 : index
      %969 = vector.load %arg7[%c1_615, %c12_616, %c3_617] : memref<2x24x128xf32, #tpu.memory_space<vmem>>, vector<1x1x16xf32>
      %970 = vector.shape_cast %969 : vector<1x1x16xf32> to vector<16xf32>
      %971 = vector.shape_cast %968 : vector<16xf32> to vector<1x1x16xf32>
      tpu.vector_store %arg7[%c1_615, %c12_616, %c3_617], %971 {strides = array<i32>} : memref<2x24x128xf32, #tpu.memory_space<vmem>>, vector<1x1x16xf32>,
      %c1_618 = arith.constant 1 : index
      %c160_619 = arith.constant 160 : index
      %972 = vector.load %arg5[%c1_618, %c160_619] : memref<2x256xf32, #tpu.memory_space<vmem>>, vector<1x16xf32>
      %973 = vector.shape_cast %972 : vector<1x16xf32> to vector<16xf32>
      %cst_620 = arith.constant 2.500000e-01 : f32
      %974 = vector.broadcast %cst_620 : f32 to vector<16xf32>
      %975 = arith.mulf %973, %974 : vector<16xf32>
      %c0_621 = arith.constant 0 : index
      %c13_622 = arith.constant 13 : index
      %c3_623 = arith.constant 3 : index
      %976 = vector.load %arg7[%c0_621, %c13_622, %c3_623] : memref<2x24x128xf32, #tpu.memory_space<vmem>>, vector<1x1x16xf32>
      %977 = vector.shape_cast %976 : vector<1x1x16xf32> to vector<16xf32>
      %978 = vector.shape_cast %975 : vector<16xf32> to vector<1x1x16xf32>
      tpu.vector_store %arg7[%c0_621, %c13_622, %c3_623], %978 {strides = array<i32>} : memref<2x24x128xf32, #tpu.memory_space<vmem>>, vector<1x1x16xf32>,
      %c1_624 = arith.constant 1 : index
      %c160_625 = arith.constant 160 : index
      %979 = vector.load %arg6[%c1_624, %c160_625] : memref<2x256xf32, #tpu.memory_space<vmem>>, vector<1x16xf32>
      %980 = vector.shape_cast %979 : vector<1x16xf32> to vector<16xf32>
      %c1_626 = arith.constant 1 : index
      %c13_627 = arith.constant 13 : index
      %c3_628 = arith.constant 3 : index
      %981 = vector.load %arg7[%c1_626, %c13_627, %c3_628] : memref<2x24x128xf32, #tpu.memory_space<vmem>>, vector<1x1x16xf32>
      %982 = vector.shape_cast %981 : vector<1x1x16xf32> to vector<16xf32>
      %983 = vector.shape_cast %980 : vector<16xf32> to vector<1x1x16xf32>
      tpu.vector_store %arg7[%c1_626, %c13_627, %c3_628], %983 {strides = array<i32>} : memref<2x24x128xf32, #tpu.memory_space<vmem>>, vector<1x1x16xf32>,
      %c1_629 = arith.constant 1 : index
      %c176_630 = arith.constant 176 : index
      %984 = vector.load %arg5[%c1_629, %c176_630] : memref<2x256xf32, #tpu.memory_space<vmem>>, vector<1x16xf32>
      %985 = vector.shape_cast %984 : vector<1x16xf32> to vector<16xf32>
      %cst_631 = arith.constant 2.500000e-01 : f32
      %986 = vector.broadcast %cst_631 : f32 to vector<16xf32>
      %987 = arith.mulf %985, %986 : vector<16xf32>
      %c0_632 = arith.constant 0 : index
      %c14_633 = arith.constant 14 : index
      %c3_634 = arith.constant 3 : index
      %988 = vector.load %arg7[%c0_632, %c14_633, %c3_634] : memref<2x24x128xf32, #tpu.memory_space<vmem>>, vector<1x1x16xf32>
      %989 = vector.shape_cast %988 : vector<1x1x16xf32> to vector<16xf32>
      %990 = vector.shape_cast %987 : vector<16xf32> to vector<1x1x16xf32>
      tpu.vector_store %arg7[%c0_632, %c14_633, %c3_634], %990 {strides = array<i32>} : memref<2x24x128xf32, #tpu.memory_space<vmem>>, vector<1x1x16xf32>,
      %c1_635 = arith.constant 1 : index
      %c176_636 = arith.constant 176 : index
      %991 = vector.load %arg6[%c1_635, %c176_636] : memref<2x256xf32, #tpu.memory_space<vmem>>, vector<1x16xf32>
      %992 = vector.shape_cast %991 : vector<1x16xf32> to vector<16xf32>
      %c1_637 = arith.constant 1 : index
      %c14_638 = arith.constant 14 : index
      %c3_639 = arith.constant 3 : index
      %993 = vector.load %arg7[%c1_637, %c14_638, %c3_639] : memref<2x24x128xf32, #tpu.memory_space<vmem>>, vector<1x1x16xf32>
      %994 = vector.shape_cast %993 : vector<1x1x16xf32> to vector<16xf32>
      %995 = vector.shape_cast %992 : vector<16xf32> to vector<1x1x16xf32>
      tpu.vector_store %arg7[%c1_637, %c14_638, %c3_639], %995 {strides = array<i32>} : memref<2x24x128xf32, #tpu.memory_space<vmem>>, vector<1x1x16xf32>,
      %c1_640 = arith.constant 1 : index
      %c192_641 = arith.constant 192 : index
      %996 = vector.load %arg5[%c1_640, %c192_641] : memref<2x256xf32, #tpu.memory_space<vmem>>, vector<1x16xf32>
      %997 = vector.shape_cast %996 : vector<1x16xf32> to vector<16xf32>
      %cst_642 = arith.constant 2.500000e-01 : f32
      %998 = vector.broadcast %cst_642 : f32 to vector<16xf32>
      %999 = arith.mulf %997, %998 : vector<16xf32>
      %c0_643 = arith.constant 0 : index
      %c15_644 = arith.constant 15 : index
      %c3_645 = arith.constant 3 : index
      %1000 = vector.load %arg7[%c0_643, %c15_644, %c3_645] : memref<2x24x128xf32, #tpu.memory_space<vmem>>, vector<1x1x16xf32>
      %1001 = vector.shape_cast %1000 : vector<1x1x16xf32> to vector<16xf32>
      %1002 = vector.shape_cast %999 : vector<16xf32> to vector<1x1x16xf32>
      tpu.vector_store %arg7[%c0_643, %c15_644, %c3_645], %1002 {strides = array<i32>} : memref<2x24x128xf32, #tpu.memory_space<vmem>>, vector<1x1x16xf32>,
      %c1_646 = arith.constant 1 : index
      %c192_647 = arith.constant 192 : index
      %1003 = vector.load %arg6[%c1_646, %c192_647] : memref<2x256xf32, #tpu.memory_space<vmem>>, vector<1x16xf32>
      %1004 = vector.shape_cast %1003 : vector<1x16xf32> to vector<16xf32>
      %c1_648 = arith.constant 1 : index
      %c15_649 = arith.constant 15 : index
      %c3_650 = arith.constant 3 : index
      %1005 = vector.load %arg7[%c1_648, %c15_649, %c3_650] : memref<2x24x128xf32, #tpu.memory_space<vmem>>, vector<1x1x16xf32>
      %1006 = vector.shape_cast %1005 : vector<1x1x16xf32> to vector<16xf32>
      %1007 = vector.shape_cast %1004 : vector<16xf32> to vector<1x1x16xf32>
      tpu.vector_store %arg7[%c1_648, %c15_649, %c3_650], %1007 {strides = array<i32>} : memref<2x24x128xf32, #tpu.memory_space<vmem>>, vector<1x1x16xf32>,
      %c1_651 = arith.constant 1 : index
      %c208_652 = arith.constant 208 : index
      %1008 = vector.load %arg5[%c1_651, %c208_652] : memref<2x256xf32, #tpu.memory_space<vmem>>, vector<1x16xf32>
      %1009 = vector.shape_cast %1008 : vector<1x16xf32> to vector<16xf32>
      %cst_653 = arith.constant 2.500000e-01 : f32
      %1010 = vector.broadcast %cst_653 : f32 to vector<16xf32>
      %1011 = arith.mulf %1009, %1010 : vector<16xf32>
      %c0_654 = arith.constant 0 : index
      %c16_655 = arith.constant 16 : index
      %c3_656 = arith.constant 3 : index
      %1012 = vector.load %arg7[%c0_654, %c16_655, %c3_656] : memref<2x24x128xf32, #tpu.memory_space<vmem>>, vector<1x1x16xf32>
      %1013 = vector.shape_cast %1012 : vector<1x1x16xf32> to vector<16xf32>
      %1014 = vector.shape_cast %1011 : vector<16xf32> to vector<1x1x16xf32>
      tpu.vector_store %arg7[%c0_654, %c16_655, %c3_656], %1014 {strides = array<i32>} : memref<2x24x128xf32, #tpu.memory_space<vmem>>, vector<1x1x16xf32>,
      %c1_657 = arith.constant 1 : index
      %c208_658 = arith.constant 208 : index
      %1015 = vector.load %arg6[%c1_657, %c208_658] : memref<2x256xf32, #tpu.memory_space<vmem>>, vector<1x16xf32>
      %1016 = vector.shape_cast %1015 : vector<1x16xf32> to vector<16xf32>
      %c1_659 = arith.constant 1 : index
      %c16_660 = arith.constant 16 : index
      %c3_661 = arith.constant 3 : index
      %1017 = vector.load %arg7[%c1_659, %c16_660, %c3_661] : memref<2x24x128xf32, #tpu.memory_space<vmem>>, vector<1x1x16xf32>
      %1018 = vector.shape_cast %1017 : vector<1x1x16xf32> to vector<16xf32>
      %1019 = vector.shape_cast %1016 : vector<16xf32> to vector<1x1x16xf32>
      tpu.vector_store %arg7[%c1_659, %c16_660, %c3_661], %1019 {strides = array<i32>} : memref<2x24x128xf32, #tpu.memory_space<vmem>>, vector<1x1x16xf32>,
      %c1_662 = arith.constant 1 : index
      %c224_663 = arith.constant 224 : index
      %1020 = vector.load %arg5[%c1_662, %c224_663] : memref<2x256xf32, #tpu.memory_space<vmem>>, vector<1x16xf32>
      %1021 = vector.shape_cast %1020 : vector<1x16xf32> to vector<16xf32>
      %cst_664 = arith.constant 2.500000e-01 : f32
      %1022 = vector.broadcast %cst_664 : f32 to vector<16xf32>
      %1023 = arith.mulf %1021, %1022 : vector<16xf32>
      %c0_665 = arith.constant 0 : index
      %c17_666 = arith.constant 17 : index
      %c3_667 = arith.constant 3 : index
      %1024 = vector.load %arg7[%c0_665, %c17_666, %c3_667] : memref<2x24x128xf32, #tpu.memory_space<vmem>>, vector<1x1x16xf32>
      %1025 = vector.shape_cast %1024 : vector<1x1x16xf32> to vector<16xf32>
      %1026 = vector.shape_cast %1023 : vector<16xf32> to vector<1x1x16xf32>
      tpu.vector_store %arg7[%c0_665, %c17_666, %c3_667], %1026 {strides = array<i32>} : memref<2x24x128xf32, #tpu.memory_space<vmem>>, vector<1x1x16xf32>,
      %c1_668 = arith.constant 1 : index
      %c224_669 = arith.constant 224 : index
      %1027 = vector.load %arg6[%c1_668, %c224_669] : memref<2x256xf32, #tpu.memory_space<vmem>>, vector<1x16xf32>
      %1028 = vector.shape_cast %1027 : vector<1x16xf32> to vector<16xf32>
      %c1_670 = arith.constant 1 : index
      %c17_671 = arith.constant 17 : index
      %c3_672 = arith.constant 3 : index
      %1029 = vector.load %arg7[%c1_670, %c17_671, %c3_672] : memref<2x24x128xf32, #tpu.memory_space<vmem>>, vector<1x1x16xf32>
      %1030 = vector.shape_cast %1029 : vector<1x1x16xf32> to vector<16xf32>
      %1031 = vector.shape_cast %1028 : vector<16xf32> to vector<1x1x16xf32>
      tpu.vector_store %arg7[%c1_670, %c17_671, %c3_672], %1031 {strides = array<i32>} : memref<2x24x128xf32, #tpu.memory_space<vmem>>, vector<1x1x16xf32>,
      %c1_673 = arith.constant 1 : index
      %c240_674 = arith.constant 240 : index
      %1032 = vector.load %arg5[%c1_673, %c240_674] : memref<2x256xf32, #tpu.memory_space<vmem>>, vector<1x16xf32>
      %1033 = vector.shape_cast %1032 : vector<1x16xf32> to vector<16xf32>
      %cst_675 = arith.constant 2.500000e-01 : f32
      %1034 = vector.broadcast %cst_675 : f32 to vector<16xf32>
      %1035 = arith.mulf %1033, %1034 : vector<16xf32>
      %c0_676 = arith.constant 0 : index
      %c18_677 = arith.constant 18 : index
      %c3_678 = arith.constant 3 : index
      %1036 = vector.load %arg7[%c0_676, %c18_677, %c3_678] : memref<2x24x128xf32, #tpu.memory_space<vmem>>, vector<1x1x16xf32>
      %1037 = vector.shape_cast %1036 : vector<1x1x16xf32> to vector<16xf32>
      %1038 = vector.shape_cast %1035 : vector<16xf32> to vector<1x1x16xf32>
      tpu.vector_store %arg7[%c0_676, %c18_677, %c3_678], %1038 {strides = array<i32>} : memref<2x24x128xf32, #tpu.memory_space<vmem>>, vector<1x1x16xf32>,
      %c1_679 = arith.constant 1 : index
      %c240_680 = arith.constant 240 : index
      %1039 = vector.load %arg6[%c1_679, %c240_680] : memref<2x256xf32, #tpu.memory_space<vmem>>, vector<1x16xf32>
      %1040 = vector.shape_cast %1039 : vector<1x16xf32> to vector<16xf32>
      %c1_681 = arith.constant 1 : index
      %c18_682 = arith.constant 18 : index
      %c3_683 = arith.constant 3 : index
      %1041 = vector.load %arg7[%c1_681, %c18_682, %c3_683] : memref<2x24x128xf32, #tpu.memory_space<vmem>>, vector<1x1x16xf32>
      %1042 = vector.shape_cast %1041 : vector<1x1x16xf32> to vector<16xf32>
      %1043 = vector.shape_cast %1040 : vector<16xf32> to vector<1x1x16xf32>
      tpu.vector_store %arg7[%c1_681, %c18_682, %c3_683], %1043 {strides = array<i32>} : memref<2x24x128xf32, #tpu.memory_space<vmem>>, vector<1x1x16xf32>,
      %cst_684 = arith.constant 0.000000e+00 : f32
      %1044 = vector.broadcast %cst_684 : f32 to vector<16x16xf32>
      %cst_685 = arith.constant 0.000000e+00 : f32
      %1045 = vector.broadcast %cst_685 : f32 to vector<16x128xf32>
      %c0_686 = arith.constant 0 : index
      %1046 = memref.load %arg3[%c0_686] : memref<98xf32, #tpu.memory_space<smem>>
      %c0_687 = arith.constant 0 : index
      %c0_688 = arith.constant 0 : index
      %c0_689 = arith.constant 0 : index
      %1047 = vector.load %arg7[%c0_687, %c0_688, %c0_689] : memref<2x24x128xf32, #tpu.memory_space<vmem>>, vector<1x16x128xf32>
      %1048 = vector.shape_cast %1047 : vector<1x16x128xf32> to vector<16x128xf32>
      %1049 = vector.broadcast %1046 : f32 to vector<16x128xf32>
      %1050 = arith.mulf %1049, %1048 : vector<16x128xf32>
      %1051 = arith.addf %1045, %1050 : vector<16x128xf32>
      %c7_690 = arith.constant 7 : index
      %1052 = memref.load %arg3[%c7_690] : memref<98xf32, #tpu.memory_space<smem>>
      %c0_691 = arith.constant 0 : index
      %c1_692 = arith.constant 1 : index
      %c0_693 = arith.constant 0 : index
      %1053 = vector.load %arg7[%c0_691, %c1_692, %c0_693] : memref<2x24x128xf32, #tpu.memory_space<vmem>>, vector<1x16x128xf32>
      %1054 = vector.shape_cast %1053 : vector<1x16x128xf32> to vector<16x128xf32>
      %1055 = vector.broadcast %1052 : f32 to vector<16x128xf32>
      %1056 = arith.mulf %1055, %1054 : vector<16x128xf32>
      %1057 = arith.addf %1051, %1056 : vector<16x128xf32>
      %c14_694 = arith.constant 14 : index
      %1058 = memref.load %arg3[%c14_694] : memref<98xf32, #tpu.memory_space<smem>>
      %c0_695 = arith.constant 0 : index
      %c2_696 = arith.constant 2 : index
      %c0_697 = arith.constant 0 : index
      %1059 = vector.load %arg7[%c0_695, %c2_696, %c0_697] : memref<2x24x128xf32, #tpu.memory_space<vmem>>, vector<1x16x128xf32>
      %1060 = vector.shape_cast %1059 : vector<1x16x128xf32> to vector<16x128xf32>
      %1061 = vector.broadcast %1058 : f32 to vector<16x128xf32>
      %1062 = arith.mulf %1061, %1060 : vector<16x128xf32>
      %1063 = arith.addf %1057, %1062 : vector<16x128xf32>
      %c21_698 = arith.constant 21 : index
      %1064 = memref.load %arg3[%c21_698] : memref<98xf32, #tpu.memory_space<smem>>
      %c0_699 = arith.constant 0 : index
      %c3_700 = arith.constant 3 : index
      %c0_701 = arith.constant 0 : index
      %1065 = vector.load %arg7[%c0_699, %c3_700, %c0_701] : memref<2x24x128xf32, #tpu.memory_space<vmem>>, vector<1x16x128xf32>
      %1066 = vector.shape_cast %1065 : vector<1x16x128xf32> to vector<16x128xf32>
      %1067 = vector.broadcast %1064 : f32 to vector<16x128xf32>
      %1068 = arith.mulf %1067, %1066 : vector<16x128xf32>
      %1069 = arith.addf %1063, %1068 : vector<16x128xf32>
      %c28_702 = arith.constant 28 : index
      %1070 = memref.load %arg3[%c28_702] : memref<98xf32, #tpu.memory_space<smem>>
      %c0_703 = arith.constant 0 : index
      %c4_704 = arith.constant 4 : index
      %c0_705 = arith.constant 0 : index
      %1071 = vector.load %arg7[%c0_703, %c4_704, %c0_705] : memref<2x24x128xf32, #tpu.memory_space<vmem>>, vector<1x16x128xf32>
      %1072 = vector.shape_cast %1071 : vector<1x16x128xf32> to vector<16x128xf32>
      %1073 = vector.broadcast %1070 : f32 to vector<16x128xf32>
      %1074 = arith.mulf %1073, %1072 : vector<16x128xf32>
      %1075 = arith.addf %1069, %1074 : vector<16x128xf32>
      %c35_706 = arith.constant 35 : index
      %1076 = memref.load %arg3[%c35_706] : memref<98xf32, #tpu.memory_space<smem>>
      %c0_707 = arith.constant 0 : index
      %c5_708 = arith.constant 5 : index
      %c0_709 = arith.constant 0 : index
      %1077 = vector.load %arg7[%c0_707, %c5_708, %c0_709] : memref<2x24x128xf32, #tpu.memory_space<vmem>>, vector<1x16x128xf32>
      %1078 = vector.shape_cast %1077 : vector<1x16x128xf32> to vector<16x128xf32>
      %1079 = vector.broadcast %1076 : f32 to vector<16x128xf32>
      %1080 = arith.mulf %1079, %1078 : vector<16x128xf32>
      %1081 = arith.addf %1075, %1080 : vector<16x128xf32>
      %c42_710 = arith.constant 42 : index
      %1082 = memref.load %arg3[%c42_710] : memref<98xf32, #tpu.memory_space<smem>>
      %c0_711 = arith.constant 0 : index
      %c6_712 = arith.constant 6 : index
      %c0_713 = arith.constant 0 : index
      %1083 = vector.load %arg7[%c0_711, %c6_712, %c0_713] : memref<2x24x128xf32, #tpu.memory_space<vmem>>, vector<1x16x128xf32>
      %1084 = vector.shape_cast %1083 : vector<1x16x128xf32> to vector<16x128xf32>
      %1085 = vector.broadcast %1082 : f32 to vector<16x128xf32>
      %1086 = arith.mulf %1085, %1084 : vector<16x128xf32>
      %1087 = arith.addf %1081, %1086 : vector<16x128xf32>
      %c49_714 = arith.constant 49 : index
      %1088 = memref.load %arg3[%c49_714] : memref<98xf32, #tpu.memory_space<smem>>
      %c1_715 = arith.constant 1 : index
      %c0_716 = arith.constant 0 : index
      %c0_717 = arith.constant 0 : index
      %1089 = vector.load %arg7[%c1_715, %c0_716, %c0_717] : memref<2x24x128xf32, #tpu.memory_space<vmem>>, vector<1x16x128xf32>
      %1090 = vector.shape_cast %1089 : vector<1x16x128xf32> to vector<16x128xf32>
      %1091 = vector.broadcast %1088 : f32 to vector<16x128xf32>
      %1092 = arith.mulf %1091, %1090 : vector<16x128xf32>
      %1093 = arith.addf %1087, %1092 : vector<16x128xf32>
      %c56_718 = arith.constant 56 : index
      %1094 = memref.load %arg3[%c56_718] : memref<98xf32, #tpu.memory_space<smem>>
      %c1_719 = arith.constant 1 : index
      %c1_720 = arith.constant 1 : index
      %c0_721 = arith.constant 0 : index
      %1095 = vector.load %arg7[%c1_719, %c1_720, %c0_721] : memref<2x24x128xf32, #tpu.memory_space<vmem>>, vector<1x16x128xf32>
      %1096 = vector.shape_cast %1095 : vector<1x16x128xf32> to vector<16x128xf32>
      %1097 = vector.broadcast %1094 : f32 to vector<16x128xf32>
      %1098 = arith.mulf %1097, %1096 : vector<16x128xf32>
      %1099 = arith.addf %1093, %1098 : vector<16x128xf32>
      %c63_722 = arith.constant 63 : index
      %1100 = memref.load %arg3[%c63_722] : memref<98xf32, #tpu.memory_space<smem>>
      %c1_723 = arith.constant 1 : index
      %c2_724 = arith.constant 2 : index
      %c0_725 = arith.constant 0 : index
      %1101 = vector.load %arg7[%c1_723, %c2_724, %c0_725] : memref<2x24x128xf32, #tpu.memory_space<vmem>>, vector<1x16x128xf32>
      %1102 = vector.shape_cast %1101 : vector<1x16x128xf32> to vector<16x128xf32>
      %1103 = vector.broadcast %1100 : f32 to vector<16x128xf32>
      %1104 = arith.mulf %1103, %1102 : vector<16x128xf32>
      %1105 = arith.addf %1099, %1104 : vector<16x128xf32>
      %c70_726 = arith.constant 70 : index
      %1106 = memref.load %arg3[%c70_726] : memref<98xf32, #tpu.memory_space<smem>>
      %c1_727 = arith.constant 1 : index
      %c3_728 = arith.constant 3 : index
      %c0_729 = arith.constant 0 : index
      %1107 = vector.load %arg7[%c1_727, %c3_728, %c0_729] : memref<2x24x128xf32, #tpu.memory_space<vmem>>, vector<1x16x128xf32>
      %1108 = vector.shape_cast %1107 : vector<1x16x128xf32> to vector<16x128xf32>
      %1109 = vector.broadcast %1106 : f32 to vector<16x128xf32>
      %1110 = arith.mulf %1109, %1108 : vector<16x128xf32>
      %1111 = arith.addf %1105, %1110 : vector<16x128xf32>
      %c77_730 = arith.constant 77 : index
      %1112 = memref.load %arg3[%c77_730] : memref<98xf32, #tpu.memory_space<smem>>
      %c1_731 = arith.constant 1 : index
      %c4_732 = arith.constant 4 : index
      %c0_733 = arith.constant 0 : index
      %1113 = vector.load %arg7[%c1_731, %c4_732, %c0_733] : memref<2x24x128xf32, #tpu.memory_space<vmem>>, vector<1x16x128xf32>
      %1114 = vector.shape_cast %1113 : vector<1x16x128xf32> to vector<16x128xf32>
      %1115 = vector.broadcast %1112 : f32 to vector<16x128xf32>
      %1116 = arith.mulf %1115, %1114 : vector<16x128xf32>
      %1117 = arith.addf %1111, %1116 : vector<16x128xf32>
      %c84_734 = arith.constant 84 : index
      %1118 = memref.load %arg3[%c84_734] : memref<98xf32, #tpu.memory_space<smem>>
      %c1_735 = arith.constant 1 : index
      %c5_736 = arith.constant 5 : index
      %c0_737 = arith.constant 0 : index
      %1119 = vector.load %arg7[%c1_735, %c5_736, %c0_737] : memref<2x24x128xf32, #tpu.memory_space<vmem>>, vector<1x16x128xf32>
      %1120 = vector.shape_cast %1119 : vector<1x16x128xf32> to vector<16x128xf32>
      %1121 = vector.broadcast %1118 : f32 to vector<16x128xf32>
      %1122 = arith.mulf %1121, %1120 : vector<16x128xf32>
      %1123 = arith.addf %1117, %1122 : vector<16x128xf32>
      %c91_738 = arith.constant 91 : index
      %1124 = memref.load %arg3[%c91_738] : memref<98xf32, #tpu.memory_space<smem>>
      %c1_739 = arith.constant 1 : index
      %c6_740 = arith.constant 6 : index
      %c0_741 = arith.constant 0 : index
      %1125 = vector.load %arg7[%c1_739, %c6_740, %c0_741] : memref<2x24x128xf32, #tpu.memory_space<vmem>>, vector<1x16x128xf32>
      %1126 = vector.shape_cast %1125 : vector<1x16x128xf32> to vector<16x128xf32>
      %1127 = vector.broadcast %1124 : f32 to vector<16x128xf32>
      %1128 = arith.mulf %1127, %1126 : vector<16x128xf32>
      %1129 = arith.addf %1123, %1128 : vector<16x128xf32>
      %1130 = vector.extract_strided_slice %1129 {offsets = [0, 0], sizes = [16, 16], strides = [1, 1]} : vector<16x128xf32> to vector<16x16xf32>
      %1131 = arith.addf %1044, %1130 : vector<16x16xf32>
      %cst_742 = arith.constant 0.000000e+00 : f32
      %1132 = vector.broadcast %cst_742 : f32 to vector<16x128xf32>
      %c1_743 = arith.constant 1 : index
      %1133 = memref.load %arg3[%c1_743] : memref<98xf32, #tpu.memory_space<smem>>
      %c0_744 = arith.constant 0 : index
      %c0_745 = arith.constant 0 : index
      %c0_746 = arith.constant 0 : index
      %1134 = vector.load %arg7[%c0_744, %c0_745, %c0_746] : memref<2x24x128xf32, #tpu.memory_space<vmem>>, vector<1x16x128xf32>
      %1135 = vector.shape_cast %1134 : vector<1x16x128xf32> to vector<16x128xf32>
      %1136 = vector.broadcast %1133 : f32 to vector<16x128xf32>
      %1137 = arith.mulf %1136, %1135 : vector<16x128xf32>
      %1138 = arith.addf %1132, %1137 : vector<16x128xf32>
      %c8_747 = arith.constant 8 : index
      %1139 = memref.load %arg3[%c8_747] : memref<98xf32, #tpu.memory_space<smem>>
      %c0_748 = arith.constant 0 : index
      %c1_749 = arith.constant 1 : index
      %c0_750 = arith.constant 0 : index
      %1140 = vector.load %arg7[%c0_748, %c1_749, %c0_750] : memref<2x24x128xf32, #tpu.memory_space<vmem>>, vector<1x16x128xf32>
      %1141 = vector.shape_cast %1140 : vector<1x16x128xf32> to vector<16x128xf32>
      %1142 = vector.broadcast %1139 : f32 to vector<16x128xf32>
      %1143 = arith.mulf %1142, %1141 : vector<16x128xf32>
      %1144 = arith.addf %1138, %1143 : vector<16x128xf32>
      %c15_751 = arith.constant 15 : index
      %1145 = memref.load %arg3[%c15_751] : memref<98xf32, #tpu.memory_space<smem>>
      %c0_752 = arith.constant 0 : index
      %c2_753 = arith.constant 2 : index
      %c0_754 = arith.constant 0 : index
      %1146 = vector.load %arg7[%c0_752, %c2_753, %c0_754] : memref<2x24x128xf32, #tpu.memory_space<vmem>>, vector<1x16x128xf32>
      %1147 = vector.shape_cast %1146 : vector<1x16x128xf32> to vector<16x128xf32>
      %1148 = vector.broadcast %1145 : f32 to vector<16x128xf32>
      %1149 = arith.mulf %1148, %1147 : vector<16x128xf32>
      %1150 = arith.addf %1144, %1149 : vector<16x128xf32>
      %c22_755 = arith.constant 22 : index
      %1151 = memref.load %arg3[%c22_755] : memref<98xf32, #tpu.memory_space<smem>>
      %c0_756 = arith.constant 0 : index
      %c3_757 = arith.constant 3 : index
      %c0_758 = arith.constant 0 : index
      %1152 = vector.load %arg7[%c0_756, %c3_757, %c0_758] : memref<2x24x128xf32, #tpu.memory_space<vmem>>, vector<1x16x128xf32>
      %1153 = vector.shape_cast %1152 : vector<1x16x128xf32> to vector<16x128xf32>
      %1154 = vector.broadcast %1151 : f32 to vector<16x128xf32>
      %1155 = arith.mulf %1154, %1153 : vector<16x128xf32>
      %1156 = arith.addf %1150, %1155 : vector<16x128xf32>
      %c29_759 = arith.constant 29 : index
      %1157 = memref.load %arg3[%c29_759] : memref<98xf32, #tpu.memory_space<smem>>
      %c0_760 = arith.constant 0 : index
      %c4_761 = arith.constant 4 : index
      %c0_762 = arith.constant 0 : index
      %1158 = vector.load %arg7[%c0_760, %c4_761, %c0_762] : memref<2x24x128xf32, #tpu.memory_space<vmem>>, vector<1x16x128xf32>
      %1159 = vector.shape_cast %1158 : vector<1x16x128xf32> to vector<16x128xf32>
      %1160 = vector.broadcast %1157 : f32 to vector<16x128xf32>
      %1161 = arith.mulf %1160, %1159 : vector<16x128xf32>
      %1162 = arith.addf %1156, %1161 : vector<16x128xf32>
      %c36_763 = arith.constant 36 : index
      %1163 = memref.load %arg3[%c36_763] : memref<98xf32, #tpu.memory_space<smem>>
      %c0_764 = arith.constant 0 : index
      %c5_765 = arith.constant 5 : index
      %c0_766 = arith.constant 0 : index
      %1164 = vector.load %arg7[%c0_764, %c5_765, %c0_766] : memref<2x24x128xf32, #tpu.memory_space<vmem>>, vector<1x16x128xf32>
      %1165 = vector.shape_cast %1164 : vector<1x16x128xf32> to vector<16x128xf32>
      %1166 = vector.broadcast %1163 : f32 to vector<16x128xf32>
      %1167 = arith.mulf %1166, %1165 : vector<16x128xf32>
      %1168 = arith.addf %1162, %1167 : vector<16x128xf32>
      %c43_767 = arith.constant 43 : index
      %1169 = memref.load %arg3[%c43_767] : memref<98xf32, #tpu.memory_space<smem>>
      %c0_768 = arith.constant 0 : index
      %c6_769 = arith.constant 6 : index
      %c0_770 = arith.constant 0 : index
      %1170 = vector.load %arg7[%c0_768, %c6_769, %c0_770] : memref<2x24x128xf32, #tpu.memory_space<vmem>>, vector<1x16x128xf32>
      %1171 = vector.shape_cast %1170 : vector<1x16x128xf32> to vector<16x128xf32>
      %1172 = vector.broadcast %1169 : f32 to vector<16x128xf32>
      %1173 = arith.mulf %1172, %1171 : vector<16x128xf32>
      %1174 = arith.addf %1168, %1173 : vector<16x128xf32>
      %c50_771 = arith.constant 50 : index
      %1175 = memref.load %arg3[%c50_771] : memref<98xf32, #tpu.memory_space<smem>>
      %c1_772 = arith.constant 1 : index
      %c0_773 = arith.constant 0 : index
      %c0_774 = arith.constant 0 : index
      %1176 = vector.load %arg7[%c1_772, %c0_773, %c0_774] : memref<2x24x128xf32, #tpu.memory_space<vmem>>, vector<1x16x128xf32>
      %1177 = vector.shape_cast %1176 : vector<1x16x128xf32> to vector<16x128xf32>
      %1178 = vector.broadcast %1175 : f32 to vector<16x128xf32>
      %1179 = arith.mulf %1178, %1177 : vector<16x128xf32>
      %1180 = arith.addf %1174, %1179 : vector<16x128xf32>
      %c57_775 = arith.constant 57 : index
      %1181 = memref.load %arg3[%c57_775] : memref<98xf32, #tpu.memory_space<smem>>
      %c1_776 = arith.constant 1 : index
      %c1_777 = arith.constant 1 : index
      %c0_778 = arith.constant 0 : index
      %1182 = vector.load %arg7[%c1_776, %c1_777, %c0_778] : memref<2x24x128xf32, #tpu.memory_space<vmem>>, vector<1x16x128xf32>
      %1183 = vector.shape_cast %1182 : vector<1x16x128xf32> to vector<16x128xf32>
      %1184 = vector.broadcast %1181 : f32 to vector<16x128xf32>
      %1185 = arith.mulf %1184, %1183 : vector<16x128xf32>
      %1186 = arith.addf %1180, %1185 : vector<16x128xf32>
      %c64_779 = arith.constant 64 : index
      %1187 = memref.load %arg3[%c64_779] : memref<98xf32, #tpu.memory_space<smem>>
      %c1_780 = arith.constant 1 : index
      %c2_781 = arith.constant 2 : index
      %c0_782 = arith.constant 0 : index
      %1188 = vector.load %arg7[%c1_780, %c2_781, %c0_782] : memref<2x24x128xf32, #tpu.memory_space<vmem>>, vector<1x16x128xf32>
      %1189 = vector.shape_cast %1188 : vector<1x16x128xf32> to vector<16x128xf32>
      %1190 = vector.broadcast %1187 : f32 to vector<16x128xf32>
      %1191 = arith.mulf %1190, %1189 : vector<16x128xf32>
      %1192 = arith.addf %1186, %1191 : vector<16x128xf32>
      %c71_783 = arith.constant 71 : index
      %1193 = memref.load %arg3[%c71_783] : memref<98xf32, #tpu.memory_space<smem>>
      %c1_784 = arith.constant 1 : index
      %c3_785 = arith.constant 3 : index
      %c0_786 = arith.constant 0 : index
      %1194 = vector.load %arg7[%c1_784, %c3_785, %c0_786] : memref<2x24x128xf32, #tpu.memory_space<vmem>>, vector<1x16x128xf32>
      %1195 = vector.shape_cast %1194 : vector<1x16x128xf32> to vector<16x128xf32>
      %1196 = vector.broadcast %1193 : f32 to vector<16x128xf32>
      %1197 = arith.mulf %1196, %1195 : vector<16x128xf32>
      %1198 = arith.addf %1192, %1197 : vector<16x128xf32>
      %c78_787 = arith.constant 78 : index
      %1199 = memref.load %arg3[%c78_787] : memref<98xf32, #tpu.memory_space<smem>>
      %c1_788 = arith.constant 1 : index
      %c4_789 = arith.constant 4 : index
      %c0_790 = arith.constant 0 : index
      %1200 = vector.load %arg7[%c1_788, %c4_789, %c0_790] : memref<2x24x128xf32, #tpu.memory_space<vmem>>, vector<1x16x128xf32>
      %1201 = vector.shape_cast %1200 : vector<1x16x128xf32> to vector<16x128xf32>
      %1202 = vector.broadcast %1199 : f32 to vector<16x128xf32>
      %1203 = arith.mulf %1202, %1201 : vector<16x128xf32>
      %1204 = arith.addf %1198, %1203 : vector<16x128xf32>
      %c85_791 = arith.constant 85 : index
      %1205 = memref.load %arg3[%c85_791] : memref<98xf32, #tpu.memory_space<smem>>
      %c1_792 = arith.constant 1 : index
      %c5_793 = arith.constant 5 : index
      %c0_794 = arith.constant 0 : index
      %1206 = vector.load %arg7[%c1_792, %c5_793, %c0_794] : memref<2x24x128xf32, #tpu.memory_space<vmem>>, vector<1x16x128xf32>
      %1207 = vector.shape_cast %1206 : vector<1x16x128xf32> to vector<16x128xf32>
      %1208 = vector.broadcast %1205 : f32 to vector<16x128xf32>
      %1209 = arith.mulf %1208, %1207 : vector<16x128xf32>
      %1210 = arith.addf %1204, %1209 : vector<16x128xf32>
      %c92_795 = arith.constant 92 : index
      %1211 = memref.load %arg3[%c92_795] : memref<98xf32, #tpu.memory_space<smem>>
      %c1_796 = arith.constant 1 : index
      %c6_797 = arith.constant 6 : index
      %c0_798 = arith.constant 0 : index
      %1212 = vector.load %arg7[%c1_796, %c6_797, %c0_798] : memref<2x24x128xf32, #tpu.memory_space<vmem>>, vector<1x16x128xf32>
      %1213 = vector.shape_cast %1212 : vector<1x16x128xf32> to vector<16x128xf32>
      %1214 = vector.broadcast %1211 : f32 to vector<16x128xf32>
      %1215 = arith.mulf %1214, %1213 : vector<16x128xf32>
      %1216 = arith.addf %1210, %1215 : vector<16x128xf32>
      %1217 = vector.extract_strided_slice %1216 {offsets = [0, 1], sizes = [16, 16], strides = [1, 1]} : vector<16x128xf32> to vector<16x16xf32>
      %1218 = arith.addf %1131, %1217 : vector<16x16xf32>
      %cst_799 = arith.constant 0.000000e+00 : f32
      %1219 = vector.broadcast %cst_799 : f32 to vector<16x128xf32>
      %c2_800 = arith.constant 2 : index
      %1220 = memref.load %arg3[%c2_800] : memref<98xf32, #tpu.memory_space<smem>>
      %c0_801 = arith.constant 0 : index
      %c0_802 = arith.constant 0 : index
      %c0_803 = arith.constant 0 : index
      %1221 = vector.load %arg7[%c0_801, %c0_802, %c0_803] : memref<2x24x128xf32, #tpu.memory_space<vmem>>, vector<1x16x128xf32>
      %1222 = vector.shape_cast %1221 : vector<1x16x128xf32> to vector<16x128xf32>
      %1223 = vector.broadcast %1220 : f32 to vector<16x128xf32>
      %1224 = arith.mulf %1223, %1222 : vector<16x128xf32>
      %1225 = arith.addf %1219, %1224 : vector<16x128xf32>
      %c9_804 = arith.constant 9 : index
      %1226 = memref.load %arg3[%c9_804] : memref<98xf32, #tpu.memory_space<smem>>
      %c0_805 = arith.constant 0 : index
      %c1_806 = arith.constant 1 : index
      %c0_807 = arith.constant 0 : index
      %1227 = vector.load %arg7[%c0_805, %c1_806, %c0_807] : memref<2x24x128xf32, #tpu.memory_space<vmem>>, vector<1x16x128xf32>
      %1228 = vector.shape_cast %1227 : vector<1x16x128xf32> to vector<16x128xf32>
      %1229 = vector.broadcast %1226 : f32 to vector<16x128xf32>
      %1230 = arith.mulf %1229, %1228 : vector<16x128xf32>
      %1231 = arith.addf %1225, %1230 : vector<16x128xf32>
      %c16_808 = arith.constant 16 : index
      %1232 = memref.load %arg3[%c16_808] : memref<98xf32, #tpu.memory_space<smem>>
      %c0_809 = arith.constant 0 : index
      %c2_810 = arith.constant 2 : index
      %c0_811 = arith.constant 0 : index
      %1233 = vector.load %arg7[%c0_809, %c2_810, %c0_811] : memref<2x24x128xf32, #tpu.memory_space<vmem>>, vector<1x16x128xf32>
      %1234 = vector.shape_cast %1233 : vector<1x16x128xf32> to vector<16x128xf32>
      %1235 = vector.broadcast %1232 : f32 to vector<16x128xf32>
      %1236 = arith.mulf %1235, %1234 : vector<16x128xf32>
      %1237 = arith.addf %1231, %1236 : vector<16x128xf32>
      %c23_812 = arith.constant 23 : index
      %1238 = memref.load %arg3[%c23_812] : memref<98xf32, #tpu.memory_space<smem>>
      %c0_813 = arith.constant 0 : index
      %c3_814 = arith.constant 3 : index
      %c0_815 = arith.constant 0 : index
      %1239 = vector.load %arg7[%c0_813, %c3_814, %c0_815] : memref<2x24x128xf32, #tpu.memory_space<vmem>>, vector<1x16x128xf32>
      %1240 = vector.shape_cast %1239 : vector<1x16x128xf32> to vector<16x128xf32>
      %1241 = vector.broadcast %1238 : f32 to vector<16x128xf32>
      %1242 = arith.mulf %1241, %1240 : vector<16x128xf32>
      %1243 = arith.addf %1237, %1242 : vector<16x128xf32>
      %c30_816 = arith.constant 30 : index
      %1244 = memref.load %arg3[%c30_816] : memref<98xf32, #tpu.memory_space<smem>>
      %c0_817 = arith.constant 0 : index
      %c4_818 = arith.constant 4 : index
      %c0_819 = arith.constant 0 : index
      %1245 = vector.load %arg7[%c0_817, %c4_818, %c0_819] : memref<2x24x128xf32, #tpu.memory_space<vmem>>, vector<1x16x128xf32>
      %1246 = vector.shape_cast %1245 : vector<1x16x128xf32> to vector<16x128xf32>
      %1247 = vector.broadcast %1244 : f32 to vector<16x128xf32>
      %1248 = arith.mulf %1247, %1246 : vector<16x128xf32>
      %1249 = arith.addf %1243, %1248 : vector<16x128xf32>
      %c37_820 = arith.constant 37 : index
      %1250 = memref.load %arg3[%c37_820] : memref<98xf32, #tpu.memory_space<smem>>
      %c0_821 = arith.constant 0 : index
      %c5_822 = arith.constant 5 : index
      %c0_823 = arith.constant 0 : index
      %1251 = vector.load %arg7[%c0_821, %c5_822, %c0_823] : memref<2x24x128xf32, #tpu.memory_space<vmem>>, vector<1x16x128xf32>
      %1252 = vector.shape_cast %1251 : vector<1x16x128xf32> to vector<16x128xf32>
      %1253 = vector.broadcast %1250 : f32 to vector<16x128xf32>
      %1254 = arith.mulf %1253, %1252 : vector<16x128xf32>
      %1255 = arith.addf %1249, %1254 : vector<16x128xf32>
      %c44_824 = arith.constant 44 : index
      %1256 = memref.load %arg3[%c44_824] : memref<98xf32, #tpu.memory_space<smem>>
      %c0_825 = arith.constant 0 : index
      %c6_826 = arith.constant 6 : index
      %c0_827 = arith.constant 0 : index
      %1257 = vector.load %arg7[%c0_825, %c6_826, %c0_827] : memref<2x24x128xf32, #tpu.memory_space<vmem>>, vector<1x16x128xf32>
      %1258 = vector.shape_cast %1257 : vector<1x16x128xf32> to vector<16x128xf32>
      %1259 = vector.broadcast %1256 : f32 to vector<16x128xf32>
      %1260 = arith.mulf %1259, %1258 : vector<16x128xf32>
      %1261 = arith.addf %1255, %1260 : vector<16x128xf32>
      %c51_828 = arith.constant 51 : index
      %1262 = memref.load %arg3[%c51_828] : memref<98xf32, #tpu.memory_space<smem>>
      %c1_829 = arith.constant 1 : index
      %c0_830 = arith.constant 0 : index
      %c0_831 = arith.constant 0 : index
      %1263 = vector.load %arg7[%c1_829, %c0_830, %c0_831] : memref<2x24x128xf32, #tpu.memory_space<vmem>>, vector<1x16x128xf32>
      %1264 = vector.shape_cast %1263 : vector<1x16x128xf32> to vector<16x128xf32>
      %1265 = vector.broadcast %1262 : f32 to vector<16x128xf32>
      %1266 = arith.mulf %1265, %1264 : vector<16x128xf32>
      %1267 = arith.addf %1261, %1266 : vector<16x128xf32>
      %c58_832 = arith.constant 58 : index
      %1268 = memref.load %arg3[%c58_832] : memref<98xf32, #tpu.memory_space<smem>>
      %c1_833 = arith.constant 1 : index
      %c1_834 = arith.constant 1 : index
      %c0_835 = arith.constant 0 : index
      %1269 = vector.load %arg7[%c1_833, %c1_834, %c0_835] : memref<2x24x128xf32, #tpu.memory_space<vmem>>, vector<1x16x128xf32>
      %1270 = vector.shape_cast %1269 : vector<1x16x128xf32> to vector<16x128xf32>
      %1271 = vector.broadcast %1268 : f32 to vector<16x128xf32>
      %1272 = arith.mulf %1271, %1270 : vector<16x128xf32>
      %1273 = arith.addf %1267, %1272 : vector<16x128xf32>
      %c65_836 = arith.constant 65 : index
      %1274 = memref.load %arg3[%c65_836] : memref<98xf32, #tpu.memory_space<smem>>
      %c1_837 = arith.constant 1 : index
      %c2_838 = arith.constant 2 : index
      %c0_839 = arith.constant 0 : index
      %1275 = vector.load %arg7[%c1_837, %c2_838, %c0_839] : memref<2x24x128xf32, #tpu.memory_space<vmem>>, vector<1x16x128xf32>
      %1276 = vector.shape_cast %1275 : vector<1x16x128xf32> to vector<16x128xf32>
      %1277 = vector.broadcast %1274 : f32 to vector<16x128xf32>
      %1278 = arith.mulf %1277, %1276 : vector<16x128xf32>
      %1279 = arith.addf %1273, %1278 : vector<16x128xf32>
      %c72_840 = arith.constant 72 : index
      %1280 = memref.load %arg3[%c72_840] : memref<98xf32, #tpu.memory_space<smem>>
      %c1_841 = arith.constant 1 : index
      %c3_842 = arith.constant 3 : index
      %c0_843 = arith.constant 0 : index
      %1281 = vector.load %arg7[%c1_841, %c3_842, %c0_843] : memref<2x24x128xf32, #tpu.memory_space<vmem>>, vector<1x16x128xf32>
      %1282 = vector.shape_cast %1281 : vector<1x16x128xf32> to vector<16x128xf32>
      %1283 = vector.broadcast %1280 : f32 to vector<16x128xf32>
      %1284 = arith.mulf %1283, %1282 : vector<16x128xf32>
      %1285 = arith.addf %1279, %1284 : vector<16x128xf32>
      %c79_844 = arith.constant 79 : index
      %1286 = memref.load %arg3[%c79_844] : memref<98xf32, #tpu.memory_space<smem>>
      %c1_845 = arith.constant 1 : index
      %c4_846 = arith.constant 4 : index
      %c0_847 = arith.constant 0 : index
      %1287 = vector.load %arg7[%c1_845, %c4_846, %c0_847] : memref<2x24x128xf32, #tpu.memory_space<vmem>>, vector<1x16x128xf32>
      %1288 = vector.shape_cast %1287 : vector<1x16x128xf32> to vector<16x128xf32>
      %1289 = vector.broadcast %1286 : f32 to vector<16x128xf32>
      %1290 = arith.mulf %1289, %1288 : vector<16x128xf32>
      %1291 = arith.addf %1285, %1290 : vector<16x128xf32>
      %c86_848 = arith.constant 86 : index
      %1292 = memref.load %arg3[%c86_848] : memref<98xf32, #tpu.memory_space<smem>>
      %c1_849 = arith.constant 1 : index
      %c5_850 = arith.constant 5 : index
      %c0_851 = arith.constant 0 : index
      %1293 = vector.load %arg7[%c1_849, %c5_850, %c0_851] : memref<2x24x128xf32, #tpu.memory_space<vmem>>, vector<1x16x128xf32>
      %1294 = vector.shape_cast %1293 : vector<1x16x128xf32> to vector<16x128xf32>
      %1295 = vector.broadcast %1292 : f32 to vector<16x128xf32>
      %1296 = arith.mulf %1295, %1294 : vector<16x128xf32>
      %1297 = arith.addf %1291, %1296 : vector<16x128xf32>
      %c93_852 = arith.constant 93 : index
      %1298 = memref.load %arg3[%c93_852] : memref<98xf32, #tpu.memory_space<smem>>
      %c1_853 = arith.constant 1 : index
      %c6_854 = arith.constant 6 : index
      %c0_855 = arith.constant 0 : index
      %1299 = vector.load %arg7[%c1_853, %c6_854, %c0_855] : memref<2x24x128xf32, #tpu.memory_space<vmem>>, vector<1x16x128xf32>
      %1300 = vector.shape_cast %1299 : vector<1x16x128xf32> to vector<16x128xf32>
      %1301 = vector.broadcast %1298 : f32 to vector<16x128xf32>
      %1302 = arith.mulf %1301, %1300 : vector<16x128xf32>
      %1303 = arith.addf %1297, %1302 : vector<16x128xf32>
      %1304 = vector.extract_strided_slice %1303 {offsets = [0, 2], sizes = [16, 16], strides = [1, 1]} : vector<16x128xf32> to vector<16x16xf32>
      %1305 = arith.addf %1218, %1304 : vector<16x16xf32>
      %cst_856 = arith.constant 0.000000e+00 : f32
      %1306 = vector.broadcast %cst_856 : f32 to vector<16x128xf32>
      %c3_857 = arith.constant 3 : index
      %1307 = memref.load %arg3[%c3_857] : memref<98xf32, #tpu.memory_space<smem>>
      %c0_858 = arith.constant 0 : index
      %c0_859 = arith.constant 0 : index
      %c0_860 = arith.constant 0 : index
      %1308 = vector.load %arg7[%c0_858, %c0_859, %c0_860] : memref<2x24x128xf32, #tpu.memory_space<vmem>>, vector<1x16x128xf32>
      %1309 = vector.shape_cast %1308 : vector<1x16x128xf32> to vector<16x128xf32>
      %1310 = vector.broadcast %1307 : f32 to vector<16x128xf32>
      %1311 = arith.mulf %1310, %1309 : vector<16x128xf32>
      %1312 = arith.addf %1306, %1311 : vector<16x128xf32>
      %c10_861 = arith.constant 10 : index
      %1313 = memref.load %arg3[%c10_861] : memref<98xf32, #tpu.memory_space<smem>>
      %c0_862 = arith.constant 0 : index
      %c1_863 = arith.constant 1 : index
      %c0_864 = arith.constant 0 : index
      %1314 = vector.load %arg7[%c0_862, %c1_863, %c0_864] : memref<2x24x128xf32, #tpu.memory_space<vmem>>, vector<1x16x128xf32>
      %1315 = vector.shape_cast %1314 : vector<1x16x128xf32> to vector<16x128xf32>
      %1316 = vector.broadcast %1313 : f32 to vector<16x128xf32>
      %1317 = arith.mulf %1316, %1315 : vector<16x128xf32>
      %1318 = arith.addf %1312, %1317 : vector<16x128xf32>
      %c17_865 = arith.constant 17 : index
      %1319 = memref.load %arg3[%c17_865] : memref<98xf32, #tpu.memory_space<smem>>
      %c0_866 = arith.constant 0 : index
      %c2_867 = arith.constant 2 : index
      %c0_868 = arith.constant 0 : index
      %1320 = vector.load %arg7[%c0_866, %c2_867, %c0_868] : memref<2x24x128xf32, #tpu.memory_space<vmem>>, vector<1x16x128xf32>
      %1321 = vector.shape_cast %1320 : vector<1x16x128xf32> to vector<16x128xf32>
      %1322 = vector.broadcast %1319 : f32 to vector<16x128xf32>
      %1323 = arith.mulf %1322, %1321 : vector<16x128xf32>
      %1324 = arith.addf %1318, %1323 : vector<16x128xf32>
      %c24_869 = arith.constant 24 : index
      %1325 = memref.load %arg3[%c24_869] : memref<98xf32, #tpu.memory_space<smem>>
      %c0_870 = arith.constant 0 : index
      %c3_871 = arith.constant 3 : index
      %c0_872 = arith.constant 0 : index
      %1326 = vector.load %arg7[%c0_870, %c3_871, %c0_872] : memref<2x24x128xf32, #tpu.memory_space<vmem>>, vector<1x16x128xf32>
      %1327 = vector.shape_cast %1326 : vector<1x16x128xf32> to vector<16x128xf32>
      %1328 = vector.broadcast %1325 : f32 to vector<16x128xf32>
      %1329 = arith.mulf %1328, %1327 : vector<16x128xf32>
      %1330 = arith.addf %1324, %1329 : vector<16x128xf32>
      %c31_873 = arith.constant 31 : index
      %1331 = memref.load %arg3[%c31_873] : memref<98xf32, #tpu.memory_space<smem>>
      %c0_874 = arith.constant 0 : index
      %c4_875 = arith.constant 4 : index
      %c0_876 = arith.constant 0 : index
      %1332 = vector.load %arg7[%c0_874, %c4_875, %c0_876] : memref<2x24x128xf32, #tpu.memory_space<vmem>>, vector<1x16x128xf32>
      %1333 = vector.shape_cast %1332 : vector<1x16x128xf32> to vector<16x128xf32>
      %1334 = vector.broadcast %1331 : f32 to vector<16x128xf32>
      %1335 = arith.mulf %1334, %1333 : vector<16x128xf32>
      %1336 = arith.addf %1330, %1335 : vector<16x128xf32>
      %c38_877 = arith.constant 38 : index
      %1337 = memref.load %arg3[%c38_877] : memref<98xf32, #tpu.memory_space<smem>>
      %c0_878 = arith.constant 0 : index
      %c5_879 = arith.constant 5 : index
      %c0_880 = arith.constant 0 : index
      %1338 = vector.load %arg7[%c0_878, %c5_879, %c0_880] : memref<2x24x128xf32, #tpu.memory_space<vmem>>, vector<1x16x128xf32>
      %1339 = vector.shape_cast %1338 : vector<1x16x128xf32> to vector<16x128xf32>
      %1340 = vector.broadcast %1337 : f32 to vector<16x128xf32>
      %1341 = arith.mulf %1340, %1339 : vector<16x128xf32>
      %1342 = arith.addf %1336, %1341 : vector<16x128xf32>
      %c45_881 = arith.constant 45 : index
      %1343 = memref.load %arg3[%c45_881] : memref<98xf32, #tpu.memory_space<smem>>
      %c0_882 = arith.constant 0 : index
      %c6_883 = arith.constant 6 : index
      %c0_884 = arith.constant 0 : index
      %1344 = vector.load %arg7[%c0_882, %c6_883, %c0_884] : memref<2x24x128xf32, #tpu.memory_space<vmem>>, vector<1x16x128xf32>
      %1345 = vector.shape_cast %1344 : vector<1x16x128xf32> to vector<16x128xf32>
      %1346 = vector.broadcast %1343 : f32 to vector<16x128xf32>
      %1347 = arith.mulf %1346, %1345 : vector<16x128xf32>
      %1348 = arith.addf %1342, %1347 : vector<16x128xf32>
      %c52_885 = arith.constant 52 : index
      %1349 = memref.load %arg3[%c52_885] : memref<98xf32, #tpu.memory_space<smem>>
      %c1_886 = arith.constant 1 : index
      %c0_887 = arith.constant 0 : index
      %c0_888 = arith.constant 0 : index
      %1350 = vector.load %arg7[%c1_886, %c0_887, %c0_888] : memref<2x24x128xf32, #tpu.memory_space<vmem>>, vector<1x16x128xf32>
      %1351 = vector.shape_cast %1350 : vector<1x16x128xf32> to vector<16x128xf32>
      %1352 = vector.broadcast %1349 : f32 to vector<16x128xf32>
      %1353 = arith.mulf %1352, %1351 : vector<16x128xf32>
      %1354 = arith.addf %1348, %1353 : vector<16x128xf32>
      %c59_889 = arith.constant 59 : index
      %1355 = memref.load %arg3[%c59_889] : memref<98xf32, #tpu.memory_space<smem>>
      %c1_890 = arith.constant 1 : index
      %c1_891 = arith.constant 1 : index
      %c0_892 = arith.constant 0 : index
      %1356 = vector.load %arg7[%c1_890, %c1_891, %c0_892] : memref<2x24x128xf32, #tpu.memory_space<vmem>>, vector<1x16x128xf32>
      %1357 = vector.shape_cast %1356 : vector<1x16x128xf32> to vector<16x128xf32>
      %1358 = vector.broadcast %1355 : f32 to vector<16x128xf32>
      %1359 = arith.mulf %1358, %1357 : vector<16x128xf32>
      %1360 = arith.addf %1354, %1359 : vector<16x128xf32>
      %c66_893 = arith.constant 66 : index
      %1361 = memref.load %arg3[%c66_893] : memref<98xf32, #tpu.memory_space<smem>>
      %c1_894 = arith.constant 1 : index
      %c2_895 = arith.constant 2 : index
      %c0_896 = arith.constant 0 : index
      %1362 = vector.load %arg7[%c1_894, %c2_895, %c0_896] : memref<2x24x128xf32, #tpu.memory_space<vmem>>, vector<1x16x128xf32>
      %1363 = vector.shape_cast %1362 : vector<1x16x128xf32> to vector<16x128xf32>
      %1364 = vector.broadcast %1361 : f32 to vector<16x128xf32>
      %1365 = arith.mulf %1364, %1363 : vector<16x128xf32>
      %1366 = arith.addf %1360, %1365 : vector<16x128xf32>
      %c73_897 = arith.constant 73 : index
      %1367 = memref.load %arg3[%c73_897] : memref<98xf32, #tpu.memory_space<smem>>
      %c1_898 = arith.constant 1 : index
      %c3_899 = arith.constant 3 : index
      %c0_900 = arith.constant 0 : index
      %1368 = vector.load %arg7[%c1_898, %c3_899, %c0_900] : memref<2x24x128xf32, #tpu.memory_space<vmem>>, vector<1x16x128xf32>
      %1369 = vector.shape_cast %1368 : vector<1x16x128xf32> to vector<16x128xf32>
      %1370 = vector.broadcast %1367 : f32 to vector<16x128xf32>
      %1371 = arith.mulf %1370, %1369 : vector<16x128xf32>
      %1372 = arith.addf %1366, %1371 : vector<16x128xf32>
      %c80_901 = arith.constant 80 : index
      %1373 = memref.load %arg3[%c80_901] : memref<98xf32, #tpu.memory_space<smem>>
      %c1_902 = arith.constant 1 : index
      %c4_903 = arith.constant 4 : index
      %c0_904 = arith.constant 0 : index
      %1374 = vector.load %arg7[%c1_902, %c4_903, %c0_904] : memref<2x24x128xf32, #tpu.memory_space<vmem>>, vector<1x16x128xf32>
      %1375 = vector.shape_cast %1374 : vector<1x16x128xf32> to vector<16x128xf32>
      %1376 = vector.broadcast %1373 : f32 to vector<16x128xf32>
      %1377 = arith.mulf %1376, %1375 : vector<16x128xf32>
      %1378 = arith.addf %1372, %1377 : vector<16x128xf32>
      %c87_905 = arith.constant 87 : index
      %1379 = memref.load %arg3[%c87_905] : memref<98xf32, #tpu.memory_space<smem>>
      %c1_906 = arith.constant 1 : index
      %c5_907 = arith.constant 5 : index
      %c0_908 = arith.constant 0 : index
      %1380 = vector.load %arg7[%c1_906, %c5_907, %c0_908] : memref<2x24x128xf32, #tpu.memory_space<vmem>>, vector<1x16x128xf32>
      %1381 = vector.shape_cast %1380 : vector<1x16x128xf32> to vector<16x128xf32>
      %1382 = vector.broadcast %1379 : f32 to vector<16x128xf32>
      %1383 = arith.mulf %1382, %1381 : vector<16x128xf32>
      %1384 = arith.addf %1378, %1383 : vector<16x128xf32>
      %c94_909 = arith.constant 94 : index
      %1385 = memref.load %arg3[%c94_909] : memref<98xf32, #tpu.memory_space<smem>>
      %c1_910 = arith.constant 1 : index
      %c6_911 = arith.constant 6 : index
      %c0_912 = arith.constant 0 : index
      %1386 = vector.load %arg7[%c1_910, %c6_911, %c0_912] : memref<2x24x128xf32, #tpu.memory_space<vmem>>, vector<1x16x128xf32>
      %1387 = vector.shape_cast %1386 : vector<1x16x128xf32> to vector<16x128xf32>
      %1388 = vector.broadcast %1385 : f32 to vector<16x128xf32>
      %1389 = arith.mulf %1388, %1387 : vector<16x128xf32>
      %1390 = arith.addf %1384, %1389 : vector<16x128xf32>
      %1391 = vector.extract_strided_slice %1390 {offsets = [0, 3], sizes = [16, 16], strides = [1, 1]} : vector<16x128xf32> to vector<16x16xf32>
      %1392 = arith.addf %1305, %1391 : vector<16x16xf32>
      %cst_913 = arith.constant 0.000000e+00 : f32
      %1393 = vector.broadcast %cst_913 : f32 to vector<16x128xf32>
      %c4_914 = arith.constant 4 : index
      %1394 = memref.load %arg3[%c4_914] : memref<98xf32, #tpu.memory_space<smem>>
      %c0_915 = arith.constant 0 : index
      %c0_916 = arith.constant 0 : index
      %c0_917 = arith.constant 0 : index
      %1395 = vector.load %arg7[%c0_915, %c0_916, %c0_917] : memref<2x24x128xf32, #tpu.memory_space<vmem>>, vector<1x16x128xf32>
      %1396 = vector.shape_cast %1395 : vector<1x16x128xf32> to vector<16x128xf32>
      %1397 = vector.broadcast %1394 : f32 to vector<16x128xf32>
      %1398 = arith.mulf %1397, %1396 : vector<16x128xf32>
      %1399 = arith.addf %1393, %1398 : vector<16x128xf32>
      %c11_918 = arith.constant 11 : index
      %1400 = memref.load %arg3[%c11_918] : memref<98xf32, #tpu.memory_space<smem>>
      %c0_919 = arith.constant 0 : index
      %c1_920 = arith.constant 1 : index
      %c0_921 = arith.constant 0 : index
      %1401 = vector.load %arg7[%c0_919, %c1_920, %c0_921] : memref<2x24x128xf32, #tpu.memory_space<vmem>>, vector<1x16x128xf32>
      %1402 = vector.shape_cast %1401 : vector<1x16x128xf32> to vector<16x128xf32>
      %1403 = vector.broadcast %1400 : f32 to vector<16x128xf32>
      %1404 = arith.mulf %1403, %1402 : vector<16x128xf32>
      %1405 = arith.addf %1399, %1404 : vector<16x128xf32>
      %c18_922 = arith.constant 18 : index
      %1406 = memref.load %arg3[%c18_922] : memref<98xf32, #tpu.memory_space<smem>>
      %c0_923 = arith.constant 0 : index
      %c2_924 = arith.constant 2 : index
      %c0_925 = arith.constant 0 : index
      %1407 = vector.load %arg7[%c0_923, %c2_924, %c0_925] : memref<2x24x128xf32, #tpu.memory_space<vmem>>, vector<1x16x128xf32>
      %1408 = vector.shape_cast %1407 : vector<1x16x128xf32> to vector<16x128xf32>
      %1409 = vector.broadcast %1406 : f32 to vector<16x128xf32>
      %1410 = arith.mulf %1409, %1408 : vector<16x128xf32>
      %1411 = arith.addf %1405, %1410 : vector<16x128xf32>
      %c25_926 = arith.constant 25 : index
      %1412 = memref.load %arg3[%c25_926] : memref<98xf32, #tpu.memory_space<smem>>
      %c0_927 = arith.constant 0 : index
      %c3_928 = arith.constant 3 : index
      %c0_929 = arith.constant 0 : index
      %1413 = vector.load %arg7[%c0_927, %c3_928, %c0_929] : memref<2x24x128xf32, #tpu.memory_space<vmem>>, vector<1x16x128xf32>
      %1414 = vector.shape_cast %1413 : vector<1x16x128xf32> to vector<16x128xf32>
      %1415 = vector.broadcast %1412 : f32 to vector<16x128xf32>
      %1416 = arith.mulf %1415, %1414 : vector<16x128xf32>
      %1417 = arith.addf %1411, %1416 : vector<16x128xf32>
      %c32_930 = arith.constant 32 : index
      %1418 = memref.load %arg3[%c32_930] : memref<98xf32, #tpu.memory_space<smem>>
      %c0_931 = arith.constant 0 : index
      %c4_932 = arith.constant 4 : index
      %c0_933 = arith.constant 0 : index
      %1419 = vector.load %arg7[%c0_931, %c4_932, %c0_933] : memref<2x24x128xf32, #tpu.memory_space<vmem>>, vector<1x16x128xf32>
      %1420 = vector.shape_cast %1419 : vector<1x16x128xf32> to vector<16x128xf32>
      %1421 = vector.broadcast %1418 : f32 to vector<16x128xf32>
      %1422 = arith.mulf %1421, %1420 : vector<16x128xf32>
      %1423 = arith.addf %1417, %1422 : vector<16x128xf32>
      %c39_934 = arith.constant 39 : index
      %1424 = memref.load %arg3[%c39_934] : memref<98xf32, #tpu.memory_space<smem>>
      %c0_935 = arith.constant 0 : index
      %c5_936 = arith.constant 5 : index
      %c0_937 = arith.constant 0 : index
      %1425 = vector.load %arg7[%c0_935, %c5_936, %c0_937] : memref<2x24x128xf32, #tpu.memory_space<vmem>>, vector<1x16x128xf32>
      %1426 = vector.shape_cast %1425 : vector<1x16x128xf32> to vector<16x128xf32>
      %1427 = vector.broadcast %1424 : f32 to vector<16x128xf32>
      %1428 = arith.mulf %1427, %1426 : vector<16x128xf32>
      %1429 = arith.addf %1423, %1428 : vector<16x128xf32>
      %c46_938 = arith.constant 46 : index
      %1430 = memref.load %arg3[%c46_938] : memref<98xf32, #tpu.memory_space<smem>>
      %c0_939 = arith.constant 0 : index
      %c6_940 = arith.constant 6 : index
      %c0_941 = arith.constant 0 : index
      %1431 = vector.load %arg7[%c0_939, %c6_940, %c0_941] : memref<2x24x128xf32, #tpu.memory_space<vmem>>, vector<1x16x128xf32>
      %1432 = vector.shape_cast %1431 : vector<1x16x128xf32> to vector<16x128xf32>
      %1433 = vector.broadcast %1430 : f32 to vector<16x128xf32>
      %1434 = arith.mulf %1433, %1432 : vector<16x128xf32>
      %1435 = arith.addf %1429, %1434 : vector<16x128xf32>
      %c53_942 = arith.constant 53 : index
      %1436 = memref.load %arg3[%c53_942] : memref<98xf32, #tpu.memory_space<smem>>
      %c1_943 = arith.constant 1 : index
      %c0_944 = arith.constant 0 : index
      %c0_945 = arith.constant 0 : index
      %1437 = vector.load %arg7[%c1_943, %c0_944, %c0_945] : memref<2x24x128xf32, #tpu.memory_space<vmem>>, vector<1x16x128xf32>
      %1438 = vector.shape_cast %1437 : vector<1x16x128xf32> to vector<16x128xf32>
      %1439 = vector.broadcast %1436 : f32 to vector<16x128xf32>
      %1440 = arith.mulf %1439, %1438 : vector<16x128xf32>
      %1441 = arith.addf %1435, %1440 : vector<16x128xf32>
      %c60_946 = arith.constant 60 : index
      %1442 = memref.load %arg3[%c60_946] : memref<98xf32, #tpu.memory_space<smem>>
      %c1_947 = arith.constant 1 : index
      %c1_948 = arith.constant 1 : index
      %c0_949 = arith.constant 0 : index
      %1443 = vector.load %arg7[%c1_947, %c1_948, %c0_949] : memref<2x24x128xf32, #tpu.memory_space<vmem>>, vector<1x16x128xf32>
      %1444 = vector.shape_cast %1443 : vector<1x16x128xf32> to vector<16x128xf32>
      %1445 = vector.broadcast %1442 : f32 to vector<16x128xf32>
      %1446 = arith.mulf %1445, %1444 : vector<16x128xf32>
      %1447 = arith.addf %1441, %1446 : vector<16x128xf32>
      %c67_950 = arith.constant 67 : index
      %1448 = memref.load %arg3[%c67_950] : memref<98xf32, #tpu.memory_space<smem>>
      %c1_951 = arith.constant 1 : index
      %c2_952 = arith.constant 2 : index
      %c0_953 = arith.constant 0 : index
      %1449 = vector.load %arg7[%c1_951, %c2_952, %c0_953] : memref<2x24x128xf32, #tpu.memory_space<vmem>>, vector<1x16x128xf32>
      %1450 = vector.shape_cast %1449 : vector<1x16x128xf32> to vector<16x128xf32>
      %1451 = vector.broadcast %1448 : f32 to vector<16x128xf32>
      %1452 = arith.mulf %1451, %1450 : vector<16x128xf32>
      %1453 = arith.addf %1447, %1452 : vector<16x128xf32>
      %c74_954 = arith.constant 74 : index
      %1454 = memref.load %arg3[%c74_954] : memref<98xf32, #tpu.memory_space<smem>>
      %c1_955 = arith.constant 1 : index
      %c3_956 = arith.constant 3 : index
      %c0_957 = arith.constant 0 : index
      %1455 = vector.load %arg7[%c1_955, %c3_956, %c0_957] : memref<2x24x128xf32, #tpu.memory_space<vmem>>, vector<1x16x128xf32>
      %1456 = vector.shape_cast %1455 : vector<1x16x128xf32> to vector<16x128xf32>
      %1457 = vector.broadcast %1454 : f32 to vector<16x128xf32>
      %1458 = arith.mulf %1457, %1456 : vector<16x128xf32>
      %1459 = arith.addf %1453, %1458 : vector<16x128xf32>
      %c81_958 = arith.constant 81 : index
      %1460 = memref.load %arg3[%c81_958] : memref<98xf32, #tpu.memory_space<smem>>
      %c1_959 = arith.constant 1 : index
      %c4_960 = arith.constant 4 : index
      %c0_961 = arith.constant 0 : index
      %1461 = vector.load %arg7[%c1_959, %c4_960, %c0_961] : memref<2x24x128xf32, #tpu.memory_space<vmem>>, vector<1x16x128xf32>
      %1462 = vector.shape_cast %1461 : vector<1x16x128xf32> to vector<16x128xf32>
      %1463 = vector.broadcast %1460 : f32 to vector<16x128xf32>
      %1464 = arith.mulf %1463, %1462 : vector<16x128xf32>
      %1465 = arith.addf %1459, %1464 : vector<16x128xf32>
      %c88_962 = arith.constant 88 : index
      %1466 = memref.load %arg3[%c88_962] : memref<98xf32, #tpu.memory_space<smem>>
      %c1_963 = arith.constant 1 : index
      %c5_964 = arith.constant 5 : index
      %c0_965 = arith.constant 0 : index
      %1467 = vector.load %arg7[%c1_963, %c5_964, %c0_965] : memref<2x24x128xf32, #tpu.memory_space<vmem>>, vector<1x16x128xf32>
      %1468 = vector.shape_cast %1467 : vector<1x16x128xf32> to vector<16x128xf32>
      %1469 = vector.broadcast %1466 : f32 to vector<16x128xf32>
      %1470 = arith.mulf %1469, %1468 : vector<16x128xf32>
      %1471 = arith.addf %1465, %1470 : vector<16x128xf32>
      %c95_966 = arith.constant 95 : index
      %1472 = memref.load %arg3[%c95_966] : memref<98xf32, #tpu.memory_space<smem>>
      %c1_967 = arith.constant 1 : index
      %c6_968 = arith.constant 6 : index
      %c0_969 = arith.constant 0 : index
      %1473 = vector.load %arg7[%c1_967, %c6_968, %c0_969] : memref<2x24x128xf32, #tpu.memory_space<vmem>>, vector<1x16x128xf32>
      %1474 = vector.shape_cast %1473 : vector<1x16x128xf32> to vector<16x128xf32>
      %1475 = vector.broadcast %1472 : f32 to vector<16x128xf32>
      %1476 = arith.mulf %1475, %1474 : vector<16x128xf32>
      %1477 = arith.addf %1471, %1476 : vector<16x128xf32>
      %1478 = vector.extract_strided_slice %1477 {offsets = [0, 4], sizes = [16, 16], strides = [1, 1]} : vector<16x128xf32> to vector<16x16xf32>
      %1479 = arith.addf %1392, %1478 : vector<16x16xf32>
      %cst_970 = arith.constant 0.000000e+00 : f32
      %1480 = vector.broadcast %cst_970 : f32 to vector<16x128xf32>
      %c5_971 = arith.constant 5 : index
      %1481 = memref.load %arg3[%c5_971] : memref<98xf32, #tpu.memory_space<smem>>
      %c0_972 = arith.constant 0 : index
      %c0_973 = arith.constant 0 : index
      %c0_974 = arith.constant 0 : index
      %1482 = vector.load %arg7[%c0_972, %c0_973, %c0_974] : memref<2x24x128xf32, #tpu.memory_space<vmem>>, vector<1x16x128xf32>
      %1483 = vector.shape_cast %1482 : vector<1x16x128xf32> to vector<16x128xf32>
      %1484 = vector.broadcast %1481 : f32 to vector<16x128xf32>
      %1485 = arith.mulf %1484, %1483 : vector<16x128xf32>
      %1486 = arith.addf %1480, %1485 : vector<16x128xf32>
      %c12_975 = arith.constant 12 : index
      %1487 = memref.load %arg3[%c12_975] : memref<98xf32, #tpu.memory_space<smem>>
      %c0_976 = arith.constant 0 : index
      %c1_977 = arith.constant 1 : index
      %c0_978 = arith.constant 0 : index
      %1488 = vector.load %arg7[%c0_976, %c1_977, %c0_978] : memref<2x24x128xf32, #tpu.memory_space<vmem>>, vector<1x16x128xf32>
      %1489 = vector.shape_cast %1488 : vector<1x16x128xf32> to vector<16x128xf32>
      %1490 = vector.broadcast %1487 : f32 to vector<16x128xf32>
      %1491 = arith.mulf %1490, %1489 : vector<16x128xf32>
      %1492 = arith.addf %1486, %1491 : vector<16x128xf32>
      %c19_979 = arith.constant 19 : index
      %1493 = memref.load %arg3[%c19_979] : memref<98xf32, #tpu.memory_space<smem>>
      %c0_980 = arith.constant 0 : index
      %c2_981 = arith.constant 2 : index
      %c0_982 = arith.constant 0 : index
      %1494 = vector.load %arg7[%c0_980, %c2_981, %c0_982] : memref<2x24x128xf32, #tpu.memory_space<vmem>>, vector<1x16x128xf32>
      %1495 = vector.shape_cast %1494 : vector<1x16x128xf32> to vector<16x128xf32>
      %1496 = vector.broadcast %1493 : f32 to vector<16x128xf32>
      %1497 = arith.mulf %1496, %1495 : vector<16x128xf32>
      %1498 = arith.addf %1492, %1497 : vector<16x128xf32>
      %c26_983 = arith.constant 26 : index
      %1499 = memref.load %arg3[%c26_983] : memref<98xf32, #tpu.memory_space<smem>>
      %c0_984 = arith.constant 0 : index
      %c3_985 = arith.constant 3 : index
      %c0_986 = arith.constant 0 : index
      %1500 = vector.load %arg7[%c0_984, %c3_985, %c0_986] : memref<2x24x128xf32, #tpu.memory_space<vmem>>, vector<1x16x128xf32>
      %1501 = vector.shape_cast %1500 : vector<1x16x128xf32> to vector<16x128xf32>
      %1502 = vector.broadcast %1499 : f32 to vector<16x128xf32>
      %1503 = arith.mulf %1502, %1501 : vector<16x128xf32>
      %1504 = arith.addf %1498, %1503 : vector<16x128xf32>
      %c33_987 = arith.constant 33 : index
      %1505 = memref.load %arg3[%c33_987] : memref<98xf32, #tpu.memory_space<smem>>
      %c0_988 = arith.constant 0 : index
      %c4_989 = arith.constant 4 : index
      %c0_990 = arith.constant 0 : index
      %1506 = vector.load %arg7[%c0_988, %c4_989, %c0_990] : memref<2x24x128xf32, #tpu.memory_space<vmem>>, vector<1x16x128xf32>
      %1507 = vector.shape_cast %1506 : vector<1x16x128xf32> to vector<16x128xf32>
      %1508 = vector.broadcast %1505 : f32 to vector<16x128xf32>
      %1509 = arith.mulf %1508, %1507 : vector<16x128xf32>
      %1510 = arith.addf %1504, %1509 : vector<16x128xf32>
      %c40_991 = arith.constant 40 : index
      %1511 = memref.load %arg3[%c40_991] : memref<98xf32, #tpu.memory_space<smem>>
      %c0_992 = arith.constant 0 : index
      %c5_993 = arith.constant 5 : index
      %c0_994 = arith.constant 0 : index
      %1512 = vector.load %arg7[%c0_992, %c5_993, %c0_994] : memref<2x24x128xf32, #tpu.memory_space<vmem>>, vector<1x16x128xf32>
      %1513 = vector.shape_cast %1512 : vector<1x16x128xf32> to vector<16x128xf32>
      %1514 = vector.broadcast %1511 : f32 to vector<16x128xf32>
      %1515 = arith.mulf %1514, %1513 : vector<16x128xf32>
      %1516 = arith.addf %1510, %1515 : vector<16x128xf32>
      %c47_995 = arith.constant 47 : index
      %1517 = memref.load %arg3[%c47_995] : memref<98xf32, #tpu.memory_space<smem>>
      %c0_996 = arith.constant 0 : index
      %c6_997 = arith.constant 6 : index
      %c0_998 = arith.constant 0 : index
      %1518 = vector.load %arg7[%c0_996, %c6_997, %c0_998] : memref<2x24x128xf32, #tpu.memory_space<vmem>>, vector<1x16x128xf32>
      %1519 = vector.shape_cast %1518 : vector<1x16x128xf32> to vector<16x128xf32>
      %1520 = vector.broadcast %1517 : f32 to vector<16x128xf32>
      %1521 = arith.mulf %1520, %1519 : vector<16x128xf32>
      %1522 = arith.addf %1516, %1521 : vector<16x128xf32>
      %c54_999 = arith.constant 54 : index
      %1523 = memref.load %arg3[%c54_999] : memref<98xf32, #tpu.memory_space<smem>>
      %c1_1000 = arith.constant 1 : index
      %c0_1001 = arith.constant 0 : index
      %c0_1002 = arith.constant 0 : index
      %1524 = vector.load %arg7[%c1_1000, %c0_1001, %c0_1002] : memref<2x24x128xf32, #tpu.memory_space<vmem>>, vector<1x16x128xf32>
      %1525 = vector.shape_cast %1524 : vector<1x16x128xf32> to vector<16x128xf32>
      %1526 = vector.broadcast %1523 : f32 to vector<16x128xf32>
      %1527 = arith.mulf %1526, %1525 : vector<16x128xf32>
      %1528 = arith.addf %1522, %1527 : vector<16x128xf32>
      %c61_1003 = arith.constant 61 : index
      %1529 = memref.load %arg3[%c61_1003] : memref<98xf32, #tpu.memory_space<smem>>
      %c1_1004 = arith.constant 1 : index
      %c1_1005 = arith.constant 1 : index
      %c0_1006 = arith.constant 0 : index
      %1530 = vector.load %arg7[%c1_1004, %c1_1005, %c0_1006] : memref<2x24x128xf32, #tpu.memory_space<vmem>>, vector<1x16x128xf32>
      %1531 = vector.shape_cast %1530 : vector<1x16x128xf32> to vector<16x128xf32>
      %1532 = vector.broadcast %1529 : f32 to vector<16x128xf32>
      %1533 = arith.mulf %1532, %1531 : vector<16x128xf32>
      %1534 = arith.addf %1528, %1533 : vector<16x128xf32>
      %c68_1007 = arith.constant 68 : index
      %1535 = memref.load %arg3[%c68_1007] : memref<98xf32, #tpu.memory_space<smem>>
      %c1_1008 = arith.constant 1 : index
      %c2_1009 = arith.constant 2 : index
      %c0_1010 = arith.constant 0 : index
      %1536 = vector.load %arg7[%c1_1008, %c2_1009, %c0_1010] : memref<2x24x128xf32, #tpu.memory_space<vmem>>, vector<1x16x128xf32>
      %1537 = vector.shape_cast %1536 : vector<1x16x128xf32> to vector<16x128xf32>
      %1538 = vector.broadcast %1535 : f32 to vector<16x128xf32>
      %1539 = arith.mulf %1538, %1537 : vector<16x128xf32>
      %1540 = arith.addf %1534, %1539 : vector<16x128xf32>
      %c75_1011 = arith.constant 75 : index
      %1541 = memref.load %arg3[%c75_1011] : memref<98xf32, #tpu.memory_space<smem>>
      %c1_1012 = arith.constant 1 : index
      %c3_1013 = arith.constant 3 : index
      %c0_1014 = arith.constant 0 : index
      %1542 = vector.load %arg7[%c1_1012, %c3_1013, %c0_1014] : memref<2x24x128xf32, #tpu.memory_space<vmem>>, vector<1x16x128xf32>
      %1543 = vector.shape_cast %1542 : vector<1x16x128xf32> to vector<16x128xf32>
      %1544 = vector.broadcast %1541 : f32 to vector<16x128xf32>
      %1545 = arith.mulf %1544, %1543 : vector<16x128xf32>
      %1546 = arith.addf %1540, %1545 : vector<16x128xf32>
      %c82_1015 = arith.constant 82 : index
      %1547 = memref.load %arg3[%c82_1015] : memref<98xf32, #tpu.memory_space<smem>>
      %c1_1016 = arith.constant 1 : index
      %c4_1017 = arith.constant 4 : index
      %c0_1018 = arith.constant 0 : index
      %1548 = vector.load %arg7[%c1_1016, %c4_1017, %c0_1018] : memref<2x24x128xf32, #tpu.memory_space<vmem>>, vector<1x16x128xf32>
      %1549 = vector.shape_cast %1548 : vector<1x16x128xf32> to vector<16x128xf32>
      %1550 = vector.broadcast %1547 : f32 to vector<16x128xf32>
      %1551 = arith.mulf %1550, %1549 : vector<16x128xf32>
      %1552 = arith.addf %1546, %1551 : vector<16x128xf32>
      %c89_1019 = arith.constant 89 : index
      %1553 = memref.load %arg3[%c89_1019] : memref<98xf32, #tpu.memory_space<smem>>
      %c1_1020 = arith.constant 1 : index
      %c5_1021 = arith.constant 5 : index
      %c0_1022 = arith.constant 0 : index
      %1554 = vector.load %arg7[%c1_1020, %c5_1021, %c0_1022] : memref<2x24x128xf32, #tpu.memory_space<vmem>>, vector<1x16x128xf32>
      %1555 = vector.shape_cast %1554 : vector<1x16x128xf32> to vector<16x128xf32>
      %1556 = vector.broadcast %1553 : f32 to vector<16x128xf32>
      %1557 = arith.mulf %1556, %1555 : vector<16x128xf32>
      %1558 = arith.addf %1552, %1557 : vector<16x128xf32>
      %c96_1023 = arith.constant 96 : index
      %1559 = memref.load %arg3[%c96_1023] : memref<98xf32, #tpu.memory_space<smem>>
      %c1_1024 = arith.constant 1 : index
      %c6_1025 = arith.constant 6 : index
      %c0_1026 = arith.constant 0 : index
      %1560 = vector.load %arg7[%c1_1024, %c6_1025, %c0_1026] : memref<2x24x128xf32, #tpu.memory_space<vmem>>, vector<1x16x128xf32>
      %1561 = vector.shape_cast %1560 : vector<1x16x128xf32> to vector<16x128xf32>
      %1562 = vector.broadcast %1559 : f32 to vector<16x128xf32>
      %1563 = arith.mulf %1562, %1561 : vector<16x128xf32>
      %1564 = arith.addf %1558, %1563 : vector<16x128xf32>
      %1565 = vector.extract_strided_slice %1564 {offsets = [0, 5], sizes = [16, 16], strides = [1, 1]} : vector<16x128xf32> to vector<16x16xf32>
      %1566 = arith.addf %1479, %1565 : vector<16x16xf32>
      %cst_1027 = arith.constant 0.000000e+00 : f32
      %1567 = vector.broadcast %cst_1027 : f32 to vector<16x128xf32>
      %c6_1028 = arith.constant 6 : index
      %1568 = memref.load %arg3[%c6_1028] : memref<98xf32, #tpu.memory_space<smem>>
      %c0_1029 = arith.constant 0 : index
      %c0_1030 = arith.constant 0 : index
      %c0_1031 = arith.constant 0 : index
      %1569 = vector.load %arg7[%c0_1029, %c0_1030, %c0_1031] : memref<2x24x128xf32, #tpu.memory_space<vmem>>, vector<1x16x128xf32>
      %1570 = vector.shape_cast %1569 : vector<1x16x128xf32> to vector<16x128xf32>
      %1571 = vector.broadcast %1568 : f32 to vector<16x128xf32>
      %1572 = arith.mulf %1571, %1570 : vector<16x128xf32>
      %1573 = arith.addf %1567, %1572 : vector<16x128xf32>
      %c13_1032 = arith.constant 13 : index
      %1574 = memref.load %arg3[%c13_1032] : memref<98xf32, #tpu.memory_space<smem>>
      %c0_1033 = arith.constant 0 : index
      %c1_1034 = arith.constant 1 : index
      %c0_1035 = arith.constant 0 : index
      %1575 = vector.load %arg7[%c0_1033, %c1_1034, %c0_1035] : memref<2x24x128xf32, #tpu.memory_space<vmem>>, vector<1x16x128xf32>
      %1576 = vector.shape_cast %1575 : vector<1x16x128xf32> to vector<16x128xf32>
      %1577 = vector.broadcast %1574 : f32 to vector<16x128xf32>
      %1578 = arith.mulf %1577, %1576 : vector<16x128xf32>
      %1579 = arith.addf %1573, %1578 : vector<16x128xf32>
      %c20_1036 = arith.constant 20 : index
      %1580 = memref.load %arg3[%c20_1036] : memref<98xf32, #tpu.memory_space<smem>>
      %c0_1037 = arith.constant 0 : index
      %c2_1038 = arith.constant 2 : index
      %c0_1039 = arith.constant 0 : index
      %1581 = vector.load %arg7[%c0_1037, %c2_1038, %c0_1039] : memref<2x24x128xf32, #tpu.memory_space<vmem>>, vector<1x16x128xf32>
      %1582 = vector.shape_cast %1581 : vector<1x16x128xf32> to vector<16x128xf32>
      %1583 = vector.broadcast %1580 : f32 to vector<16x128xf32>
      %1584 = arith.mulf %1583, %1582 : vector<16x128xf32>
      %1585 = arith.addf %1579, %1584 : vector<16x128xf32>
      %c27_1040 = arith.constant 27 : index
      %1586 = memref.load %arg3[%c27_1040] : memref<98xf32, #tpu.memory_space<smem>>
      %c0_1041 = arith.constant 0 : index
      %c3_1042 = arith.constant 3 : index
      %c0_1043 = arith.constant 0 : index
      %1587 = vector.load %arg7[%c0_1041, %c3_1042, %c0_1043] : memref<2x24x128xf32, #tpu.memory_space<vmem>>, vector<1x16x128xf32>
      %1588 = vector.shape_cast %1587 : vector<1x16x128xf32> to vector<16x128xf32>
      %1589 = vector.broadcast %1586 : f32 to vector<16x128xf32>
      %1590 = arith.mulf %1589, %1588 : vector<16x128xf32>
      %1591 = arith.addf %1585, %1590 : vector<16x128xf32>
      %c34_1044 = arith.constant 34 : index
      %1592 = memref.load %arg3[%c34_1044] : memref<98xf32, #tpu.memory_space<smem>>
      %c0_1045 = arith.constant 0 : index
      %c4_1046 = arith.constant 4 : index
      %c0_1047 = arith.constant 0 : index
      %1593 = vector.load %arg7[%c0_1045, %c4_1046, %c0_1047] : memref<2x24x128xf32, #tpu.memory_space<vmem>>, vector<1x16x128xf32>
      %1594 = vector.shape_cast %1593 : vector<1x16x128xf32> to vector<16x128xf32>
      %1595 = vector.broadcast %1592 : f32 to vector<16x128xf32>
      %1596 = arith.mulf %1595, %1594 : vector<16x128xf32>
      %1597 = arith.addf %1591, %1596 : vector<16x128xf32>
      %c41_1048 = arith.constant 41 : index
      %1598 = memref.load %arg3[%c41_1048] : memref<98xf32, #tpu.memory_space<smem>>
      %c0_1049 = arith.constant 0 : index
      %c5_1050 = arith.constant 5 : index
      %c0_1051 = arith.constant 0 : index
      %1599 = vector.load %arg7[%c0_1049, %c5_1050, %c0_1051] : memref<2x24x128xf32, #tpu.memory_space<vmem>>, vector<1x16x128xf32>
      %1600 = vector.shape_cast %1599 : vector<1x16x128xf32> to vector<16x128xf32>
      %1601 = vector.broadcast %1598 : f32 to vector<16x128xf32>
      %1602 = arith.mulf %1601, %1600 : vector<16x128xf32>
      %1603 = arith.addf %1597, %1602 : vector<16x128xf32>
      %c48_1052 = arith.constant 48 : index
      %1604 = memref.load %arg3[%c48_1052] : memref<98xf32, #tpu.memory_space<smem>>
      %c0_1053 = arith.constant 0 : index
      %c6_1054 = arith.constant 6 : index
      %c0_1055 = arith.constant 0 : index
      %1605 = vector.load %arg7[%c0_1053, %c6_1054, %c0_1055] : memref<2x24x128xf32, #tpu.memory_space<vmem>>, vector<1x16x128xf32>
      %1606 = vector.shape_cast %1605 : vector<1x16x128xf32> to vector<16x128xf32>
      %1607 = vector.broadcast %1604 : f32 to vector<16x128xf32>
      %1608 = arith.mulf %1607, %1606 : vector<16x128xf32>
      %1609 = arith.addf %1603, %1608 : vector<16x128xf32>
      %c55_1056 = arith.constant 55 : index
      %1610 = memref.load %arg3[%c55_1056] : memref<98xf32, #tpu.memory_space<smem>>
      %c1_1057 = arith.constant 1 : index
      %c0_1058 = arith.constant 0 : index
      %c0_1059 = arith.constant 0 : index
      %1611 = vector.load %arg7[%c1_1057, %c0_1058, %c0_1059] : memref<2x24x128xf32, #tpu.memory_space<vmem>>, vector<1x16x128xf32>
      %1612 = vector.shape_cast %1611 : vector<1x16x128xf32> to vector<16x128xf32>
      %1613 = vector.broadcast %1610 : f32 to vector<16x128xf32>
      %1614 = arith.mulf %1613, %1612 : vector<16x128xf32>
      %1615 = arith.addf %1609, %1614 : vector<16x128xf32>
      %c62_1060 = arith.constant 62 : index
      %1616 = memref.load %arg3[%c62_1060] : memref<98xf32, #tpu.memory_space<smem>>
      %c1_1061 = arith.constant 1 : index
      %c1_1062 = arith.constant 1 : index
      %c0_1063 = arith.constant 0 : index
      %1617 = vector.load %arg7[%c1_1061, %c1_1062, %c0_1063] : memref<2x24x128xf32, #tpu.memory_space<vmem>>, vector<1x16x128xf32>
      %1618 = vector.shape_cast %1617 : vector<1x16x128xf32> to vector<16x128xf32>
      %1619 = vector.broadcast %1616 : f32 to vector<16x128xf32>
      %1620 = arith.mulf %1619, %1618 : vector<16x128xf32>
      %1621 = arith.addf %1615, %1620 : vector<16x128xf32>
      %c69_1064 = arith.constant 69 : index
      %1622 = memref.load %arg3[%c69_1064] : memref<98xf32, #tpu.memory_space<smem>>
      %c1_1065 = arith.constant 1 : index
      %c2_1066 = arith.constant 2 : index
      %c0_1067 = arith.constant 0 : index
      %1623 = vector.load %arg7[%c1_1065, %c2_1066, %c0_1067] : memref<2x24x128xf32, #tpu.memory_space<vmem>>, vector<1x16x128xf32>
      %1624 = vector.shape_cast %1623 : vector<1x16x128xf32> to vector<16x128xf32>
      %1625 = vector.broadcast %1622 : f32 to vector<16x128xf32>
      %1626 = arith.mulf %1625, %1624 : vector<16x128xf32>
      %1627 = arith.addf %1621, %1626 : vector<16x128xf32>
      %c76_1068 = arith.constant 76 : index
      %1628 = memref.load %arg3[%c76_1068] : memref<98xf32, #tpu.memory_space<smem>>
      %c1_1069 = arith.constant 1 : index
      %c3_1070 = arith.constant 3 : index
      %c0_1071 = arith.constant 0 : index
      %1629 = vector.load %arg7[%c1_1069, %c3_1070, %c0_1071] : memref<2x24x128xf32, #tpu.memory_space<vmem>>, vector<1x16x128xf32>
      %1630 = vector.shape_cast %1629 : vector<1x16x128xf32> to vector<16x128xf32>
      %1631 = vector.broadcast %1628 : f32 to vector<16x128xf32>
      %1632 = arith.mulf %1631, %1630 : vector<16x128xf32>
      %1633 = arith.addf %1627, %1632 : vector<16x128xf32>
      %c83_1072 = arith.constant 83 : index
      %1634 = memref.load %arg3[%c83_1072] : memref<98xf32, #tpu.memory_space<smem>>
      %c1_1073 = arith.constant 1 : index
      %c4_1074 = arith.constant 4 : index
      %c0_1075 = arith.constant 0 : index
      %1635 = vector.load %arg7[%c1_1073, %c4_1074, %c0_1075] : memref<2x24x128xf32, #tpu.memory_space<vmem>>, vector<1x16x128xf32>
      %1636 = vector.shape_cast %1635 : vector<1x16x128xf32> to vector<16x128xf32>
      %1637 = vector.broadcast %1634 : f32 to vector<16x128xf32>
      %1638 = arith.mulf %1637, %1636 : vector<16x128xf32>
      %1639 = arith.addf %1633, %1638 : vector<16x128xf32>
      %c90_1076 = arith.constant 90 : index
      %1640 = memref.load %arg3[%c90_1076] : memref<98xf32, #tpu.memory_space<smem>>
      %c1_1077 = arith.constant 1 : index
      %c5_1078 = arith.constant 5 : index
      %c0_1079 = arith.constant 0 : index
      %1641 = vector.load %arg7[%c1_1077, %c5_1078, %c0_1079] : memref<2x24x128xf32, #tpu.memory_space<vmem>>, vector<1x16x128xf32>
      %1642 = vector.shape_cast %1641 : vector<1x16x128xf32> to vector<16x128xf32>
      %1643 = vector.broadcast %1640 : f32 to vector<16x128xf32>
      %1644 = arith.mulf %1643, %1642 : vector<16x128xf32>
      %1645 = arith.addf %1639, %1644 : vector<16x128xf32>
      %c97_1080 = arith.constant 97 : index
      %1646 = memref.load %arg3[%c97_1080] : memref<98xf32, #tpu.memory_space<smem>>
      %c1_1081 = arith.constant 1 : index
      %c6_1082 = arith.constant 6 : index
      %c0_1083 = arith.constant 0 : index
      %1647 = vector.load %arg7[%c1_1081, %c6_1082, %c0_1083] : memref<2x24x128xf32, #tpu.memory_space<vmem>>, vector<1x16x128xf32>
      %1648 = vector.shape_cast %1647 : vector<1x16x128xf32> to vector<16x128xf32>
      %1649 = vector.broadcast %1646 : f32 to vector<16x128xf32>
      %1650 = arith.mulf %1649, %1648 : vector<16x128xf32>
      %1651 = arith.addf %1645, %1650 : vector<16x128xf32>
      %1652 = vector.extract_strided_slice %1651 {offsets = [0, 6], sizes = [16, 16], strides = [1, 1]} : vector<16x128xf32> to vector<16x16xf32>
      %1653 = arith.addf %1566, %1652 : vector<16x16xf32>
      %cst_1084 = arith.constant 0.000000e+00 : f32
      %1654 = vector.broadcast %cst_1084 : f32 to vector<16x16xf32>
      %1655 = arith.subf %1654, %1653 : vector<16x16xf32>
      %1656 = math.exp %1655 : vector<16x16xf32>
      %cst_1085 = arith.constant 1.000000e+00 : f32
      %1657 = vector.broadcast %cst_1085 : f32 to vector<16x16xf32>
      %1658 = arith.addf %1657, %1656 : vector<16x16xf32>
      %cst_1086 = arith.constant 1.000000e+00 : f32
      %1659 = vector.broadcast %cst_1086 : f32 to vector<16x16xf32>
      %1660 = arith.divf %1659, %1658 : vector<16x16xf32>
      %c1_1087 = arith.constant 1 : index
      %c0_1088 = arith.constant 0 : index
      %c0_1089 = arith.constant 0 : index
      %c0_1090 = arith.constant 0 : index
      %1661 = vector.load %arg4[%c1_1087, %c0_1088, %c0_1089, %c0_1090] : memref<2x1x16x16xf32, #tpu.memory_space<vmem>>, vector<1x1x16x16xf32>
      %1662 = vector.shape_cast %1661 : vector<1x1x16x16xf32> to vector<16x16xf32>
      %1663 = vector.shape_cast %1660 : vector<16x16xf32> to vector<1x1x16x16xf32>
      tpu.vector_store %arg4[%c1_1087, %c0_1088, %c0_1089, %c0_1090], %1663 {strides = array<i32>} : memref<2x1x16x16xf32, #tpu.memory_space<vmem>>, vector<1x1x16x16xf32>,
    } else {
    }
    return
  }
  func.func @transform_0(%arg0: i32, %arg1: i32) -> (i32, i32, i32) {
    %c0_i32 = arith.constant 0 : i32
    %c0_i32_0 = arith.constant 0 : i32
    return %arg0, %arg1, %c0_i32 : i32, i32, i32
  }
  func.func @transform_1(%arg0: i32, %arg1: i32) -> i32 {
    %c0_i32 = arith.constant 0 : i32
    %c0_i32_0 = arith.constant 0 : i32
    return %c0_i32 : i32
  }
  func.func @transform_2(%arg0: i32, %arg1: i32) -> (i32, i32, i32, i32) {
    %c0_i32 = arith.constant 0 : i32
    %c0_i32_0 = arith.constant 0 : i32
    %c0_i32_1 = arith.constant 0 : i32
    %c0_i32_2 = arith.constant 0 : i32
    return %arg0, %c0_i32, %c0_i32_0, %c0_i32_1 : i32, i32, i32, i32
  }
}

</mosaic_0001>

<bundles_post_ra>
// kernel: tpu_custom_call.1
= control target key start
LH: loop header
LB: loop body
LE: loop exit
PB: predicated region body
PF: predicated region fallthrough
CT: control target
= control target key end

     0   :  { %s4768_s0 = inlined_call_operand.hbm [shape: f32[2,4,256], index: 0, kind: input, shape index: {}]   ;;  %s4769_s1 = inlined_call_operand.vmem [shape: f32[98], index: 1, kind: input, shape index: {}]   ;;  %s4770_s2 = inlined_call_operand.hbm [shape: f32[2,1,16,16], index: 2, kind: output, shape index: {}]  }
   0x1   :  { %5068 = sst [smem:[#allocation138_spill]] %s4770_s2 }
   0x2   :  { %7 = vsyncpa [#allocation6], 0 }
   0x3   :  { %8 = vsyncpa [#allocation8], 0 }
   0x4   :  { %9 = vsyncpa [#allocation7], 0  ;;  %s2626_s9 = smov [#allocation5]   ;;  %s28_s13 = sshll.u32 %s4769_s1, 4  ;;  %s29_s13 = int_to_ptr.vmem [resolvable:$true] %s28_s13 }
   0x5   :  { %s15_s10 = sshll.u32 %s2626_s9, 4  ;;  %s16_s10 = int_to_ptr.vmem [resolvable:$true] %s15_s10 }
   0x6   :  { %s2576_s14 = scalar_lea.vmem %s16_s10, 256  ;;  %p2581_p1 = scmp.lt.s32.totalorder %s16_s10, %s16_s10 }
   0x7   :  { %p2577_p0 = scmp.ne.s32.totalorder %s16_s10, %s2576_s14  ;;  %p2582_p2 = scmp.lt.s32.totalorder %s2576_s14, %s2576_s14 }
   0x9   :  { %p2583_p3 = por %p2582_p2, %p2581_p1 }
   0xb   :  { %p2584_p4 = pnand %p2583_p3, %p2577_p0 }
   0xd   :  { %2587 = shalt.err (!%p2584_p4)
}
   0xe   :  { %s4771_s15 = smov 128   ;;  %s4772_s16 = smov 8  }
   0xf   :  { %21 = dma.hbm_to_vmem [thread:$0]  %s4768_s0, 256, %s16_s10, [#allocation6], %s4771_s15, %s4771_s15, %s4772_s16  }
  0x10   :  { %s2588_s19 = scalar_lea.vmem %s29_s13, 16  ;;  %p2593_p6 = scmp.lt.s32.totalorder %s29_s13, %s29_s13 }
  0x11   :  { %p2589_p5 = scmp.ne.s32.totalorder %s29_s13, %s2588_s19  ;;  %p2594_p7 = scmp.lt.s32.totalorder %s2588_s19, %s2588_s19 }
  0x13   :  { %p2595_p8 = por %p2594_p7, %p2593_p6 }
  0x15   :  { %p2596_p9 = pnand %p2595_p8, %p2589_p5 }
  0x17   :  { %2599 = shalt.err (!%p2596_p9)
}
  0x18   :  { %s2629_s1 = smov [#allocation9]  }
  0x19   :  { %31 = dma.vmem_to_smem %s29_s13, 16, %s2629_s1, [#allocation8]  }
  0x1a   :  { %2620 = dma.done.wait [#allocation6], 256  }
  0x1b   :  { %2621 = vsyncadd [#allocation6], 4294967040 }
  0x1c   :  { %2622 = dma.done.wait [#allocation8], 16  }
  0x1d   :  { %2623 = vsyncadd [#allocation8], 4294967280 }
  0x1e   :  { %38 = sfence }
  0x1f   :  { %v45_v0 = vld [vmem:[#allocation5] sm:$0xff]  ;;  %vm50_vm0 = vcmask 1043456   ;;  %v2630_v1 = vmov 0.0   ;;  %v125_v4 = vld [vmem:[#allocation5 + $0x8] sm:$0xff]  ;;  %v2631_v7 = vmov -inf   ;;  %v71_v13 = vlaneseq  ;;  %s4773_s0 = smov 99  }
  0x20   :  { %43 = vst [vmem:[#allocation2] sm:$0xf] %v2630_v1  ;;  %v48_v2 = vcombine.high %v45_v0, %v45_v0  ;;  %v51_v3 = vsel %vm50_vm0, %v45_v0, 0.0  ;;  %204 = vst [vmem:[#allocation4] sm:$0xff] %v2630_v1  ;;  %v129_v6 = vcombine.high %v125_v4, %v125_v4  ;;  %v131_v9 = vsel %vm50_vm0, %v125_v4, 0.0  ;;  %s4777_s20 = smov 3  }
  0x21   :  { %205 = vst [vmem:[#allocation4 + $0x8] sm:$0xff] %v2630_v1  ;;  %206 = vst [vmem:[#allocation4 + $0x10] sm:$0xff] %v2630_v1  ;;  %v52_v5 = vrot.slane %v51_v3, 4  ;;  %v90_v10 = vsel %vm50_vm0, %v45_v0, -inf  ;;  %v132_v14 = vrot.slane %v131_v9, 4  ;;  %v167_v26 = vsel %vm50_vm0, %v125_v4, -inf }
  0x22   :  { %207 = vst [vmem:[#allocation4 + $0x18] sm:$0xff] %v2630_v1  ;;  %208 = vst [vmem:[#allocation4 + $0x20] sm:$0xff] %v2630_v1  ;;  %v58_v8 = vsel %vm50_vm0, %v48_v2, 0.0  ;;  %v2632_v15 = vmov 1966171168   ;;  %v138_v17 = vsel %vm50_vm0, %v129_v6, 0.0 }
  0x23   :  { %209 = vst [vmem:[#allocation4 + $0x28] sm:$0xff] %v2630_v1  ;;  %44 = vst [vmem:[#allocation3] sm:$0xf] %v2631_v7  ;;  %v53_v11 = vadd.f32 %v52_v5, %v51_v3  ;;  %v59_v12 = vrot.slane %v58_v8, 4  ;;  %v69_v16 = vunpack.c.l.s4 %v2632_v15  ;;  %v91_v18 = vrot.slane %v90_v10, 4  ;;  %s4775_s21 = smov 83  }
  0x24   :  { %v97_v19 = vsel %vm50_vm0, %v48_v2, -inf  ;;  %v133_v22 = vadd.f32 %v132_v14, %v131_v9  ;;  %v139_v23 = vrot.slane %v138_v17, 4  ;;  %v174_v27 = vsel %vm50_vm0, %v129_v6, -inf  ;;  %s4779_s22 = smov 115   ;;  %s4783_s23 = smov 51  }
  0x25   :  { %v54_v20 = vrot.slane %v53_v11, 2  ;;  %v60_v21 = vadd.f32 %v59_v12, %v58_v8  ;;  %v92_v24 = vmax.f32 %v90_v10, %v91_v18  ;;  %v98_v25 = vrot.slane %v97_v19, 4  ;;  %s4781_s24 = smov 67   ;;  %s4787_s25 = smov 19  }
  0x26   :  { %v134_v30 = vrot.slane %v133_v22, 2  ;;  %v140_v31 = vadd.f32 %v139_v23, %v138_v17  ;;  %v70_v32 = vunpack.c.0.s8 %v69_v16  ;;  %v72_v33 = vshrl.u32 %v71_v13, 7  ;;  %s4789_s26 = smov 35   ;;  %s2716_s27 = sld [smem:[#allocation9 + $0x1]] }
  0x27   :  { %v55_v28 = vadd.f32 %v54_v20, %v53_v11  ;;  %v61_v29 = vrot.slane %v60_v21, 2  ;;  %v99_v34 = vmax.f32 %v97_v19, %v98_v25  ;;  %v93_v39 = vrot.slane %v92_v24, 2  ;;  %v46_v3 = vld [vmem:[#allocation2] ss:$2 sm:$0x3]  ;;  %s2718_s28 = sld [smem:[#allocation9 + $0x8]] }
  0x28   :  { %v135_v37 = vadd.f32 %v134_v30, %v133_v22  ;;  %v141_v38 = vrot.slane %v140_v31, 2  ;;  %v168_v41 = vrot.slane %v167_v26, 4  ;;  %v175_v42 = vrot.slane %v174_v27, 4  ;;  %v127_v10 = vld [vmem:[#allocation2 + $0x1] ss:$2 sm:$0x3] }
  0x29   :  { %v56_v35 = vrot.slane %v55_v28, 1  ;;  %v62_v36 = vadd.f32 %v61_v29, %v60_v21  ;;  %v100_v40 = vrot.slane %v99_v34, 2  ;;  %v94_v47 = vmax.f32 %v92_v24, %v93_v39  ;;  %s2724_s29 = sld [smem:[#allocation9 + $0xf]] }
  0x2a   :  { %v136_v45 = vrot.slane %v135_v37, 1  ;;  %v142_v46 = vadd.f32 %v141_v38, %v140_v31  ;;  %v169_v49 = vmax.f32 %v167_v26, %v168_v41  ;;  %v176_v50 = vmax.f32 %v174_v27, %v175_v42  ;;  %v89_v17 = vld [vmem:[#allocation3] ss:$2 sm:$0x3]  ;;  %s2726_s30 = sld [smem:[#allocation9 + $0x16]] }
  0x2b   :  { %v57_v43 = vadd.f32 %v56_v35, %v55_v28  ;;  %v63_v44 = vrot.slane %v62_v36, 1  ;;  %v101_v48 = vmax.f32 %v99_v34, %v100_v40  ;;  %v73_v52 = vsub.s32 %v70_v32, %v72_v33  ;;  %s2728_s3 = sld [smem:[#allocation9 + $0x1d]] }
  0x2c   :  { %v137_v53 = vadd.f32 %v136_v45, %v135_v37  ;;  %v143_v54 = vrot.slane %v142_v46, 1  ;;  %v95_v55 = vrot.slane %v94_v47, 1  ;;  %v170_v57 = vrot.slane %v169_v49, 2  ;;  %5071 = sst [smem:[#allocation14_spill]] %s2716_s27 }
  0x2d   :  { %v64_v51 = vadd.f32 %v63_v44, %v62_v36  ;;  %v102_v56 = vrot.slane %v101_v48, 1  ;;  %v177_v58 = vrot.slane %v176_v50, 2  ;;  %vm2680_vm1 = vcmp.lt.s32.totalorder %v71_v13, 256  ;;  %v166_v13 = vld [vmem:[#allocation3 + $0x1] ss:$2 sm:$0x3] }
  0x2e   :  { %v144_v60 = vadd.f32 %v143_v54, %v142_v46  ;;  %v96_v61 = vmax.f32 %v94_v47, %v95_v55  ;;  %v171_v63 = vmax.f32 %v169_v49, %v170_v57  ;;  %v2690_v25 = vsub.s32 0, %v72_v33  ;;  %5072 = sst [smem:[#allocation15_spill]] %s2718_s28 }
  0x2f   :  { %v67_v59 = vcombine.low %v57_v43, %v64_v51  ;;  %v103_v62 = vmax.f32 %v101_v48, %v102_v56  ;;  %v178_v0 = vmax.f32 %v176_v50, %v177_v58  ;;  %5073 = sst [smem:[#allocation16_spill]] %s2724_s29  ;;  %vm220_vm2 = vcmask 147480  }
  0x30   :  { %v147_v2 = vcombine.low %v137_v53, %v144_v60  ;;  %v172_v5 = vrot.slane %v171_v63, 1  ;;  %5074 = sst [smem:[#allocation17_spill]] %s2726_s30  ;;  %vm1238_vm3 = vcmask 130048  }
  0x31   :  { %v74_v1 = vrot.slane %v67_v59, %v73_v52  ;;  %v106_v4 = vcombine.low %v96_v61, %v103_v62  ;;  %v179_v6 = vrot.slane %v178_v0, 1  ;;  %5075 = sst [smem:[#allocation18_spill]] %s2728_s3 }
  0x32   :  { %v154_v8 = vrot.slane %v147_v2, %v73_v52  ;;  %v173_v12 = vmax.f32 %v171_v63, %v172_v5  ;;  %s2730_s4 = sld [smem:[#allocation9 + $0x24]] }
  0x33   :  { %v81_v7 = vrot.slane %v74_v1, %v73_v52  ;;  %v113_v11 = vrot.slane %v106_v4, %v73_v52  ;;  %v180_v14 = vmax.f32 %v178_v0, %v179_v6  ;;  %s2736_s5 = sld [smem:[#allocation9 + $0x2b]] }
  0x34   :  { %v161_v16 = vrot.slane %v154_v8, %v73_v52  ;;  %s2738_s6 = sld [smem:[#allocation9 + $0x2]] }
  0x35   :  { %v83_v15 = vadd.f32 %v81_v7, %v46_v3  ;;  %v120_v18 = vrot.slane %v113_v11, %v73_v52  ;;  %v183_v19 = vcombine.low %v173_v12, %v180_v14  ;;  %s2740_s7 = sld [smem:[#allocation9 + $0x9]] }
  0x36   :  { %v163_v20 = vadd.f32 %v161_v16, %v127_v10  ;;  %s2742_s8 = sld [smem:[#allocation9 + $0x10]] }
  0x37   :  { %88 = vst.msk [vmem:[#allocation2] ss:$2 sm:$0x3] %vm2680_vm1, %v83_v15  ;;  %v122_v21 = vmax.f32 %v89_v17, %v120_v18  ;;  %v190_v22 = vrot.slane %v183_v19, %v73_v52  ;;  %s2748_s9 = sld [smem:[#allocation9 + $0x17]] }
  0x38   :  { %164 = vst.msk [vmem:[#allocation2 + $0x1] ss:$2 sm:$0x3] %vm2680_vm1, %v163_v20  ;;  %5076 = sst [smem:[#allocation19_spill]] %s2730_s4 }
  0x39   :  { %123 = vst.msk [vmem:[#allocation3] ss:$2 sm:$0x3] %vm2680_vm1, %v122_v21  ;;  %v197_v23 = vrot.slane %v190_v22, %v73_v52  ;;  %5077 = sst [smem:[#allocation20_spill]] %s2736_s5 }
  0x3a   :  { %5078 = sst [smem:[#allocation21_spill]] %s2738_s6 }
  0x3b   :  { %v199_v24 = vmax.f32 %v166_v13, %v197_v23  ;;  %5079 = sst [smem:[#allocation22_spill]] %s2740_s7 }
  0x3c   :  { %5080 = sst [smem:[#allocation23_spill]] %s2742_s8 }
  0x3d   :  { %200 = vst.msk [vmem:[#allocation3 + $0x1] ss:$2 sm:$0x3] %vm2680_vm1, %v199_v24  ;;  %5081 = sst [smem:[#allocation24_spill]] %s2748_s9 }
  0x3e   :  { %v254_v26 = vld [vmem:[#allocation2] sm:$0x1]  ;;  %v401_v48 = vld [vmem:[#allocation2 + $0x2] sm:$0x1]  ;;  %s2750_s10 = sld [smem:[#allocation9 + $0x1e]] }
  0x3f   :  { %v210_v27 = vld [vmem:[#allocation2] sm:$0x1]  ;;  %v255_v29 = vmul.f32 0.25, %v254_v26  ;;  %v380_v49 = vld [vmem:[#allocation2 + $0x2] sm:$0x1]  ;;  %v402_v52 = vmul.f32 0.25, %v401_v48 }
  0x40   :  { %v275_v28 = vld [vmem:[#allocation2] sm:$0x1]  ;;  %v211_v30 = vmul.f32 0.25, %v210_v27  ;;  %v381_v53 = vmul.f32 0.25, %v380_v49  ;;  %v443_v54 = vld [vmem:[#allocation2 + $0x2] sm:$0x1] }
  0x41   :  { %v276_v31 = vmul.f32 0.25, %v275_v28  ;;  %v233_v32 = vld [vmem:[#allocation2] sm:$0x1]  ;;  %v260_v37 = vrot.slane %v255_v29, %v2690_v25  ;;  %v422_v55 = vld [vmem:[#allocation2 + $0x2] sm:$0x1]  ;;  %v407_v56 = vrot.slane %v402_v52, %v2690_v25  ;;  %v444_v58 = vmul.f32 0.25, %v443_v54 }
  0x42   :  { %v234_v34 = vmul.f32 0.25, %v233_v32  ;;  %v317_v35 = vld [vmem:[#allocation2] sm:$0x1]  ;;  %v216_v38 = vrot.slane %v211_v30, %v2690_v25  ;;  %v386_v57 = vrot.slane %v381_v53, %v2690_v25  ;;  %v423_v59 = vmul.f32 0.25, %v422_v55  ;;  %v485_v60 = vld [vmem:[#allocation2 + $0x2] sm:$0x1] }
  0x43   :  { %v296_v36 = vld [vmem:[#allocation2] sm:$0x1]  ;;  %261 = vrot.lane.b32.xlu1 %v260_v37, %s4773_s0  ;;  %v281_v33 = vrot.slane %v276_v31, %v2690_v25  ;;  %v318_v40 = vmul.f32 0.25, %v317_v35  ;;  %v464_v61 = vld [vmem:[#allocation2 + $0x2] sm:$0x1]  ;;  %v449_v62 = vrot.slane %v444_v58, %v2690_v25  ;;  %v486_v0 = vmul.f32 0.25, %v485_v60 }
  0x44   :  { %217 = vrot.lane.b32.xlu0 %v216_v38, %s4777_s20  ;;  %v239_v39 = vrot.slane %v234_v34, %v2690_v25  ;;  %v297_v41 = vmul.f32 0.25, %v296_v36  ;;  %v359_v42 = vld [vmem:[#allocation2] sm:$0x1]  ;;  %v428_v63 = vrot.slane %v423_v59, %v2690_v25  ;;  %v465_v1 = vmul.f32 0.25, %v464_v61  ;;  %v527_v2 = vld [vmem:[#allocation2 + $0x2] sm:$0x1] }
  0x45   :  { %v338_v43 = vld [vmem:[#allocation2] sm:$0x1]  ;;  %v323_v44 = vrot.slane %v318_v40, %v2690_v25  ;;  %v360_v46 = vmul.f32 0.25, %v359_v42  ;;  %v506_v3 = vld [vmem:[#allocation2 + $0x2] sm:$0x1]  ;;  %v491_v4 = vrot.slane %v486_v0, %v2690_v25  ;;  %v528_v6 = vmul.f32 0.25, %v527_v2 }
  0x46   :  { %v302_v45 = vrot.slane %v297_v41, %v2690_v25  ;;  %v339_v47 = vmul.f32 0.25, %v338_v43  ;;  %v470_v5 = vrot.slane %v465_v1, %v2690_v25  ;;  %v507_v7 = vmul.f32 0.25, %v506_v3  ;;  %v1262_v8 = vld [vmem:[#allocation2 + $0x1] sm:$0x1]  ;;  %5082 = sst [smem:[#allocation25_spill]] %s2750_s10 }
  0x47   :  { %282 = vrot.lane.b32.xlu1 %v281_v33, %s4775_s21  ;;  %v365_v50 = vrot.slane %v360_v46, %v2690_v25  ;;  %v1241_v9 = vld [vmem:[#allocation2 + $0x1] sm:$0x1]  ;;  %v533_v10 = vrot.slane %v528_v6, %v2690_v25  ;;  %v1263_v12 = vmul.f32 0.25, %v1262_v8  ;;  %s2752_s11 = sld [smem:[#allocation9 + $0x25]]  ;;  %v1430_v34 = vld [vmem:[#allocation2 + $0x3] sm:$0x1]  ;;  %v681_v0 = vstv %s2726_s30 }
  0x48   :  { %240 = vrot.lane.b32.xlu0 %v239_v39, %s4779_s22  ;;  %v344_v51 = vrot.slane %v339_v47, %v2690_v25  ;;  %v512_v11 = vrot.slane %v507_v7, %v2690_v25  ;;  %v1242_v14 = vmul.f32 0.25, %v1241_v9  ;;  %v1304_v15 = vld [vmem:[#allocation2 + $0x1] sm:$0x1]  ;;  %s2754_s12 = sld [smem:[#allocation9 + $0x2c]]  ;;  %v1409_v35 = vld [vmem:[#allocation2 + $0x3] sm:$0x1]  ;;  %v687_v1 = vstv %s2728_s3 }
  0x49   :  { %v1283_v16 = vld [vmem:[#allocation2 + $0x1] sm:$0x1]  ;;  %v1268_v17 = vrot.slane %v1263_v12, %v2690_v25  ;;  %v1305_v19 = vmul.f32 0.25, %v1304_v15  ;;  %s2760_s13 = sld [smem:[#allocation9 + $0x3]]  ;;  %v1431_v38 = vmul.f32 0.25, %v1430_v34  ;;  %v1410_v33 = vmul.f32 0.25, %v1409_v35 }
  0x4a   :  { %v1247_v18 = vrot.slane %v1242_v14, %v2690_v25  ;;  %v1284_v20 = vmul.f32 0.25, %v1283_v16  ;;  %v1346_v21 = vld [vmem:[#allocation2 + $0x1] sm:$0x1]  ;;  %s2762_s14 = sld [smem:[#allocation9 + $0xa]]  ;;  %v1472_v39 = vld [vmem:[#allocation2 + $0x3] sm:$0x1]  ;;  %v693_v2 = vstv %s2730_s4  ;;  %v699_v3 = vstv %s2736_s5 }
  0x4b   :  { %324 = vrot.lane.b32.xlu1 %v323_v44, %s4783_s23  ;;  %v1325_v22 = vld [vmem:[#allocation2 + $0x1] sm:$0x1]  ;;  %v1310_v13 = vrot.slane %v1305_v19, %v2690_v25  ;;  %v1347_v24 = vmul.f32 0.25, %v1346_v21  ;;  %s2764_s17 = sld [smem:[#allocation9 + $0x11]]  ;;  %v1451_v40 = vld [vmem:[#allocation2 + $0x3] sm:$0x1]  ;;  %v1436_v41 = vrot.slane %v1431_v38, %v2690_v25  ;;  %v1415_v42 = vrot.slane %v1410_v33, %v2690_v25 }
  0x4c   :  { %303 = vrot.lane.b32.xlu0 %v302_v45, %s4781_s24  ;;  %v1289_v23 = vrot.slane %v1284_v20, %v2690_v25  ;;  %v1326_v26 = vmul.f32 0.25, %v1325_v22  ;;  %v1388_v27 = vld [vmem:[#allocation2 + $0x1] sm:$0x1]  ;;  %s2766_s18 = sld [smem:[#allocation9 + $0x18]]  ;;  %v1473_v43 = vmul.f32 0.25, %v1472_v39  ;;  %v1452_v44 = vmul.f32 0.25, %v1451_v40 }
  0x4d   :  { %5083 = sst [smem:[#allocation26_spill]] %s2752_s11  ;;  %v1367_v28 = vld [vmem:[#allocation2 + $0x1] sm:$0x1]  ;;  %v1352_v29 = vrot.slane %v1347_v24, %v2690_v25  ;;  %v1389_v31 = vmul.f32 0.25, %v1388_v27  ;;  %v1514_v45 = vld [vmem:[#allocation2 + $0x3] sm:$0x1]  ;;  %v769_v6 = vstv %s2742_s8  ;;  %v775_v7 = vstv %s2748_s9 }
  0x4e   :  { %5084 = sst [smem:[#allocation27_spill]] %s2754_s12  ;;  %v1331_v30 = vrot.slane %v1326_v26, %v2690_v25  ;;  %v1368_v32 = vmul.f32 0.25, %v1367_v28  ;;  %v1493_v46 = vld [vmem:[#allocation2 + $0x3] sm:$0x1]  ;;  %v1478_v47 = vrot.slane %v1473_v43, %v2690_v25  ;;  %v1457_v48 = vrot.slane %v1452_v44, %v2690_v25  ;;  %v2402_v61 = vld [vmem:[#allocation3 + $0x1] ss:$0 sm:$0xff] }
  0x4f   :  { %366 = vrot.lane.b32.xlu1 %v365_v50, %s4787_s25  ;;  %5085 = sst [smem:[#allocation28_spill]] %s2760_s13  ;;  %v1394_v36 = vrot.slane %v1389_v31, %v2690_v25  ;;  %v1515_v49 = vmul.f32 0.25, %v1514_v45  ;;  %v1494_v50 = vmul.f32 0.25, %v1493_v46  ;;  %v1556_v58 = vld [vmem:[#allocation2 + $0x3] sm:$0x1]  ;;  %v781_v8 = vstv %s2750_s10 }
  0x50   :  { %345 = vrot.lane.b32.xlu0 %v344_v51, %s4789_s26  ;;  %5086 = sst [smem:[#allocation29_spill]] %s2762_s14  ;;  %v1373_v37 = vrot.slane %v1368_v32, %v2690_v25  ;;  %v1535_v51 = vld [vmem:[#allocation2 + $0x3] sm:$0x1]  ;;  %v1557_v59 = vmul.f32 0.25, %v1556_v58  ;;  %v787_v9 = vstv %s2752_s11 }
  0x51   :  { %5087 = sst [smem:[#allocation30_spill]] %s2764_s17  ;;  %v1520_v52 = vrot.slane %v1515_v49, %v2690_v25  ;;  %v1499_v53 = vrot.slane %v1494_v50, %v2690_v25  ;;  %v1536_v54 = vmul.f32 0.25, %v1535_v51 }
  0x52   :  { %5088 = sst [smem:[#allocation31_spill]] %s2766_s18  ;;  %v1562_v60 = vrot.slane %v1557_v59, %v2690_v25 }
  0x53   :  { %408 = vrot.lane.b32.xlu1 %v407_v56, %s4779_s22  ;;  %s2772_s19 = sld [smem:[#allocation9 + $0x1f]]  ;;  %v1541_v55 = vrot.slane %v1536_v54, %v2690_v25  ;;  %v2288_v56 = vld [vmem:[#allocation3] ss:$0 sm:$0xff]  ;;  %v663_v25 = vstv %s2716_s27 }
  0x54   :  { %387 = vrot.lane.b32.xlu0 %v386_v57, %s4777_s20  ;;  %s2774_s1 = sld [smem:[#allocation9 + $0x26]]  ;;  %v2296_v57 = vld [vmem:[#allocation3 + $0x2] ss:$0 sm:$0xff] }
  0x55   :  { %s2776_s15 = sld [smem:[#allocation9 + $0x2d]] }
  0x56   :  { %s2778_s16 = sld [smem:[#allocation9 + $0x4]] }
  0x57   :  { %450 = vrot.lane.b32.xlu1 %v449_v62, %s4775_s21  ;;  %s2800_s2 = sld [smem:[#allocation9 + $0x5]]  ;;  %v669_v62 = vstv %s2718_s28 }
  0x58   :  { %429 = vrot.lane.b32.xlu0 %v428_v63, %s4773_s0  ;;  %s2845_s18 = sld [smem:[#allocation9 + $0x34]]  ;;  %v675_v63 = vstv %s2724_s29 }
  0x59   :  { %5089 = sst [smem:[#allocation32_spill]] %s2772_s19 }
  0x5a   :  { %5090 = sst [smem:[#allocation33_spill]] %s2774_s1 }
  0x5b   :  { %492 = vrot.lane.b32.xlu1 %v491_v4, %s4783_s23  ;;  %5091 = sst [smem:[#allocation34_spill]] %s2776_s15  ;;  %v757_v4 = vstv %s2738_s6 }
  0x5c   :  { %471 = vrot.lane.b32.xlu0 %v470_v5, %s4781_s24  ;;  %5092 = sst [smem:[#allocation35_spill]] %s2778_s16  ;;  %v763_v5 = vstv %s2740_s7 }
  0x5d   :  { %5099 = sst [smem:[#allocation42_spill]] %s2800_s2 }
  0x5e   :  { %s2814_s2 = sld [smem:[#allocation9 + $0x28]] }
  0x5f   :  { %534 = vrot.lane.b32.xlu1 %v533_v10, %s4787_s25  ;;  %s2822_s16 = sld [smem:[#allocation9 + $0x6]]  ;;  %v793_v10 = vstv %s2754_s12 }
  0x60   :  { %513 = vrot.lane.b32.xlu0 %v512_v11, %s4789_s26  ;;  %s2831_s15 = sld [smem:[#allocation9 + $0x1b]]  ;;  %v851_v11 = vstv %s2760_s13 }
  0x61   :  { %s2833_s1 = sld [smem:[#allocation9 + $0x22]] }
  0x62   :  { %s2835_s19 = sld [smem:[#allocation9 + $0x29]] }
  0x63   :  { %1269 = vrot.lane.b32.xlu1 %v1268_v17, %s4779_s22  ;;  %s2790_s22 = sld [smem:[#allocation9 + $0x20]] }
  0x64   :  { %1248 = vrot.lane.b32.xlu0 %v1247_v18, %s4777_s20  ;;  %s2788_s20 = sld [smem:[#allocation9 + $0x19]] }
  0x65   :  { %5106 = sst [smem:[#allocation47_spill]] %s2814_s2  ;;  %s5114_s2 = smov 67  }
  0x66   :  { %5110 = sst [smem:[#allocation49_spill]] %s2822_s16 }
  0x67   :  { %1311 = vrot.lane.b32.xlu1 %v1310_v13, %s4775_s21  ;;  %s2786_s21 = sld [smem:[#allocation9 + $0x12]]  ;;  %v2989_v13 = vld [vmem:[#allocation3 + $0x3] ss:$0 sm:$0xff] }
  0x68   :  { %1290 = vrot.lane.b32.xlu0 %v1289_v23, %s4773_s0  ;;  %s2784_s0 = sld [smem:[#allocation9 + $0xb]] }
  0x69   :  { %5096 = sst [smem:[#allocation39_spill]] %s2790_s22  ;;  %s5101_s22 = smov 115  }
  0x6a   :  { %5095 = sst [smem:[#allocation38_spill]] %s2788_s20 }
  0x6b   :  { %1353 = vrot.lane.b32.xlu1 %v1352_v29, %s4783_s23  ;;  %s2798_s23 = sld [smem:[#allocation9 + $0x2e]] }
  0x6c   :  { %1332 = vrot.lane.b32.xlu0 %v1331_v30, %s4781_s24  ;;  %s2796_s24 = sld [smem:[#allocation9 + $0x27]] }
  0x6d   :  { %5094 = sst [smem:[#allocation37_spill]] %s2786_s21  ;;  %s5108_s21 = smov 99  }
  0x6e   :  { %5093 = sst [smem:[#allocation36_spill]] %s2784_s0 }
  0x6f   :  { %1395 = vrot.lane.b32.xlu1 %v1394_v36, %s4787_s25  ;;  %s2802_s20 = sld [smem:[#allocation9 + $0xc]]  ;;  %s5102_s25 = smov 3  }
  0x70   :  { %1374 = vrot.lane.b32.xlu0 %v1373_v37, %s4789_s26  ;;  %s2808_s26 = sld [smem:[#allocation9 + $0x13]] }
  0x71   :  { %5098 = sst [smem:[#allocation41_spill]] %s2798_s23 }
  0x72   :  { %5097 = sst [smem:[#allocation40_spill]] %s2796_s24 }
  0x73   :  { %1437 = vrot.lane.b32.xlu1 %v1436_v41, %s5101_s22  ;;  %s2810_s24 = sld [smem:[#allocation9 + $0x1a]] }
  0x74   :  { %1416 = vrot.lane.b32.xlu0 %v1415_v42, %s5102_s25  ;;  %s2812_s23 = sld [smem:[#allocation9 + $0x21]] }
  0x75   :  { %5100 = sst [smem:[#allocation43_spill]] %s2802_s20  ;;  %s5107_s20 = smov 83  }
  0x76   :  { %5103 = sst [smem:[#allocation44_spill]] %s2808_s26 }
  0x77   :  { %1479 = vrot.lane.b32.xlu1 %v1478_v47, %s5107_s20  ;;  %s2820_s0 = sld [smem:[#allocation9 + $0x2f]] }
  0x78   :  { %1458 = vrot.lane.b32.xlu0 %v1457_v48, %s5108_s21  ;;  %s2824_s26 = sld [smem:[#allocation9 + $0xd]] }
  0x79   :  { %5104 = sst [smem:[#allocation45_spill]] %s2810_s24 }
  0x7a   :  { %5105 = sst [smem:[#allocation46_spill]] %s2812_s23  ;;  %s5113_s23 = smov 51  }
  0x7b   :  { %s2826_s24 = sld [smem:[#allocation9 + $0x14]]  ;;  %1521 = vrot.lane.b32.xlu1 %v1520_v52, %s5113_s23 }
  0x7c   :  { %1500 = vrot.lane.b32.xlu0 %v1499_v53, %s5114_s2  ;;  %5115 = sst [smem:[#allocation52_spill]] %s2831_s15 }
  0x7d   :  { %5109 = sst [smem:[#allocation48_spill]] %s2820_s0 }
  0x7e   :  { %5111 = sst [smem:[#allocation50_spill]] %s2824_s26  ;;  %s5119_s26 = smov 35  }
  0x7f   :  { %5116 = sst [smem:[#allocation53_spill]] %s2833_s1  ;;  %228 = vrot.lane.b32.xlu1 %v2288_v56, %s5102_s25 }
  0x80   :  { %5117 = sst [smem:[#allocation54_spill]] %s2835_s19  ;;  %1542 = vrot.lane.b32.xlu0 %v1541_v55, %s5119_s26 }
  0x81   :  { %5112 = sst [smem:[#allocation51_spill]] %s2826_s24 }
  0x82   :  { %s2837_s0 = sld [smem:[#allocation9 + $0x30]] }
  0x83   :  { %s2841_s24 = sld [smem:[#allocation9 + $0x32]]  ;;  %271 = vrot.lane.b32.xlu1 %v2288_v56, %s5108_s21 }
  0x84   :  { %s2843_s16 = sld [smem:[#allocation9 + $0x33]]  ;;  %250 = vrot.lane.b32.xlu0 %v2288_v56, %s5101_s22 }
  0x85   :  { %5122 = sst [smem:[#allocation58_spill]] %s2845_s18 }
  0x86   :  { %s2847_s17 = sld [smem:[#allocation9 + $0x35]] }
  0x87   :  { %s2851_s1 = sld [smem:[#allocation9 + $0x39]]  ;;  %313 = vrot.lane.b32.xlu1 %v2288_v56, %s5114_s2 }
  0x88   :  { %5118 = sst [smem:[#allocation55_spill]] %s2837_s0  ;;  %292 = vrot.lane.b32.xlu0 %v2288_v56, %s5107_s20 }
  0x89   :  { %5120 = sst [smem:[#allocation56_spill]] %s2841_s24 }
  0x8a   :  { %5121 = sst [smem:[#allocation57_spill]] %s2843_s16 }
  0x8b   :  { %s2853_s19 = sld [smem:[#allocation9 + $0x40]]  ;;  %355 = vrot.lane.b32.xlu1 %v2288_v56, %s5119_s26 }
  0x8c   :  { %5123 = sst [smem:[#allocation59_spill]] %s2847_s17  ;;  %334 = vrot.lane.b32.xlu0 %v2288_v56, %s5113_s23 }
  0x8d   :  { %5124 = sst [smem:[#allocation60_spill]] %s2851_s1 }
  0x8e   :  { %s2855_s0 = sld [smem:[#allocation9 + $0x3a]] }
  0x8f   :  { %s2857_s15 = sld [smem:[#allocation9 + $0x41]]  ;;  %397 = vrot.lane.b32.xlu1 %v2296_v57, %s5102_s25 }
  0x90   :  { %s2861_s16 = sld [smem:[#allocation9 + $0x47]] }
  0x91   :  { %5125 = sst [smem:[#allocation61_spill]] %s2853_s19 }
  0x92   :  { %s2863_s18 = sld [smem:[#allocation9 + $0x4e]] }
  0x93   :  { %s2865_s17 = sld [smem:[#allocation9 + $0x48]]  ;;  %439 = vrot.lane.b32.xlu1 %v2296_v57, %s5108_s21 }
  0x94   :  { %5126 = sst [smem:[#allocation62_spill]] %s2855_s0 }
  0x95   :  { %5127 = sst [smem:[#allocation63_spill]] %s2857_s15 }
  0x96   :  { %5128 = sst [smem:[#allocation64_spill]] %s2861_s16 }
  0x97   :  { %s2867_s24 = sld [smem:[#allocation9 + $0x4f]]  ;;  %481 = vrot.lane.b32.xlu1 %v2296_v57, %s5114_s2 }
  0x98   :  { %5129 = sst [smem:[#allocation65_spill]] %s2863_s18  ;;  %s5136_s18 = smov 19  }
  0x99   :  { %5130 = sst [smem:[#allocation66_spill]] %s2865_s17  ;;  %376 = vrot.lane.b32.xlu0 %v2288_v56, %s5136_s18 }
  0x9a   :  { %s2871_s19 = sld [smem:[#allocation9 + $0x55]] }
  0x9b   :  { %s2873_s15 = sld [smem:[#allocation9 + $0x5c]]  ;;  %523 = vrot.lane.b32.xlu1 %v2296_v57, %s5119_s26 }
  0x9c   :  { %s2875_s0 = sld [smem:[#allocation9 + $0x56]] }
  0x9d   :  { %5131 = sst [smem:[#allocation67_spill]] %s2867_s24  ;;  %418 = vrot.lane.b32.xlu0 %v2296_v57, %s5101_s22 }
  0x9e   :  { %s2877_s1 = sld [smem:[#allocation9 + $0x5d]] }
  0x9f   :  { %s2881_s17 = sld [smem:[#allocation9 + $0x3b]]  ;;  %1563 = vrot.lane.b32.xlu1 %v1562_v60, %s5136_s18 }
  0xa0   :  { %5132 = sst [smem:[#allocation68_spill]] %s2871_s19 }
  0xa1   :  { %5133 = sst [smem:[#allocation69_spill]] %s2873_s15  ;;  %460 = vrot.lane.b32.xlu0 %v2296_v57, %s5107_s20 }
  0xa2   :  { %5134 = sst [smem:[#allocation70_spill]] %s2875_s0 }
  0xa3   :  { %s2883_s24 = sld [smem:[#allocation9 + $0x42]]  ;;  %1279 = vrot.lane.b32.xlu1 %v2402_v61, %s5101_s22 }
  0xa4   :  { %5135 = sst [smem:[#allocation71_spill]] %s2877_s1 }
  0xa5   :  { %5137 = sst [smem:[#allocation72_spill]] %s2881_s17  ;;  %502 = vrot.lane.b32.xlu0 %v2296_v57, %s5113_s23 }
  0xa6   :  { %s2885_s16 = sld [smem:[#allocation9 + $0x49]] }
  0xa7   :  { %s2887_s14 = sld [smem:[#allocation9 + $0x50]]  ;;  %1321 = vrot.lane.b32.xlu1 %v2402_v61, %s5107_s20 }
  0xa8   :  { %s2891_s15 = sld [smem:[#allocation9 + $0x57]] }
  0xa9   :  { %5138 = sst [smem:[#allocation73_spill]] %s2883_s24  ;;  %544 = vrot.lane.b32.xlu0 %v2296_v57, %s5136_s18 }
  0xaa   :  { %s2893_s1 = sld [smem:[#allocation9 + $0x5e]] }
  0xab   :  { %s2895_s0 = sld [smem:[#allocation9 + $0x3c]]  ;;  %1363 = vrot.lane.b32.xlu1 %v2402_v61, %s5113_s23 }
  0xac   :  { %5139 = sst [smem:[#allocation74_spill]] %s2885_s16 }
  0xad   :  { %5140 = sst [smem:[#allocation75_spill]] %s2887_s14  ;;  %1258 = vrot.lane.b32.xlu0 %v2402_v61, %s5102_s25 }
  0xae   :  { %5141 = sst [smem:[#allocation76_spill]] %s2891_s15 }
  0xaf   :  { %s2897_s19 = sld [smem:[#allocation9 + $0x43]]  ;;  %1405 = vrot.lane.b32.xlu1 %v2402_v61, %s5136_s18 }
  0xb0   :  { %5142 = sst [smem:[#allocation77_spill]] %s2893_s1 }
  0xb1   :  { %5143 = sst [smem:[#allocation78_spill]] %s2895_s0  ;;  %1300 = vrot.lane.b32.xlu0 %v2402_v61, %s5108_s21 }
  0xb2   :  { %s2901_s16 = sld [smem:[#allocation9 + $0x4a]] }
  0xb3   :  { %s2903_s14 = sld [smem:[#allocation9 + $0x51]]  ;;  %1447 = vrot.lane.b32.xlu1 %v2989_v13, %s5101_s22  ;;  %s5239_s22 = smov 67  }
  0xb4   :  { %s2905_s24 = sld [smem:[#allocation9 + $0x58]] }
  0xb5   :  { %5144 = sst [smem:[#allocation79_spill]] %s2897_s19  ;;  %1342 = vrot.lane.b32.xlu0 %v2402_v61, %s5114_s2  ;;  %v262_v42 = vpop.permute.xlu1 %261 }
  0xb6   :  { %s2907_s17 = sld [smem:[#allocation9 + $0x5f]]  ;;  %v218_v43 = vpop.permute.xlu0 %217  ;;  %264 = vst.msk [vmem:[#allocation4 + $0x5] sm:$0x1] %vm220_vm2, %v262_v42 }
  0xb7   :  { %s2912_s19 = sld [smem:[#allocation9 + $0x36]]  ;;  %221 = vst.msk [vmem:[#allocation4 + $0x3] sm:$0x1] %vm220_vm2, %v218_v43  ;;  %1489 = vrot.lane.b32.xlu1 %v2989_v13, %s5107_s20 }
  0xb8   :  { %5145 = sst [smem:[#allocation80_spill]] %s2901_s16 }
  0xb9   :  { %5146 = sst [smem:[#allocation81_spill]] %s2903_s14  ;;  %1384 = vrot.lane.b32.xlu0 %v2402_v61, %s5119_s26  ;;  %v283_v58 = vpop.permute.xlu1 %282 }
  0xba   :  { %5147 = sst [smem:[#allocation82_spill]] %s2905_s24  ;;  %v241_v59 = vpop.permute.xlu0 %240  ;;  %285 = vst.msk [vmem:[#allocation4 + $0x6] sm:$0x1] %vm220_vm2, %v283_v58 }
  0xbb   :  { %s2914_s0 = sld [smem:[#allocation9 + $0x3d]]  ;;  %243 = vst.msk [vmem:[#allocation4 + $0x4] sm:$0x1] %vm220_vm2, %v241_v59  ;;  %1531 = vrot.lane.b32.xlu1 %v2989_v13, %s5113_s23 }
  0xbc   :  { %5148 = sst [smem:[#allocation83_spill]] %s2907_s17 }
  0xbd   :  { %5149 = sst [smem:[#allocation84_spill]] %s2912_s19  ;;  %1426 = vrot.lane.b32.xlu0 %v2989_v13, %s5102_s25  ;;  %v325_v43 = vpop.permute.xlu1 %324 }
  0xbe   :  { %s2916_s1 = sld [smem:[#allocation9 + $0x44]]  ;;  %v304_v53 = vpop.permute.xlu0 %303  ;;  %327 = vst.msk [vmem:[#allocation4 + $0x8] sm:$0x1] %vm220_vm2, %v325_v43 }
  0xbf   :  { %s2918_s15 = sld [smem:[#allocation9 + $0x4b]]  ;;  %306 = vst.msk [vmem:[#allocation4 + $0x7] sm:$0x1] %vm220_vm2, %v304_v53  ;;  %1573 = vrot.lane.b32.xlu1 %v2989_v13, %s5136_s18 }
  0xc0   :  { %s2922_s17 = sld [smem:[#allocation9 + $0x52]] }
  0xc1   :  { %5150 = sst [smem:[#allocation85_spill]] %s2914_s0  ;;  %1468 = vrot.lane.b32.xlu0 %v2989_v13, %s5108_s21  ;;  %v367_v42 = vpop.permute.xlu1 %366 }
  0xc2   :  { %s2924_s24 = sld [smem:[#allocation9 + $0x59]]  ;;  %369 = vst.msk [vmem:[#allocation4 + $0xa] sm:$0x1] %vm220_vm2, %v367_v42 }
  0xc3   :  { %s2926_s19 = sld [smem:[#allocation9 + $0x60]] }
  0xc4   :  { %5151 = sst [smem:[#allocation86_spill]] %s2916_s1 }
  0xc5   :  { %5152 = sst [smem:[#allocation87_spill]] %s2918_s15  ;;  %1510 = vrot.lane.b32.xlu0 %v2989_v13, %s5239_s22  ;;  %v409_v56 = vpop.permute.xlu1 %408 }
  0xc6   :  { %5153 = sst [smem:[#allocation88_spill]] %s2922_s17  ;;  %v3125_v55 = vld [vmem:[#allocation4] sm:$0xff]  ;;  %411 = vst.msk [vmem:[#allocation4 + $0xc] sm:$0x1] %vm220_vm2, %v409_v56 }
  0xc7   :  { %s2928_s0 = sld [smem:[#allocation9 + $0x37]]  ;;  %v3127_v47 = vld [vmem:[#allocation4 + $0x1] sm:$0xff]  ;;  %v664_v42 = vmul.f32 %v663_v25, %v3125_v55  ;;  %v758_v54 = vmul.f32 %v757_v4, %v3125_v55  ;;  %v852_v46 = vmul.f32 %v851_v11, %v3125_v55 }
  0xc8   :  { %5154 = sst [smem:[#allocation89_spill]] %s2924_s24  ;;  %v670_v33 = vmul.f32 %v669_v62, %v3127_v47  ;;  %v764_v45 = vmul.f32 %v763_v5, %v3127_v47 }
  0xc9   :  { %5155 = sst [smem:[#allocation90_spill]] %s2926_s19  ;;  %v451_v51 = vpop.permute.xlu1 %450 }
  0xca   :  { %s2932_s15 = sld [smem:[#allocation9 + $0x3e]]  ;;  %v672_v44 = vadd.f32 %v670_v33, %v664_v42  ;;  %v766_v49 = vadd.f32 %v764_v45, %v758_v54  ;;  %453 = vst.msk [vmem:[#allocation4 + $0xe] sm:$0x1] %vm220_vm2, %v451_v51 }
  0xcb   :  { %s2934_s17 = sld [smem:[#allocation9 + $0x45]] }
  0xcc   :  { %s2936_s1 = sld [smem:[#allocation9 + $0x4c]] }
  0xcd   :  { %5156 = sst [smem:[#allocation91_spill]] %s2928_s0 }
  0xce   :  { %s2938_s24 = sld [smem:[#allocation9 + $0x53]] }
  0xcf   :  { %s2942_s0 = sld [smem:[#allocation9 + $0x5a]] }
  0xd0   :  { %5157 = sst [smem:[#allocation92_spill]] %s2932_s15 }
  0xd1   :  { %5158 = sst [smem:[#allocation93_spill]] %s2934_s17 }
  0xd2   :  { %5159 = sst [smem:[#allocation94_spill]] %s2936_s1 }
  0xd3   :  { %s2945_s19 = sld [smem:[#allocation9 + $0x61]] }
  0xd4   :  { %5160 = sst [smem:[#allocation95_spill]] %s2938_s24 }
  0xd5   :  { %5161 = sst [smem:[#allocation96_spill]] %s2942_s0 }
  0xd6   :  { %s2951_s24 = sld [smem:[#allocation9 + $0x1]] }
  0xd7   :  { %s5164_s1 = sld [smem:[#allocation29_spill]] }
  0xd8   :  { %s5165_s17 = sld [smem:[#allocation30_spill]] }
  0xd9   :  { %5162 = sst [smem:[#allocation97_spill]] %s2945_s19 }
  0xda   :  { %s5166_s15 = sld [smem:[#allocation31_spill]] }
  0xdb   :  { %s5167_s0 = sld [smem:[#allocation32_spill]] }
  0xdc   :  { %5163 = sst [smem:[#allocation98_spill]] %s2951_s24 }
  0xdd   :  { %s2957_s27 = sld [smem:[#allocation9 + $0x8]]  ;;  %v857_v12 = vstv %s5164_s1 }
  0xde   :  { %s5169_s28 = sld [smem:[#allocation33_spill]]  ;;  %v863_v14 = vstv %s5165_s17  ;;  %v858_v56 = vmul.f32 %v857_v12, %v3127_v47 }
  0xdf   :  { %s5170_s29 = sld [smem:[#allocation34_spill]] }
  0xe0   :  { %s5171_s30 = sld [smem:[#allocation35_spill]]  ;;  %v869_v15 = vstv %s5166_s15  ;;  %v860_v60 = vadd.f32 %v858_v56, %v852_v46 }
  0xe1   :  { %s5172_s3 = sld [smem:[#allocation36_spill]]  ;;  %v875_v16 = vstv %s5167_s0 }
  0xe2   :  { %s2963_s24 = sld [smem:[#allocation9 + $0xf]] }
  0xe3   :  { %5168 = sst [smem:[#allocation99_spill]] %s2957_s27 }
  0xe4   :  { %s5174_s5 = sld [smem:[#allocation37_spill]]  ;;  %v881_v17 = vstv %s5169_s28 }
  0xe5   :  { %s5175_s4 = sld [smem:[#allocation38_spill]]  ;;  %v887_v18 = vstv %s5170_s29 }
  0xe6   :  { %s2969_s7 = sld [smem:[#allocation9 + $0x16]]  ;;  %v945_v19 = vstv %s5171_s30 }
  0xe7   :  { %s5177_s6 = sld [smem:[#allocation39_spill]]  ;;  %v951_v20 = vstv %s5172_s3 }
  0xe8   :  { %5173 = sst [smem:[#allocation100_spill]] %s2963_s24  ;;  %v952_v59 = vmul.f32 %v951_v20, %v3127_v47 }
  0xe9   :  { %s5178_s27 = sld [smem:[#allocation40_spill]] }
  0xea   :  { %s5179_s19 = sld [smem:[#allocation41_spill]]  ;;  %v4927_v21 = vstv %s5174_s5 }
  0xeb   :  { %s5180_s8 = sld [smem:[#allocation42_spill]]  ;;  %v4938_v22 = vstv %s5175_s4 }
  0xec   :  { %5176 = sst [smem:[#allocation101_spill]] %s2969_s7 }
  0xed   :  { %s2975_s2 = sld [smem:[#allocation9 + $0x1d]]  ;;  %v969_v23 = vstv %s5177_s6 }
  0xee   :  { %s5182_s9 = sld [smem:[#allocation43_spill]] }
  0xef   :  { %s5183_s11 = sld [smem:[#allocation44_spill]]  ;;  %v975_v24 = vstv %s5178_s27 }
  0xf0   :  { %s5184_s12 = sld [smem:[#allocation45_spill]]  ;;  %v981_v26 = vstv %s5179_s19 }
  0xf1   :  { %s5185_s10 = sld [smem:[#allocation46_spill]]  ;;  %v4926_v27 = vstv %s5180_s8 }
  0xf2   :  { %s2981_s13 = sld [smem:[#allocation9 + $0x24]]  ;;  %v1040_v33 = vmul.f32 %v4926_v27, %v3125_v55 }
  0xf3   :  { %5181 = sst [smem:[#allocation102_spill]] %s2975_s2 }
  0xf4   :  { %s5187_s17 = sld [smem:[#allocation47_spill]]  ;;  %v4925_v28 = vstv %s5182_s9 }
  0xf5   :  { %s5188_s15 = sld [smem:[#allocation48_spill]]  ;;  %v4937_v29 = vstv %s5183_s11  ;;  %v1046_v42 = vmul.f32 %v4925_v28, %v3127_v47  ;;  %v493_v28 = vpop.permute.xlu1 %492 }
  0xf6   :  { %s5189_s0 = sld [smem:[#allocation49_spill]]  ;;  %v4939_v30 = vstv %s5184_s12  ;;  %495 = vst.msk [vmem:[#allocation4 + $0x10] sm:$0x1] %vm220_vm2, %v493_v28 }
  0xf7   :  { %s5190_s1 = sld [smem:[#allocation50_spill]]  ;;  %v4940_v31 = vstv %s5185_s10 }
  0xf8   :  { %5186 = sst [smem:[#allocation103_spill]] %s2981_s13 }
  0xf9   :  { %s2987_s28 = sld [smem:[#allocation9 + $0x2b]] }
  0xfa   :  { %s5192_s29 = sld [smem:[#allocation51_spill]]  ;;  %v1069_v32 = vstv %s5187_s17 }
  0xfb   :  { %s5193_s3 = sld [smem:[#allocation52_spill]]  ;;  %v1075_v34 = vstv %s5188_s15 }
  0xfc   :  { %s2995_s30 = sld [smem:[#allocation9 + $0x2]]  ;;  %v4922_v35 = vstv %s5189_s0 }
  0xfd   :  { %s5196_s26 = sld [smem:[#allocation53_spill]]  ;;  %v4928_v36 = vstv %s5190_s1  ;;  %v1134_v46 = vmul.f32 %v4922_v35, %v3125_v55 }
  0xfe   :  { %s5197_s5 = sld [smem:[#allocation54_spill]]  ;;  %v1140_v56 = vmul.f32 %v4928_v36, %v3127_v47 }
  0xff   :  { %5191 = sst [smem:[#allocation104_spill]] %s2987_s28 }
 0x100   :  { %s5198_s4 = sld [smem:[#allocation55_spill]]  ;;  %v1145_v37 = vstv %s5192_s29 }
 0x101   :  { %s3001_s2 = sld [smem:[#allocation9 + $0x9]]  ;;  %v1151_v38 = vstv %s5193_s3 }
 0x102   :  { %5194 = sst [smem:[#allocation105_spill]] %s2995_s30 }
 0x103   :  { %s3007_s6 = sld [smem:[#allocation9 + $0x10]]  ;;  %v1157_v39 = vstv %s5196_s26 }
 0x104   :  { %s3015_s17 = sld [smem:[#allocation9 + $0x32]]  ;;  %v1163_v40 = vstv %s5197_s5 }
 0x105   :  { %s3021_s0 = sld [smem:[#allocation9 + $0x39]] }
 0x106   :  { %v1169_v41 = vstv %s5198_s4  ;;  %s3035_s19 = sld [smem:[#allocation9 + $0x1e]]  ;;  %s5256_s4 = smov 35  }
 0x107   :  { %5199 = sst [smem:[#allocation106_spill]] %s3001_s2  ;;  %1552 = vrot.lane.b32.xlu0 %v2989_v13, %s5256_s4  ;;  %v346_v13 = vpop.permute.xlu0 %345 }
 0x108   :  { %s3043_s26 = sld [smem:[#allocation9 + $0x40]]  ;;  %348 = vst.msk [vmem:[#allocation4 + $0x9] sm:$0x1] %vm220_vm2, %v346_v13 }
 0x109   :  { %5202 = sst [smem:[#allocation107_spill]] %s3007_s6 }
 0x10a   :  { %5206 = sst [smem:[#allocation108_spill]] %s3015_s17 }
 0x10b   :  { %5210 = sst [smem:[#allocation109_spill]] %s3021_s0  ;;  %v388_v61 = vpop.permute.xlu0 %387 }
 0x10c   :  { %s3027_s6 = sld [smem:[#allocation9 + $0x17]]  ;;  %390 = vst.msk [vmem:[#allocation4 + $0xb] sm:$0x1] %vm220_vm2, %v388_v61  ;;  %v946_v61 = vmul.f32 %v945_v19, %v3125_v55 }
 0x10d   :  { %5221 = sst [smem:[#allocation111_spill]] %s3035_s19 }
 0x10e   :  { %5224 = sst [smem:[#allocation112_spill]] %s3043_s26  ;;  %v954_v45 = vadd.f32 %v952_v59, %v946_v61 }
 0x10f   :  { %s3049_s11 = sld [smem:[#allocation9 + $0x47]]  ;;  %v3162_v53 = vld [vmem:[#allocation4 + $0x2] sm:$0xff]  ;;  %v430_v52 = vpop.permute.xlu0 %429 }
 0x110   :  { %s3055_s8 = sld [smem:[#allocation9 + $0x4e]]  ;;  %v3164_v48 = vld [vmem:[#allocation4 + $0x3] sm:$0xff]  ;;  %432 = vst.msk [vmem:[#allocation4 + $0xd] sm:$0x1] %vm220_vm2, %v430_v52  ;;  %v676_v50 = vmul.f32 %v675_v63, %v3162_v53  ;;  %v770_v57 = vmul.f32 %v769_v6, %v3162_v53  ;;  %v864_v51 = vmul.f32 %v863_v14, %v3162_v53  ;;  %v958_v52 = vmul.f32 %v4927_v21, %v3162_v53 }
 0x111   :  { %s3063_s29 = sld [smem:[#allocation9 + $0x55]]  ;;  %v682_v54 = vmul.f32 %v681_v0, %v3164_v48  ;;  %v776_v61 = vmul.f32 %v775_v7, %v3164_v48  ;;  %v870_v35 = vmul.f32 %v869_v15, %v3164_v48 }
 0x112   :  { %5216 = sst [smem:[#allocation110_spill]] %s3027_s6  ;;  %v678_v13 = vadd.f32 %v676_v50, %v672_v44  ;;  %v772_v59 = vadd.f32 %v770_v57, %v766_v49  ;;  %v866_v21 = vadd.f32 %v864_v51, %v860_v60  ;;  %v960_v36 = vadd.f32 %v958_v52, %v954_v45 }
 0x113   :  { %s3071_s5 = sld [smem:[#allocation9 + $0x5c]]  ;;  %v3201_v43 = vld [vmem:[#allocation4 + $0x4] sm:$0xff]  ;;  %v472_v27 = vpop.permute.xlu0 %471  ;;  %v964_v44 = vmul.f32 %v4938_v22, %v3164_v48  ;;  %v1052_v49 = vmul.f32 %v4937_v29, %v3162_v53  ;;  %v1048_v45 = vadd.f32 %v1046_v42, %v1040_v33  ;;  %v1058_v22 = vmul.f32 %v4939_v30, %v3164_v48  ;;  %v535_v33 = vpop.permute.xlu1 %534 }
 0x114   :  { %s3077_s1 = sld [smem:[#allocation9 + $0x25]]  ;;  %v3203_v58 = vld [vmem:[#allocation4 + $0x5] sm:$0xff]  ;;  %474 = vst.msk [vmem:[#allocation4 + $0xf] sm:$0x1] %vm220_vm2, %v472_v27  ;;  %v684_v50 = vadd.f32 %v682_v54, %v678_v13  ;;  %v688_v57 = vmul.f32 %v687_v1, %v3201_v43  ;;  %v778_v60 = vadd.f32 %v776_v61, %v772_v59  ;;  %v782_v51 = vmul.f32 %v781_v8, %v3201_v43 }
 0x115   :  { %5228 = sst [smem:[#allocation113_spill]] %s3049_s11  ;;  %v872_v52 = vadd.f32 %v870_v35, %v866_v21  ;;  %v876_v29 = vmul.f32 %v875_v16, %v3201_v43  ;;  %v694_v28 = vmul.f32 %v693_v2, %v3203_v58  ;;  %v966_v13 = vadd.f32 %v964_v44, %v960_v36  ;;  %537 = vst.msk [vmem:[#allocation4 + $0x12] sm:$0x1] %vm220_vm2, %v535_v33 }
 0x116   :  { %5232 = sst [smem:[#allocation114_spill]] %s3055_s8  ;;  %v690_v27 = vadd.f32 %v688_v57, %v684_v50  ;;  %v970_v21 = vmul.f32 %v969_v23, %v3201_v43  ;;  %v784_v54 = vadd.f32 %v782_v51, %v778_v60  ;;  %v788_v59 = vmul.f32 %v787_v9, %v3203_v58 }
 0x117   :  { %5237 = sst [smem:[#allocation115_spill]] %s3063_s29  ;;  %v3235_v35 = vld [vmem:[#allocation4 + $0x6] sm:$0xff]  ;;  %v514_v42 = vpop.permute.xlu0 %513  ;;  %v878_v61 = vadd.f32 %v876_v29, %v872_v52  ;;  %v1054_v50 = vadd.f32 %v1052_v49, %v1048_v45  ;;  %v882_v57 = vmul.f32 %v881_v17, %v3203_v58  ;;  %v976_v60 = vmul.f32 %v975_v24, %v3203_v58 }
 0x118   :  { %s3091_s14 = sld [smem:[#allocation9 + $0x33]]  ;;  %516 = vst.msk [vmem:[#allocation4 + $0x11] sm:$0x1] %vm220_vm2, %v514_v42  ;;  %v696_v36 = vadd.f32 %v694_v28, %v690_v27  ;;  %v700_v44 = vmul.f32 %v699_v3, %v3235_v35  ;;  %v790_v51 = vadd.f32 %v788_v59, %v784_v54  ;;  %v794_v29 = vmul.f32 %v793_v10, %v3235_v35  ;;  %v1270_v59 = vpop.permute.xlu1 %1269 }
 0x119   :  { %5241 = sst [smem:[#allocation116_spill]] %s3071_s5  ;;  %v888_v49 = vmul.f32 %v887_v18, %v3235_v35  ;;  %v972_v45 = vadd.f32 %v970_v21, %v966_v13  ;;  %v884_v52 = vadd.f32 %v882_v57, %v878_v61  ;;  %v982_v27 = vmul.f32 %v981_v26, %v3235_v35  ;;  %1272 = vst.msk [vmem:[#allocation4 + $0x4] sm:$0x1] %vm220_vm2, %v1270_v59 }
 0x11a   :  { %5245 = sst [smem:[#allocation117_spill]] %s3077_s1  ;;  %v1060_v28 = vadd.f32 %v1058_v22, %v1054_v50  ;;  %v1064_v33 = vmul.f32 %v4940_v31, %v3201_v43  ;;  %v1070_v21 = vmul.f32 %v1069_v32, %v3203_v58  ;;  %v1142_v61 = vadd.f32 %v1140_v56, %v1134_v46 }
 0x11b   :  { %s3083_s5 = sld [smem:[#allocation9 + $0x2c]]  ;;  %v3263_v42 = vld [vmem:[#allocation4 + $0x8] sm:$0xff]  ;;  %v1249_v30 = vpop.permute.xlu0 %1248  ;;  %v978_v13 = vadd.f32 %v976_v60, %v972_v45  ;;  %v1146_v60 = vmul.f32 %v1145_v37, %v3162_v53  ;;  %v3282_v46 = vadd.f32 %v700_v44, %v696_v36  ;;  %v3284_v56 = vadd.f32 %v794_v29, %v790_v51 }
 0x11c   :  { %s3099_s27 = sld [smem:[#allocation9 + $0x3a]]  ;;  %v3265_v54 = vld [vmem:[#allocation4 + $0x9] sm:$0xff]  ;;  %1251 = vst.msk [vmem:[#allocation4 + $0x3] sm:$0x1] %vm220_vm2, %v1249_v30  ;;  %v1066_v22 = vadd.f32 %v1064_v33, %v1060_v28  ;;  %v665_v50 = vmul.f32 %v663_v25, %v3263_v42  ;;  %v1076_v30 = vmul.f32 %v1075_v34, %v3235_v35  ;;  %v3290_v28 = vadd.f32 %v888_v49, %v884_v52  ;;  %v1312_v36 = vpop.permute.xlu1 %1311 }
 0x11d   :  { %s3105_s9 = sld [smem:[#allocation9 + $0x41]]  ;;  %v671_v31 = vmul.f32 %v669_v62, %v3265_v54  ;;  %v3292_v25 = vadd.f32 %v982_v27, %v978_v13  ;;  %v1148_v62 = vadd.f32 %v1146_v60, %v1142_v61  ;;  %v1152_v51 = vmul.f32 %v1151_v38, %v3164_v48  ;;  %1314 = vst.msk [vmem:[#allocation4 + $0x6] sm:$0x1] %vm220_vm2, %v1312_v36 }
 0x11e   :  { %5254 = sst [smem:[#allocation119_spill]] %s3091_s14  ;;  %v1072_v33 = vadd.f32 %v1070_v21, %v1066_v22  ;;  %v1158_v29 = vmul.f32 %v1157_v39, %v3201_v43  ;;  %v759_v49 = vmul.f32 %v757_v4, %v3263_v42  ;;  %v765_v52 = vmul.f32 %v763_v5, %v3265_v54 }
 0x11f   :  { %s3211_s7 = sld [smem:[#allocation9 + $0x48]]  ;;  %v3294_v59 = vld [vmem:[#allocation4 + $0xa] sm:$0xff]  ;;  %v1291_v44 = vpop.permute.xlu0 %1290  ;;  %v673_v21 = vadd.f32 %v671_v31, %v665_v50  ;;  %v853_v4 = vmul.f32 %v851_v11, %v3263_v42  ;;  %v859_v5 = vmul.f32 %v857_v12, %v3265_v54  ;;  %v1154_v60 = vadd.f32 %v1152_v51, %v1148_v62 }
 0x120   :  { %s3227_s26 = sld [smem:[#allocation9 + $0x4f]]  ;;  %v3296_v57 = vld [vmem:[#allocation4 + $0xb] sm:$0xff]  ;;  %1293 = vst.msk [vmem:[#allocation4 + $0x5] sm:$0x1] %vm220_vm2, %v1291_v44  ;;  %v677_v61 = vmul.f32 %v675_v63, %v3294_v59  ;;  %v3325_v22 = vadd.f32 %v1076_v30, %v1072_v33  ;;  %v1164_v36 = vmul.f32 %v1163_v40, %v3203_v58  ;;  %v1170_v31 = vmul.f32 %v1169_v41, %v3235_v35  ;;  %v1354_v30 = vpop.permute.xlu1 %1353 }
 0x121   :  { %5251 = sst [smem:[#allocation118_spill]] %s3083_s5  ;;  %v3310_v27 = vld [vmem:[#allocation4 + $0xc] sm:$0xff]  ;;  %v683_v63 = vmul.f32 %v681_v0, %v3296_v57  ;;  %v767_v11 = vadd.f32 %v765_v52, %v759_v49  ;;  %v771_v12 = vmul.f32 %v769_v6, %v3294_v59  ;;  %1356 = vst.msk [vmem:[#allocation4 + $0x8] sm:$0x1] %vm220_vm2, %v1354_v30  ;;  %v861_v49 = vadd.f32 %v859_v5, %v853_v4 }
 0x122   :  { %5258 = sst [smem:[#allocation120_spill]] %s3099_s27  ;;  %5308 = vst [vmem:[#allocation122_spill] sm:$0xff] %v3310_v27  ;;  %v3312_v13 = vld [vmem:[#allocation4 + $0xd] sm:$0xff]  ;;  %v679_v44 = vadd.f32 %v677_v61, %v673_v21  ;;  %v689_v62 = vmul.f32 %v687_v1, %v3310_v27  ;;  %v1160_v21 = vadd.f32 %v1158_v29, %v1154_v60  ;;  %v777_v61 = vmul.f32 %v775_v7, %v3296_v57 }
 0x123   :  { %5260 = sst [smem:[#allocation121_spill]] %s3105_s9  ;;  %5309 = vst [vmem:[#allocation123_spill] sm:$0xff] %v3312_v13  ;;  %v3333_v50 = vld [vmem:[#allocation4 + $0xe] sm:$0xff]  ;;  %v1333_v33 = vpop.permute.xlu0 %1332  ;;  %v695_v51 = vmul.f32 %v693_v2, %v3312_v13  ;;  %v773_v6 = vadd.f32 %v771_v12, %v767_v11  ;;  %v865_v1 = vmul.f32 %v863_v14, %v3294_v59  ;;  %v783_v29 = vmul.f32 %v781_v8, %v3310_v27 }
 0x124   :  { %s5279_s5 = sld [smem:[#allocation37_spill]]  ;;  %5310 = vst [vmem:[#allocation124_spill] sm:$0xff] %v3333_v50  ;;  %1335 = vst.msk [vmem:[#allocation4 + $0x7] sm:$0x1] %vm220_vm2, %v1333_v33  ;;  %v685_v0 = vadd.f32 %v683_v63, %v679_v44  ;;  %v701_v2 = vmul.f32 %v699_v3, %v3333_v50  ;;  %v1166_v7 = vadd.f32 %v1164_v36, %v1160_v21  ;;  %v1396_v3 = vpop.permute.xlu1 %1395 }
 0x125   :  { %5291 = sst [smem:[#allocation14_spill]] %s3211_s7  ;;  %v871_v52 = vmul.f32 %v869_v15, %v3296_v57  ;;  %v779_v5 = vadd.f32 %v777_v61, %v773_v6  ;;  %v867_v14 = vadd.f32 %v865_v1, %v861_v49  ;;  %v947_v60 = vmul.f32 %v945_v19, %v3263_v42  ;;  %1398 = vst.msk [vmem:[#allocation4 + $0xa] sm:$0x1] %vm220_vm2, %v1396_v3 }
 0x126   :  { %5294 = sst [smem:[#allocation15_spill]] %s3227_s26  ;;  %v691_v4 = vadd.f32 %v689_v62, %v685_v0  ;;  %v789_v8 = vmul.f32 %v787_v9, %v3312_v13  ;;  %v795_v15 = vmul.f32 %v793_v10, %v3333_v50  ;;  %v953_v44 = vmul.f32 %v951_v20, %v3265_v54 }
 0x127   :  { %s3350_s0 = sld [smem:[#allocation9 + $0x56]]  ;;  %v1375_v36 = vpop.permute.xlu0 %1374  ;;  %v785_v12 = vadd.f32 %v783_v29, %v779_v5  ;;  %v873_v9 = vadd.f32 %v871_v52, %v867_v14  ;;  %v877_v10 = vmul.f32 %v875_v16, %v3310_v27  ;;  %v883_v20 = vmul.f32 %v881_v17, %v3312_v13 }
 0x128   :  { %s3357_s2 = sld [smem:[#allocation9 + $0x5d]]  ;;  %1377 = vst.msk [vmem:[#allocation4 + $0x9] sm:$0x1] %vm220_vm2, %v1375_v36  ;;  %v697_v19 = vadd.f32 %v695_v51, %v691_v4  ;;  %v889_v30 = vmul.f32 %v887_v18, %v3333_v50  ;;  %v955_v33 = vadd.f32 %v953_v44, %v947_v60  ;;  %v3407_v51 = vadd.f32 %v1170_v31, %v1166_v7  ;;  %v1438_v18 = vpop.permute.xlu1 %1437 }
 0x129   :  { %s3368_s29 = sld [smem:[#allocation9 + $0x3]]  ;;  %v879_v61 = vadd.f32 %v877_v10, %v873_v9  ;;  %v791_v1 = vadd.f32 %v789_v8, %v785_v12  ;;  %v971_v31 = vmul.f32 %v969_v23, %v3310_v27  ;;  %1440 = vst.msk [vmem:[#allocation4 + $0xc] sm:$0x1] %vm220_vm2, %v1438_v18  ;;  %v977_v23 = vmul.f32 %v975_v24, %v3312_v13 }
 0x12a   :  { %s3373_s8 = sld [smem:[#allocation9 + $0xa]]  ;;  %v5316_v63 = vstv %s5279_s5  ;;  %v3431_v14 = vadd.f32 %v701_v2, %v697_v19  ;;  %v3439_v60 = vmul.f32 %v981_v26, %v3333_v50  ;;  %v1147_v18 = vmul.f32 %v1145_v37, %v3294_v59 }
 0x12b   :  { %s5315_s6 = sld [smem:[#allocation42_spill]]  ;;  %v959_v11 = vmul.f32 %v5316_v63, %v3294_v59  ;;  %v1417_v49 = vpop.permute.xlu0 %1416  ;;  %v3423_v4 = vld [vmem:[#allocation4] sm:$0xff]  ;;  %v885_v36 = vadd.f32 %v883_v20, %v879_v61  ;;  %v1071_v37 = vmul.f32 %v1069_v32, %v3312_v13 }
 0x12c   :  { %s5317_s3 = sld [smem:[#allocation38_spill]]  ;;  %v3425_v5 = vld [vmem:[#allocation4 + $0x1] sm:$0xff]  ;;  %1419 = vst.msk [vmem:[#allocation4 + $0xb] sm:$0x1] %vm220_vm2, %v1417_v49 }
 0x12d   :  { %5311 = sst [smem:[#allocation21_spill]] %s3350_s0  ;;  %v961_v29 = vadd.f32 %v959_v11, %v955_v33  ;;  %v1480_v33 = vpop.permute.xlu1 %1479 }
 0x12e   :  { %5312 = sst [smem:[#allocation22_spill]] %s3357_s2  ;;  %1482 = vst.msk [vmem:[#allocation4 + $0xe] sm:$0x1] %vm220_vm2, %v1480_v33 }
 0x12f   :  { %5313 = sst [smem:[#allocation28_spill]] %s3368_s29 }
 0x130   :  { %5314 = sst [smem:[#allocation29_spill]] %s3373_s8 }
 0x131   :  { %s3387_s10 = sld [smem:[#allocation9 + $0x11]]  ;;  %v5323_v62 = vstv %s5315_s6  ;;  %v1522_v32 = vpop.permute.xlu1 %1521 }
 0x132   :  { %s5319_s11 = sld [smem:[#allocation43_spill]]  ;;  %v1041_v21 = vmul.f32 %v5323_v62, %v3263_v42  ;;  %v5325_v16 = vstv %s5317_s3  ;;  %v1459_v62 = vpop.permute.xlu0 %1458  ;;  %1524 = vst.msk [vmem:[#allocation4 + $0x10] sm:$0x1] %vm220_vm2, %v1522_v32 }
 0x133   :  { %s3394_s27 = sld [smem:[#allocation9 + $0x18]]  ;;  %v965_v0 = vmul.f32 %v5325_v16, %v3296_v57  ;;  %1461 = vst.msk [vmem:[#allocation4 + $0xd] sm:$0x1] %vm220_vm2, %v1459_v62 }
 0x134   :  { %s5322_s28 = sld [smem:[#allocation44_spill]] }
 0x135   :  { %s3405_s5 = sld [smem:[#allocation9 + $0x1f]]  ;;  %v967_v8 = vadd.f32 %v965_v0, %v961_v29 }
 0x136   :  { %s3415_s14 = sld [smem:[#allocation9 + $0x26]] }
 0x137   :  { %5318 = sst [smem:[#allocation35_spill]] %s3387_s10  ;;  %v973_v61 = vadd.f32 %v971_v31, %v967_v8 }
 0x138   :  { %v5327_v6 = vstv %s5319_s11  ;;  %s5330_s17 = sld [smem:[#allocation98_spill]] }
 0x139   :  { %5321 = sst [smem:[#allocation36_spill]] %s3394_s27  ;;  %v1047_v17 = vmul.f32 %v5327_v6, %v3265_v54  ;;  %v3467_v6 = vld [vmem:[#allocation4 + $0x2] sm:$0xff] }
 0x13a   :  { %s5331_s19 = sld [smem:[#allocation99_spill]]  ;;  %v5332_v7 = vstv %s5322_s28 }
 0x13b   :  { %5324 = sst [smem:[#allocation16_spill]] %s3405_s5  ;;  %v1053_v52 = vmul.f32 %v5332_v7, %v3294_v59  ;;  %v1049_v3 = vadd.f32 %v1047_v17, %v1041_v21  ;;  %v3462_v21 = vadd.f32 %v795_v15, %v791_v1  ;;  %v3469_v17 = vld [vmem:[#allocation4 + $0x3] sm:$0xff]  ;;  %v3483_v7 = vadd.f32 %v889_v30, %v885_v36 }
 0x13c   :  { %5329 = sst [smem:[#allocation23_spill]] %s3415_s14 }
 0x13d   :  { %s5333_s1 = sld [smem:[#allocation45_spill]]  ;;  %v1055_v24 = vadd.f32 %v1053_v52, %v1049_v3  ;;  %v1077_v52 = vmul.f32 %v1075_v34, %v3333_v50  ;;  %v979_v34 = vadd.f32 %v977_v23, %v973_v61  ;;  %v1165_v61 = vmul.f32 %v1163_v40, %v3312_v13 }
 0x13e   :  { %s5334_s25 = sld [smem:[#allocation49_spill]]  ;;  %v5339_v44 = vstv %s5330_s17 }
 0x13f   :  { %s3427_s21 = sld [smem:[#allocation9 + $0x2d]]  ;;  %v1693_v63 = vmul.f32 %v5339_v44, %v3423_v4 }
 0x140   :  { %s5336_s23 = sld [smem:[#allocation50_spill]]  ;;  %v5340_v2 = vstv %s5331_s19 }
 0x141   :  { %s5337_s4 = sld [smem:[#allocation46_spill]]  ;;  %v1699_v11 = vmul.f32 %v5340_v2, %v3425_v5 }
 0x142   :  { %s3441_s6 = sld [smem:[#allocation9 + $0x34]] }
 0x143   :  { %s3449_s3 = sld [smem:[#allocation9 + $0x3b]]  ;;  %v5342_v19 = vstv %s5333_s1  ;;  %v1701_v49 = vadd.f32 %v1699_v11, %v1693_v63  ;;  %v1501_v11 = vpop.permute.xlu0 %1500 }
 0x144   :  { %v1059_v26 = vmul.f32 %v5342_v19, %v3296_v57  ;;  %v5343_v12 = vstv %s5334_s25  ;;  %s5345_s11 = sld [smem:[#allocation100_spill]]  ;;  %v3503_v19 = vld [vmem:[#allocation4 + $0x5] sm:$0xff]  ;;  %1503 = vst.msk [vmem:[#allocation4 + $0xf] sm:$0x1] %vm220_vm2, %v1501_v11 }
 0x145   :  { %5335 = sst [smem:[#allocation17_spill]] %s3427_s21  ;;  %v1135_v9 = vmul.f32 %v5343_v12, %v3263_v42 }
 0x146   :  { %v5344_v10 = vstv %s5336_s23  ;;  %s3460_s24 = sld [smem:[#allocation9 + $0x42]]  ;;  %v1061_v15 = vadd.f32 %v1059_v26, %v1055_v24  ;;  %v3501_v24 = vld [vmem:[#allocation4 + $0x4] sm:$0xff]  ;;  %v1153_v26 = vmul.f32 %v1151_v38, %v3296_v57  ;;  %v1159_v38 = vmul.f32 %v1157_v39, %v3310_v27 }
 0x147   :  { %v1141_v20 = vmul.f32 %v5344_v10, %v3265_v54  ;;  %v5347_v16 = vstv %s5337_s4  ;;  %s5348_s28 = sld [smem:[#allocation101_spill]] }
 0x148   :  { %5338 = sst [smem:[#allocation30_spill]] %s3441_s6  ;;  %v1065_v0 = vmul.f32 %v5347_v16, %v3310_v27 }
 0x149   :  { %5341 = sst [smem:[#allocation37_spill]] %s3449_s3  ;;  %v1143_v31 = vadd.f32 %v1141_v20, %v1135_v9 }
 0x14a   :  { %s3474_s12 = sld [smem:[#allocation9 + $0x49]]  ;;  %v5351_v1 = vstv %s5345_s11  ;;  %v1067_v44 = vadd.f32 %v1065_v0, %v1061_v15  ;;  %v1171_v0 = vmul.f32 %v1169_v41, %v3333_v50  ;;  %v229_v41 = vpop.permute.xlu1 %228 }
 0x14b   :  { %s5350_s13 = sld [smem:[#allocation105_spill]]  ;;  %v1705_v29 = vmul.f32 %v5351_v1, %v3467_v6  ;;  %v1149_v2 = vadd.f32 %v1147_v18, %v1143_v31  ;;  %232 = vst.msk [vmem:[#allocation4 + $0x1b] sm:$0x1] %vm220_vm2, %v229_v41  ;;  %v4948_v41 = vstv %s3415_s14 }
 0x14c   :  { %5346 = sst [smem:[#allocation24_spill]] %s3460_s24  ;;  %v1073_v1 = vadd.f32 %v1071_v37, %v1067_v44  ;;  %v4966_v44 = vstv %s3368_s29 }
 0x14d   :  { %s3481_s1 = sld [smem:[#allocation9 + $0x50]]  ;;  %v5355_v3 = vstv %s5348_s28  ;;  %v1707_v63 = vadd.f32 %v1705_v29, %v1701_v49  ;;  %v1155_v16 = vadd.f32 %v1153_v26, %v1149_v2 }
 0x14e   :  { %s5353_s18 = sld [smem:[#allocation106_spill]]  ;;  %v1711_v8 = vmul.f32 %v5355_v3, %v3469_v17 }
 0x14f   :  { %s5354_s25 = sld [smem:[#allocation107_spill]]  ;;  %v1161_v2 = vadd.f32 %v1159_v38, %v1155_v16  ;;  %v4952_v38 = vstv %s3405_s5  ;;  %v272_v16 = vpop.permute.xlu1 %271 }
 0x150   :  { %5349 = sst [smem:[#allocation31_spill]] %s3474_s12  ;;  %v1713_v23 = vadd.f32 %v1711_v8, %v1707_v63  ;;  %v1543_v8 = vpop.permute.xlu0 %1542  ;;  %v3545_v63 = vld [vmem:[#allocation4 + $0x6] sm:$0xff]  ;;  %274 = vst.msk [vmem:[#allocation4 + $0x1d] sm:$0x1] %vm220_vm2, %v272_v16 }
 0x151   :  { %s3494_s23 = sld [smem:[#allocation9 + $0x57]]  ;;  %v5358_v30 = vstv %s5350_s13  ;;  %1545 = vst.msk [vmem:[#allocation4 + $0x11] sm:$0x1] %vm220_vm2, %v1543_v8  ;;  %v4947_v8 = vstv %s3427_s21 }
 0x152   :  { %s5357_s4 = sld [smem:[#allocation102_spill]]  ;;  %v1787_v36 = vmul.f32 %v5358_v30, %v3423_v4  ;;  %v4965_v30 = vstv %s3373_s8 }
 0x153   :  { %5352 = sst [smem:[#allocation18_spill]] %s3481_s1 }
 0x154   :  { %s3499_s30 = sld [smem:[#allocation9 + $0x5e]]  ;;  %v5361_v12 = vstv %s5353_s18 }
 0x155   :  { %s5360_s20 = sld [smem:[#allocation110_spill]]  ;;  %v1793_v9 = vmul.f32 %v5361_v12, %v3425_v5  ;;  %v5362_v10 = vstv %s5354_s25  ;;  %v1881_v12 = vmul.f32 %v4966_v44, %v3423_v4 }
 0x156   :  { %v1799_v20 = vmul.f32 %v5362_v10, %v3467_v6  ;;  %s5363_s13 = sld [smem:[#allocation103_spill]] }
 0x157   :  { %5356 = sst [smem:[#allocation25_spill]] %s3494_s23  ;;  %v1795_v18 = vadd.f32 %v1793_v9, %v1787_v36  ;;  %v3554_v36 = vadd.f32 %v3439_v60, %v979_v34  ;;  %v1167_v60 = vadd.f32 %v1165_v61, %v1161_v2  ;;  %v1905_v2 = vmul.f32 %v4952_v38, %v3501_v24 }
 0x158   :  { %s3514_s28 = sld [smem:[#allocation9 + $0x4]]  ;;  %v5366_v33 = vstv %s5357_s4 }
 0x159   :  { %s5365_s11 = sld [smem:[#allocation111_spill]]  ;;  %v1717_v62 = vmul.f32 %v5366_v33, %v3501_v24  ;;  %v1801_v37 = vadd.f32 %v1799_v20, %v1795_v18  ;;  %v4954_v33 = vstv %s3387_s10  ;;  %v251_v18 = vpop.permute.xlu0 %250 }
 0x15a   :  { %5359 = sst [smem:[#allocation32_spill]] %s3499_s30  ;;  %v1893_v34 = vmul.f32 %v4954_v33, %v3467_v6  ;;  %253 = vst.msk [vmem:[#allocation4 + $0x1c] sm:$0x1] %vm220_vm2, %v251_v18 }
 0x15b   :  { %s3527_s9 = sld [smem:[#allocation9 + $0xb]]  ;;  %v5368_v15 = vstv %s5360_s20  ;;  %v1719_v29 = vadd.f32 %v1717_v62, %v1713_v23  ;;  %v1887_v23 = vmul.f32 %v4965_v30, %v3425_v5  ;;  %v4953_v62 = vstv %s3394_s27 }
 0x15c   :  { %v1805_v49 = vmul.f32 %v5368_v15, %v3469_v17  ;;  %s3535_s25 = sld [smem:[#allocation9 + $0x12]]  ;;  %v5370_v39 = vstv %s5363_s13  ;;  %v3580_v15 = vadd.f32 %v1077_v52, %v1073_v1 }
 0x15d   :  { %s5371_s15 = sld [smem:[#allocation117_spill]]  ;;  %v1723_v40 = vmul.f32 %v5370_v39, %v3503_v19  ;;  %v1889_v39 = vadd.f32 %v1887_v23, %v1881_v12  ;;  %v1917_v23 = vmul.f32 %v4947_v8, %v3545_v63 }
 0x15e   :  { %5364 = sst [smem:[#allocation19_spill]] %s3514_s28  ;;  %v1807_v20 = vadd.f32 %v1805_v49, %v1801_v37  ;;  %v3605_v37 = vadd.f32 %v1171_v0, %v1167_v60  ;;  %v4951_v60 = vstv %s3514_s28 }
 0x15f   :  { %v5372_v31 = vstv %s5365_s11  ;;  %s3543_s16 = sld [smem:[#allocation9 + $0x19]]  ;;  %v1725_v32 = vadd.f32 %v1723_v40, %v1719_v29  ;;  %v1895_v1 = vadd.f32 %v1893_v34, %v1889_v39  ;;  %v1975_v39 = vmul.f32 %v4951_v60, %v3423_v4 }
 0x160   :  { %v1811_v3 = vmul.f32 %v5372_v31, %v3501_v24  ;;  %s5374_s22 = sld [smem:[#allocation104_spill]] }
 0x161   :  { %5367 = sst [smem:[#allocation26_spill]] %s3527_s9  ;;  %v4950_v34 = vstv %s3527_s9 }
 0x162   :  { %5369 = sst [smem:[#allocation20_spill]] %s3535_s25  ;;  %v1813_v49 = vadd.f32 %v1811_v3, %v1807_v20  ;;  %v1899_v3 = vmul.f32 %v4953_v62, %v3469_v17  ;;  %v4949_v16 = vstv %s3535_s25 }
 0x163   :  { %s3549_s20 = sld [smem:[#allocation9 + $0x20]]  ;;  %v5376_v11 = vstv %s5371_s15 }
 0x164   :  { %v1817_v26 = vmul.f32 %v5376_v11, %v3503_v19  ;;  %s3562_s11 = sld [smem:[#allocation9 + $0x27]]  ;;  %v1901_v20 = vadd.f32 %v1899_v3, %v1895_v1  ;;  %v1987_v1 = vmul.f32 %v4949_v16, %v3467_v6 }
 0x165   :  { %5373 = sst [smem:[#allocation33_spill]] %s3543_s16  ;;  %v4961_v18 = vstv %s3543_s16 }
 0x166   :  { %v5378_v9 = vstv %s5374_s22  ;;  %s5379_s18 = sld [smem:[#allocation118_spill]]  ;;  %v1819_v11 = vadd.f32 %v1817_v26, %v1813_v49  ;;  %v1907_v49 = vadd.f32 %v1905_v2, %v1901_v20  ;;  %v1993_v33 = vmul.f32 %v4961_v18, %v3469_v17 }
 0x167   :  { %v1729_v10 = vmul.f32 %v5378_v9, %v3545_v63  ;;  %s3571_s13 = sld [smem:[#allocation9 + $0x2e]]  ;;  %v314_v9 = vpop.permute.xlu1 %313 }
 0x168   :  { %s3578_s15 = sld [smem:[#allocation9 + $0x35]]  ;;  %316 = vst.msk [vmem:[#allocation4 + $0x1f] sm:$0x1] %vm220_vm2, %v314_v9 }
 0x169   :  { %5375 = sst [smem:[#allocation27_spill]] %s3549_s20  ;;  %v3595_v52 = vadd.f32 %v1729_v10, %v1725_v32  ;;  %v1911_v32 = vmul.f32 %v4948_v41, %v3503_v19  ;;  %v293_v10 = vpop.permute.xlu0 %292  ;;  %v4962_v9 = vstv %s3549_s20 }
 0x16a   :  { %5377 = sst [smem:[#allocation34_spill]] %s3562_s11  ;;  %295 = vst.msk [vmem:[#allocation4 + $0x1e] sm:$0x1] %vm220_vm2, %v293_v10  ;;  %v4963_v10 = vstv %s3562_s11 }
 0x16b   :  { %s3583_s8 = sld [smem:[#allocation9 + $0x3c]]  ;;  %v356_v20 = vpop.permute.xlu1 %355  ;;  %v1913_v16 = vadd.f32 %v1911_v32, %v1907_v49  ;;  %v2005_v32 = vmul.f32 %v4963_v10, %v3503_v19 }
 0x16c   :  { %v5383_v61 = vstv %s5379_s18  ;;  %s3593_s10 = sld [smem:[#allocation9 + $0x43]]  ;;  %358 = vst.msk [vmem:[#allocation4 + $0x21] sm:$0x1] %vm220_vm2, %v356_v20 }
 0x16d   :  { %5380 = sst [smem:[#allocation47_spill]] %s3571_s13  ;;  %v1823_v40 = vmul.f32 %v5383_v61, %v3545_v63  ;;  %v1981_v61 = vmul.f32 %v4950_v34, %v3425_v5  ;;  %v4964_v2 = vstv %s3571_s13  ;;  %v335_v8 = vpop.permute.xlu0 %334  ;;  %v3671_v10 = vadd.f32 %v1917_v23, %v1913_v16 }
 0x16e   :  { %5381 = sst [smem:[#allocation51_spill]] %s3578_s15  ;;  %337 = vst.msk [vmem:[#allocation4 + $0x20] sm:$0x1] %vm220_vm2, %v335_v8  ;;  %v3662_v49 = vmul.f32 %v4964_v2, %v3545_v63 }
 0x16f   :  { %s3603_s18 = sld [smem:[#allocation9 + $0x5]]  ;;  %v3643_v41 = vadd.f32 %v1823_v40, %v1819_v11  ;;  %v1983_v60 = vadd.f32 %v1981_v61, %v1975_v39  ;;  %v1999_v40 = vmul.f32 %v4962_v9, %v3501_v24 }
 0x170   :  { %s3611_s29 = sld [smem:[#allocation9 + $0xc]] }
 0x171   :  { %5382 = sst [smem:[#allocation48_spill]] %s3583_s8  ;;  %v1989_v11 = vadd.f32 %v1987_v1, %v1983_v60  ;;  %v3669_v9 = vld [vmem:[#allocation4 + $0x18] sm:$0xff]  ;;  %v398_v60 = vpop.permute.xlu1 %397  ;;  %v377_v1 = vpop.permute.xlu0 %376 }
 0x172   :  { %5384 = sst [smem:[#allocation52_spill]] %s3593_s10  ;;  %400 = vst.msk [vmem:[#allocation4 + $0x23] sm:$0x1] %vm220_vm2, %v398_v60  ;;  %379 = vst.msk [vmem:[#allocation4 + $0x22] sm:$0x1] %vm220_vm2, %v377_v1 }
 0x173   :  { %s3624_s14 = sld [smem:[#allocation9 + $0x4a]]  ;;  %v1995_v2 = vadd.f32 %v1993_v33, %v1989_v11 }
 0x174   :  { %s3635_s21 = sld [smem:[#allocation9 + $0x51]] }
 0x175   :  { %5385 = sst [smem:[#allocation53_spill]] %s3603_s18  ;;  %v4967_v20 = vstv %s3603_s18  ;;  %v3705_v8 = vld [vmem:[#allocation4 + $0x19] sm:$0xff] }
 0x176   :  { %5386 = sst [smem:[#allocation54_spill]] %s3611_s29  ;;  %v4968_v18 = vstv %s3611_s29  ;;  %v2069_v30 = vmul.f32 %v4967_v20, %v3423_v4 }
 0x177   :  { %s3641_s28 = sld [smem:[#allocation9 + $0x13]]  ;;  %v2075_v44 = vmul.f32 %v4968_v18, %v3425_v5  ;;  %v2001_v18 = vadd.f32 %v1999_v40, %v1995_v2 }
 0x178   :  { %s5390_s25 = sld [smem:[#allocation56_spill]] }
 0x179   :  { %5387 = sst [smem:[#allocation55_spill]] %s3624_s14 }
 0x17a   :  { %5388 = sst [smem:[#allocation42_spill]] %s3635_s21 }
 0x17b   :  { %s5391_s9 = sld [smem:[#allocation57_spill]] }
 0x17c   :  { %s5392_s5 = sld [smem:[#allocation58_spill]] }
 0x17d   :  { %5389 = sst [smem:[#allocation38_spill]] %s3641_s28 }
 0x17e   :  { %s5393_s16 = sld [smem:[#allocation59_spill]]  ;;  %v5396_v62 = vstv %s5390_s25 }
 0x17f   :  { %s5394_s27 = sld [smem:[#allocation84_spill]]  ;;  %v706_v61 = vmul.f32 %v5396_v62, %v3669_v9 }
 0x180   :  { %s5395_s20 = sld [smem:[#allocation91_spill]] }
 0x181   :  { %v5397_v39 = vstv %s5391_s9  ;;  %s5402_s13 = sld [smem:[#allocation60_spill]]  ;;  %v708_v62 = vadd.f32 %v706_v61, %v3282_v46 }
 0x182   :  { %v800_v38 = vmul.f32 %v5397_v39, %v3669_v9  ;;  %v5398_v23 = vstv %s5392_s5  ;;  %s5403_s11 = sld [smem:[#allocation62_spill]]  ;;  %v3702_v39 = vadd.f32 %v2075_v44, %v2069_v30 }
 0x183   :  { %v894_v33 = vmul.f32 %v5398_v23, %v3669_v9  ;;  %s5404_s29 = sld [smem:[#allocation61_spill]]  ;;  %v4988_v23 = vstv %s3641_s28 }
 0x184   :  { %v5399_v16 = vstv %s5393_s16  ;;  %s5405_s18 = sld [smem:[#allocation72_spill]]  ;;  %v802_v2 = vadd.f32 %v800_v38, %v3284_v56 }
 0x185   :  { %v988_v11 = vmul.f32 %v5399_v16, %v3669_v9  ;;  %v5400_v4 = vstv %s5394_s27  ;;  %s5406_s22 = sld [smem:[#allocation78_spill]]  ;;  %v3707_v16 = vld [vmem:[#allocation4 + $0x1a] sm:$0xff]  ;;  %v896_v40 = vadd.f32 %v894_v33, %v3290_v28  ;;  %v3724_v28 = vadd.f32 %v2005_v32, %v2001_v18 }
 0x186   :  { %v1082_v20 = vmul.f32 %v5400_v4, %v3669_v9  ;;  %v5401_v5 = vstv %s5395_s20  ;;  %v440_v4 = vpop.permute.xlu1 %439  ;;  %s5407_s4 = sld [smem:[#allocation63_spill]] }
 0x187   :  { %v1176_v60 = vmul.f32 %v5401_v5, %v3669_v9  ;;  %v419_v5 = vpop.permute.xlu0 %418  ;;  %s5408_s19 = sld [smem:[#allocation73_spill]]  ;;  %v990_v46 = vadd.f32 %v988_v11, %v3292_v25  ;;  %442 = vst.msk [vmem:[#allocation4 + $0x25] sm:$0x1] %vm220_vm2, %v440_v4  ;;  %v5409_v30 = vstv %s5402_s13  ;;  %v3738_v4 = vmul.f32 %v4988_v23, %v3467_v6 }
 0x188   :  { %v1084_v44 = vadd.f32 %v1082_v20, %v3325_v22  ;;  %421 = vst.msk [vmem:[#allocation4 + $0x24] sm:$0x1] %vm220_vm2, %v419_v5  ;;  %v712_v61 = vmul.f32 %v5409_v30, %v3705_v8  ;;  %v5410_v34 = vstv %s5403_s11  ;;  %s5411_s17 = sld [smem:[#allocation79_spill]]  ;;  %v3746_v30 = vld [vmem:[#allocation4 + $0x1b] sm:$0xff] }
 0x189   :  { %v806_v1 = vmul.f32 %v5410_v34, %v3705_v8  ;;  %v3722_v56 = vadd.f32 %v1176_v60, %v3407_v51  ;;  %v5412_v25 = vstv %s5404_s29  ;;  %s5413_s21 = sld [smem:[#allocation85_spill]] }
 0x18a   :  { %v718_v22 = vmul.f32 %v5412_v25, %v3707_v16  ;;  %v5414_v38 = vstv %s5405_s18  ;;  %s5416_s14 = sld [smem:[#allocation64_spill]]  ;;  %v714_v51 = vadd.f32 %v712_v61, %v708_v62  ;;  %v3748_v25 = vld [vmem:[#allocation4 + $0x1c] sm:$0xff] }
 0x18b   :  { %v900_v20 = vmul.f32 %v5414_v38, %v3705_v8  ;;  %v5415_v33 = vstv %s5406_s22  ;;  %v808_v34 = vadd.f32 %v806_v1, %v802_v2  ;;  %s5418_s30 = sld [smem:[#allocation86_spill]]  ;;  %5422 = vst [vmem:[#allocation125_spill] sm:$0xff] %v3748_v25  ;;  %v482_v38 = vpop.permute.xlu1 %481  ;;  %v461_v6 = vpop.permute.xlu0 %460 }
 0x18c   :  { %v994_v11 = vmul.f32 %v5415_v33, %v3705_v8  ;;  %v5417_v18 = vstv %s5407_s4  ;;  %s5420_s10 = sld [smem:[#allocation65_spill]]  ;;  %484 = vst.msk [vmem:[#allocation4 + $0x27] sm:$0x1] %vm220_vm2, %v482_v38  ;;  %463 = vst.msk [vmem:[#allocation4 + $0x26] sm:$0x1] %vm220_vm2, %v461_v6 }
 0x18d   :  { %v812_v32 = vmul.f32 %v5417_v18, %v3707_v16  ;;  %v5419_v60 = vstv %s5408_s19  ;;  %s5421_s8 = sld [smem:[#allocation66_spill]]  ;;  %v902_v33 = vadd.f32 %v900_v20, %v896_v40 }
 0x18e   :  { %v906_v5 = vmul.f32 %v5419_v60, %v3707_v16  ;;  %s5423_s23 = sld [smem:[#allocation74_spill]]  ;;  %v996_v62 = vadd.f32 %v994_v11, %v990_v46  ;;  %v5425_v1 = vstv %s5411_s17  ;;  %v720_v60 = vadd.f32 %v718_v22, %v714_v51  ;;  %s5009_s17 = smov 127  }
 0x18f   :  { %s5424_s28 = sld [smem:[#allocation67_spill]]  ;;  %v1000_v2 = vmul.f32 %v5425_v1, %v3707_v16  ;;  %v5427_v61 = vstv %s5413_s21  ;;  %v814_v31 = vadd.f32 %v812_v32, %v808_v34  ;;  %v3779_v6 = vld [vmem:[#allocation4 + $0x1d] sm:$0xff] }
 0x190   :  { %s5426_s1 = sld [smem:[#allocation80_spill]]  ;;  %v1088_v18 = vmul.f32 %v5427_v61, %v3705_v8  ;;  %v5428_v23 = vstv %s5416_s14  ;;  %v908_v61 = vadd.f32 %v906_v5, %v902_v33  ;;  %5439 = vst [vmem:[#allocation126_spill] sm:$0xff] %v3779_v6  ;;  %v524_v5 = vpop.permute.xlu1 %523  ;;  %v503_v33 = vpop.permute.xlu0 %502 }
 0x191   :  { %v724_v3 = vmul.f32 %v5428_v23, %v3746_v30  ;;  %v5429_v29 = vstv %s5418_s30  ;;  %s5430_s15 = sld [smem:[#allocation75_spill]]  ;;  %v1002_v34 = vadd.f32 %v1000_v2, %v996_v62  ;;  %526 = vst.msk [vmem:[#allocation4 + $0x29] sm:$0x1] %vm220_vm2, %v524_v5  ;;  %505 = vst.msk [vmem:[#allocation4 + $0x28] sm:$0x1] %vm220_vm2, %v503_v33 }
 0x192   :  { %v1094_v40 = vmul.f32 %v5429_v29, %v3707_v16  ;;  %v5431_v46 = vstv %s5420_s10  ;;  %s5434_s12 = sld [smem:[#allocation68_spill]] }
 0x193   :  { %v730_v20 = vmul.f32 %v5431_v46, %v3748_v25  ;;  %v5432_v11 = vstv %s5421_s8  ;;  %v726_v22 = vadd.f32 %v724_v3, %v720_v60  ;;  %s5436_s2 = sld [smem:[#allocation70_spill]]  ;;  %v3781_v46 = vld [vmem:[#allocation4 + $0x1e] sm:$0xff] }
 0x194   :  { %v818_v1 = vmul.f32 %v5432_v11, %v3746_v30  ;;  %v5433_v38 = vstv %s5423_s23  ;;  %s5437_s0 = sld [smem:[#allocation92_spill]]  ;;  %5441 = vst [vmem:[#allocation127_spill] sm:$0xff] %v3781_v46 }
 0x195   :  { %v912_v26 = vmul.f32 %v5433_v38, %v3746_v30  ;;  %v5435_v51 = vstv %s5424_s28  ;;  %s5440_s24 = sld [smem:[#allocation76_spill]]  ;;  %v732_v62 = vadd.f32 %v730_v20, %v726_v22 }
 0x196   :  { %v824_v23 = vmul.f32 %v5435_v51, %v3748_v25  ;;  %v5438_v29 = vstv %s5426_s1  ;;  %s5442_s3 = sld [smem:[#allocation81_spill]]  ;;  %v820_v11 = vadd.f32 %v818_v1, %v814_v31  ;;  %v1090_v51 = vadd.f32 %v1088_v18, %v1084_v44 }
 0x197   :  { %v1006_v32 = vmul.f32 %v5438_v29, %v3746_v30  ;;  %s5443_s6 = sld [smem:[#allocation69_spill]]  ;;  %v914_v3 = vadd.f32 %v912_v26, %v908_v61  ;;  %v5445_v60 = vstv %s5430_s15 }
 0x198   :  { %s5444_s26 = sld [smem:[#allocation71_spill]]  ;;  %v918_v38 = vmul.f32 %v5445_v60, %v3748_v25  ;;  %v5446_v2 = vstv %s5434_s12  ;;  %v826_v26 = vadd.f32 %v824_v23, %v820_v11  ;;  %v3809_v23 = vld [vmem:[#allocation4 + $0x20] sm:$0xff]  ;;  %v1564_v11 = vpop.permute.xlu1 %1563 }
 0x199   :  { %v736_v29 = vmul.f32 %v5446_v2, %v3779_v6  ;;  %v5447_v0 = vstv %s5436_s2  ;;  %s5448_s7 = sld [smem:[#allocation82_spill]]  ;;  %v1008_v45 = vadd.f32 %v1006_v32, %v1002_v34  ;;  %1566 = vst.msk [vmem:[#allocation4 + $0x12] sm:$0x1] %vm220_vm2, %v1564_v11 }
 0x19a   :  { %v830_v12 = vmul.f32 %v5447_v0, %v3779_v6  ;;  %v5449_v31 = vstv %s5437_s0  ;;  %v920_v61 = vadd.f32 %v918_v38, %v914_v3  ;;  %s5452_s20 = sld [smem:[#allocation87_spill]]  ;;  %v545_v3 = vpop.permute.xlu0 %544 }
 0x19b   :  { %v1182_v1 = vmul.f32 %v5449_v31, %v3705_v8  ;;  %v5450_v60 = vstv %s5440_s24  ;;  %v738_v20 = vadd.f32 %v736_v29, %v732_v62  ;;  %s5454_s30 = sld [smem:[#allocation93_spill]]  ;;  %v1096_v29 = vadd.f32 %v1094_v40, %v1090_v51  ;;  %547 = vst.msk [vmem:[#allocation4 + $0x2a] sm:$0x1] %vm220_vm2, %v545_v3 }
 0x19c   :  { %v924_v44 = vmul.f32 %v5450_v60, %v3779_v6  ;;  %v5451_v18 = vstv %s5442_s3  ;;  %s5456_s21 = sld [smem:[#allocation77_spill]]  ;;  %v832_v38 = vadd.f32 %v830_v12, %v826_v26 }
 0x19d   :  { %v1012_v5 = vmul.f32 %v5451_v18, %v3748_v25  ;;  %v5453_v22 = vstv %s5443_s6  ;;  %s5457_s0 = sld [smem:[#allocation83_spill]]  ;;  %v1184_v3 = vadd.f32 %v1182_v1, %v3722_v56 }
 0x19e   :  { %v742_v33 = vmul.f32 %v5453_v22, %v3781_v46  ;;  %v5455_v2 = vstv %s5444_s26  ;;  %s5458_s27 = sld [smem:[#allocation88_spill]]  ;;  %v926_v31 = vadd.f32 %v924_v44, %v920_v61 }
 0x19f   :  { %v836_v0 = vmul.f32 %v5455_v2, %v3781_v46  ;;  %v5459_v60 = vstv %s5448_s7  ;;  %s5460_s3 = sld [smem:[#allocation89_spill]]  ;;  %v1014_v34 = vadd.f32 %v1012_v5, %v1008_v45 }
 0x1a0   :  { %v1018_v62 = vmul.f32 %v5459_v60, %v3779_v6  ;;  %v744_v18 = vadd.f32 %v742_v33, %v738_v20  ;;  %v5461_v32 = vstv %s5452_s20  ;;  %s5464_s7 = sld [smem:[#allocation90_spill]]  ;;  %v5469_v33 = vstv %s5390_s25  ;;  %v3841_v60 = vld [vmem:[#allocation4 + $0x22] sm:$0xff] }
 0x1a1   :  { %v1100_v22 = vmul.f32 %v5461_v32, %v3746_v30  ;;  %v5462_v2 = vstv %s5454_s30  ;;  %v838_v12 = vadd.f32 %v836_v0, %v832_v38  ;;  %s5466_s1 = sld [smem:[#allocation94_spill]]  ;;  %v707_v0 = vmul.f32 %v5469_v33, %v3809_v23  ;;  %v3839_v38 = vld [vmem:[#allocation4 + $0x21] sm:$0xff]  ;;  %v1280_v32 = vpop.permute.xlu1 %1279 }
 0x1a2   :  { %v1188_v50 = vmul.f32 %v5462_v2, %v3707_v16  ;;  %v5463_v26 = vstv %s5456_s21  ;;  %748 = vrot.lane.b32.xlu0 %v744_v18, %s5009_s17  ;;  %s5470_s30 = sld [smem:[#allocation95_spill]]  ;;  %v1259_v18 = vpop.permute.xlu0 %1258  ;;  %1282 = vst.msk [vmem:[#allocation4 + $0x1c] sm:$0x1] %vm220_vm2, %v1280_v32  ;;  %v5479_v32 = vstv %s5403_s11  ;;  %s5019_s17 = smov 126  }
 0x1a3   :  { %v930_v61 = vmul.f32 %v5463_v26, %v3781_v46  ;;  %v5465_v44 = vstv %s5457_s0  ;;  %v1102_v45 = vadd.f32 %v1100_v22, %v1096_v29  ;;  %s5471_s20 = sld [smem:[#allocation96_spill]]  ;;  %v1020_v22 = vadd.f32 %v1018_v62, %v1014_v34  ;;  %1261 = vst.msk [vmem:[#allocation4 + $0x1b] sm:$0x1] %vm220_vm2, %v1259_v18 }
 0x1a4   :  { %v1024_v40 = vmul.f32 %v5465_v44, %v3781_v46  ;;  %v5467_v51 = vstv %s5458_s27  ;;  %s5474_s25 = sld [smem:[#allocation97_spill]]  ;;  %v709_v1 = vadd.f32 %v707_v0, %v3431_v14  ;;  %v1190_v34 = vadd.f32 %v1188_v50, %v1184_v3 }
 0x1a5   :  { %v1106_v11 = vmul.f32 %v5467_v51, %v3748_v25  ;;  %v5468_v5 = vstv %s5460_s3  ;;  %v932_v29 = vadd.f32 %v930_v61, %v926_v31  ;;  %v807_v18 = vmul.f32 %v5479_v32, %v3839_v38  ;;  %s5509_s11 = sld [smem:[#allocation82_spill]] }
 0x1a6   :  { %v1112_v20 = vmul.f32 %v5468_v5, %v3779_v6  ;;  %v5472_v2 = vstv %s5464_s7  ;;  %v5475_v5 = vstv %s5402_s13  ;;  %842 = vrot.lane.b32.xlu0 %v838_v12, %s5019_s17  ;;  %v1301_v12 = vpop.permute.xlu0 %1300  ;;  %s5519_s13 = sld [smem:[#allocation108_spill]] }
 0x1a7   :  { %v1118_v26 = vmul.f32 %v5472_v2, %v3781_v46  ;;  %v5473_v44 = vstv %s5466_s1  ;;  %v1108_v56 = vadd.f32 %v1106_v11, %v1102_v45  ;;  %v713_v33 = vmul.f32 %v5475_v5, %v3839_v38  ;;  %v3874_v5 = vld [vmem:[#allocation4 + $0x23] sm:$0xff]  ;;  %1303 = vst.msk [vmem:[#allocation4 + $0x1d] sm:$0x1] %vm220_vm2, %v1301_v12 }
 0x1a8   :  { %v1194_v51 = vmul.f32 %v5473_v44, %v3746_v30  ;;  %v5476_v31 = vstv %s5470_s30  ;;  %v5478_v44 = vstv %s5391_s9  ;;  %v5480_v45 = vstv %s5404_s29  ;;  %s5017_s29 = smov 125   ;;  %s5530_s9 = sld [smem:[#allocation112_spill]] }
 0x1a9   :  { %v1200_v62 = vmul.f32 %v5476_v31, %v3748_v25  ;;  %v5477_v61 = vstv %s5471_s20  ;;  %v801_v13 = vmul.f32 %v5478_v44, %v3809_v23  ;;  %v1114_v14 = vadd.f32 %v1112_v20, %v1108_v56  ;;  %v3876_v31 = vld [vmem:[#allocation4 + $0x24] sm:$0xff]  ;;  %v1322_v44 = vpop.permute.xlu1 %1321 }
 0x1aa   :  { %v1206_v2 = vmul.f32 %v5477_v61, %v3779_v6  ;;  %v715_v11 = vadd.f32 %v713_v33, %v709_v1  ;;  %v719_v0 = vmul.f32 %v5480_v45, %v3841_v60  ;;  %v5481_v50 = vstv %s5474_s25  ;;  %5482 = vst [vmem:[#allocation128_spill] sm:$0xff] %v3876_v31  ;;  %v3878_v61 = vld [vmem:[#allocation4 + $0x25] sm:$0xff]  ;;  %1324 = vst.msk [vmem:[#allocation4 + $0x1e] sm:$0x1] %vm220_vm2, %v1322_v44 }
 0x1ab   :  { %v1212_v3 = vmul.f32 %v5481_v50, %v3781_v46  ;;  %5483 = vst [vmem:[#allocation129_spill] sm:$0xff] %v3878_v61  ;;  %v1026_v20 = vadd.f32 %v1024_v40, %v1020_v22  ;;  %v1196_v56 = vadd.f32 %v1194_v51, %v1190_v34  ;;  %v803_v1 = vadd.f32 %v801_v13, %v3462_v21  ;;  %v3884_v45 = vld [vmem:[#allocation4 + $0x26] sm:$0xff] }
 0x1ac   :  { %v5484_v33 = vstv %s5392_s5  ;;  %5485 = vst [vmem:[#allocation130_spill] sm:$0xff] %v3884_v45  ;;  %v721_v50 = vadd.f32 %v719_v0, %v715_v11  ;;  %v5486_v46 = vstv %s5416_s14  ;;  %v5487_v40 = vstv %s5407_s4  ;;  %936 = vrot.lane.b32.xlu0 %v932_v29, %s5017_s29  ;;  %s3910_s5 = sld [smem:[#allocation9 + $0x58]] }
 0x1ad   :  { %v895_v32 = vmul.f32 %v5484_v33, %v3809_v23  ;;  %v725_v6 = vmul.f32 %v5486_v46, %v3874_v5  ;;  %v813_v13 = vmul.f32 %v5487_v40, %v3841_v60  ;;  %v5488_v21 = vstv %s5405_s18  ;;  %s3943_s14 = sld [smem:[#allocation9 + $0x5f]] }
 0x1ae   :  { %v901_v22 = vmul.f32 %v5488_v21, %v3839_v38  ;;  %v1120_v51 = vadd.f32 %v1118_v26, %v1114_v14  ;;  %v1202_v34 = vadd.f32 %v1200_v62, %v1196_v56  ;;  %v809_v33 = vadd.f32 %v807_v18, %v803_v1  ;;  %v1343_v18 = vpop.permute.xlu0 %1342  ;;  %s5520_s18 = sld [smem:[#allocation109_spill]] }
 0x1af   :  { %v5489_v25 = vstv %s5408_s19  ;;  %v727_v11 = vadd.f32 %v725_v6, %v721_v50  ;;  %v5490_v46 = vstv %s5420_s10  ;;  %v5491_v44 = vstv %s5434_s12  ;;  %1345 = vst.msk [vmem:[#allocation4 + $0x1f] sm:$0x1] %vm220_vm2, %v1343_v18  ;;  %s5500_s10 = sld [smem:[#allocation79_spill]] }
 0x1b0   :  { %v907_v27 = vmul.f32 %v5489_v25, %v3841_v60  ;;  %v731_v0 = vmul.f32 %v5490_v46, %v3876_v31  ;;  %v737_v12 = vmul.f32 %v5491_v44, %v3878_v61  ;;  %v5492_v26 = vstv %s5421_s8  ;;  %v1364_v25 = vpop.permute.xlu1 %1363  ;;  %s5015_s8 = smov 124   ;;  %s5506_s19 = sld [smem:[#allocation85_spill]] }
 0x1b1   :  { %v819_v62 = vmul.f32 %v5492_v26, %v3874_v5  ;;  %v5494_v29 = vstv %s5443_s6  ;;  %v1208_v6 = vadd.f32 %v1206_v2, %v1202_v34  ;;  %v815_v56 = vadd.f32 %v813_v13, %v809_v33  ;;  %1366 = vst.msk [vmem:[#allocation4 + $0x20] sm:$0x1] %vm220_vm2, %v1364_v25  ;;  %1030 = vrot.lane.b32.xlu0 %v1026_v20, %s5015_s8  ;;  %s5508_s6 = sld [smem:[#allocation81_spill]] }
 0x1b2   :  { %5493 = sst [smem:[#allocation43_spill]] %s3910_s5  ;;  %v743_v14 = vmul.f32 %v5494_v29, %v3884_v45  ;;  %v897_v1 = vadd.f32 %v895_v32, %v3483_v7  ;;  %v733_v50 = vadd.f32 %v731_v0, %v727_v11  ;;  %v5495_v40 = vstv %s5424_s28  ;;  %s5515_s28 = smov 127  }
 0x1b3   :  { %v825_v21 = vmul.f32 %v5495_v40, %v3876_v31  ;;  %v5496_v46 = vstv %s5436_s2  ;;  %v5497_v26 = vstv %s5444_s26  ;;  %v821_v34 = vadd.f32 %v819_v62, %v815_v56  ;;  %s5502_s2 = sld [smem:[#allocation80_spill]]  ;;  %v1385_v40 = vpop.permute.xlu0 %1384 }
 0x1b4   :  { %v831_v44 = vmul.f32 %v5496_v46, %v3878_v61  ;;  %v837_v2 = vmul.f32 %v5497_v26, %v3884_v45  ;;  %v903_v13 = vadd.f32 %v901_v22, %v897_v1  ;;  %v5498_v7 = vstv %s5423_s23  ;;  %s5505_s26 = sld [smem:[#allocation84_spill]]  ;;  %v1406_v1 = vpop.permute.xlu1 %1405  ;;  %1387 = vst.msk [vmem:[#allocation4 + $0x21] sm:$0x1] %vm220_vm2, %v1385_v40 }
 0x1b5   :  { %v913_v32 = vmul.f32 %v5498_v7, %v3874_v5  ;;  %v5499_v33 = vstv %s5430_s15  ;;  %v739_v11 = vadd.f32 %v737_v12, %v733_v50  ;;  %v5501_v0 = vstv %s5440_s24  ;;  %1408 = vst.msk [vmem:[#allocation4 + $0x22] sm:$0x1] %vm220_vm2, %v1406_v1  ;;  %s5023_s24 = smov 123   ;;  %s5517_s12 = sld [smem:[#allocation87_spill]] }
 0x1b6   :  { %v919_v25 = vmul.f32 %v5499_v33, %v3876_v31  ;;  %v925_v18 = vmul.f32 %v5501_v0, %v3878_v61  ;;  %v5503_v29 = vstv %s5393_s16  ;;  %v5504_v22 = vstv %s5406_s22  ;;  %1124 = vrot.lane.b32.xlu0 %v1120_v51, %s5023_s24  ;;  %s5521_s23 = sld [smem:[#allocation91_spill]] }
 0x1b7   :  { %v989_v62 = vmul.f32 %v5503_v29, %v3809_v23  ;;  %v995_v56 = vmul.f32 %v5504_v22, %v3839_v38  ;;  %v1214_v46 = vadd.f32 %v1212_v3, %v1208_v6  ;;  %v827_v20 = vadd.f32 %v825_v21, %v821_v34  ;;  %s5524_s4 = sld [smem:[#allocation92_spill]] }
 0x1b8   :  { %v909_v26 = vadd.f32 %v907_v27, %v903_v13  ;;  %v5507_v12 = vstv %s5456_s21  ;;  %v745_v7 = vadd.f32 %v743_v14, %v739_v11  ;;  %v5510_v0 = vstv %s5500_s10  ;;  %s5512_s21 = sld [smem:[#allocation86_spill]]  ;;  %v1448_v40 = vpop.permute.xlu1 %1447 }
 0x1b9   :  { %v931_v50 = vmul.f32 %v5507_v12, %v3884_v45  ;;  %v991_v33 = vadd.f32 %v989_v62, %v3554_v36  ;;  %v1001_v29 = vmul.f32 %v5510_v0, %v3841_v60  ;;  %v5511_v3 = vstv %s5502_s2  ;;  %v3979_v0 = vld [vmem:[#allocation4 + $0x18] sm:$0xff]  ;;  %1450 = vst.msk [vmem:[#allocation4 + $0x24] sm:$0x1] %vm220_vm2, %v1448_v40  ;;  %s5531_s15 = sld [smem:[#allocation93_spill]] }
 0x1ba   :  { %v1007_v27 = vmul.f32 %v5511_v3, %v3874_v5  ;;  %v833_v6 = vadd.f32 %v831_v44, %v827_v20  ;;  %v915_v21 = vadd.f32 %v913_v32, %v909_v26  ;;  %v5513_v34 = vstv %s5505_s26  ;;  %750 = vrot.lane.b32.xlu1 %v745_v7, %s5515_s28  ;;  %v1427_v20 = vpop.permute.xlu0 %1426  ;;  %v3981_v3 = vld [vmem:[#allocation4 + $0x19] sm:$0xff]  ;;  %s5534_s16 = sld [smem:[#allocation113_spill]] }
 0x1bb   :  { %v1083_v13 = vmul.f32 %v5513_v34, %v3809_v23  ;;  %v5514_v22 = vstv %s5506_s19  ;;  %v997_v36 = vadd.f32 %v995_v56, %v991_v33  ;;  %v5516_v14 = vstv %s5508_s6  ;;  %1429 = vst.msk [vmem:[#allocation4 + $0x23] sm:$0x1] %vm220_vm2, %v1427_v20  ;;  %s5541_s22 = sld [smem:[#allocation114_spill]] }
 0x1bc   :  { %v1089_v1 = vmul.f32 %v5514_v22, %v3839_v38  ;;  %v1013_v11 = vmul.f32 %v5516_v14, %v3876_v31  ;;  %v5518_v44 = vstv %s5509_s11  ;;  %v921_v26 = vadd.f32 %v919_v25, %v915_v21  ;;  %s5543_s10 = sld [smem:[#allocation120_spill]] }
 0x1bd   :  { %v1019_v32 = vmul.f32 %v5518_v44, %v3878_v61  ;;  %v5522_v12 = vstv %s5457_s0  ;;  %v1085_v7 = vadd.f32 %v1083_v13, %v3580_v15  ;;  %v839_v34 = vadd.f32 %v837_v2, %v833_v6  ;;  %s5021_s0 = smov 122   ;;  %s4035_s2 = sld [smem:[#allocation9 + $0x21]] }
 0x1be   :  { %v1025_v51 = vmul.f32 %v5522_v12, %v3884_v45  ;;  %v5523_v56 = vstv %s5512_s21  ;;  %v1003_v25 = vadd.f32 %v1001_v29, %v997_v36  ;;  %v5525_v21 = vstv %s5517_s12  ;;  %1218 = vrot.lane.b32.xlu0 %v1214_v46, %s5021_s0  ;;  %v1469_v20 = vpop.permute.xlu0 %1468  ;;  %s5546_s26 = sld [smem:[#allocation115_spill]] }
 0x1bf   :  { %v1095_v33 = vmul.f32 %v5523_v56, %v3841_v60  ;;  %v1101_v22 = vmul.f32 %v5525_v21, %v3874_v5  ;;  %v5526_v15 = vstv %s5519_s13  ;;  %v927_v14 = vadd.f32 %v925_v18, %v921_v26  ;;  %844 = vrot.lane.b32.xlu1 %v839_v34, %s5019_s17  ;;  %v4010_v34 = vld [vmem:[#allocation4 + $0x1a] sm:$0xff]  ;;  %1471 = vst.msk [vmem:[#allocation4 + $0x25] sm:$0x1] %vm220_vm2, %v1469_v20  ;;  %s5552_s19 = sld [smem:[#allocation15_spill]] }
 0x1c0   :  { %v1735_v13 = vmul.f32 %v5526_v15, %v3979_v0  ;;  %v1091_v44 = vadd.f32 %v1089_v1, %v1085_v7  ;;  %v5527_v12 = vstv %s5520_s18  ;;  %v5528_v40 = vstv %s5521_s23  ;;  %v1490_v1 = vpop.permute.xlu1 %1489  ;;  %s5556_s6 = sld [smem:[#allocation116_spill]] }
 0x1c1   :  { %v1741_v56 = vmul.f32 %v5527_v12, %v3981_v3  ;;  %v1177_v62 = vmul.f32 %v5528_v40, %v3809_v23  ;;  %v1009_v2 = vadd.f32 %v1007_v27, %v1003_v25  ;;  %v5529_v6 = vstv %s5524_s4  ;;  %1492 = vst.msk [vmem:[#allocation4 + $0x26] sm:$0x1] %vm220_vm2, %v1490_v1  ;;  %s5558_s11 = sld [smem:[#allocation37_spill]] }
 0x1c2   :  { %v1737_v29 = vadd.f32 %v1735_v13, %v3595_v52  ;;  %v1183_v36 = vmul.f32 %v5529_v6, %v3839_v38  ;;  %v1097_v26 = vadd.f32 %v1095_v33, %v1091_v44  ;;  %v5532_v7 = vstv %s5458_s27  ;;  %v4012_v52 = vld [vmem:[#allocation4 + $0x1b] sm:$0xff]  ;;  %s5538_s27 = sld [smem:[#allocation119_spill]] }
 0x1c3   :  { %v1107_v21 = vmul.f32 %v5532_v7, %v3876_v31  ;;  %v5533_v46 = vstv %s5460_s3  ;;  %v1179_v27 = vadd.f32 %v1177_v62, %v3605_v37  ;;  %v933_v25 = vadd.f32 %v931_v50, %v927_v14  ;;  %s4026_s3 = sld [smem:[#allocation9 + $0x1a]]  ;;  %v4039_v1 = vld [vmem:[#allocation4 + $0x1d] sm:$0xff] }
 0x1c4   :  { %v1113_v15 = vmul.f32 %v5533_v46, %v3878_v61  ;;  %v1015_v33 = vadd.f32 %v1013_v11, %v1009_v2  ;;  %v1743_v13 = vadd.f32 %v1741_v56, %v1737_v29  ;;  %v5535_v44 = vstv %s5530_s9  ;;  %5544 = sst [smem:[#allocation44_spill]] %s4035_s2  ;;  %v1532_v2 = vpop.permute.xlu1 %1531  ;;  %v1511_v29 = vpop.permute.xlu0 %1510 }
 0x1c5   :  { %v1747_v12 = vmul.f32 %v5535_v44, %v4010_v34  ;;  %v1103_v40 = vadd.f32 %v1101_v22, %v1097_v26  ;;  %v1185_v6 = vadd.f32 %v1183_v36, %v1179_v27  ;;  %v5536_v7 = vstv %s5531_s15  ;;  %938 = vrot.lane.b32.xlu1 %v933_v25, %s5017_s29  ;;  %1534 = vst.msk [vmem:[#allocation4 + $0x28] sm:$0x1] %vm220_vm2, %v1532_v2  ;;  %s5560_s21 = sld [smem:[#allocation24_spill]] }
 0x1c6   :  { %v1189_v46 = vmul.f32 %v5536_v7, %v3841_v60  ;;  %v5537_v18 = vstv %s5466_s1  ;;  %v1021_v50 = vadd.f32 %v1019_v32, %v1015_v33  ;;  %v5540_v11 = vstv %s5464_s7  ;;  %s5545_s1 = sld [smem:[#allocation121_spill]]  ;;  %1513 = vst.msk [vmem:[#allocation4 + $0x27] sm:$0x1] %vm220_vm2, %v1511_v29 }
 0x1c7   :  { %v1195_v37 = vmul.f32 %v5537_v18, %v3874_v5  ;;  %v1119_v62 = vmul.f32 %v5540_v11, %v3884_v45  ;;  %v1749_v14 = vadd.f32 %v1747_v12, %v1743_v13  ;;  %v5542_v22 = vstv %s5534_s16  ;;  %v4037_v18 = vld [vmem:[#allocation4 + $0x1c] sm:$0xff]  ;;  %s5549_s7 = sld [smem:[#allocation14_spill]] }
 0x1c8   :  { %v1753_v56 = vmul.f32 %v5542_v22, %v4012_v52  ;;  %v1109_v36 = vadd.f32 %v1107_v21, %v1103_v40  ;;  %v1191_v32 = vadd.f32 %v1189_v46, %v1185_v6  ;;  %v5547_v20 = vstv %s5470_s30  ;;  %s5553_s30 = sld [smem:[#allocation30_spill]] }
 0x1c9   :  { %5539 = sst [smem:[#allocation39_spill]] %s4026_s3  ;;  %v1201_v26 = vmul.f32 %v5547_v20, %v3876_v31  ;;  %v5548_v27 = vstv %s5538_s27  ;;  %v1027_v33 = vadd.f32 %v1025_v51, %v1021_v50  ;;  %v5550_v13 = vstv %s5541_s22 }
 0x1ca   :  { %v1829_v25 = vmul.f32 %v5548_v27, %v3979_v0  ;;  %v1755_v21 = vadd.f32 %v1753_v56, %v1749_v14  ;;  %v1759_v44 = vmul.f32 %v5550_v13, %v4037_v18  ;;  %v5551_v12 = vstv %s5543_s10  ;;  %s5564_s12 = sld [smem:[#allocation21_spill]] }
 0x1cb   :  { %v1835_v40 = vmul.f32 %v5551_v12, %v3981_v3  ;;  %v1115_v6 = vadd.f32 %v1113_v15, %v1109_v36  ;;  %v1197_v7 = vadd.f32 %v1195_v37, %v1191_v32  ;;  %1032 = vrot.lane.b32.xlu1 %v1027_v33, %s5015_s8  ;;  %v5555_v51 = vstv %s5546_s26  ;;  %v1574_v37 = vpop.permute.xlu1 %1573  ;;  %v1553_v36 = vpop.permute.xlu0 %1552  ;;  %s5566_s23 = sld [smem:[#allocation22_spill]] }
 0x1cc   :  { %v1831_v46 = vadd.f32 %v1829_v25, %v3643_v41  ;;  %v5554_v11 = vstv %s5545_s1  ;;  %v1761_v2 = vadd.f32 %v1759_v44, %v1755_v21  ;;  %v1765_v50 = vmul.f32 %v5555_v51, %v4039_v1  ;;  %v4069_v41 = vld [vmem:[#allocation4 + $0x1e] sm:$0xff]  ;;  %1576 = vst.msk [vmem:[#allocation4 + $0x2a] sm:$0x1] %vm220_vm2, %v1574_v37  ;;  %1555 = vst.msk [vmem:[#allocation4 + $0x29] sm:$0x1] %vm220_vm2, %v1553_v36  ;;  %s4087_s4 = sld [smem:[#allocation9 + $0x2f]] }
 0x1cd   :  { %v1841_v22 = vmul.f32 %v5554_v11, %v4010_v34  ;;  %v5557_v14 = vstv %s5471_s20  ;;  %v5559_v29 = vstv %s5549_s7  ;;  %v1203_v32 = vadd.f32 %v1201_v26, %v1197_v7  ;;  %s4077_s20 = sld [smem:[#allocation9 + $0x28]] }
 0x1ce   :  { %v1207_v56 = vmul.f32 %v5557_v14, %v3878_v61  ;;  %v1847_v15 = vmul.f32 %v5559_v29, %v4012_v52  ;;  %v1837_v20 = vadd.f32 %v1835_v40, %v1831_v46  ;;  %v5561_v27 = vstv %s5552_s19  ;;  %s5569_s15 = sld [smem:[#allocation31_spill]] }
 0x1cf   :  { %v1853_v25 = vmul.f32 %v5561_v27, %v4037_v18  ;;  %v5562_v33 = vstv %s5553_s30  ;;  %v1121_v13 = vadd.f32 %v1119_v62, %v1115_v6  ;;  %v1767_v44 = vadd.f32 %v1765_v50, %v1761_v2  ;;  %s5571_s8 = sld [smem:[#allocation51_spill]] }
 0x1d0   :  { %v1923_v21 = vmul.f32 %v5562_v33, %v3979_v0  ;;  %v5565_v26 = vstv %s5556_s6  ;;  %v5567_v40 = vstv %s5558_s11  ;;  %v1209_v46 = vadd.f32 %v1207_v56, %v1203_v32  ;;  %s5573_s29 = sld [smem:[#allocation18_spill]] }
 0x1d1   :  { %v1771_v12 = vmul.f32 %v5565_v26, %v4069_v41  ;;  %v1929_v7 = vmul.f32 %v5567_v40, %v3981_v3  ;;  %v1843_v11 = vadd.f32 %v1841_v22, %v1837_v20  ;;  %v5570_v14 = vstv %s5560_s21  ;;  %1126 = vrot.lane.b32.xlu1 %v1121_v13, %s5023_s24  ;;  %s5574_s17 = sld [smem:[#allocation25_spill]] }
 0x1d2   :  { %5568 = sst [smem:[#allocation41_spill]] %s4087_s4  ;;  %v1925_v51 = vadd.f32 %v1923_v21, %v3671_v10  ;;  %v1935_v29 = vmul.f32 %v5570_v14, %v4010_v34  ;;  %v5572_v6 = vstv %s5474_s25  ;;  %v5048_v50 = vstv %s4026_s3 }
 0x1d3   :  { %5563 = sst [smem:[#allocation40_spill]] %s4077_s20  ;;  %v1773_v62 = vadd.f32 %v1771_v12, %v1767_v44  ;;  %v1213_v2 = vmul.f32 %v5572_v6, %v3884_v45  ;;  %v5047_v37 = vstv %s4035_s2  ;;  %v1849_v22 = vadd.f32 %v1847_v15, %v1843_v11 }
 0x1d4   :  { %s4099_s0 = sld [smem:[#allocation9 + $0x36]]  ;;  %v5576_v56 = vstv %s5564_s12  ;;  %v5577_v36 = vstv %s5566_s23  ;;  %v1931_v20 = vadd.f32 %v1929_v7, %v1925_v51  ;;  %v5580_v33 = vstv %s5569_s15  ;;  %s5585_s15 = smov 122  }
 0x1d5   :  { %v1859_v10 = vmul.f32 %v5576_v56, %v4039_v1  ;;  %s5578_s21 = sld [smem:[#allocation48_spill]]  ;;  %v1865_v32 = vmul.f32 %v5577_v36, %v4069_v41  ;;  %1777 = vrot.lane.b32.xlu0 %v1773_v62, %s5515_s28  ;;  %v1215_v27 = vadd.f32 %v1213_v2, %v1209_v46  ;;  %v1941_v21 = vmul.f32 %v5580_v33, %v4012_v52 }
 0x1d6   :  { %s5579_s11 = sld [smem:[#allocation52_spill]]  ;;  %v2013_v15 = vadd.f32 %v3662_v49, %v3724_v28  ;;  %v5581_v13 = vstv %s5571_s8  ;;  %v1855_v26 = vadd.f32 %v1853_v25, %v1849_v22  ;;  %v1937_v12 = vadd.f32 %v1935_v29, %v1931_v20 }
 0x1d7   :  { %s4107_s24 = sld [smem:[#allocation9 + $0x3d]]  ;;  %v2017_v44 = vmul.f32 %v5581_v13, %v3979_v0  ;;  %v5583_v40 = vstv %s5573_s29  ;;  %v5584_v46 = vstv %s5574_s17  ;;  %1220 = vrot.lane.b32.xlu1 %v1215_v27, %s5585_s15  ;;  %v2083_v25 = vadd.f32 %v3738_v4, %v3702_v39  ;;  %s5597_s15 = smov 126  }
 0x1d8   :  { %s4118_s25 = sld [smem:[#allocation9 + $0x44]]  ;;  %v1947_v7 = vmul.f32 %v5583_v40, %v4037_v18  ;;  %v1953_v11 = vmul.f32 %v5584_v46, %v4039_v1  ;;  %v1861_v29 = vadd.f32 %v1859_v10, %v1855_v26  ;;  %v1943_v6 = vadd.f32 %v1941_v21, %v1937_v12  ;;  %v4171_v46 = vld [vmem:[#allocation4 + $0x8] sm:$0xff]  ;;  %s5606_s17 = smov 125  }
 0x1d9   :  { %s5582_s30 = sld [smem:[#allocation32_spill]]  ;;  %v2019_v49 = vadd.f32 %v2017_v44, %v2013_v15  ;;  %v2087_v2 = vmul.f32 %v5048_v50, %v3469_v17  ;;  %v2093_v22 = vmul.f32 %v5047_v37, %v3501_v24  ;;  %v5042_v39 = vstv %s4077_s20  ;;  %v4301_v37 = vld [vmem:[#allocation4 + $0x25] sm:$0xff] }
 0x1da   :  { %5575 = sst [smem:[#allocation45_spill]] %s4099_s0  ;;  %v5041_v4 = vstv %s4087_s4  ;;  %v1867_v10 = vadd.f32 %v1865_v32, %v1861_v29  ;;  %v1949_v27 = vadd.f32 %v1947_v7, %v1943_v6  ;;  %v2099_v44 = vmul.f32 %v5042_v39, %v3503_v19  ;;  %v4283_v39 = vld [vmem:[#allocation4 + $0x23] sm:$0xff] }
 0x1db   :  { %v5586_v28 = vstv %s5578_s21  ;;  %s5588_s8 = sld [smem:[#allocation55_spill]]  ;;  %v2089_v21 = vadd.f32 %v2087_v2, %v2083_v25  ;;  %v5040_v26 = vstv %s4099_s0  ;;  %v2105_v40 = vmul.f32 %v5041_v4, %v3545_v63  ;;  %v4186_v25 = vld [vmem:[#allocation4 + $0xa] sm:$0xff]  ;;  %v4276_v4 = vld [vmem:[#allocation4 + $0x2] sm:$0xff] }
 0x1dc   :  { %v2023_v51 = vmul.f32 %v5586_v28, %v3981_v3  ;;  %v5587_v14 = vstv %s5579_s11  ;;  %s4135_s29 = sld [smem:[#allocation9 + $0x4b]]  ;;  %1871 = vrot.lane.b32.xlu0 %v1867_v10, %s5597_s15  ;;  %v1955_v32 = vadd.f32 %v1953_v11, %v1949_v27  ;;  %v4176_v28 = vld [vmem:[#allocation4 + $0x9] sm:$0xff]  ;;  %v5602_v6 = vstv %s3943_s14  ;;  %5618 = vst [vmem:[#allocation133_spill] sm:$0xff] %v4276_v4 }
 0x1dd   :  { %v2029_v62 = vmul.f32 %v5587_v14, %v4010_v34  ;;  %s5590_s28 = sld [smem:[#allocation42_spill]]  ;;  %v2095_v12 = vadd.f32 %v2093_v22, %v2089_v21  ;;  %v5039_v7 = vstv %s4107_s24  ;;  %v2053_v2 = vmul.f32 %v5602_v6, %v4069_v41 }
 0x1de   :  { %s4143_s21 = sld [smem:[#allocation9 + $0x52]]  ;;  %v2025_v20 = vadd.f32 %v2023_v51, %v2019_v49  ;;  %v5038_v49 = vstv %s4118_s25  ;;  %v5599_v51 = vstv %s3910_s5  ;;  %v2117_v22 = vmul.f32 %v5039_v7, %v3981_v3 }
 0x1df   :  { %v5592_v56 = vstv %s5582_s30  ;;  %s4150_s11 = sld [smem:[#allocation9 + $0x59]]  ;;  %v2047_v63 = vmul.f32 %v5599_v51, %v4039_v1  ;;  %v2101_v14 = vadd.f32 %v2099_v44, %v2095_v12  ;;  %v2123_v27 = vmul.f32 %v5038_v49, %v4010_v34  ;;  %v4274_v49 = vld [vmem:[#allocation4 + $0x22] sm:$0xff] }
 0x1e0   :  { %v1959_v36 = vmul.f32 %v5592_v56, %v4069_v41  ;;  %s4155_s2 = sld [smem:[#allocation9 + $0x60]]  ;;  %v2031_v24 = vadd.f32 %v2029_v62, %v2025_v20  ;;  %v2111_v62 = vmul.f32 %v5040_v26, %v3979_v0  ;;  %v4196_v56 = vld [vmem:[#allocation4 + $0xb] sm:$0xff] }
 0x1e1   :  { %v5594_v17 = vstv %s5588_s8  ;;  %s4164_s3 = sld [smem:[#allocation9 + $0x6]]  ;;  %v2107_v10 = vadd.f32 %v2105_v40, %v2101_v14 }
 0x1e2   :  { %5589 = sst [smem:[#allocation49_spill]] %s4135_s29  ;;  %v2035_v33 = vmul.f32 %v5594_v17, %v4012_v52  ;;  %v1961_v11 = vadd.f32 %v1959_v36, %v1955_v32  ;;  %v5037_v17 = vstv %s4135_s29 }
 0x1e3   :  { %v5596_v15 = vstv %s5590_s28  ;;  %s5598_s28 = sld [smem:[#allocation98_spill]]  ;;  %v2113_v12 = vadd.f32 %v2111_v62, %v2107_v10  ;;  %v4235_v10 = vld [vmem:[#allocation4 + $0xd] sm:$0xff] }
 0x1e4   :  { %5591 = sst [smem:[#allocation50_spill]] %s4143_s21  ;;  %v2041_v13 = vmul.f32 %v5596_v15, %v4037_v18  ;;  %v2037_v19 = vadd.f32 %v2035_v33, %v2031_v24  ;;  %1965 = vrot.lane.b32.xlu0 %v1961_v11, %s5606_s17  ;;  %v5036_v15 = vstv %s4143_s21 }
 0x1e5   :  { %5593 = sst [smem:[#allocation46_spill]] %s4150_s11  ;;  %v2119_v6 = vadd.f32 %v2117_v22, %v2113_v12  ;;  %v2135_v62 = vmul.f32 %v5036_v15, %v4037_v18  ;;  %v4248_v12 = vld [vmem:[#allocation4 + $0xe] sm:$0xff] }
 0x1e6   :  { %5595 = sst [smem:[#allocation56_spill]] %s4155_s2  ;;  %v2043_v29 = vadd.f32 %v2041_v13, %v2037_v19  ;;  %v5034_v13 = vstv %s4150_s11  ;;  %v5033_v40 = vstv %s4155_s2  ;;  %v4219_v19 = vld [vmem:[#allocation4 + $0xc] sm:$0xff] }
 0x1e7   :  { %s4173_s20 = sld [smem:[#allocation9 + $0xd]] }
 0x1e8   :  { %s4178_s8 = sld [smem:[#allocation9 + $0x14]]  ;;  %v2049_v24 = vadd.f32 %v2047_v63, %v2043_v29  ;;  %v2129_v29 = vmul.f32 %v5037_v17, %v4012_v52  ;;  %v4272_v17 = vld [vmem:[#allocation4 + $0x21] sm:$0xff] }
 0x1e9   :  { %s5600_s15 = sld [smem:[#allocation99_spill]]  ;;  %v5603_v36 = vstv %s5598_s28 }
 0x1ea   :  { %s5601_s4 = sld [smem:[#allocation100_spill]]  ;;  %v1694_v20 = vmul.f32 %v5603_v36, %v4171_v46  ;;  %v2055_v63 = vadd.f32 %v2053_v2, %v2049_v24  ;;  %v2141_v36 = vmul.f32 %v5034_v13, %v4039_v1  ;;  %v2147_v2 = vmul.f32 %v5033_v40, %v4069_v41  ;;  %v4257_v40 = vld [vmem:[#allocation4 + $0x1] sm:$0xff] }
 0x1eb   :  { %s4188_s30 = sld [smem:[#allocation9 + $0x1b]]  ;;  %5615 = vst [vmem:[#allocation132_spill] sm:$0xff] %v4257_v40 }
 0x1ec   :  { %s5604_s0 = sld [smem:[#allocation101_spill]] }
 0x1ed   :  { %s4201_s5 = sld [smem:[#allocation9 + $0x22]]  ;;  %v5043_v24 = vstv %s4173_s20 }
 0x1ee   :  { %s4216_s28 = sld [smem:[#allocation9 + $0x29]]  ;;  %v5045_v13 = vstv %s4178_s8 }
 0x1ef   :  { %v5607_v33 = vstv %s5600_s15  ;;  %s5609_s17 = sld [smem:[#allocation102_spill]] }
 0x1f0   :  { %v1700_v21 = vmul.f32 %v5607_v33, %v4176_v28  ;;  %v5608_v44 = vstv %s5601_s4  ;;  %s4227_s4 = sld [smem:[#allocation9 + $0x30]] }
 0x1f1   :  { %v1706_v32 = vmul.f32 %v5608_v44, %v4186_v25  ;;  %s5612_s15 = sld [smem:[#allocation103_spill]]  ;;  %v2125_v44 = vadd.f32 %v2123_v27, %v2119_v6 }
 0x1f2   :  { %v1702_v11 = vadd.f32 %v1700_v21, %v1694_v20  ;;  %v5610_v51 = vstv %s5604_s0  ;;  %s5611_s0 = smov 124   ;;  %v5046_v21 = vstv %s4164_s3  ;;  %s4246_s11 = sld [smem:[#allocation9 + $0x37]] }
 0x1f3   :  { %5605 = sst [smem:[#allocation57_spill]] %s4201_s5  ;;  %v1712_v14 = vmul.f32 %v5610_v51, %v4196_v56  ;;  %2059 = vrot.lane.b32.xlu0 %v2055_v63, %s5611_s0  ;;  %v4252_v51 = vld [vmem:[#allocation4] sm:$0xff]  ;;  %v2131_v15 = vadd.f32 %v2129_v29, %v2125_v44  ;;  %v5620_v44 = vstv %s5519_s13 }
 0x1f4   :  { %v1708_v20 = vadd.f32 %v1706_v32, %v1702_v11  ;;  %v4250_v32 = vld [vmem:[#allocation4 + $0x20] sm:$0xff]  ;;  %5614 = vst [vmem:[#allocation131_spill] sm:$0xff] %v4252_v51  ;;  %v2163_v63 = vmul.f32 %v4252_v51, %v5046_v21  ;;  %s4262_s0 = sld [smem:[#allocation9 + $0x3e]] }
 0x1f5   :  { %v5613_v22 = vstv %s5609_s17  ;;  %s5616_s17 = sld [smem:[#allocation104_spill]]  ;;  %v4299_v21 = vld [vmem:[#allocation4 + $0x24] sm:$0xff] }
 0x1f6   :  { %v1718_v33 = vmul.f32 %v5613_v22, %v4219_v19  ;;  %v1714_v11 = vadd.f32 %v1712_v14, %v1708_v20  ;;  %v2169_v22 = vmul.f32 %v4257_v40, %v5043_v24  ;;  %v5049_v14 = vstv %s4188_s30  ;;  %s4270_s2 = sld [smem:[#allocation9 + $0x45]]  ;;  %v4328_v40 = vld [vmem:[#allocation4 + $0x5] sm:$0xff] }
 0x1f7   :  { %v5617_v27 = vstv %s5612_s15  ;;  %v5055_v20 = vstv %s4201_s5  ;;  %s4281_s15 = sld [smem:[#allocation9 + $0x4c]]  ;;  %v5060_v45 = vstv %s4227_s4  ;;  %5630 = vst [vmem:[#allocation136_spill] sm:$0xff] %v4328_v40 }
 0x1f8   :  { %v1724_v6 = vmul.f32 %v5617_v27, %v4235_v10  ;;  %v1720_v7 = vadd.f32 %v1718_v33, %v1714_v11  ;;  %v2171_v26 = vadd.f32 %v2169_v22, %v2163_v63  ;;  %v2175_v27 = vmul.f32 %v4276_v4, %v5045_v13  ;;  %v4291_v11 = vld [vmem:[#allocation4 + $0x3] sm:$0xff]  ;;  %s4297_s21 = sld [smem:[#allocation9 + $0x53]] }
 0x1f9   :  { %v1736_v33 = vmul.f32 %v5620_v44, %v4250_v32  ;;  %5621 = vst [vmem:[#allocation134_spill] sm:$0xff] %v4291_v11  ;;  %v2181_v63 = vmul.f32 %v4291_v11, %v5049_v14  ;;  %v2137_v13 = vadd.f32 %v2135_v62, %v2131_v15  ;;  %v4303_v44 = vld [vmem:[#allocation4 + $0x4] sm:$0xff]  ;;  %s4308_s13 = sld [smem:[#allocation9 + $0x5a]]  ;;  %v5623_v22 = vstv %s5520_s18 }
 0x1fa   :  { %v2177_v50 = vadd.f32 %v2175_v27, %v2171_v26  ;;  %5622 = vst [vmem:[#allocation135_spill] sm:$0xff] %v4303_v44  ;;  %v2187_v14 = vmul.f32 %v4303_v44, %v5055_v20  ;;  %v1742_v15 = vmul.f32 %v5623_v22, %v4272_v17  ;;  %v5624_v62 = vstv %s5530_s9  ;;  %s5627_s29 = sld [smem:[#allocation106_spill]] }
 0x1fb   :  { %v5619_v24 = vstv %s5616_s17  ;;  %v1748_v11 = vmul.f32 %v5624_v62, %v4274_v49  ;;  %v2143_v4 = vadd.f32 %v2141_v36, %v2137_v13  ;;  %v5625_v26 = vstv %s5534_s16  ;;  %s5626_s17 = sld [smem:[#allocation105_spill]]  ;;  %s5637_s16 = smov 123  }
 0x1fc   :  { %v1730_v29 = vmul.f32 %v5619_v24, %v4248_v12  ;;  %v1726_v24 = vadd.f32 %v1724_v6, %v1720_v7  ;;  %v1754_v6 = vmul.f32 %v5625_v26, %v4283_v39  ;;  %v2183_v27 = vadd.f32 %v2181_v63, %v2177_v50  ;;  %s4320_s5 = sld [smem:[#allocation9 + $0x61]]  ;;  %v4334_v26 = vld [vmem:[#allocation4 + $0x6] sm:$0xff] }
 0x1fd   :  { %v5628_v20 = vstv %s5541_s22  ;;  %v5629_v44 = vstv %s5546_s26  ;;  %v5631_v13 = vstv %s4216_s28  ;;  %s5632_s18 = sld [smem:[#allocation107_spill]]  ;;  %5634 = vst [vmem:[#allocation137_spill] sm:$0xff] %v4334_v26 }
 0x1fe   :  { %v1732_v7 = vadd.f32 %v1730_v29, %v1726_v24  ;;  %v1760_v22 = vmul.f32 %v5628_v20, %v4299_v21  ;;  %v1766_v62 = vmul.f32 %v5629_v44, %v4301_v37  ;;  %v2193_v36 = vmul.f32 %v4328_v40, %v5631_v13  ;;  %s5633_s9 = sld [smem:[#allocation110_spill]]  ;;  %v4339_v44 = vld [vmem:[#allocation4 + $0x26] sm:$0xff] }
 0x1ff   :  { %v2149_v24 = vadd.f32 %v2147_v2, %v2143_v4  ;;  %v2189_v63 = vadd.f32 %v2187_v14, %v2183_v27  ;;  %v2199_v20 = vmul.f32 %v4334_v26, %v5060_v45  ;;  %v5066_v45 = vstv %s4281_s15  ;;  %s5642_s22 = sld [smem:[#allocation28_spill]] }
 0x200   :  { %v1738_v50 = vadd.f32 %v1736_v33, %v1732_v7  ;;  %v5636_v4 = vstv %s5627_s29  ;;  %v5638_v7 = vstv %s4246_s11  ;;  %v5065_v61 = vstv %s4297_s21  ;;  %s5641_s29 = sld [smem:[#allocation111_spill]] }
 0x201   :  { %v5635_v13 = vstv %s5626_s17  ;;  %v1794_v2 = vmul.f32 %v5636_v4, %v4176_v28  ;;  %2153 = vrot.lane.b32.xlu0 %v2149_v24, %s5637_s16  ;;  %v2195_v33 = vadd.f32 %v2193_v36, %v2189_v63  ;;  %v2205_v27 = vmul.f32 %v5638_v7, %v3979_v0  ;;  %s5644_s26 = sld [smem:[#allocation29_spill]] }
 0x202   :  { %v1788_v29 = vmul.f32 %v5635_v13, %v4171_v46  ;;  %v1744_v14 = vadd.f32 %v1742_v15, %v1738_v50  ;;  %v5643_v15 = vstv %s5556_s6  ;;  %v5064_v0 = vstv %s4308_s13  ;;  %s5646_s17 = sld [smem:[#allocation35_spill]] }
 0x203   :  { %v5639_v13 = vstv %s5632_s18  ;;  %v1772_v36 = vmul.f32 %v5643_v15, %v4339_v44  ;;  %v2201_v50 = vadd.f32 %v2199_v20, %v2195_v33  ;;  %v5645_v63 = vstv %s4262_s0  ;;  %s5648_s18 = sld [smem:[#allocation117_spill]] }
 0x204   :  { %v1796_v51 = vadd.f32 %v1794_v2, %v1788_v29  ;;  %v1800_v26 = vmul.f32 %v5639_v13, %v4186_v25  ;;  %v5640_v40 = vstv %s5633_s9  ;;  %v1750_v24 = vadd.f32 %v1748_v11, %v1744_v14  ;;  %s5649_s9 = sld [smem:[#allocation118_spill]] }
 0x205   :  { %v1806_v4 = vmul.f32 %v5640_v40, %v4196_v56  ;;  %v2211_v7 = vmul.f32 %v5645_v63, %v3981_v3  ;;  %v5647_v29 = vstv %s4270_s2  ;;  %v2223_v13 = vmul.f32 %v5066_v45, %v4012_v52  ;;  %s5650_s6 = sld [smem:[#allocation36_spill]] }
 0x206   :  { %v2217_v2 = vmul.f32 %v5647_v29, %v4010_v34  ;;  %v1802_v40 = vadd.f32 %v1800_v26, %v1796_v51  ;;  %v1756_v11 = vadd.f32 %v1754_v6, %v1750_v24  ;;  %v2207_v14 = vadd.f32 %v2205_v27, %v2201_v50 }
 0x207   :  { %v2229_v20 = vmul.f32 %v5065_v61, %v4037_v18  ;;  %v5063_v33 = vstv %s4320_s5  ;;  %v2235_v3 = vmul.f32 %v5064_v0, %v4039_v1  ;;  %v5651_v63 = vstv %s5641_s29  ;;  %s5657_s29 = sld [smem:[#allocation16_spill]] }
 0x208   :  { %v1808_v15 = vadd.f32 %v1806_v4, %v1802_v40  ;;  %v1812_v34 = vmul.f32 %v5651_v63, %v4219_v19  ;;  %v5652_v52 = vstv %s5642_s22  ;;  %v1762_v6 = vadd.f32 %v1760_v22, %v1756_v11  ;;  %s5659_s22 = sld [smem:[#allocation19_spill]] }
 0x209   :  { %v1882_v51 = vmul.f32 %v5652_v52, %v4171_v46  ;;  %v2213_v26 = vadd.f32 %v2211_v7, %v2207_v14  ;;  %v5653_v27 = vstv %s5644_s26  ;;  %v5654_v24 = vstv %s5646_s17  ;;  %s5661_s26 = sld [smem:[#allocation26_spill]] }
 0x20a   :  { %v1888_v18 = vmul.f32 %v5653_v27, %v4176_v28  ;;  %v1894_v50 = vmul.f32 %v5654_v24, %v4186_v25  ;;  %v2241_v1 = vmul.f32 %v5063_v33, %v4069_v41  ;;  %v1814_v4 = vadd.f32 %v1812_v34, %v1808_v15  ;;  %s5664_s17 = sld [smem:[#allocation23_spill]] }
 0x20b   :  { %v5655_v29 = vstv %s5648_s18  ;;  %v5656_v63 = vstv %s5649_s9  ;;  %v1768_v7 = vadd.f32 %v1766_v62, %v1762_v6  ;;  %v2219_v11 = vadd.f32 %v2217_v2, %v2213_v26  ;;  %s5665_s18 = sld [smem:[#allocation20_spill]] }
 0x20c   :  { %v1818_v40 = vmul.f32 %v5655_v29, %v4235_v10  ;;  %v1824_v22 = vmul.f32 %v5656_v63, %v4248_v12  ;;  %v1890_v14 = vadd.f32 %v1888_v18, %v1882_v51  ;;  %v5658_v52 = vstv %s5650_s6  ;;  %s5673_s9 = sld [smem:[#allocation30_spill]] }
 0x20d   :  { %v1900_v27 = vmul.f32 %v5658_v52, %v4196_v56  ;;  %v5660_v41 = vstv %s5538_s27  ;;  %v5662_v34 = vstv %s5543_s10  ;;  %v5663_v33 = vstv %s5545_s1  ;;  %s5668_s27 = sld [smem:[#allocation33_spill]]  ;;  %s5672_s1 = smov 127  }
 0x20e   :  { %v1820_v24 = vadd.f32 %v1818_v40, %v1814_v4  ;;  %v1830_v15 = vmul.f32 %v5660_v41, %v4250_v32  ;;  %v1836_v29 = vmul.f32 %v5662_v34, %v4272_v17  ;;  %v1842_v63 = vmul.f32 %v5663_v33, %v4274_v49  ;;  %s5671_s10 = sld [smem:[#allocation17_spill]] }
 0x20f   :  { %v1774_v62 = vadd.f32 %v1772_v36, %v1768_v7  ;;  %v2225_v2 = vadd.f32 %v2223_v13, %v2219_v11  ;;  %v5666_v51 = vstv %s5549_s7  ;;  %v1896_v26 = vadd.f32 %v1894_v50, %v1890_v14  ;;  %s5674_s6 = sld [smem:[#allocation37_spill]] }
 0x210   :  { %v1848_v6 = vmul.f32 %v5666_v51, %v4283_v39  ;;  %v1826_v18 = vadd.f32 %v1824_v22, %v1820_v24  ;;  %v5667_v4 = vstv %s5552_s19  ;;  %v5669_v52 = vstv %s5564_s12  ;;  %s5677_s7 = sld [smem:[#allocation24_spill]] }
 0x211   :  { %v1854_v40 = vmul.f32 %v5667_v4, %v4299_v21  ;;  %v1860_v41 = vmul.f32 %v5669_v52, %v4301_v37  ;;  %v5670_v34 = vstv %s5657_s29  ;;  %1779 = vrot.lane.b32.xlu1 %v1774_v62, %s5672_s1  ;;  %v2231_v36 = vadd.f32 %v2229_v20, %v2225_v2  ;;  %s5680_s19 = sld [smem:[#allocation31_spill]] }
 0x212   :  { %v1906_v33 = vmul.f32 %v5670_v34, %v4219_v19  ;;  %v1902_v13 = vadd.f32 %v1900_v27, %v1896_v26  ;;  %v5675_v50 = vstv %s5659_s22  ;;  %v5676_v7 = vstv %s5661_s26  ;;  %s5682_s12 = sld [smem:[#allocation18_spill]] }
 0x213   :  { %v1976_v22 = vmul.f32 %v5675_v50, %v4171_v46  ;;  %v1982_v11 = vmul.f32 %v5676_v7, %v4176_v28  ;;  %v1832_v14 = vadd.f32 %v1830_v15, %v1826_v18  ;;  %v5678_v24 = vstv %s5566_s23  ;;  %s5683_s29 = sld [smem:[#allocation25_spill]] }
 0x214   :  { %v1866_v51 = vmul.f32 %v5678_v24, %v4339_v44  ;;  %v5679_v4 = vstv %s5664_s17  ;;  %v5681_v62 = vstv %s5665_s18  ;;  %v2237_v27 = vadd.f32 %v2235_v3, %v2231_v36  ;;  %s5685_s22 = sld [smem:[#allocation27_spill]] }
 0x215   :  { %v1912_v52 = vmul.f32 %v5679_v4, %v4235_v10  ;;  %v1988_v20 = vmul.f32 %v5681_v62, %v4186_v25  ;;  %v1908_v2 = vadd.f32 %v1906_v33, %v1902_v13  ;;  %v1984_v26 = vadd.f32 %v1982_v11, %v1976_v22  ;;  %s5687_s23 = sld [smem:[#allocation53_spill]] }
 0x216   :  { %v5684_v34 = vstv %s5668_s27  ;;  %v1838_v15 = vadd.f32 %v1836_v29, %v1832_v14  ;;  %v5686_v18 = vstv %s5671_s10  ;;  %v5688_v24 = vstv %s5673_s9  ;;  %s5690_s26 = sld [smem:[#allocation32_spill]]  ;;  %s5700_s9 = smov 122  }
 0x217   :  { %v1994_v50 = vmul.f32 %v5684_v34, %v4196_v56  ;;  %v1918_v7 = vmul.f32 %v5686_v18, %v4248_v12  ;;  %v1924_v4 = vmul.f32 %v5688_v24, %v4250_v32  ;;  %v5689_v0 = vstv %s5674_s6  ;;  %s5691_s17 = sld [smem:[#allocation54_spill]] }
 0x218   :  { %v1930_v62 = vmul.f32 %v5689_v0, %v4272_v17  ;;  %v2243_v3 = vadd.f32 %v2241_v1, %v2237_v27  ;;  %s5692_s18 = sld [smem:[#allocation38_spill]]  ;;  %v1914_v33 = vadd.f32 %v1912_v52, %v1908_v2  ;;  %v5693_v36 = vstv %s5677_s7 }
 0x219   :  { %v1936_v13 = vmul.f32 %v5693_v36, %v4274_v49  ;;  %v1990_v22 = vadd.f32 %v1988_v20, %v1984_v26  ;;  %s5694_s27 = sld [smem:[#allocation34_spill]]  ;;  %v1844_v29 = vadd.f32 %v1842_v63, %v1838_v15  ;;  %v5695_v11 = vstv %s5680_s19 }
 0x21a   :  { %s5696_s10 = sld [smem:[#allocation47_spill]]  ;;  %v1942_v14 = vmul.f32 %v5695_v11, %v4283_v39  ;;  %v5697_v34 = vstv %s5682_s12  ;;  %v5698_v24 = vstv %s5683_s29  ;;  %2247 = vrot.lane.b32.xlu0 %v2243_v3, %s5700_s9  ;;  %v1920_v1 = vadd.f32 %v1918_v7, %v1914_v33 }
 0x21b   :  { %v1948_v18 = vmul.f32 %v5697_v34, %v4299_v21  ;;  %s5699_s1 = sld [smem:[#allocation51_spill]]  ;;  %v1954_v0 = vmul.f32 %v5698_v24, %v4301_v37  ;;  %v1996_v52 = vadd.f32 %v1994_v50, %v1990_v22  ;;  %v5702_v20 = vstv %s5685_s22 }
 0x21c   :  { %s5701_s6 = sld [smem:[#allocation39_spill]]  ;;  %v2000_v27 = vmul.f32 %v5702_v20, %v4219_v19  ;;  %v5703_v63 = vstv %s5687_s23  ;;  %v1850_v26 = vadd.f32 %v1848_v6, %v1844_v29  ;;  %v5706_v15 = vstv %s5690_s26 }
 0x21d   :  { %s5704_s7 = sld [smem:[#allocation48_spill]]  ;;  %v2070_v2 = vmul.f32 %v5703_v63, %v4171_v46  ;;  %v1960_v36 = vmul.f32 %v5706_v15, %v4339_v44  ;;  %v5707_v11 = vstv %s5691_s17  ;;  %v1926_v50 = vadd.f32 %v1924_v4, %v1920_v1 }
 0x21e   :  { %s5705_s19 = sld [smem:[#allocation52_spill]]  ;;  %v2076_v34 = vmul.f32 %v5707_v11, %v4176_v28  ;;  %v5708_v3 = vstv %s5692_s18  ;;  %v2002_v33 = vadd.f32 %v2000_v27, %v1996_v52  ;;  %v1856_v6 = vadd.f32 %v1854_v40, %v1850_v26 }
 0x21f   :  { %s5709_s12 = sld [smem:[#allocation55_spill]]  ;;  %v2082_v7 = vmul.f32 %v5708_v3, %v4186_v25  ;;  %v5711_v22 = vstv %s5694_s27  ;;  %v1932_v3 = vadd.f32 %v1930_v62, %v1926_v50 }
 0x220   :  { %s5710_s29 = sld [smem:[#allocation42_spill]]  ;;  %v2006_v24 = vmul.f32 %v5711_v22, %v4235_v10  ;;  %v5712_v20 = vstv %s5696_s10  ;;  %v2078_v11 = vadd.f32 %v2076_v34, %v2070_v2  ;;  %v1862_v40 = vadd.f32 %v1860_v41, %v1856_v6 }
 0x221   :  { %v2012_v63 = vmul.f32 %v5712_v20, %v4248_v12  ;;  %v5713_v29 = vstv %s5699_s1  ;;  %s5714_s22 = sld [smem:[#allocation43_spill]]  ;;  %v1938_v34 = vadd.f32 %v1936_v13, %v1932_v3  ;;  %v5728_v3 = vstv %s3943_s14 }
 0x222   :  { %v2018_v15 = vmul.f32 %v5713_v29, %v4250_v32  ;;  %s5715_s23 = sld [smem:[#allocation44_spill]]  ;;  %v5716_v61 = vstv %s5701_s6  ;;  %v2008_v31 = vadd.f32 %v2006_v24, %v2002_v33  ;;  %v2084_v62 = vadd.f32 %v2082_v7, %v2078_v11 }
 0x223   :  { %v2088_v45 = vmul.f32 %v5716_v61, %v4196_v56  ;;  %v5717_v4 = vstv %s5704_s7  ;;  %s4500_s26 = sld [smem:[#allocation9]]  ;;  %v1868_v6 = vadd.f32 %v1866_v51, %v1862_v40  ;;  %v5726_v11 = vstv %s4173_s20 }
 0x224   :  { %v2024_v1 = vmul.f32 %v5717_v4, %v4272_v17  ;;  %v5718_v52 = vstv %s5705_s19  ;;  %s4508_s17 = sld [smem:[#allocation9 + $0x7]]  ;;  %v2014_v50 = vadd.f32 %v2012_v63, %v2008_v31  ;;  %v5724_v4 = vstv %s4164_s3  ;;  %s5730_s3 = smov 126  }
 0x225   :  { %v2030_v27 = vmul.f32 %v5718_v52, %v4274_v49  ;;  %v5719_v26 = vstv %s5709_s12  ;;  %s5722_s18 = sld [smem:[#allocation40_spill]]  ;;  %v2090_v29 = vadd.f32 %v2088_v45, %v2084_v62  ;;  %v2164_v7 = vmul.f32 %v5724_v4, %v4171_v46  ;;  %1873 = vrot.lane.b32.xlu1 %v1868_v6, %s5730_s3 }
 0x226   :  { %v2036_v22 = vmul.f32 %v5719_v26, %v4283_v39  ;;  %v5720_v2 = vstv %s5710_s29  ;;  %s4516_s27 = sld [smem:[#allocation9 + $0xe]]  ;;  %v2170_v31 = vmul.f32 %v5726_v11, %v4176_v28  ;;  %v1944_v13 = vadd.f32 %v1942_v14, %v1938_v34 }
 0x227   :  { %v2042_v61 = vmul.f32 %v5720_v2, %v4299_v21  ;;  %v5721_v33 = vstv %s5714_s22  ;;  %s5725_s10 = sld [smem:[#allocation41_spill]]  ;;  %v2020_v63 = vadd.f32 %v2018_v15, %v2014_v50  ;;  %v2054_v52 = vmul.f32 %v5728_v3, %v4339_v44  ;;  %s5751_s22 = smov 124  }
 0x228   :  { %v2048_v24 = vmul.f32 %v5721_v33, %v4301_v37  ;;  %v5723_v20 = vstv %s5715_s23  ;;  %s5727_s1 = sld [smem:[#allocation45_spill]]  ;;  %v5729_v51 = vstv %s4178_s8  ;;  %v2172_v62 = vadd.f32 %v2170_v31, %v2164_v7 }
 0x229   :  { %v2094_v41 = vmul.f32 %v5723_v20, %v4219_v19  ;;  %s4524_s6 = sld [smem:[#allocation9 + $0x15]]  ;;  %v2176_v45 = vmul.f32 %v5729_v51, %v4186_v25  ;;  %v5733_v14 = vstv %s4188_s30  ;;  %v1950_v34 = vadd.f32 %v1948_v18, %v1944_v13 }
 0x22a   :  { %s4532_s7 = sld [smem:[#allocation9 + $0x1c]]  ;;  %v2182_v15 = vmul.f32 %v5733_v14, %v4196_v56  ;;  %v2026_v50 = vadd.f32 %v2024_v1, %v2020_v63  ;;  %v5737_v3 = vstv %s4118_s25  ;;  %v5739_v51 = vstv %s4216_s28 }
 0x22b   :  { %s5731_s19 = sld [smem:[#allocation57_spill]]  ;;  %v2096_v40 = vadd.f32 %v2094_v41, %v2090_v29  ;;  %v5732_v26 = vstv %s5722_s18  ;;  %v5736_v41 = vstv %s4107_s24  ;;  %v2124_v7 = vmul.f32 %v5737_v3, %v4274_v49 }
 0x22c   :  { %v2100_v2 = vmul.f32 %v5732_v26, %v4235_v10  ;;  %v2118_v29 = vmul.f32 %v5736_v41, %v4272_v17  ;;  %v2178_v31 = vadd.f32 %v2176_v45, %v2172_v62  ;;  %s4553_s8 = sld [smem:[#allocation9 + $0x23]]  ;;  %v1956_v18 = vadd.f32 %v1954_v0, %v1950_v34 }
 0x22d   :  { %v5734_v33 = vstv %s5725_s10  ;;  %v2032_v1 = vadd.f32 %v2030_v27, %v2026_v50  ;;  %v2194_v26 = vmul.f32 %v5739_v51, %v4235_v10  ;;  %s4561_s14 = sld [smem:[#allocation9 + $0x2a]]  ;;  %v5740_v14 = vstv %s4227_s4 }
 0x22e   :  { %v2106_v20 = vmul.f32 %v5734_v33, %v4248_v12  ;;  %v5735_v4 = vstv %s5727_s1  ;;  %v2102_v11 = vadd.f32 %v2100_v2, %v2096_v40  ;;  %v2184_v2 = vadd.f32 %v2182_v15, %v2178_v31  ;;  %s4569_s24 = sld [smem:[#allocation9 + $0x31]] }
 0x22f   :  { %v2112_v6 = vmul.f32 %v5735_v4, %v4250_v32  ;;  %v2200_v33 = vmul.f32 %v5740_v14, %v4248_v12  ;;  %v5741_v45 = vstv %s4246_s11  ;;  %v1962_v27 = vadd.f32 %v1960_v36, %v1956_v18  ;;  %s5742_s30 = sld [smem:[#allocation49_spill]]  ;;  %s5743_s11 = smov 125  }
 0x230   :  { %v2108_v40 = vadd.f32 %v2106_v20, %v2102_v11  ;;  %v2206_v0 = vmul.f32 %v5741_v45, %v4250_v32  ;;  %v2038_v62 = vadd.f32 %v2036_v22, %v2032_v1  ;;  %v4572_v34 = vstv %s4500_s26  ;;  %s4577_s20 = sld [smem:[#allocation9 + $0x38]] }
 0x231   :  { %v5738_v13 = vstv %s5731_s19  ;;  %v4575_v50 = vstv %s4508_s17  ;;  %v552_v4 = vmul.f32 %v4572_v34, %v3125_v55  ;;  %1967 = vrot.lane.b32.xlu1 %v1962_v27, %s5743_s11  ;;  %v4585_v22 = vstv %s4516_s27  ;;  %s5744_s25 = sld [smem:[#allocation50_spill]] }
 0x232   :  { %v2188_v63 = vmul.f32 %v5738_v13, %v4219_v19  ;;  %v2114_v15 = vadd.f32 %v2112_v6, %v2108_v40  ;;  %v560_v11 = vmul.f32 %v4575_v50, %v3127_v47  ;;  %v2044_v36 = vadd.f32 %v2042_v61, %v2038_v62  ;;  %s5746_s28 = sld [smem:[#allocation46_spill]] }
 0x233   :  { %v4588_v41 = vstv %s4524_s6  ;;  %v4591_v3 = vstv %s4532_s7  ;;  %v568_v55 = vmul.f32 %v4585_v22, %v3162_v53  ;;  %v4603_v40 = vstv %s4553_s8  ;;  %s4605_s4 = sld [smem:[#allocation9 + $0x3f]] }
 0x234   :  { %v2190_v20 = vadd.f32 %v2188_v63, %v2184_v2  ;;  %v2120_v6 = vadd.f32 %v2118_v29, %v2114_v15  ;;  %v562_v18 = vadd.f32 %v560_v11, %v552_v4  ;;  %v2050_v47 = vadd.f32 %v2048_v24, %v2044_v36  ;;  %s5749_s12 = sld [smem:[#allocation56_spill]] }
 0x235   :  { %v5745_v1 = vstv %s5742_s30  ;;  %v576_v13 = vmul.f32 %v4588_v41, %v3164_v48  ;;  %v584_v63 = vmul.f32 %v4591_v3, %v3201_v43  ;;  %v5748_v14 = vstv %s4262_s0  ;;  %s4616_s29 = sld [smem:[#allocation9 + $0x46]] }
 0x236   :  { %v2196_v31 = vadd.f32 %v2194_v26, %v2190_v20  ;;  %v2130_v61 = vmul.f32 %v5745_v1, %v4283_v39  ;;  %v2126_v51 = vadd.f32 %v2124_v7, %v2120_v6  ;;  %v570_v26 = vadd.f32 %v568_v55, %v562_v18  ;;  %s2315_s0 = sld [smem:[#allocation9 + $0x54]] }
 0x237   :  { %v2056_v53 = vadd.f32 %v2054_v52, %v2050_v47  ;;  %v5747_v24 = vstv %s5744_s25  ;;  %v2212_v48 = vmul.f32 %v5748_v14, %v4272_v17  ;;  %v4614_v45 = vstv %s4561_s14 }
 0x238   :  { %v2202_v29 = vadd.f32 %v2200_v33, %v2196_v31  ;;  %v2136_v2 = vmul.f32 %v5747_v24, %v4299_v21  ;;  %v2132_v43 = vadd.f32 %v2130_v61, %v2126_v51  ;;  %v5750_v33 = vstv %s4270_s2  ;;  %s2314_s2 = sld [smem:[#allocation9 + $0x4d]] }
 0x239   :  { %v2218_v27 = vmul.f32 %v5750_v33, %v4274_v49  ;;  %v578_v62 = vadd.f32 %v576_v13, %v570_v26  ;;  %2061 = vrot.lane.b32.xlu1 %v2056_v53, %s5751_s22  ;;  %v5752_v52 = vstv %s5746_s28  ;;  %v592_v20 = vmul.f32 %v4603_v40, %v3203_v58 }
 0x23a   :  { %v2208_v7 = vadd.f32 %v2206_v0, %v2202_v29  ;;  %v2142_v15 = vmul.f32 %v5752_v52, %v4301_v37  ;;  %v4628_v4 = vstv %s4569_s24  ;;  %v4631_v11 = vstv %s4577_s20 }
 0x23b   :  { %v2138_v36 = vadd.f32 %v2136_v2, %v2132_v43  ;;  %v586_v0 = vadd.f32 %v584_v63, %v578_v62  ;;  %v600_v31 = vmul.f32 %v4614_v45, %v3235_v35  ;;  %v5753_v18 = vstv %s5749_s12 }
 0x23c   :  { %v2214_v6 = vadd.f32 %v2212_v48, %v2208_v7  ;;  %v2148_v55 = vmul.f32 %v5753_v18, %v4339_v44  ;;  %v5754_v47 = vstv %s4281_s15  ;;  %v608_v51 = vmul.f32 %v4628_v4, %v3669_v9  ;;  %v5758_v18 = vld [vmem:[#allocation122_spill] sm:$0xff] }
 0x23d   :  { %v2224_v1 = vmul.f32 %v5754_v47, %v4283_v39  ;;  %v2144_v58 = vadd.f32 %v2142_v15, %v2138_v36  ;;  %v594_v13 = vadd.f32 %v592_v20, %v586_v0  ;;  %v5755_v63 = vstv %s4297_s21  ;;  %s2316_s21 = sld [smem:[#allocation9 + $0x5b]] }
 0x23e   :  { %v2220_v61 = vadd.f32 %v2218_v27, %v2214_v6  ;;  %v2230_v35 = vmul.f32 %v5755_v63, %v4299_v21  ;;  %v616_v29 = vmul.f32 %v4631_v11, %v3705_v8  ;;  %v553_v26 = vmul.f32 %v4572_v34, %v3263_v42  ;;  %v749_v63 = vpop.permute.xlu0 %748 }
 0x23f   :  { %v561_v53 = vmul.f32 %v4575_v50, %v3265_v54  ;;  %v2150_v24 = vadd.f32 %v2148_v55, %v2144_v58  ;;  %v602_v14 = vadd.f32 %v600_v31, %v594_v13  ;;  %v569_v9 = vmul.f32 %v4585_v22, %v3294_v59 }
 0x240   :  { %v2226_v2 = vadd.f32 %v2224_v1, %v2220_v61  ;;  %v4655_v48 = vstv %s4605_s4  ;;  %v4658_v43 = vstv %s4616_s29  ;;  %v5756_v33 = vstv %s4308_s13  ;;  %v5759_v61 = vld [vmem:[#allocation123_spill] sm:$0xff] }
 0x241   :  { %v563_v7 = vadd.f32 %v561_v53, %v553_v26  ;;  %2155 = vrot.lane.b32.xlu1 %v2150_v24, %s5637_s16  ;;  %v2236_v42 = vmul.f32 %v5756_v33, %v4301_v37  ;;  %v610_v27 = vadd.f32 %v608_v51, %v602_v14  ;;  %v5757_v54 = vstv %s4320_s5  ;;  %v5760_v51 = vld [vmem:[#allocation125_spill] sm:$0xff]  ;;  %v5762_v53 = vld [vmem:[#allocation124_spill] sm:$0xff]  ;;  %s2647_s5 = smov [#allocation10]  }
 0x242   :  { %v2232_v8 = vadd.f32 %v2230_v35, %v2226_v2  ;;  %v2242_v62 = vmul.f32 %v5757_v54, %v4339_v44  ;;  %v577_v15 = vmul.f32 %v4588_v41, %v3296_v57  ;;  %v624_v36 = vmul.f32 %v4655_v48, %v3707_v16  ;;  %v5761_v35 = vld [vmem:[#allocation126_spill] sm:$0xff]  ;;  %s2275_s15 = sshll.u32 %s2647_s5, 4  ;;  %s2276_s15 = int_to_ptr.vmem [resolvable:$true] %s2275_s15 }
 0x243   :  { %v571_v52 = vadd.f32 %v569_v9, %v563_v7  ;;  %v618_v20 = vadd.f32 %v616_v29, %v610_v27  ;;  %v632_v6 = vmul.f32 %v4658_v43, %v3746_v30  ;;  %v4673_v0 = vstv %s2314_s2  ;;  %v843_v27 = vpop.permute.xlu0 %842  ;;  %s2600_s13 = scalar_lea.vmem %s2276_s15, 512  ;;  %p2605_p11 = scmp.lt.s32.totalorder %s2276_s15, %s2276_s15 }
 0x244   :  { %v2238_v59 = vadd.f32 %v2236_v42, %v2232_v8  ;;  %v585_v55 = vmul.f32 %v4591_v3, %v5758_v18  ;;  %v4677_v58 = vstv %s2315_s0  ;;  %v593_v13 = vmul.f32 %v4603_v40, %v5759_v61  ;;  %p2601_p10 = scmp.ne.s32.totalorder %s2276_s15, %s2600_s13  ;;  %p2606_p12 = scmp.lt.s32.totalorder %s2600_s13, %s2600_s13 }
 0x245   :  { %v579_v31 = vadd.f32 %v577_v15, %v571_v52  ;;  %v626_v1 = vadd.f32 %v624_v36, %v618_v20  ;;  %v640_v30 = vmul.f32 %v4673_v0, %v5760_v51  ;;  %v648_v29 = vmul.f32 %v4677_v58, %v5761_v35 }
 0x246   :  { %v2244_v47 = vadd.f32 %v2242_v62, %v2238_v59  ;;  %v601_v24 = vmul.f32 %v4614_v45, %v5762_v53  ;;  %v609_v2 = vmul.f32 %v4628_v4, %v3809_v23  ;;  %v617_v7 = vmul.f32 %v4631_v11, %v3839_v38  ;;  %v5763_v59 = vld [vmem:[#allocation127_spill] sm:$0xff]  ;;  %p2607_p13 = por %p2606_p12, %p2605_p11 }
 0x247   :  { %v587_v57 = vadd.f32 %v585_v55, %v579_v31  ;;  %v634_v16 = vadd.f32 %v632_v6, %v626_v1  ;;  %v1582_v8 = vmul.f32 %v4171_v46, %v4572_v34  ;;  %v1590_v33 = vmul.f32 %v4176_v28, %v4575_v50  ;;  %v937_v36 = vpop.permute.xlu0 %936 }
 0x248   :  { %2249 = vrot.lane.b32.xlu1 %v2244_v47, %s5700_s9  ;;  %v4696_v42 = vstv %s2316_s21  ;;  %v1598_v54 = vmul.f32 %v4186_v25, %v4585_v22  ;;  %v1606_v15 = vmul.f32 %v4196_v56, %v4588_v41  ;;  %v625_v46 = vmul.f32 %v4655_v48, %v3841_v60  ;;  %p2608_p0 = pnand %p2607_p13, %p2601_p10 }
 0x249   :  { %v595_v26 = vadd.f32 %v593_v13, %v587_v57  ;;  %v642_v14 = vadd.f32 %v640_v30, %v634_v16  ;;  %v1592_v23 = vadd.f32 %v1590_v33, %v1582_v8  ;;  %v656_v38 = vmul.f32 %v4696_v42, %v5763_v59  ;;  %v5764_v30 = vld [vmem:[#allocation128_spill] sm:$0xff]  ;;  %v5766_v33 = vld [vmem:[#allocation131_spill] sm:$0xff] }
 0x24a   :  { %v633_v6 = vmul.f32 %v4658_v43, %v3874_v5  ;;  %v1614_v55 = vmul.f32 %v4219_v19, %v4591_v3  ;;  %v1622_v1 = vmul.f32 %v4235_v10, %v4603_v40  ;;  %v1630_v60 = vmul.f32 %v4248_v12, %v4614_v45 }
 0x24b   :  { %v603_v9 = vadd.f32 %v601_v24, %v595_v26  ;;  %v650_v62 = vadd.f32 %v648_v29, %v642_v14  ;;  %v1600_v28 = vadd.f32 %v1598_v54, %v1592_v23  ;;  %v1031_v57 = vpop.permute.xlu0 %1030  ;;  %v1638_v5 = vmul.f32 %v4250_v32, %v4628_v4  ;;  %v5767_v54 = vld [vmem:[#allocation132_spill] sm:$0xff] }
 0x24c   :  { %v641_v35 = vmul.f32 %v4673_v0, %v5764_v30  ;;  %v1646_v10 = vmul.f32 %v4272_v17, %v4631_v11  ;;  %v1654_v12 = vmul.f32 %v4274_v49, %v4655_v48  ;;  %v1662_v23 = vmul.f32 %v4283_v39, %v4658_v43  ;;  %v5768_v49 = vld [vmem:[#allocation133_spill] sm:$0xff] }
 0x24d   :  { %v611_v52 = vadd.f32 %v609_v2, %v603_v9  ;;  %v658_v31 = vadd.f32 %v656_v38, %v650_v62  ;;  %v1608_v18 = vadd.f32 %v1606_v15, %v1600_v28  ;;  %v5765_v2 = vld [vmem:[#allocation129_spill] sm:$0xff]  ;;  %v1589_v62 = vmul.f32 %v5767_v54, %v4575_v50  ;;  %v5769_v38 = vld [vmem:[#allocation130_spill] sm:$0xff] }
 0x24e   :  { %v649_v14 = vmul.f32 %v4677_v58, %v5765_v2  ;;  %v1597_v59 = vmul.f32 %v5768_v49, %v4585_v22  ;;  %v1670_v28 = vmul.f32 %v4299_v21, %v4673_v0  ;;  %v1686_v22 = vmul.f32 %v4339_v44, %v4696_v42 }
 0x24f   :  { %v619_v20 = vadd.f32 %v617_v7, %v611_v52  ;;  %v754_v47 = vadd.f32 %v749_v63, %v658_v31  ;;  %v1616_v56 = vadd.f32 %v1614_v55, %v1608_v18  ;;  %v751_v63 = vpop.permute.xlu1 %750  ;;  %v1125_v29 = vpop.permute.xlu0 %1124 }
 0x251   :  { %v627_v25 = vadd.f32 %v625_v46, %v619_v20  ;;  %v848_v61 = vadd.f32 %v843_v27, %v754_v47  ;;  %v1624_v16 = vadd.f32 %v1622_v1, %v1616_v56  ;;  %v1581_v27 = vmul.f32 %v5766_v33, %v4572_v34  ;;  %v5770_v1 = vld [vmem:[#allocation134_spill] sm:$0xff] }
 0x252   :  { %v657_v20 = vmul.f32 %v4696_v42, %v5769_v38  ;;  %v1605_v21 = vmul.f32 %v5770_v1, %v4588_v41  ;;  %v5773_v41 = vld [vmem:[#allocation137_spill] sm:$0xff] }
 0x253   :  { %v635_v13 = vadd.f32 %v633_v6, %v627_v25  ;;  %v942_v51 = vadd.f32 %v937_v36, %v848_v61  ;;  %v1632_v19 = vadd.f32 %v1630_v60, %v1624_v16  ;;  %v845_v7 = vpop.permute.xlu1 %844  ;;  %v1219_v8 = vpop.permute.xlu0 %1218  ;;  %v1591_v6 = vadd.f32 %v1589_v62, %v1581_v27  ;;  %v2563_v33 = vld [vmem:[#allocation4 + $0x1a] sm:$0xff] }
 0x254   :  { %v1678_v25 = vmul.f32 %v4301_v37, %v4677_v58  ;;  %v1653_v27 = vmul.f32 %v2563_v33, %v4655_v48  ;;  %v2564_v62 = vld [vmem:[#allocation4 + $0x1b] sm:$0xff] }
 0x255   :  { %v1036_v26 = vadd.f32 %v1031_v57, %v942_v51  ;;  %v643_v53 = vadd.f32 %v641_v35, %v635_v13  ;;  %v1640_v24 = vadd.f32 %v1638_v5, %v1632_v19  ;;  %v1599_v18 = vadd.f32 %v1597_v59, %v1591_v6  ;;  %v5771_v13 = vld [vmem:[#allocation135_spill] sm:$0xff]  ;;  %v5772_v19 = vld [vmem:[#allocation136_spill] sm:$0xff]  ;;  %v2566_v48 = vld [vmem:[#allocation4 + $0x1d] sm:$0xff] }
 0x256   :  { %v1613_v16 = vmul.f32 %v5771_v13, %v4591_v3  ;;  %v1621_v44 = vmul.f32 %v5772_v19, %v4603_v40 }
 0x257   :  { %v1130_v32 = vadd.f32 %v1125_v29, %v1036_v26  ;;  %v1648_v9 = vadd.f32 %v1646_v10, %v1640_v24  ;;  %v651_v17 = vadd.f32 %v649_v14, %v643_v53  ;;  %v939_v36 = vpop.permute.xlu1 %938  ;;  %v1607_v61 = vadd.f32 %v1605_v21, %v1599_v18  ;;  %v1778_v54 = vpop.permute.xlu0 %1777 }
 0x258   :  { %v1629_v26 = vmul.f32 %v5773_v41, %v4614_v45 }
 0x259   :  { %v1224_v52 = vadd.f32 %v1219_v8, %v1130_v32  ;;  %v1656_v15 = vadd.f32 %v1654_v12, %v1648_v9  ;;  %v659_v50 = vadd.f32 %v657_v20, %v651_v17  ;;  %v1615_v30 = vadd.f32 %v1613_v16, %v1607_v61  ;;  %v2561_v12 = vld [vmem:[#allocation4 + $0x18] sm:$0xff] }
 0x25a   :  { %v1637_v2 = vmul.f32 %v2561_v12, %v4628_v4  ;;  %v1661_v17 = vmul.f32 %v2564_v62, %v4658_v43 }
 0x25b   :  { %v1226_v46 = vsub.f32 0.0, %v1224_v52  ;;  %v1664_v34 = vadd.f32 %v1662_v23, %v1656_v15  ;;  %v755_v55 = vadd.f32 %v751_v63, %v659_v50  ;;  %v1033_v56 = vpop.permute.xlu1 %1032  ;;  %v1623_v10 = vadd.f32 %v1621_v44, %v1615_v30  ;;  %v1872_v4 = vpop.permute.xlu0 %1871  ;;  %v2565_v15 = vld [vmem:[#allocation4 + $0x1c] sm:$0xff] }
 0x25c   :  { %v1669_v49 = vmul.f32 %v2565_v15, %v4673_v0 }
 0x25d   :  { %v1228_v31 = vmul.f32 1.442695, %v1226_v46  ;;  %v1672_v39 = vadd.f32 %v1670_v28, %v1664_v34  ;;  %v849_v57 = vadd.f32 %v845_v7, %v755_v55  ;;  %v1631_v32 = vadd.f32 %v1629_v26, %v1623_v10  ;;  %v2562_v7 = vld [vmem:[#allocation4 + $0x19] sm:$0xff] }
 0x25e   :  { %v1645_v40 = vmul.f32 %v2562_v7, %v4631_v11  ;;  %v1677_v46 = vmul.f32 %v2566_v48, %v4677_v58  ;;  %v2567_v34 = vld [vmem:[#allocation4 + $0x1e] sm:$0xff] }
 0x25f   :  { %2538 = vpow2.f32 %v1228_v31  ;;  %v1680_v47 = vadd.f32 %v1678_v25, %v1672_v39  ;;  %v943_v37 = vadd.f32 %v939_v36, %v849_v57  ;;  %v1127_v5 = vpop.permute.xlu1 %1126  ;;  %v1639_v9 = vadd.f32 %v1637_v2, %v1631_v32  ;;  %v1966_v20 = vpop.permute.xlu0 %1965 }
 0x260   :  { %v1685_v43 = vmul.f32 %v2567_v34, %v4696_v42 }
 0x261   :  { %v4742_v60 = vadd.f32 %v1686_v22, %v1680_v47  ;;  %v1037_v51 = vadd.f32 %v1033_v56, %v943_v37  ;;  %v1647_v8 = vadd.f32 %v1645_v40, %v1639_v9 }
 0x263   :  { %v1131_v35 = vadd.f32 %v1127_v5, %v1037_v51  ;;  %v1221_v63 = vpop.permute.xlu1 %1220  ;;  %v1655_v45 = vadd.f32 %v1653_v27, %v1647_v8 }
 0x265   :  { %v1225_v29 = vadd.f32 %v1221_v63, %v1131_v35  ;;  %v1663_v23 = vadd.f32 %v1661_v17, %v1655_v45  ;;  %v2060_v36 = vpop.permute.xlu0 %2059 }
 0x267   :  { %v1227_v53 = vsub.f32 0.0, %v1225_v29  ;;  %v1671_v38 = vadd.f32 %v1669_v49, %v1663_v23 }
 0x269   :  { %v1230_v14 = vmul.f32 1.442695, %v1227_v53  ;;  %v1679_v28 = vadd.f32 %v1677_v46, %v1671_v38 }
 0x26b   :  { %v1687_v6 = vadd.f32 %v1685_v43, %v1679_v28 }
 0x26c   :  { %v2539_v24 = vpop.eup %2538 }
 0x26d   :  { %v1232_v3 = vadd.f32 1.0, %v2539_v24  ;;  %v1783_v50 = vadd.f32 %v1778_v54, %v1687_v6 }
 0x26f   :  { %2540 = vrcp.f32 %v1232_v3  ;;  %v1877_v31 = vadd.f32 %v1872_v4, %v1783_v50 }
 0x270   :  { %2542 = vpow2.f32 %v1230_v14 }
 0x271   :  { %v1971_v39 = vadd.f32 %v1966_v20, %v1877_v31 }
 0x273   :  { %v2154_v0 = vpop.permute.xlu0 %2153  ;;  %v2065_v18 = vadd.f32 %v2060_v36, %v1971_v39 }
 0x275   :  { %v2159_v55 = vadd.f32 %v2154_v0, %v2065_v18 }
 0x27c   :  { %v2541_v52 = vpop.eup %2540 }
 0x27d   :  { %v2543_v59 = vpop.eup %2542  ;;  %1239 = vst.msk [vmem:[#allocation10] sm:$0xff] %vm1238_vm3, %v2541_v52 }
 0x27e   :  { %v1233_v11 = vadd.f32 1.0, %v2543_v59 }
 0x280   :  { %2544 = vrcp.f32 %v1233_v11 }
 0x283   :  { %v1780_v1 = vpop.permute.xlu1 %1779 }
 0x284   :  { %v1784_v16 = vadd.f32 %v1780_v1, %v4742_v60 }
 0x28c   :  { %v2248_v22 = vpop.permute.xlu0 %2247 }
 0x28d   :  { %v2545_v25 = vpop.eup %2544  ;;  %v2253_v47 = vadd.f32 %v2248_v22, %v2159_v55 }
 0x28e   :  { %1240 = vst.msk [vmem:[#allocation10 + $0x8] sm:$0xff] %vm1238_vm3, %v2545_v25 }
 0x28f   :  { %v2255_v56 = vsub.f32 0.0, %v2253_v47 }
 0x291   :  { %v2257_v58 = vmul.f32 1.442695, %v2255_v56 }
 0x293   :  { %2546 = vpow2.f32 %v2257_v58 }
 0x297   :  { %v1874_v21 = vpop.permute.xlu1 %1873 }
 0x298   :  { %v1878_v37 = vadd.f32 %v1874_v21, %v1784_v16 }
 0x2a0   :  { %v2547_v42 = vpop.eup %2546 }
 0x2a1   :  { %v2261_v61 = vadd.f32 1.0, %v2547_v42 }
 0x2a3   :  { %v1968_v57 = vpop.permute.xlu1 %1967  ;;  %2548 = vrcp.f32 %v2261_v61 }
 0x2a4   :  { %v1972_v51 = vadd.f32 %v1968_v57, %v1878_v37 }
 0x2ab   :  { %v2062_v13 = vpop.permute.xlu1 %2061 }
 0x2ac   :  { %v2066_v30 = vadd.f32 %v2062_v13, %v1972_v51 }
 0x2b0   :  { %v2549_v44 = vpop.eup %2548 }
 0x2b1   :  { %2268 = vst.msk [vmem:[#allocation10 + $0x10] sm:$0xff] %vm1238_vm3, %v2549_v44 }
 0x2b3   :  { %v2156_v5 = vpop.permute.xlu1 %2155 }
 0x2b4   :  { %v2160_v35 = vadd.f32 %v2156_v5, %v2066_v30 }
 0x2ba   :  { %v2250_v19 = vpop.permute.xlu1 %2249 }
 0x2bb   :  { %v2254_v63 = vadd.f32 %v2250_v19, %v2160_v35 }
 0x2bd   :  { %v2256_v29 = vsub.f32 0.0, %v2254_v63 }
 0x2bf   :  { %v2259_v10 = vmul.f32 1.442695, %v2256_v29 }
 0x2c1   :  { %2550 = vpow2.f32 %v2259_v10 }
 0x2ce   :  { %v2551_v41 = vpop.eup %2550 }
 0x2cf   :  { %v2262_v26 = vadd.f32 1.0, %v2551_v41 }
 0x2d1   :  { %2552 = vrcp.f32 %v2262_v26 }
 0x2de   :  { %v2553_v60 = vpop.eup %2552 }
 0x2df   :  { %2269 = vst.msk [vmem:[#allocation10 + $0x18] sm:$0xff] %vm1238_vm3, %v2553_v60 }
 0x2e0   :  { %2611 = shalt.err (!%p2608_p0)
}
 0x2e1   :  { %s5774_s16 = smov 8   ;;  %s5775_s9 = smov 128  }
 0x2e2   :  { %s5776_s17 = sld [smem:[#allocation138_spill]] }
 0x2e8   :  { %2281 = dma.vmem_to_hbm [thread:$0]  %s2276_s15, 512, %s5776_s17, [#allocation7], %s5775_s9, %s5775_s9, %s5774_s16  }
 0x2e9   :  { %2624 = dma.done.wait [#allocation7], 512  }
 0x2ea   :  { %2625 = vsyncadd [#allocation7], 4294966784 }
 0x2eb   :  { %2285 = vsyncpa [#allocation6], 1 }
 0x2ec   :  { %2286 = vsyncpa [#allocation7], 1 }
 0x2ed   :  { %2287 = vsyncpa [#allocation8], 1 }

</bundles_post_ra>
